<compile_context>
chip_gen: v5e
topology: v5e:2x2
jax: 0.10.0
libtpu: 0.0.40
codegen_flags: <defaults>
</compile_context>

<pallas_src>
import functools
import math

import jax
import jax.numpy as jnp
from jax import lax
from jax.experimental import pallas as pl
from jax.experimental.pallas import tpu as pltpu


# ----------------------------------------------------------------------------
# Fused forward-pass kernel (one grid step == one chunk of the batch)
# ----------------------------------------------------------------------------
def _net_kernel(vm_ref, pm_ref,                      # [Bc*Lv, vm_cov], [Bc*Lp, pm_cov]
                vm_w_ref, pm_w_ref,                  # [vm_cov, d], [pm_cov, d]
                pos_ref,                             # [Lp, d]
                glob_ref,                            # [8, d]
                enc_aw_ref,                          # [n_enc, d, 4d]  (wq|wk|wv|wo)
                enc_w1_ref, enc_w2_ref,              # [n_enc, d, dff], [n_enc, dff, d]
                enc_vec_ref,                         # [n_enc, 8, 128] bias/LN rows
                dec_sw_ref, dec_cw_ref,              # [n_dec, d, 4d] self / cross
                dec_w1_ref, dec_w2_ref,              # [n_dec, d, dff], [n_dec, dff, d]
                dec_vec_ref,                         # [n_dec, 12, 128]
                o_ref,                               # [1, Bc, 1]
                *, Bc, Lv, Lp, H, d, dff, n_enc, n_dec):
    f32 = jnp.float32
    dh = d // H
    scale = 1.0 / math.sqrt(dh)

    def erf(x):
        # Abramowitz & Stegun 7.1.26 rational approximation (|err| <= 1.5e-7,
        # i.e. f32-exact) so exact-erf GELU stays fused in-kernel.
        a1, a2, a3, a4, a5 = (0.254829592, -0.284496736, 1.421413741,
                              -1.453152027, 1.061405429)
        pp = 0.3275911
        ax = jnp.abs(x)
        t = pl.reciprocal(1.0 + pp * ax, approx=False)   # EUP, not a VPU divide
        poly = ((((a5 * t + a4) * t + a3) * t + a2) * t + a1) * t
        y = 1.0 - poly * jnp.exp(-ax * ax)
        return jnp.where(x >= 0.0, y, -y)

    def gelu(x):
        return 0.5 * x * (1.0 + erf(x * (1.0 / math.sqrt(2.0))))

    def layer_norm(x, g, b):
        mu = jnp.mean(x, axis=-1, keepdims=True)
        var = jnp.mean(jnp.square(x - mu), axis=-1, keepdims=True)
        return (x - mu) * lax.rsqrt(var + 1e-5) * g + b

    def attn_core(q, k, v, w_o, b_o, Lq, Lk):
        # q: [Bc*Lq, d]; k, v: [Bc*Lk, d] with heads in lane blocks (PyTorch order).
        # Per-(batch, head) scores stacked along sublanes -> ONE softmax issue.
        s_blocks = []
        for b in range(Bc):
            for h in range(H):
                qh = q[b * Lq:(b + 1) * Lq, h * dh:(h + 1) * dh]
                kh = k[b * Lk:(b + 1) * Lk, h * dh:(h + 1) * dh]
                s_blocks.append(lax.dot_general(
                    qh, kh, (((1,), (1,)), ((), ())),
                    preferred_element_type=f32))
        s = s_blocks[0] if len(s_blocks) == 1 else jnp.concatenate(s_blocks, axis=0)
        s = s * scale                                     # [Bc*H*Lq, Lk]
        s = s - jnp.max(s, axis=-1, keepdims=True)
        p = jnp.exp(s)
        p = p * pl.reciprocal(jnp.sum(p, axis=-1, keepdims=True), approx=False)
        ctx_rows = []
        for b in range(Bc):
            heads = []
            for h in range(H):
                r0 = (b * H + h) * Lq
                ph = p[r0:r0 + Lq, :]
                vh = v[b * Lk:(b + 1) * Lk, h * dh:(h + 1) * dh]
                heads.append(jnp.dot(ph, vh, preferred_element_type=f32))
            ctx_rows.append(jnp.concatenate(heads, axis=-1))   # [Lq, d] lane concat
        ctx = ctx_rows[0] if Bc == 1 else jnp.concatenate(ctx_rows, axis=0)
        # single fused output projection with the original Wo
        return jnp.dot(ctx, w_o, preferred_element_type=f32) + b_o

    glob = glob_ref[...]                               # [8, d]

    # ---- input encoders (+ learned positional embedding on the pm/src side) ----
    tgt = jnp.dot(vm_ref[...], vm_w_ref[...], preferred_element_type=f32) + glob[0:1, :]
    pos = pos_ref[...]
    if Bc > 1:
        pos = jnp.concatenate([pos] * Bc, axis=0)      # tile across folded batch
    src = (jnp.dot(pm_ref[...], pm_w_ref[...], preferred_element_type=f32)
           + glob[1:2, :] + pos)

    # ---- encoder stack (post-LN, GELU FFN; dropout = identity in eval) ----
    mem = src                                          # [Bc*Lp, d]
    for l in range(n_enc):
        w = enc_aw_ref[l]                              # [d, 4d]
        vec = enc_vec_ref[l]                           # [8, 128]
        qkv = (jnp.dot(mem, w[:, 0:3 * d], preferred_element_type=f32)
               + vec[0:1, 0:3 * d])                    # fused QKV, one matmul
        a = attn_core(qkv[:, 0:d], qkv[:, d:2 * d], qkv[:, 2 * d:3 * d],
                      w[:, 3 * d:4 * d], vec[1:2, 0:d], Lp, Lp)
        mem = layer_norm(mem + a, vec[4:5, 0:d], vec[5:6, 0:d])
        h1 = gelu(jnp.dot(mem, enc_w1_ref[l], preferred_element_type=f32)
                  + vec[2:3, 0:dff])
        f = jnp.dot(h1, enc_w2_ref[l], preferred_element_type=f32) + vec[3:4, 0:d]
        mem = layer_norm(mem + f, vec[6:7, 0:d], vec[7:8, 0:d])
    mem = layer_norm(mem, glob[2:3, :], glob[3:4, :])

    # ---- decoder stack ----
    out = tgt                                          # [Bc*Lv, d]
    for l in range(n_dec):
        vec = dec_vec_ref[l]                           # [12, 128]
        # self-attention (fused QKV)
        sw = dec_sw_ref[l]
        qkv = (jnp.dot(out, sw[:, 0:3 * d], preferred_element_type=f32)
               + vec[0:1, 0:3 * d])
        a = attn_core(qkv[:, 0:d], qkv[:, d:2 * d], qkv[:, 2 * d:3 * d],
                      sw[:, 3 * d:4 * d], vec[1:2, 0:d], Lv, Lv)
        out = layer_norm(out + a, vec[6:7, 0:d], vec[7:8, 0:d])
        # cross-attention (q from decoder, fused KV from encoder memory)
        cw = dec_cw_ref[l]
        q = jnp.dot(out, cw[:, 0:d], preferred_element_type=f32) + vec[2:3, 0:d]
        kv = (jnp.dot(mem, cw[:, d:3 * d], preferred_element_type=f32)
              + vec[2:3, d:3 * d])
        a = attn_core(q, kv[:, 0:d], kv[:, d:2 * d],
                      cw[:, 3 * d:4 * d], vec[3:4, 0:d], Lv, Lp)
        out = layer_norm(out + a, vec[8:9, 0:d], vec[9:10, 0:d])
        # FFN
        h1 = gelu(jnp.dot(out, dec_w1_ref[l], preferred_element_type=f32)
                  + vec[4:5, 0:dff])
        f = jnp.dot(h1, dec_w2_ref[l], preferred_element_type=f32) + vec[5:6, 0:d]
        out = layer_norm(out + f, vec[10:11, 0:d], vec[11:12, 0:d])
    out = layer_norm(out, glob[4:5, :], glob[5:6, :])

    # ---- head: decoder position 0 of each batch element -> Linear(d, 1) ----
    rows = [out[b * Lv:b * Lv + 1, :] for b in range(Bc)]
    out0 = rows[0] if Bc == 1 else jnp.concatenate(rows, axis=0)   # [Bc, d]
    score = (jnp.sum(out0 * glob[6:7, :], axis=-1, keepdims=True)
             + glob[7:8, 0:1])                                     # [Bc, 1]
    o_ref[...] = score.reshape(1, Bc, 1)


# ----------------------------------------------------------------------------
# Host-side parameter packing into a handful of VMEM slabs
# ----------------------------------------------------------------------------
_SLAB_ORDER = ("vm_w", "pm_w", "pos_emb", "glob",
               "enc_attn_w", "enc_ffn_w1", "enc_ffn_w2", "enc_vec",
               "dec_self_w", "dec_cross_w", "dec_ffn_w1", "dec_ffn_w2", "dec_vec")


def _prepare_params(params, cfg):
    # NOTE: weights use a [k_in, k_out] convention matching the in-file reference.
    # TODO(synk): if loading real PyTorch nn.MultiheadAttention / nn.Linear
    # checkpoints, transpose in_proj/out_proj weights and verify QKV packing order.
    d = cfg["d_hidden"]

    def row128(v):
        v = jnp.asarray(v, jnp.float32).reshape(-1)
        return jnp.pad(v, (0, 128 - v.shape[0]))

    def attn_w(p):        # [d, 4d] = wq | wk | wv | wo  (lane-concatenated)
        return jnp.concatenate([p["wq"], p["wk"], p["wv"], p["wo"]], axis=1)

    def attn_bqkv(p):     # [3d]
        return jnp.concatenate([p["bq"], p["bk"], p["bv"]], axis=0)

    enc_aw, enc_w1, enc_w2, enc_vec = [], [], [], []
    for lp in params["enc_layers"]:
        enc_aw.append(attn_w(lp["self"]))
        enc_w1.append(lp["w1"])
        enc_w2.append(lp["w2"])
        enc_vec.append(jnp.stack([
            row128(attn_bqkv(lp["self"])), row128(lp["self"]["bo"]),
            row128(lp["b1"]), row128(lp["b2"]),
            row128(lp["ln1_g"]), row128(lp["ln1_b"]),
            row128(lp["ln2_g"]), row128(lp["ln2_b"])]))

    dec_sw, dec_cw, dec_w1, dec_w2, dec_vec = [], [], [], [], []
    for lp in params["dec_layers"]:
        dec_sw.append(attn_w(lp["self"]))
        dec_cw.append(attn_w(lp["cross"]))
        dec_w1.append(lp["w1"])
        dec_w2.append(lp["w2"])
        dec_vec.append(jnp.stack([
            row128(attn_bqkv(lp["self"])), row128(lp["self"]["bo"]),
            row128(attn_bqkv(lp["cross"])), row128(lp["cross"]["bo"]),
            row128(lp["b1"]), row128(lp["b2"]),
            row128(lp["ln1_g"]), row128(lp["ln1_b"]),
            row128(lp["ln2_g"]), row128(lp["ln2_b"]),
            row128(lp["ln3_g"]), row128(lp["ln3_b"])]))

    glob = jnp.stack([
        params["vm_b"], params["pm_b"],
        params["enc_norm_g"], params["enc_norm_b"],
        params["dec_norm_g"], params["dec_norm_b"],
        params["out_w"].reshape(-1),
        jnp.full((d,), params["out_b"][0], jnp.float32)])          # [8, d]

    return dict(
        vm_w=params["vm_w"], pm_w=params["pm_w"], pos_emb=params["pos_emb"],
        glob=glob,
        enc_attn_w=jnp.stack(enc_aw), enc_ffn_w1=jnp.stack(enc_w1),
        enc_ffn_w2=jnp.stack(enc_w2), enc_vec=jnp.stack(enc_vec),
        dec_self_w=jnp.stack(dec_sw), dec_cross_w=jnp.stack(dec_cw),
        dec_ffn_w1=jnp.stack(dec_w1), dec_ffn_w2=jnp.stack(dec_w2),
        dec_vec=jnp.stack(dec_vec))


def _default_batch_chunks(batch_size):
    # Multi-TensorCore chips (v7x; also v4/v5p megacore) want a >=2-wide parallel
    # grid axis; single-TC chips (v5e/v6e) do best with the batch fully folded.
    try:
        kind = jax.devices()[0].device_kind.lower()
    except Exception:
        kind = ""
    multi_tc = ("v7" in kind) or ("v4" in kind) or ("v5p" in kind)
    n = 2 if multi_tc else 1
    while n > 1 and batch_size % n:
        n -= 1
    return max(n, 1)


def _cost_estimate(cfg, slab_arrays):
    B, Lv, Lp = cfg["batch_size"], cfg["num_vm"], cfg["num_pm"]
    d, dff, H, n = cfg["d_hidden"], cfg["d_ff"], cfg["num_head"], cfg["transformer_blocks"]
    mha_self = lambda L: 2 * (L * d * 3 * d + 2 * L * L * d + L * d * d)
    mha_cross = 2 * (Lv * d * d + Lp * d * 2 * d + 2 * Lv * Lp * d + Lv * d * d)
    ffn = lambda L: 4 * L * d * dff
    flops = B * (2 * (Lv * cfg["vm_cov"] * d + Lp * cfg["pm_cov"] * d)
                 + n * (mha_self(Lp) + ffn(Lp))
                 + n * (mha_self(Lv) + mha_cross + ffn(Lv)) + 2 * d)
    trans = B * (n * H * (Lp * Lp + Lv * Lv + Lv * Lp) + n * (Lp + Lv) * dff)
    bytes_acc = (sum(int(a.size) * 4 for a in slab_arrays)
                 + B * (Lv * cfg["vm_cov"] + Lp * cfg["pm_cov"] + 1) * 4)
    return pl.CostEstimate(flops=int(flops), transcendentals=int(trans),
                           bytes_accessed=int(bytes_acc))


def build_forward(params, cfg):
    B, Lv, Lp = cfg["batch_size"], cfg["num_vm"], cfg["num_pm"]
    d, dff, H = cfg["d_hidden"], cfg["d_ff"], cfg["num_head"]
    n_layers = cfg["transformer_blocks"]

    n_chunks = cfg.get("batch_chunks") or _default_batch_chunks(B)
    if B % n_chunks:
        n_chunks = 1
    Bc = B // n_chunks

    slabs = _prepare_params(params, cfg)
    slab_arrays = [slabs[k] for k in _SLAB_ORDER]

    kernel = functools.partial(
        _net_kernel, Bc=Bc, Lv=Lv, Lp=Lp, H=H, d=d, dff=dff,
        n_enc=n_layers, n_dec=n_layers)

    def const_spec(a):
        nd = a.ndim
        return pl.BlockSpec(a.shape, lambda i, _nd=nd: (0,) * _nd)

    in_specs = ([pl.BlockSpec((Bc * Lv, cfg["vm_cov"]), lambda i: (i, 0)),
                 pl.BlockSpec((Bc * Lp, cfg["pm_cov"]), lambda i: (i, 0))]
                + [const_spec(a) for a in slab_arrays])

    fwd = pl.pallas_call(
        kernel,
        out_shape=jax.ShapeDtypeStruct((n_chunks, Bc, 1), jnp.float32),
        grid=(n_chunks,),
        in_specs=in_specs,
        out_specs=pl.BlockSpec((1, Bc, 1), lambda i: (i, 0, 0)),
        compiler_params=pltpu.CompilerParams(dimension_semantics=("parallel",)),
        cost_estimate=_cost_estimate(cfg, slab_arrays),
    )

    @jax.jit
    def forward(vm_states, pm_states):
        vm2 = vm_states.astype(jnp.float32).reshape(B * Lv, cfg["vm_cov"])
        pm2 = pm_states.astype(jnp.float32).reshape(B * Lp, cfg["pm_cov"])
        out = fwd(vm2, pm2, *slab_arrays)
        return out.reshape(B, 1)

    return forward


# ----------------------------------------------------------------------------
# Pure-JAX reference (mirrors the PyTorch module exactly) for a sanity check
# ----------------------------------------------------------------------------
def reference_forward(params, vm_states, pm_states, cfg):
    H, d = cfg["num_head"], cfg["d_hidden"]
    dh = d // H

    def lin(x, w, b):
        return jnp.einsum("...k,kn->...n", x, w) + b

    def ln(x, g, b):
        mu = jnp.mean(x, axis=-1, keepdims=True)
        var = jnp.mean(jnp.square(x - mu), axis=-1, keepdims=True)
        return (x - mu) * lax.rsqrt(var + 1e-5) * g + b

    def mha(xq, xkv, p):
        B, Lq, _ = xq.shape
        Lk = xkv.shape[1]
        def heads(x, L):
            return x.reshape(B, L, H, dh).transpose(0, 2, 1, 3)
        q = heads(lin(xq, p["wq"], p["bq"]), Lq)
        k = heads(lin(xkv, p["wk"], p["bk"]), Lk)
        v = heads(lin(xkv, p["wv"], p["bv"]), Lk)
        s = jnp.einsum("bhqd,bhkd->bhqk", q, k) * (1.0 / math.sqrt(dh))
        a = jax.nn.softmax(s, axis=-1)
        o = jnp.einsum("bhqk,bhkd->bhqd", a, v).transpose(0, 2, 1, 3).reshape(B, Lq, d)
        return lin(o, p["wo"], p["bo"])

    def ffn(x, lp):
        h = jax.nn.gelu(lin(x, lp["w1"], lp["b1"]), approximate=False)
        return lin(h, lp["w2"], lp["b2"])

    src = lin(pm_states, params["pm_w"], params["pm_b"]) + params["pos_emb"][None]
    tgt = lin(vm_states, params["vm_w"], params["vm_b"])

    mem = src
    for lp in params["enc_layers"]:
        mem = ln(mem + mha(mem, mem, lp["self"]), lp["ln1_g"], lp["ln1_b"])
        mem = ln(mem + ffn(mem, lp), lp["ln2_g"], lp["ln2_b"])
    mem = ln(mem, params["enc_norm_g"], params["enc_norm_b"])

    out = tgt
    for lp in params["dec_layers"]:
        out = ln(out + mha(out, out, lp["self"]), lp["ln1_g"], lp["ln1_b"])
        out = ln(out + mha(out, mem, lp["cross"]), lp["ln2_g"], lp["ln2_b"])
        out = ln(out + ffn(out, lp), lp["ln3_g"], lp["ln3_b"])
    out = ln(out, params["dec_norm_g"], params["dec_norm_b"])

    return lin(out[:, 0], params["out_w"], params["out_b"])


# ----------------------------------------------------------------------------
# Deterministic parameter construction (synthetic init, not a checkpoint)
# ----------------------------------------------------------------------------
def _dense_init(key, k_in, k_out, scale=0.05):
    kw, kb = jax.random.split(key)
    w = jax.random.normal(kw, (k_in, k_out), jnp.float32) * scale
    b = jax.random.normal(kb, (k_out,), jnp.float32) * scale
    return w, b


def _mha_init(key, d):
    ks = jax.random.split(key, 4)
    wq, bq = _dense_init(ks[0], d, d)
    wk, bk = _dense_init(ks[1], d, d)
    wv, bv = _dense_init(ks[2], d, d)
    wo, bo = _dense_init(ks[3], d, d)
    return dict(wq=wq, bq=bq, wk=wk, bk=bk, wv=wv, bv=bv, wo=wo, bo=bo)


def _enc_layer_init(key, d, d_ff):
    ks = jax.random.split(key, 3)
    w1, b1 = _dense_init(ks[1], d, d_ff)
    w2, b2 = _dense_init(ks[2], d_ff, d)
    return dict(self=_mha_init(ks[0], d), w1=w1, b1=b1, w2=w2, b2=b2,
                ln1_g=jnp.ones((d,), jnp.float32), ln1_b=jnp.zeros((d,), jnp.float32),
                ln2_g=jnp.ones((d,), jnp.float32), ln2_b=jnp.zeros((d,), jnp.float32))


def _dec_layer_init(key, d, d_ff):
    ks = jax.random.split(key, 4)
    w1, b1 = _dense_init(ks[2], d, d_ff)
    w2, b2 = _dense_init(ks[3], d_ff, d)
    return dict(self=_mha_init(ks[0], d), cross=_mha_init(ks[1], d),
                w1=w1, b1=b1, w2=w2, b2=b2,
                ln1_g=jnp.ones((d,), jnp.float32), ln1_b=jnp.zeros((d,), jnp.float32),
                ln2_g=jnp.ones((d,), jnp.float32), ln2_b=jnp.zeros((d,), jnp.float32),
                ln3_g=jnp.ones((d,), jnp.float32), ln3_b=jnp.zeros((d,), jnp.float32))


def init_params(key, cfg):
    d = cfg["d_hidden"]
    ks = jax.random.split(key, 8)
    vm_w, vm_b = _dense_init(ks[0], cfg["vm_cov"], d)
    pm_w, pm_b = _dense_init(ks[1], cfg["pm_cov"], d)
    pos_emb = jax.random.normal(ks[2], (cfg["num_pm"], d), jnp.float32) * 0.05
    enc_keys = jax.random.split(ks[3], cfg["transformer_blocks"])
    dec_keys = jax.random.split(ks[4], cfg["transformer_blocks"])
    out_w, out_b = _dense_init(ks[5], d, 1)   # output_categorical=False -> Linear(d, 1)
    return dict(
        vm_w=vm_w, vm_b=vm_b, pm_w=pm_w, pm_b=pm_b, pos_emb=pos_emb,
        enc_layers=[_enc_layer_init(k, d, cfg["d_ff"]) for k in enc_keys],
        dec_layers=[_dec_layer_init(k, d, cfg["d_ff"]) for k in dec_keys],
        enc_norm_g=jnp.ones((d,), jnp.float32), enc_norm_b=jnp.zeros((d,), jnp.float32),
        dec_norm_g=jnp.ones((d,), jnp.float32), dec_norm_b=jnp.zeros((d,), jnp.float32),
        out_w=out_w, out_b=out_b,
    )


# ----------------------------------------------------------------------------
if __name__ == "__main__":
    cfg = dict(
        batch_size=2,
        num_pm=8,            # seq_length (encoder / source side)
        num_vm=8,            # decoder / target side
        pm_cov=6,
        vm_cov=5,
        d_hidden=32,
        num_head=4,
        transformer_blocks=2,
        d_ff=64,
    )

    root = jax.random.PRNGKey(0)
    k_par, k_vm, k_pm = jax.random.split(root, 3)
    params = init_params(k_par, cfg)

    vm_states = jax.random.normal(
        k_vm, (cfg["batch_size"], cfg["num_vm"], cfg["vm_cov"]), jnp.float32)
    pm_states = jax.random.normal(
        k_pm, (cfg["batch_size"], cfg["num_pm"], cfg["pm_cov"]), jnp.float32)

    forward = build_forward(params, cfg)
    score = jax.block_until_ready(forward(vm_states, pm_states))   # [batch_size, 1]

    assert score.shape == (cfg["batch_size"], 1)
    assert bool(jnp.all(jnp.isfinite(score)))

    ref = jax.block_until_ready(reference_forward(params, vm_states, pm_states, cfg))
    max_err = float(jnp.max(jnp.abs(score - ref)))
    assert max_err < 1e-3, f"mismatch vs reference: {max_err}"

    print("KERNEL_OK")
</pallas_src>

<mosaic_0001>
module attributes {stable_mosaic.version = 11 : i64} {
  func.func @_net_kernel(%arg0: i32, %arg1: memref<16x5xf32, #tpu.memory_space<vmem>>, %arg2: memref<16x6xf32, #tpu.memory_space<vmem>>, %arg3: memref<5x32xf32, #tpu.memory_space<vmem>>, %arg4: memref<6x32xf32, #tpu.memory_space<vmem>>, %arg5: memref<8x32xf32, #tpu.memory_space<vmem>>, %arg6: memref<8x32xf32, #tpu.memory_space<vmem>>, %arg7: memref<2x32x128xf32, #tpu.memory_space<vmem>>, %arg8: memref<2x32x64xf32, #tpu.memory_space<vmem>>, %arg9: memref<2x64x32xf32, #tpu.memory_space<vmem>>, %arg10: memref<2x8x128xf32, #tpu.memory_space<vmem>>, %arg11: memref<2x32x128xf32, #tpu.memory_space<vmem>>, %arg12: memref<2x32x128xf32, #tpu.memory_space<vmem>>, %arg13: memref<2x32x64xf32, #tpu.memory_space<vmem>>, %arg14: memref<2x64x32xf32, #tpu.memory_space<vmem>>, %arg15: memref<2x12x128xf32, #tpu.memory_space<vmem>>, %arg16: memref<1x2x1xf32, #tpu.memory_space<vmem>>) attributes {dimension_semantics = [#tpu.dimension_semantics<parallel>], iteration_bounds = array<i64: 1>, scalar_prefetch = 0 : i64, scratch_operands = 0 : i64, tpu.core_type = #tpu.core_type<tc>, window_params = [{transform_indices = @transform_0, window_bounds = array<i64: 16, 5>}, {transform_indices = @transform_1, window_bounds = array<i64: 16, 6>}, {pipeline_mode = #tpu.pipeline_mode<synchronous>, transform_indices = @transform_2, window_bounds = array<i64: 5, 32>}, {pipeline_mode = #tpu.pipeline_mode<synchronous>, transform_indices = @transform_3, window_bounds = array<i64: 6, 32>}, {pipeline_mode = #tpu.pipeline_mode<synchronous>, transform_indices = @transform_4, window_bounds = array<i64: 8, 32>}, {pipeline_mode = #tpu.pipeline_mode<synchronous>, transform_indices = @transform_5, window_bounds = array<i64: 8, 32>}, {pipeline_mode = #tpu.pipeline_mode<synchronous>, transform_indices = @transform_6, window_bounds = array<i64: 2, 32, 128>}, {pipeline_mode = #tpu.pipeline_mode<synchronous>, transform_indices = @transform_7, window_bounds = array<i64: 2, 32, 64>}, {pipeline_mode = #tpu.pipeline_mode<synchronous>, transform_indices = @transform_8, window_bounds = array<i64: 2, 64, 32>}, {pipeline_mode = #tpu.pipeline_mode<synchronous>, transform_indices = @transform_9, window_bounds = array<i64: 2, 8, 128>}, {pipeline_mode = #tpu.pipeline_mode<synchronous>, transform_indices = @transform_10, window_bounds = array<i64: 2, 32, 128>}, {pipeline_mode = #tpu.pipeline_mode<synchronous>, transform_indices = @transform_11, window_bounds = array<i64: 2, 32, 128>}, {pipeline_mode = #tpu.pipeline_mode<synchronous>, transform_indices = @transform_12, window_bounds = array<i64: 2, 32, 64>}, {pipeline_mode = #tpu.pipeline_mode<synchronous>, transform_indices = @transform_13, window_bounds = array<i64: 2, 64, 32>}, {pipeline_mode = #tpu.pipeline_mode<synchronous>, transform_indices = @transform_14, window_bounds = array<i64: 2, 12, 128>}, {transform_indices = @transform_15, window_bounds = array<i64: 1, 2, 1>}]} {
    %c0 = arith.constant 0 : index
    %c0_0 = arith.constant 0 : index
    %0 = vector.load %arg6[%c0, %c0_0] : memref<8x32xf32, #tpu.memory_space<vmem>>, vector<8x32xf32>
    %c0_1 = arith.constant 0 : index
    %c0_2 = arith.constant 0 : index
    %1 = vector.load %arg1[%c0_1, %c0_2] : memref<16x5xf32, #tpu.memory_space<vmem>>, vector<16x5xf32>
    %c0_3 = arith.constant 0 : index
    %c0_4 = arith.constant 0 : index
    %2 = vector.load %arg3[%c0_3, %c0_4] : memref<5x32xf32, #tpu.memory_space<vmem>>, vector<5x32xf32>
    %cst = arith.constant dense<0.000000e+00> : vector<16x32xf32>
    %3 = tpu.matmul %1, %2, %cst {dimension_numbers = #tpu.dot_dimension_numbers<[1], [0], [0], [1], [0, 0, 1, 1], [], []>} : vector<16x5xf32>, vector<5x32xf32>, vector<16x32xf32> -> vector<16x32xf32>
    %4 = vector.extract_strided_slice %0 {offsets = [0, 0], sizes = [1, 32], strides = [1, 1]} : vector<8x32xf32> to vector<1x32xf32>
    %5 = vector.broadcast %4 : vector<1x32xf32> to vector<16x32xf32>
    %6 = arith.addf %3, %5 : vector<16x32xf32>
    %c0_5 = arith.constant 0 : index
    %c0_6 = arith.constant 0 : index
    %7 = vector.load %arg5[%c0_5, %c0_6] : memref<8x32xf32, #tpu.memory_space<vmem>>, vector<8x32xf32>
    %8 = tpu.concatenate %7, %7 in 0 : vector<8x32xf32>, vector<8x32xf32> -> vector<16x32xf32>
    %c0_7 = arith.constant 0 : index
    %c0_8 = arith.constant 0 : index
    %9 = vector.load %arg2[%c0_7, %c0_8] : memref<16x6xf32, #tpu.memory_space<vmem>>, vector<16x6xf32>
    %c0_9 = arith.constant 0 : index
    %c0_10 = arith.constant 0 : index
    %10 = vector.load %arg4[%c0_9, %c0_10] : memref<6x32xf32, #tpu.memory_space<vmem>>, vector<6x32xf32>
    %cst_11 = arith.constant dense<0.000000e+00> : vector<16x32xf32>
    %11 = tpu.matmul %9, %10, %cst_11 {dimension_numbers = #tpu.dot_dimension_numbers<[1], [0], [0], [1], [0, 0, 1, 1], [], []>} : vector<16x6xf32>, vector<6x32xf32>, vector<16x32xf32> -> vector<16x32xf32>
    %12 = vector.extract_strided_slice %0 {offsets = [1, 0], sizes = [1, 32], strides = [1, 1]} : vector<8x32xf32> to vector<1x32xf32>
    %13 = vector.broadcast %12 : vector<1x32xf32> to vector<16x32xf32>
    %14 = arith.addf %11, %13 : vector<16x32xf32>
    %15 = arith.addf %14, %8 : vector<16x32xf32>
    %c0_12 = arith.constant 0 : index
    %c0_13 = arith.constant 0 : index
    %c0_14 = arith.constant 0 : index
    %16 = vector.load %arg7[%c0_12, %c0_13, %c0_14] : memref<2x32x128xf32, #tpu.memory_space<vmem>>, vector<1x32x128xf32>
    %17 = vector.shape_cast %16 : vector<1x32x128xf32> to vector<32x128xf32>
    %c0_15 = arith.constant 0 : index
    %c0_16 = arith.constant 0 : index
    %c0_17 = arith.constant 0 : index
    %18 = vector.load %arg10[%c0_15, %c0_16, %c0_17] : memref<2x8x128xf32, #tpu.memory_space<vmem>>, vector<1x8x128xf32>
    %19 = vector.shape_cast %18 : vector<1x8x128xf32> to vector<8x128xf32>
    %20 = vector.extract_strided_slice %17 {offsets = [0, 0], sizes = [32, 96], strides = [1, 1]} : vector<32x128xf32> to vector<32x96xf32>
    %cst_18 = arith.constant dense<0.000000e+00> : vector<16x96xf32>
    %21 = tpu.matmul %15, %20, %cst_18 {dimension_numbers = #tpu.dot_dimension_numbers<[1], [0], [0], [1], [0, 0, 1, 1], [], []>} : vector<16x32xf32>, vector<32x96xf32>, vector<16x96xf32> -> vector<16x96xf32>
    %22 = vector.extract_strided_slice %19 {offsets = [0, 0], sizes = [1, 96], strides = [1, 1]} : vector<8x128xf32> to vector<1x96xf32>
    %23 = vector.broadcast %22 : vector<1x96xf32> to vector<16x96xf32>
    %24 = arith.addf %21, %23 : vector<16x96xf32>
    %25 = vector.extract_strided_slice %24 {offsets = [0, 0], sizes = [16, 32], strides = [1, 1]} : vector<16x96xf32> to vector<16x32xf32>
    %26 = vector.extract_strided_slice %24 {offsets = [0, 32], sizes = [16, 32], strides = [1, 1]} : vector<16x96xf32> to vector<16x32xf32>
    %27 = vector.extract_strided_slice %24 {offsets = [0, 64], sizes = [16, 32], strides = [1, 1]} : vector<16x96xf32> to vector<16x32xf32>
    %28 = vector.extract_strided_slice %17 {offsets = [0, 96], sizes = [32, 32], strides = [1, 1]} : vector<32x128xf32> to vector<32x32xf32>
    %29 = vector.extract_strided_slice %19 {offsets = [1, 0], sizes = [1, 32], strides = [1, 1]} : vector<8x128xf32> to vector<1x32xf32>
    %30 = vector.extract_strided_slice %25 {offsets = [0, 0], sizes = [8, 8], strides = [1, 1]} : vector<16x32xf32> to vector<8x8xf32>
    %31 = vector.extract_strided_slice %26 {offsets = [0, 0], sizes = [8, 8], strides = [1, 1]} : vector<16x32xf32> to vector<8x8xf32>
    %cst_19 = arith.constant dense<0.000000e+00> : vector<8x8xf32>
    %32 = tpu.matmul %30, %31, %cst_19 {dimension_numbers = #tpu.dot_dimension_numbers<[1], [1], [0], [0], [0, 0, 1, 0], [], []>} : vector<8x8xf32>, vector<8x8xf32>, vector<8x8xf32> -> vector<8x8xf32>
    %33 = vector.extract_strided_slice %25 {offsets = [0, 8], sizes = [8, 8], strides = [1, 1]} : vector<16x32xf32> to vector<8x8xf32>
    %34 = vector.extract_strided_slice %26 {offsets = [0, 8], sizes = [8, 8], strides = [1, 1]} : vector<16x32xf32> to vector<8x8xf32>
    %cst_20 = arith.constant dense<0.000000e+00> : vector<8x8xf32>
    %35 = tpu.matmul %33, %34, %cst_20 {dimension_numbers = #tpu.dot_dimension_numbers<[1], [1], [0], [0], [0, 0, 1, 0], [], []>} : vector<8x8xf32>, vector<8x8xf32>, vector<8x8xf32> -> vector<8x8xf32>
    %36 = vector.extract_strided_slice %25 {offsets = [0, 16], sizes = [8, 8], strides = [1, 1]} : vector<16x32xf32> to vector<8x8xf32>
    %37 = vector.extract_strided_slice %26 {offsets = [0, 16], sizes = [8, 8], strides = [1, 1]} : vector<16x32xf32> to vector<8x8xf32>
    %cst_21 = arith.constant dense<0.000000e+00> : vector<8x8xf32>
    %38 = tpu.matmul %36, %37, %cst_21 {dimension_numbers = #tpu.dot_dimension_numbers<[1], [1], [0], [0], [0, 0, 1, 0], [], []>} : vector<8x8xf32>, vector<8x8xf32>, vector<8x8xf32> -> vector<8x8xf32>
    %39 = vector.extract_strided_slice %25 {offsets = [0, 24], sizes = [8, 8], strides = [1, 1]} : vector<16x32xf32> to vector<8x8xf32>
    %40 = vector.extract_strided_slice %26 {offsets = [0, 24], sizes = [8, 8], strides = [1, 1]} : vector<16x32xf32> to vector<8x8xf32>
    %cst_22 = arith.constant dense<0.000000e+00> : vector<8x8xf32>
    %41 = tpu.matmul %39, %40, %cst_22 {dimension_numbers = #tpu.dot_dimension_numbers<[1], [1], [0], [0], [0, 0, 1, 0], [], []>} : vector<8x8xf32>, vector<8x8xf32>, vector<8x8xf32> -> vector<8x8xf32>
    %42 = vector.extract_strided_slice %25 {offsets = [8, 0], sizes = [8, 8], strides = [1, 1]} : vector<16x32xf32> to vector<8x8xf32>
    %43 = vector.extract_strided_slice %26 {offsets = [8, 0], sizes = [8, 8], strides = [1, 1]} : vector<16x32xf32> to vector<8x8xf32>
    %cst_23 = arith.constant dense<0.000000e+00> : vector<8x8xf32>
    %44 = tpu.matmul %42, %43, %cst_23 {dimension_numbers = #tpu.dot_dimension_numbers<[1], [1], [0], [0], [0, 0, 1, 0], [], []>} : vector<8x8xf32>, vector<8x8xf32>, vector<8x8xf32> -> vector<8x8xf32>
    %45 = vector.extract_strided_slice %25 {offsets = [8, 8], sizes = [8, 8], strides = [1, 1]} : vector<16x32xf32> to vector<8x8xf32>
    %46 = vector.extract_strided_slice %26 {offsets = [8, 8], sizes = [8, 8], strides = [1, 1]} : vector<16x32xf32> to vector<8x8xf32>
    %cst_24 = arith.constant dense<0.000000e+00> : vector<8x8xf32>
    %47 = tpu.matmul %45, %46, %cst_24 {dimension_numbers = #tpu.dot_dimension_numbers<[1], [1], [0], [0], [0, 0, 1, 0], [], []>} : vector<8x8xf32>, vector<8x8xf32>, vector<8x8xf32> -> vector<8x8xf32>
    %48 = vector.extract_strided_slice %25 {offsets = [8, 16], sizes = [8, 8], strides = [1, 1]} : vector<16x32xf32> to vector<8x8xf32>
    %49 = vector.extract_strided_slice %26 {offsets = [8, 16], sizes = [8, 8], strides = [1, 1]} : vector<16x32xf32> to vector<8x8xf32>
    %cst_25 = arith.constant dense<0.000000e+00> : vector<8x8xf32>
    %50 = tpu.matmul %48, %49, %cst_25 {dimension_numbers = #tpu.dot_dimension_numbers<[1], [1], [0], [0], [0, 0, 1, 0], [], []>} : vector<8x8xf32>, vector<8x8xf32>, vector<8x8xf32> -> vector<8x8xf32>
    %51 = vector.extract_strided_slice %25 {offsets = [8, 24], sizes = [8, 8], strides = [1, 1]} : vector<16x32xf32> to vector<8x8xf32>
    %52 = vector.extract_strided_slice %26 {offsets = [8, 24], sizes = [8, 8], strides = [1, 1]} : vector<16x32xf32> to vector<8x8xf32>
    %cst_26 = arith.constant dense<0.000000e+00> : vector<8x8xf32>
    %53 = tpu.matmul %51, %52, %cst_26 {dimension_numbers = #tpu.dot_dimension_numbers<[1], [1], [0], [0], [0, 0, 1, 0], [], []>} : vector<8x8xf32>, vector<8x8xf32>, vector<8x8xf32> -> vector<8x8xf32>
    %54 = tpu.concatenate %32, %35, %38, %41, %44, %47, %50, %53 in 0 : vector<8x8xf32>, vector<8x8xf32>, vector<8x8xf32>, vector<8x8xf32>, vector<8x8xf32>, vector<8x8xf32>, vector<8x8xf32>, vector<8x8xf32> -> vector<64x8xf32>
    %cst_27 = arith.constant 0.353553385 : f32
    %55 = vector.broadcast %cst_27 : f32 to vector<64x8xf32>
    %56 = arith.mulf %54, %55 : vector<64x8xf32>
    %cst_28 = arith.constant dense<0xFF800000> : vector<64xf32>
    %57 = vector.multi_reduction <maximumf>, %56, %cst_28 [1] : vector<64x8xf32> to vector<64xf32>
    %58 = vector.shape_cast %57 : vector<64xf32> to vector<64x1xf32>
    %59 = vector.broadcast %58 : vector<64x1xf32> to vector<64x8xf32>
    %60 = arith.subf %56, %59 : vector<64x8xf32>
    %61 = math.exp %60 : vector<64x8xf32>
    %cst_29 = arith.constant dense<0.000000e+00> : vector<64xf32>
    %62 = vector.multi_reduction <add>, %61, %cst_29 [1] : vector<64x8xf32> to vector<64xf32>
    %63 = vector.shape_cast %62 : vector<64xf32> to vector<64x1xf32>
    %64 = tpu.reciprocal %63 : vector<64x1xf32> -> vector<64x1xf32>
    %65 = vector.broadcast %64 : vector<64x1xf32> to vector<64x8xf32>
    %66 = arith.mulf %61, %65 : vector<64x8xf32>
    %67 = vector.extract_strided_slice %66 {offsets = [0, 0], sizes = [8, 8], strides = [1, 1]} : vector<64x8xf32> to vector<8x8xf32>
    %68 = vector.extract_strided_slice %27 {offsets = [0, 0], sizes = [8, 8], strides = [1, 1]} : vector<16x32xf32> to vector<8x8xf32>
    %cst_30 = arith.constant dense<0.000000e+00> : vector<8x8xf32>
    %69 = tpu.matmul %67, %68, %cst_30 {dimension_numbers = #tpu.dot_dimension_numbers<[1], [0], [0], [1], [0, 0, 1, 1], [], []>} : vector<8x8xf32>, vector<8x8xf32>, vector<8x8xf32> -> vector<8x8xf32>
    %70 = vector.extract_strided_slice %66 {offsets = [8, 0], sizes = [8, 8], strides = [1, 1]} : vector<64x8xf32> to vector<8x8xf32>
    %71 = vector.extract_strided_slice %27 {offsets = [0, 8], sizes = [8, 8], strides = [1, 1]} : vector<16x32xf32> to vector<8x8xf32>
    %cst_31 = arith.constant dense<0.000000e+00> : vector<8x8xf32>
    %72 = tpu.matmul %70, %71, %cst_31 {dimension_numbers = #tpu.dot_dimension_numbers<[1], [0], [0], [1], [0, 0, 1, 1], [], []>} : vector<8x8xf32>, vector<8x8xf32>, vector<8x8xf32> -> vector<8x8xf32>
    %73 = vector.extract_strided_slice %66 {offsets = [16, 0], sizes = [8, 8], strides = [1, 1]} : vector<64x8xf32> to vector<8x8xf32>
    %74 = vector.extract_strided_slice %27 {offsets = [0, 16], sizes = [8, 8], strides = [1, 1]} : vector<16x32xf32> to vector<8x8xf32>
    %cst_32 = arith.constant dense<0.000000e+00> : vector<8x8xf32>
    %75 = tpu.matmul %73, %74, %cst_32 {dimension_numbers = #tpu.dot_dimension_numbers<[1], [0], [0], [1], [0, 0, 1, 1], [], []>} : vector<8x8xf32>, vector<8x8xf32>, vector<8x8xf32> -> vector<8x8xf32>
    %76 = vector.extract_strided_slice %66 {offsets = [24, 0], sizes = [8, 8], strides = [1, 1]} : vector<64x8xf32> to vector<8x8xf32>
    %77 = vector.extract_strided_slice %27 {offsets = [0, 24], sizes = [8, 8], strides = [1, 1]} : vector<16x32xf32> to vector<8x8xf32>
    %cst_33 = arith.constant dense<0.000000e+00> : vector<8x8xf32>
    %78 = tpu.matmul %76, %77, %cst_33 {dimension_numbers = #tpu.dot_dimension_numbers<[1], [0], [0], [1], [0, 0, 1, 1], [], []>} : vector<8x8xf32>, vector<8x8xf32>, vector<8x8xf32> -> vector<8x8xf32>
    %79 = tpu.concatenate %69, %72, %75, %78 in 1 : vector<8x8xf32>, vector<8x8xf32>, vector<8x8xf32>, vector<8x8xf32> -> vector<8x32xf32>
    %80 = vector.extract_strided_slice %66 {offsets = [32, 0], sizes = [8, 8], strides = [1, 1]} : vector<64x8xf32> to vector<8x8xf32>
    %81 = vector.extract_strided_slice %27 {offsets = [8, 0], sizes = [8, 8], strides = [1, 1]} : vector<16x32xf32> to vector<8x8xf32>
    %cst_34 = arith.constant dense<0.000000e+00> : vector<8x8xf32>
    %82 = tpu.matmul %80, %81, %cst_34 {dimension_numbers = #tpu.dot_dimension_numbers<[1], [0], [0], [1], [0, 0, 1, 1], [], []>} : vector<8x8xf32>, vector<8x8xf32>, vector<8x8xf32> -> vector<8x8xf32>
    %83 = vector.extract_strided_slice %66 {offsets = [40, 0], sizes = [8, 8], strides = [1, 1]} : vector<64x8xf32> to vector<8x8xf32>
    %84 = vector.extract_strided_slice %27 {offsets = [8, 8], sizes = [8, 8], strides = [1, 1]} : vector<16x32xf32> to vector<8x8xf32>
    %cst_35 = arith.constant dense<0.000000e+00> : vector<8x8xf32>
    %85 = tpu.matmul %83, %84, %cst_35 {dimension_numbers = #tpu.dot_dimension_numbers<[1], [0], [0], [1], [0, 0, 1, 1], [], []>} : vector<8x8xf32>, vector<8x8xf32>, vector<8x8xf32> -> vector<8x8xf32>
    %86 = vector.extract_strided_slice %66 {offsets = [48, 0], sizes = [8, 8], strides = [1, 1]} : vector<64x8xf32> to vector<8x8xf32>
    %87 = vector.extract_strided_slice %27 {offsets = [8, 16], sizes = [8, 8], strides = [1, 1]} : vector<16x32xf32> to vector<8x8xf32>
    %cst_36 = arith.constant dense<0.000000e+00> : vector<8x8xf32>
    %88 = tpu.matmul %86, %87, %cst_36 {dimension_numbers = #tpu.dot_dimension_numbers<[1], [0], [0], [1], [0, 0, 1, 1], [], []>} : vector<8x8xf32>, vector<8x8xf32>, vector<8x8xf32> -> vector<8x8xf32>
    %89 = vector.extract_strided_slice %66 {offsets = [56, 0], sizes = [8, 8], strides = [1, 1]} : vector<64x8xf32> to vector<8x8xf32>
    %90 = vector.extract_strided_slice %27 {offsets = [8, 24], sizes = [8, 8], strides = [1, 1]} : vector<16x32xf32> to vector<8x8xf32>
    %cst_37 = arith.constant dense<0.000000e+00> : vector<8x8xf32>
    %91 = tpu.matmul %89, %90, %cst_37 {dimension_numbers = #tpu.dot_dimension_numbers<[1], [0], [0], [1], [0, 0, 1, 1], [], []>} : vector<8x8xf32>, vector<8x8xf32>, vector<8x8xf32> -> vector<8x8xf32>
    %92 = tpu.concatenate %82, %85, %88, %91 in 1 : vector<8x8xf32>, vector<8x8xf32>, vector<8x8xf32>, vector<8x8xf32> -> vector<8x32xf32>
    %93 = tpu.concatenate %79, %92 in 0 : vector<8x32xf32>, vector<8x32xf32> -> vector<16x32xf32>
    %cst_38 = arith.constant dense<0.000000e+00> : vector<16x32xf32>
    %94 = tpu.matmul %93, %28, %cst_38 {dimension_numbers = #tpu.dot_dimension_numbers<[1], [0], [0], [1], [0, 0, 1, 1], [], []>} : vector<16x32xf32>, vector<32x32xf32>, vector<16x32xf32> -> vector<16x32xf32>
    %95 = vector.broadcast %29 : vector<1x32xf32> to vector<16x32xf32>
    %96 = arith.addf %94, %95 : vector<16x32xf32>
    %97 = arith.addf %15, %96 : vector<16x32xf32>
    %98 = vector.extract_strided_slice %19 {offsets = [4, 0], sizes = [1, 32], strides = [1, 1]} : vector<8x128xf32> to vector<1x32xf32>
    %99 = vector.extract_strided_slice %19 {offsets = [5, 0], sizes = [1, 32], strides = [1, 1]} : vector<8x128xf32> to vector<1x32xf32>
    %cst_39 = arith.constant dense<0.000000e+00> : vector<16xf32>
    %100 = vector.multi_reduction <add>, %97, %cst_39 [1] : vector<16x32xf32> to vector<16xf32>
    %101 = vector.shape_cast %100 : vector<16xf32> to vector<16x1xf32>
    %cst_40 = arith.constant 3.200000e+01 : f32
    %102 = vector.broadcast %cst_40 : f32 to vector<16x1xf32>
    %103 = arith.divf %101, %102 : vector<16x1xf32>
    %104 = vector.broadcast %103 : vector<16x1xf32> to vector<16x32xf32>
    %105 = arith.subf %97, %104 : vector<16x32xf32>
    %106 = arith.mulf %105, %105 : vector<16x32xf32>
    %cst_41 = arith.constant dense<0.000000e+00> : vector<16xf32>
    %107 = vector.multi_reduction <add>, %106, %cst_41 [1] : vector<16x32xf32> to vector<16xf32>
    %108 = vector.shape_cast %107 : vector<16xf32> to vector<16x1xf32>
    %cst_42 = arith.constant 3.200000e+01 : f32
    %109 = vector.broadcast %cst_42 : f32 to vector<16x1xf32>
    %110 = arith.divf %108, %109 : vector<16x1xf32>
    %111 = vector.broadcast %103 : vector<16x1xf32> to vector<16x32xf32>
    %112 = arith.subf %97, %111 : vector<16x32xf32>
    %cst_43 = arith.constant 9.99999974E-6 : f32
    %113 = vector.broadcast %cst_43 : f32 to vector<16x1xf32>
    %114 = arith.addf %110, %113 : vector<16x1xf32>
    %115 = math.rsqrt %114 : vector<16x1xf32>
    %116 = vector.broadcast %115 : vector<16x1xf32> to vector<16x32xf32>
    %117 = arith.mulf %112, %116 : vector<16x32xf32>
    %118 = vector.broadcast %98 : vector<1x32xf32> to vector<16x32xf32>
    %119 = arith.mulf %117, %118 : vector<16x32xf32>
    %120 = vector.broadcast %99 : vector<1x32xf32> to vector<16x32xf32>
    %121 = arith.addf %119, %120 : vector<16x32xf32>
    %c0_44 = arith.constant 0 : index
    %c0_45 = arith.constant 0 : index
    %c0_46 = arith.constant 0 : index
    %122 = vector.load %arg8[%c0_44, %c0_45, %c0_46] : memref<2x32x64xf32, #tpu.memory_space<vmem>>, vector<1x32x64xf32>
    %123 = vector.shape_cast %122 : vector<1x32x64xf32> to vector<32x64xf32>
    %cst_47 = arith.constant dense<0.000000e+00> : vector<16x64xf32>
    %124 = tpu.matmul %121, %123, %cst_47 {dimension_numbers = #tpu.dot_dimension_numbers<[1], [0], [0], [1], [0, 0, 1, 1], [], []>} : vector<16x32xf32>, vector<32x64xf32>, vector<16x64xf32> -> vector<16x64xf32>
    %125 = vector.extract_strided_slice %19 {offsets = [2, 0], sizes = [1, 64], strides = [1, 1]} : vector<8x128xf32> to vector<1x64xf32>
    %126 = vector.broadcast %125 : vector<1x64xf32> to vector<16x64xf32>
    %127 = arith.addf %124, %126 : vector<16x64xf32>
    %cst_48 = arith.constant 5.000000e-01 : f32
    %128 = vector.broadcast %cst_48 : f32 to vector<16x64xf32>
    %129 = arith.mulf %128, %127 : vector<16x64xf32>
    %cst_49 = arith.constant 0.707106769 : f32
    %130 = vector.broadcast %cst_49 : f32 to vector<16x64xf32>
    %131 = arith.mulf %127, %130 : vector<16x64xf32>
    %132 = math.absf %131 : vector<16x64xf32>
    %cst_50 = arith.constant 0.327591091 : f32
    %133 = vector.broadcast %cst_50 : f32 to vector<16x64xf32>
    %134 = arith.mulf %133, %132 : vector<16x64xf32>
    %cst_51 = arith.constant 1.000000e+00 : f32
    %135 = vector.broadcast %cst_51 : f32 to vector<16x64xf32>
    %136 = arith.addf %135, %134 : vector<16x64xf32>
    %137 = tpu.reciprocal %136 : vector<16x64xf32> -> vector<16x64xf32>
    %cst_52 = arith.constant 1.06140542 : f32
    %138 = vector.broadcast %cst_52 : f32 to vector<16x64xf32>
    %139 = arith.mulf %138, %137 : vector<16x64xf32>
    %cst_53 = arith.constant -1.45315206 : f32
    %140 = vector.broadcast %cst_53 : f32 to vector<16x64xf32>
    %141 = arith.addf %139, %140 : vector<16x64xf32>
    %142 = arith.mulf %141, %137 : vector<16x64xf32>
    %cst_54 = arith.constant 1.42141378 : f32
    %143 = vector.broadcast %cst_54 : f32 to vector<16x64xf32>
    %144 = arith.addf %142, %143 : vector<16x64xf32>
    %145 = arith.mulf %144, %137 : vector<16x64xf32>
    %cst_55 = arith.constant -0.284496725 : f32
    %146 = vector.broadcast %cst_55 : f32 to vector<16x64xf32>
    %147 = arith.addf %145, %146 : vector<16x64xf32>
    %148 = arith.mulf %147, %137 : vector<16x64xf32>
    %cst_56 = arith.constant 0.254829586 : f32
    %149 = vector.broadcast %cst_56 : f32 to vector<16x64xf32>
    %150 = arith.addf %148, %149 : vector<16x64xf32>
    %151 = arith.mulf %150, %137 : vector<16x64xf32>
    %cst_57 = arith.constant 0.000000e+00 : f32
    %152 = vector.broadcast %cst_57 : f32 to vector<16x64xf32>
    %153 = arith.subf %152, %132 : vector<16x64xf32>
    %154 = arith.mulf %153, %132 : vector<16x64xf32>
    %155 = math.exp %154 : vector<16x64xf32>
    %156 = arith.mulf %151, %155 : vector<16x64xf32>
    %cst_58 = arith.constant 1.000000e+00 : f32
    %157 = vector.broadcast %cst_58 : f32 to vector<16x64xf32>
    %158 = arith.subf %157, %156 : vector<16x64xf32>
    %cst_59 = arith.constant 0.000000e+00 : f32
    %159 = vector.broadcast %cst_59 : f32 to vector<16x64xf32>
    %160 = arith.cmpf oge, %131, %159 : vector<16x64xf32>
    %cst_60 = arith.constant 0.000000e+00 : f32
    %161 = vector.broadcast %cst_60 : f32 to vector<16x64xf32>
    %162 = arith.subf %161, %158 : vector<16x64xf32>
    %163 = arith.select %160, %158, %162 : vector<16x64xi1>, vector<16x64xf32>
    %cst_61 = arith.constant 1.000000e+00 : f32
    %164 = vector.broadcast %cst_61 : f32 to vector<16x64xf32>
    %165 = arith.addf %164, %163 : vector<16x64xf32>
    %166 = arith.mulf %129, %165 : vector<16x64xf32>
    %c0_62 = arith.constant 0 : index
    %c0_63 = arith.constant 0 : index
    %c0_64 = arith.constant 0 : index
    %167 = vector.load %arg9[%c0_62, %c0_63, %c0_64] : memref<2x64x32xf32, #tpu.memory_space<vmem>>, vector<1x64x32xf32>
    %168 = vector.shape_cast %167 : vector<1x64x32xf32> to vector<64x32xf32>
    %cst_65 = arith.constant dense<0.000000e+00> : vector<16x32xf32>
    %169 = tpu.matmul %166, %168, %cst_65 {dimension_numbers = #tpu.dot_dimension_numbers<[1], [0], [0], [1], [0, 0, 1, 1], [], []>} : vector<16x64xf32>, vector<64x32xf32>, vector<16x32xf32> -> vector<16x32xf32>
    %170 = vector.extract_strided_slice %19 {offsets = [3, 0], sizes = [1, 32], strides = [1, 1]} : vector<8x128xf32> to vector<1x32xf32>
    %171 = vector.broadcast %170 : vector<1x32xf32> to vector<16x32xf32>
    %172 = arith.addf %169, %171 : vector<16x32xf32>
    %173 = arith.addf %121, %172 : vector<16x32xf32>
    %174 = vector.extract_strided_slice %19 {offsets = [6, 0], sizes = [1, 32], strides = [1, 1]} : vector<8x128xf32> to vector<1x32xf32>
    %175 = vector.extract_strided_slice %19 {offsets = [7, 0], sizes = [1, 32], strides = [1, 1]} : vector<8x128xf32> to vector<1x32xf32>
    %cst_66 = arith.constant dense<0.000000e+00> : vector<16xf32>
    %176 = vector.multi_reduction <add>, %173, %cst_66 [1] : vector<16x32xf32> to vector<16xf32>
    %177 = vector.shape_cast %176 : vector<16xf32> to vector<16x1xf32>
    %cst_67 = arith.constant 3.200000e+01 : f32
    %178 = vector.broadcast %cst_67 : f32 to vector<16x1xf32>
    %179 = arith.divf %177, %178 : vector<16x1xf32>
    %180 = vector.broadcast %179 : vector<16x1xf32> to vector<16x32xf32>
    %181 = arith.subf %173, %180 : vector<16x32xf32>
    %182 = arith.mulf %181, %181 : vector<16x32xf32>
    %cst_68 = arith.constant dense<0.000000e+00> : vector<16xf32>
    %183 = vector.multi_reduction <add>, %182, %cst_68 [1] : vector<16x32xf32> to vector<16xf32>
    %184 = vector.shape_cast %183 : vector<16xf32> to vector<16x1xf32>
    %cst_69 = arith.constant 3.200000e+01 : f32
    %185 = vector.broadcast %cst_69 : f32 to vector<16x1xf32>
    %186 = arith.divf %184, %185 : vector<16x1xf32>
    %187 = vector.broadcast %179 : vector<16x1xf32> to vector<16x32xf32>
    %188 = arith.subf %173, %187 : vector<16x32xf32>
    %cst_70 = arith.constant 9.99999974E-6 : f32
    %189 = vector.broadcast %cst_70 : f32 to vector<16x1xf32>
    %190 = arith.addf %186, %189 : vector<16x1xf32>
    %191 = math.rsqrt %190 : vector<16x1xf32>
    %192 = vector.broadcast %191 : vector<16x1xf32> to vector<16x32xf32>
    %193 = arith.mulf %188, %192 : vector<16x32xf32>
    %194 = vector.broadcast %174 : vector<1x32xf32> to vector<16x32xf32>
    %195 = arith.mulf %193, %194 : vector<16x32xf32>
    %196 = vector.broadcast %175 : vector<1x32xf32> to vector<16x32xf32>
    %197 = arith.addf %195, %196 : vector<16x32xf32>
    %c1 = arith.constant 1 : index
    %c0_71 = arith.constant 0 : index
    %c0_72 = arith.constant 0 : index
    %198 = vector.load %arg7[%c1, %c0_71, %c0_72] : memref<2x32x128xf32, #tpu.memory_space<vmem>>, vector<1x32x128xf32>
    %199 = vector.shape_cast %198 : vector<1x32x128xf32> to vector<32x128xf32>
    %c1_73 = arith.constant 1 : index
    %c0_74 = arith.constant 0 : index
    %c0_75 = arith.constant 0 : index
    %200 = vector.load %arg10[%c1_73, %c0_74, %c0_75] : memref<2x8x128xf32, #tpu.memory_space<vmem>>, vector<1x8x128xf32>
    %201 = vector.shape_cast %200 : vector<1x8x128xf32> to vector<8x128xf32>
    %202 = vector.extract_strided_slice %199 {offsets = [0, 0], sizes = [32, 96], strides = [1, 1]} : vector<32x128xf32> to vector<32x96xf32>
    %cst_76 = arith.constant dense<0.000000e+00> : vector<16x96xf32>
    %203 = tpu.matmul %197, %202, %cst_76 {dimension_numbers = #tpu.dot_dimension_numbers<[1], [0], [0], [1], [0, 0, 1, 1], [], []>} : vector<16x32xf32>, vector<32x96xf32>, vector<16x96xf32> -> vector<16x96xf32>
    %204 = vector.extract_strided_slice %201 {offsets = [0, 0], sizes = [1, 96], strides = [1, 1]} : vector<8x128xf32> to vector<1x96xf32>
    %205 = vector.broadcast %204 : vector<1x96xf32> to vector<16x96xf32>
    %206 = arith.addf %203, %205 : vector<16x96xf32>
    %207 = vector.extract_strided_slice %206 {offsets = [0, 0], sizes = [16, 32], strides = [1, 1]} : vector<16x96xf32> to vector<16x32xf32>
    %208 = vector.extract_strided_slice %206 {offsets = [0, 32], sizes = [16, 32], strides = [1, 1]} : vector<16x96xf32> to vector<16x32xf32>
    %209 = vector.extract_strided_slice %206 {offsets = [0, 64], sizes = [16, 32], strides = [1, 1]} : vector<16x96xf32> to vector<16x32xf32>
    %210 = vector.extract_strided_slice %199 {offsets = [0, 96], sizes = [32, 32], strides = [1, 1]} : vector<32x128xf32> to vector<32x32xf32>
    %211 = vector.extract_strided_slice %201 {offsets = [1, 0], sizes = [1, 32], strides = [1, 1]} : vector<8x128xf32> to vector<1x32xf32>
    %212 = vector.extract_strided_slice %207 {offsets = [0, 0], sizes = [8, 8], strides = [1, 1]} : vector<16x32xf32> to vector<8x8xf32>
    %213 = vector.extract_strided_slice %208 {offsets = [0, 0], sizes = [8, 8], strides = [1, 1]} : vector<16x32xf32> to vector<8x8xf32>
    %cst_77 = arith.constant dense<0.000000e+00> : vector<8x8xf32>
    %214 = tpu.matmul %212, %213, %cst_77 {dimension_numbers = #tpu.dot_dimension_numbers<[1], [1], [0], [0], [0, 0, 1, 0], [], []>} : vector<8x8xf32>, vector<8x8xf32>, vector<8x8xf32> -> vector<8x8xf32>
    %215 = vector.extract_strided_slice %207 {offsets = [0, 8], sizes = [8, 8], strides = [1, 1]} : vector<16x32xf32> to vector<8x8xf32>
    %216 = vector.extract_strided_slice %208 {offsets = [0, 8], sizes = [8, 8], strides = [1, 1]} : vector<16x32xf32> to vector<8x8xf32>
    %cst_78 = arith.constant dense<0.000000e+00> : vector<8x8xf32>
    %217 = tpu.matmul %215, %216, %cst_78 {dimension_numbers = #tpu.dot_dimension_numbers<[1], [1], [0], [0], [0, 0, 1, 0], [], []>} : vector<8x8xf32>, vector<8x8xf32>, vector<8x8xf32> -> vector<8x8xf32>
    %218 = vector.extract_strided_slice %207 {offsets = [0, 16], sizes = [8, 8], strides = [1, 1]} : vector<16x32xf32> to vector<8x8xf32>
    %219 = vector.extract_strided_slice %208 {offsets = [0, 16], sizes = [8, 8], strides = [1, 1]} : vector<16x32xf32> to vector<8x8xf32>
    %cst_79 = arith.constant dense<0.000000e+00> : vector<8x8xf32>
    %220 = tpu.matmul %218, %219, %cst_79 {dimension_numbers = #tpu.dot_dimension_numbers<[1], [1], [0], [0], [0, 0, 1, 0], [], []>} : vector<8x8xf32>, vector<8x8xf32>, vector<8x8xf32> -> vector<8x8xf32>
    %221 = vector.extract_strided_slice %207 {offsets = [0, 24], sizes = [8, 8], strides = [1, 1]} : vector<16x32xf32> to vector<8x8xf32>
    %222 = vector.extract_strided_slice %208 {offsets = [0, 24], sizes = [8, 8], strides = [1, 1]} : vector<16x32xf32> to vector<8x8xf32>
    %cst_80 = arith.constant dense<0.000000e+00> : vector<8x8xf32>
    %223 = tpu.matmul %221, %222, %cst_80 {dimension_numbers = #tpu.dot_dimension_numbers<[1], [1], [0], [0], [0, 0, 1, 0], [], []>} : vector<8x8xf32>, vector<8x8xf32>, vector<8x8xf32> -> vector<8x8xf32>
    %224 = vector.extract_strided_slice %207 {offsets = [8, 0], sizes = [8, 8], strides = [1, 1]} : vector<16x32xf32> to vector<8x8xf32>
    %225 = vector.extract_strided_slice %208 {offsets = [8, 0], sizes = [8, 8], strides = [1, 1]} : vector<16x32xf32> to vector<8x8xf32>
    %cst_81 = arith.constant dense<0.000000e+00> : vector<8x8xf32>
    %226 = tpu.matmul %224, %225, %cst_81 {dimension_numbers = #tpu.dot_dimension_numbers<[1], [1], [0], [0], [0, 0, 1, 0], [], []>} : vector<8x8xf32>, vector<8x8xf32>, vector<8x8xf32> -> vector<8x8xf32>
    %227 = vector.extract_strided_slice %207 {offsets = [8, 8], sizes = [8, 8], strides = [1, 1]} : vector<16x32xf32> to vector<8x8xf32>
    %228 = vector.extract_strided_slice %208 {offsets = [8, 8], sizes = [8, 8], strides = [1, 1]} : vector<16x32xf32> to vector<8x8xf32>
    %cst_82 = arith.constant dense<0.000000e+00> : vector<8x8xf32>
    %229 = tpu.matmul %227, %228, %cst_82 {dimension_numbers = #tpu.dot_dimension_numbers<[1], [1], [0], [0], [0, 0, 1, 0], [], []>} : vector<8x8xf32>, vector<8x8xf32>, vector<8x8xf32> -> vector<8x8xf32>
    %230 = vector.extract_strided_slice %207 {offsets = [8, 16], sizes = [8, 8], strides = [1, 1]} : vector<16x32xf32> to vector<8x8xf32>
    %231 = vector.extract_strided_slice %208 {offsets = [8, 16], sizes = [8, 8], strides = [1, 1]} : vector<16x32xf32> to vector<8x8xf32>
    %cst_83 = arith.constant dense<0.000000e+00> : vector<8x8xf32>
    %232 = tpu.matmul %230, %231, %cst_83 {dimension_numbers = #tpu.dot_dimension_numbers<[1], [1], [0], [0], [0, 0, 1, 0], [], []>} : vector<8x8xf32>, vector<8x8xf32>, vector<8x8xf32> -> vector<8x8xf32>
    %233 = vector.extract_strided_slice %207 {offsets = [8, 24], sizes = [8, 8], strides = [1, 1]} : vector<16x32xf32> to vector<8x8xf32>
    %234 = vector.extract_strided_slice %208 {offsets = [8, 24], sizes = [8, 8], strides = [1, 1]} : vector<16x32xf32> to vector<8x8xf32>
    %cst_84 = arith.constant dense<0.000000e+00> : vector<8x8xf32>
    %235 = tpu.matmul %233, %234, %cst_84 {dimension_numbers = #tpu.dot_dimension_numbers<[1], [1], [0], [0], [0, 0, 1, 0], [], []>} : vector<8x8xf32>, vector<8x8xf32>, vector<8x8xf32> -> vector<8x8xf32>
    %236 = tpu.concatenate %214, %217, %220, %223, %226, %229, %232, %235 in 0 : vector<8x8xf32>, vector<8x8xf32>, vector<8x8xf32>, vector<8x8xf32>, vector<8x8xf32>, vector<8x8xf32>, vector<8x8xf32>, vector<8x8xf32> -> vector<64x8xf32>
    %cst_85 = arith.constant 0.353553385 : f32
    %237 = vector.broadcast %cst_85 : f32 to vector<64x8xf32>
    %238 = arith.mulf %236, %237 : vector<64x8xf32>
    %cst_86 = arith.constant dense<0xFF800000> : vector<64xf32>
    %239 = vector.multi_reduction <maximumf>, %238, %cst_86 [1] : vector<64x8xf32> to vector<64xf32>
    %240 = vector.shape_cast %239 : vector<64xf32> to vector<64x1xf32>
    %241 = vector.broadcast %240 : vector<64x1xf32> to vector<64x8xf32>
    %242 = arith.subf %238, %241 : vector<64x8xf32>
    %243 = math.exp %242 : vector<64x8xf32>
    %cst_87 = arith.constant dense<0.000000e+00> : vector<64xf32>
    %244 = vector.multi_reduction <add>, %243, %cst_87 [1] : vector<64x8xf32> to vector<64xf32>
    %245 = vector.shape_cast %244 : vector<64xf32> to vector<64x1xf32>
    %246 = tpu.reciprocal %245 : vector<64x1xf32> -> vector<64x1xf32>
    %247 = vector.broadcast %246 : vector<64x1xf32> to vector<64x8xf32>
    %248 = arith.mulf %243, %247 : vector<64x8xf32>
    %249 = vector.extract_strided_slice %248 {offsets = [0, 0], sizes = [8, 8], strides = [1, 1]} : vector<64x8xf32> to vector<8x8xf32>
    %250 = vector.extract_strided_slice %209 {offsets = [0, 0], sizes = [8, 8], strides = [1, 1]} : vector<16x32xf32> to vector<8x8xf32>
    %cst_88 = arith.constant dense<0.000000e+00> : vector<8x8xf32>
    %251 = tpu.matmul %249, %250, %cst_88 {dimension_numbers = #tpu.dot_dimension_numbers<[1], [0], [0], [1], [0, 0, 1, 1], [], []>} : vector<8x8xf32>, vector<8x8xf32>, vector<8x8xf32> -> vector<8x8xf32>
    %252 = vector.extract_strided_slice %248 {offsets = [8, 0], sizes = [8, 8], strides = [1, 1]} : vector<64x8xf32> to vector<8x8xf32>
    %253 = vector.extract_strided_slice %209 {offsets = [0, 8], sizes = [8, 8], strides = [1, 1]} : vector<16x32xf32> to vector<8x8xf32>
    %cst_89 = arith.constant dense<0.000000e+00> : vector<8x8xf32>
    %254 = tpu.matmul %252, %253, %cst_89 {dimension_numbers = #tpu.dot_dimension_numbers<[1], [0], [0], [1], [0, 0, 1, 1], [], []>} : vector<8x8xf32>, vector<8x8xf32>, vector<8x8xf32> -> vector<8x8xf32>
    %255 = vector.extract_strided_slice %248 {offsets = [16, 0], sizes = [8, 8], strides = [1, 1]} : vector<64x8xf32> to vector<8x8xf32>
    %256 = vector.extract_strided_slice %209 {offsets = [0, 16], sizes = [8, 8], strides = [1, 1]} : vector<16x32xf32> to vector<8x8xf32>
    %cst_90 = arith.constant dense<0.000000e+00> : vector<8x8xf32>
    %257 = tpu.matmul %255, %256, %cst_90 {dimension_numbers = #tpu.dot_dimension_numbers<[1], [0], [0], [1], [0, 0, 1, 1], [], []>} : vector<8x8xf32>, vector<8x8xf32>, vector<8x8xf32> -> vector<8x8xf32>
    %258 = vector.extract_strided_slice %248 {offsets = [24, 0], sizes = [8, 8], strides = [1, 1]} : vector<64x8xf32> to vector<8x8xf32>
    %259 = vector.extract_strided_slice %209 {offsets = [0, 24], sizes = [8, 8], strides = [1, 1]} : vector<16x32xf32> to vector<8x8xf32>
    %cst_91 = arith.constant dense<0.000000e+00> : vector<8x8xf32>
    %260 = tpu.matmul %258, %259, %cst_91 {dimension_numbers = #tpu.dot_dimension_numbers<[1], [0], [0], [1], [0, 0, 1, 1], [], []>} : vector<8x8xf32>, vector<8x8xf32>, vector<8x8xf32> -> vector<8x8xf32>
    %261 = tpu.concatenate %251, %254, %257, %260 in 1 : vector<8x8xf32>, vector<8x8xf32>, vector<8x8xf32>, vector<8x8xf32> -> vector<8x32xf32>
    %262 = vector.extract_strided_slice %248 {offsets = [32, 0], sizes = [8, 8], strides = [1, 1]} : vector<64x8xf32> to vector<8x8xf32>
    %263 = vector.extract_strided_slice %209 {offsets = [8, 0], sizes = [8, 8], strides = [1, 1]} : vector<16x32xf32> to vector<8x8xf32>
    %cst_92 = arith.constant dense<0.000000e+00> : vector<8x8xf32>
    %264 = tpu.matmul %262, %263, %cst_92 {dimension_numbers = #tpu.dot_dimension_numbers<[1], [0], [0], [1], [0, 0, 1, 1], [], []>} : vector<8x8xf32>, vector<8x8xf32>, vector<8x8xf32> -> vector<8x8xf32>
    %265 = vector.extract_strided_slice %248 {offsets = [40, 0], sizes = [8, 8], strides = [1, 1]} : vector<64x8xf32> to vector<8x8xf32>
    %266 = vector.extract_strided_slice %209 {offsets = [8, 8], sizes = [8, 8], strides = [1, 1]} : vector<16x32xf32> to vector<8x8xf32>
    %cst_93 = arith.constant dense<0.000000e+00> : vector<8x8xf32>
    %267 = tpu.matmul %265, %266, %cst_93 {dimension_numbers = #tpu.dot_dimension_numbers<[1], [0], [0], [1], [0, 0, 1, 1], [], []>} : vector<8x8xf32>, vector<8x8xf32>, vector<8x8xf32> -> vector<8x8xf32>
    %268 = vector.extract_strided_slice %248 {offsets = [48, 0], sizes = [8, 8], strides = [1, 1]} : vector<64x8xf32> to vector<8x8xf32>
    %269 = vector.extract_strided_slice %209 {offsets = [8, 16], sizes = [8, 8], strides = [1, 1]} : vector<16x32xf32> to vector<8x8xf32>
    %cst_94 = arith.constant dense<0.000000e+00> : vector<8x8xf32>
    %270 = tpu.matmul %268, %269, %cst_94 {dimension_numbers = #tpu.dot_dimension_numbers<[1], [0], [0], [1], [0, 0, 1, 1], [], []>} : vector<8x8xf32>, vector<8x8xf32>, vector<8x8xf32> -> vector<8x8xf32>
    %271 = vector.extract_strided_slice %248 {offsets = [56, 0], sizes = [8, 8], strides = [1, 1]} : vector<64x8xf32> to vector<8x8xf32>
    %272 = vector.extract_strided_slice %209 {offsets = [8, 24], sizes = [8, 8], strides = [1, 1]} : vector<16x32xf32> to vector<8x8xf32>
    %cst_95 = arith.constant dense<0.000000e+00> : vector<8x8xf32>
    %273 = tpu.matmul %271, %272, %cst_95 {dimension_numbers = #tpu.dot_dimension_numbers<[1], [0], [0], [1], [0, 0, 1, 1], [], []>} : vector<8x8xf32>, vector<8x8xf32>, vector<8x8xf32> -> vector<8x8xf32>
    %274 = tpu.concatenate %264, %267, %270, %273 in 1 : vector<8x8xf32>, vector<8x8xf32>, vector<8x8xf32>, vector<8x8xf32> -> vector<8x32xf32>
    %275 = tpu.concatenate %261, %274 in 0 : vector<8x32xf32>, vector<8x32xf32> -> vector<16x32xf32>
    %cst_96 = arith.constant dense<0.000000e+00> : vector<16x32xf32>
    %276 = tpu.matmul %275, %210, %cst_96 {dimension_numbers = #tpu.dot_dimension_numbers<[1], [0], [0], [1], [0, 0, 1, 1], [], []>} : vector<16x32xf32>, vector<32x32xf32>, vector<16x32xf32> -> vector<16x32xf32>
    %277 = vector.broadcast %211 : vector<1x32xf32> to vector<16x32xf32>
    %278 = arith.addf %276, %277 : vector<16x32xf32>
    %279 = arith.addf %197, %278 : vector<16x32xf32>
    %280 = vector.extract_strided_slice %201 {offsets = [4, 0], sizes = [1, 32], strides = [1, 1]} : vector<8x128xf32> to vector<1x32xf32>
    %281 = vector.extract_strided_slice %201 {offsets = [5, 0], sizes = [1, 32], strides = [1, 1]} : vector<8x128xf32> to vector<1x32xf32>
    %cst_97 = arith.constant dense<0.000000e+00> : vector<16xf32>
    %282 = vector.multi_reduction <add>, %279, %cst_97 [1] : vector<16x32xf32> to vector<16xf32>
    %283 = vector.shape_cast %282 : vector<16xf32> to vector<16x1xf32>
    %cst_98 = arith.constant 3.200000e+01 : f32
    %284 = vector.broadcast %cst_98 : f32 to vector<16x1xf32>
    %285 = arith.divf %283, %284 : vector<16x1xf32>
    %286 = vector.broadcast %285 : vector<16x1xf32> to vector<16x32xf32>
    %287 = arith.subf %279, %286 : vector<16x32xf32>
    %288 = arith.mulf %287, %287 : vector<16x32xf32>
    %cst_99 = arith.constant dense<0.000000e+00> : vector<16xf32>
    %289 = vector.multi_reduction <add>, %288, %cst_99 [1] : vector<16x32xf32> to vector<16xf32>
    %290 = vector.shape_cast %289 : vector<16xf32> to vector<16x1xf32>
    %cst_100 = arith.constant 3.200000e+01 : f32
    %291 = vector.broadcast %cst_100 : f32 to vector<16x1xf32>
    %292 = arith.divf %290, %291 : vector<16x1xf32>
    %293 = vector.broadcast %285 : vector<16x1xf32> to vector<16x32xf32>
    %294 = arith.subf %279, %293 : vector<16x32xf32>
    %cst_101 = arith.constant 9.99999974E-6 : f32
    %295 = vector.broadcast %cst_101 : f32 to vector<16x1xf32>
    %296 = arith.addf %292, %295 : vector<16x1xf32>
    %297 = math.rsqrt %296 : vector<16x1xf32>
    %298 = vector.broadcast %297 : vector<16x1xf32> to vector<16x32xf32>
    %299 = arith.mulf %294, %298 : vector<16x32xf32>
    %300 = vector.broadcast %280 : vector<1x32xf32> to vector<16x32xf32>
    %301 = arith.mulf %299, %300 : vector<16x32xf32>
    %302 = vector.broadcast %281 : vector<1x32xf32> to vector<16x32xf32>
    %303 = arith.addf %301, %302 : vector<16x32xf32>
    %c1_102 = arith.constant 1 : index
    %c0_103 = arith.constant 0 : index
    %c0_104 = arith.constant 0 : index
    %304 = vector.load %arg8[%c1_102, %c0_103, %c0_104] : memref<2x32x64xf32, #tpu.memory_space<vmem>>, vector<1x32x64xf32>
    %305 = vector.shape_cast %304 : vector<1x32x64xf32> to vector<32x64xf32>
    %cst_105 = arith.constant dense<0.000000e+00> : vector<16x64xf32>
    %306 = tpu.matmul %303, %305, %cst_105 {dimension_numbers = #tpu.dot_dimension_numbers<[1], [0], [0], [1], [0, 0, 1, 1], [], []>} : vector<16x32xf32>, vector<32x64xf32>, vector<16x64xf32> -> vector<16x64xf32>
    %307 = vector.extract_strided_slice %201 {offsets = [2, 0], sizes = [1, 64], strides = [1, 1]} : vector<8x128xf32> to vector<1x64xf32>
    %308 = vector.broadcast %307 : vector<1x64xf32> to vector<16x64xf32>
    %309 = arith.addf %306, %308 : vector<16x64xf32>
    %cst_106 = arith.constant 5.000000e-01 : f32
    %310 = vector.broadcast %cst_106 : f32 to vector<16x64xf32>
    %311 = arith.mulf %310, %309 : vector<16x64xf32>
    %cst_107 = arith.constant 0.707106769 : f32
    %312 = vector.broadcast %cst_107 : f32 to vector<16x64xf32>
    %313 = arith.mulf %309, %312 : vector<16x64xf32>
    %314 = math.absf %313 : vector<16x64xf32>
    %cst_108 = arith.constant 0.327591091 : f32
    %315 = vector.broadcast %cst_108 : f32 to vector<16x64xf32>
    %316 = arith.mulf %315, %314 : vector<16x64xf32>
    %cst_109 = arith.constant 1.000000e+00 : f32
    %317 = vector.broadcast %cst_109 : f32 to vector<16x64xf32>
    %318 = arith.addf %317, %316 : vector<16x64xf32>
    %319 = tpu.reciprocal %318 : vector<16x64xf32> -> vector<16x64xf32>
    %cst_110 = arith.constant 1.06140542 : f32
    %320 = vector.broadcast %cst_110 : f32 to vector<16x64xf32>
    %321 = arith.mulf %320, %319 : vector<16x64xf32>
    %cst_111 = arith.constant -1.45315206 : f32
    %322 = vector.broadcast %cst_111 : f32 to vector<16x64xf32>
    %323 = arith.addf %321, %322 : vector<16x64xf32>
    %324 = arith.mulf %323, %319 : vector<16x64xf32>
    %cst_112 = arith.constant 1.42141378 : f32
    %325 = vector.broadcast %cst_112 : f32 to vector<16x64xf32>
    %326 = arith.addf %324, %325 : vector<16x64xf32>
    %327 = arith.mulf %326, %319 : vector<16x64xf32>
    %cst_113 = arith.constant -0.284496725 : f32
    %328 = vector.broadcast %cst_113 : f32 to vector<16x64xf32>
    %329 = arith.addf %327, %328 : vector<16x64xf32>
    %330 = arith.mulf %329, %319 : vector<16x64xf32>
    %cst_114 = arith.constant 0.254829586 : f32
    %331 = vector.broadcast %cst_114 : f32 to vector<16x64xf32>
    %332 = arith.addf %330, %331 : vector<16x64xf32>
    %333 = arith.mulf %332, %319 : vector<16x64xf32>
    %cst_115 = arith.constant 0.000000e+00 : f32
    %334 = vector.broadcast %cst_115 : f32 to vector<16x64xf32>
    %335 = arith.subf %334, %314 : vector<16x64xf32>
    %336 = arith.mulf %335, %314 : vector<16x64xf32>
    %337 = math.exp %336 : vector<16x64xf32>
    %338 = arith.mulf %333, %337 : vector<16x64xf32>
    %cst_116 = arith.constant 1.000000e+00 : f32
    %339 = vector.broadcast %cst_116 : f32 to vector<16x64xf32>
    %340 = arith.subf %339, %338 : vector<16x64xf32>
    %cst_117 = arith.constant 0.000000e+00 : f32
    %341 = vector.broadcast %cst_117 : f32 to vector<16x64xf32>
    %342 = arith.cmpf oge, %313, %341 : vector<16x64xf32>
    %cst_118 = arith.constant 0.000000e+00 : f32
    %343 = vector.broadcast %cst_118 : f32 to vector<16x64xf32>
    %344 = arith.subf %343, %340 : vector<16x64xf32>
    %345 = arith.select %342, %340, %344 : vector<16x64xi1>, vector<16x64xf32>
    %cst_119 = arith.constant 1.000000e+00 : f32
    %346 = vector.broadcast %cst_119 : f32 to vector<16x64xf32>
    %347 = arith.addf %346, %345 : vector<16x64xf32>
    %348 = arith.mulf %311, %347 : vector<16x64xf32>
    %c1_120 = arith.constant 1 : index
    %c0_121 = arith.constant 0 : index
    %c0_122 = arith.constant 0 : index
    %349 = vector.load %arg9[%c1_120, %c0_121, %c0_122] : memref<2x64x32xf32, #tpu.memory_space<vmem>>, vector<1x64x32xf32>
    %350 = vector.shape_cast %349 : vector<1x64x32xf32> to vector<64x32xf32>
    %cst_123 = arith.constant dense<0.000000e+00> : vector<16x32xf32>
    %351 = tpu.matmul %348, %350, %cst_123 {dimension_numbers = #tpu.dot_dimension_numbers<[1], [0], [0], [1], [0, 0, 1, 1], [], []>} : vector<16x64xf32>, vector<64x32xf32>, vector<16x32xf32> -> vector<16x32xf32>
    %352 = vector.extract_strided_slice %201 {offsets = [3, 0], sizes = [1, 32], strides = [1, 1]} : vector<8x128xf32> to vector<1x32xf32>
    %353 = vector.broadcast %352 : vector<1x32xf32> to vector<16x32xf32>
    %354 = arith.addf %351, %353 : vector<16x32xf32>
    %355 = arith.addf %303, %354 : vector<16x32xf32>
    %356 = vector.extract_strided_slice %201 {offsets = [6, 0], sizes = [1, 32], strides = [1, 1]} : vector<8x128xf32> to vector<1x32xf32>
    %357 = vector.extract_strided_slice %201 {offsets = [7, 0], sizes = [1, 32], strides = [1, 1]} : vector<8x128xf32> to vector<1x32xf32>
    %cst_124 = arith.constant dense<0.000000e+00> : vector<16xf32>
    %358 = vector.multi_reduction <add>, %355, %cst_124 [1] : vector<16x32xf32> to vector<16xf32>
    %359 = vector.shape_cast %358 : vector<16xf32> to vector<16x1xf32>
    %cst_125 = arith.constant 3.200000e+01 : f32
    %360 = vector.broadcast %cst_125 : f32 to vector<16x1xf32>
    %361 = arith.divf %359, %360 : vector<16x1xf32>
    %362 = vector.broadcast %361 : vector<16x1xf32> to vector<16x32xf32>
    %363 = arith.subf %355, %362 : vector<16x32xf32>
    %364 = arith.mulf %363, %363 : vector<16x32xf32>
    %cst_126 = arith.constant dense<0.000000e+00> : vector<16xf32>
    %365 = vector.multi_reduction <add>, %364, %cst_126 [1] : vector<16x32xf32> to vector<16xf32>
    %366 = vector.shape_cast %365 : vector<16xf32> to vector<16x1xf32>
    %cst_127 = arith.constant 3.200000e+01 : f32
    %367 = vector.broadcast %cst_127 : f32 to vector<16x1xf32>
    %368 = arith.divf %366, %367 : vector<16x1xf32>
    %369 = vector.broadcast %361 : vector<16x1xf32> to vector<16x32xf32>
    %370 = arith.subf %355, %369 : vector<16x32xf32>
    %cst_128 = arith.constant 9.99999974E-6 : f32
    %371 = vector.broadcast %cst_128 : f32 to vector<16x1xf32>
    %372 = arith.addf %368, %371 : vector<16x1xf32>
    %373 = math.rsqrt %372 : vector<16x1xf32>
    %374 = vector.broadcast %373 : vector<16x1xf32> to vector<16x32xf32>
    %375 = arith.mulf %370, %374 : vector<16x32xf32>
    %376 = vector.broadcast %356 : vector<1x32xf32> to vector<16x32xf32>
    %377 = arith.mulf %375, %376 : vector<16x32xf32>
    %378 = vector.broadcast %357 : vector<1x32xf32> to vector<16x32xf32>
    %379 = arith.addf %377, %378 : vector<16x32xf32>
    %380 = vector.extract_strided_slice %0 {offsets = [2, 0], sizes = [1, 32], strides = [1, 1]} : vector<8x32xf32> to vector<1x32xf32>
    %381 = vector.extract_strided_slice %0 {offsets = [3, 0], sizes = [1, 32], strides = [1, 1]} : vector<8x32xf32> to vector<1x32xf32>
    %cst_129 = arith.constant dense<0.000000e+00> : vector<16xf32>
    %382 = vector.multi_reduction <add>, %379, %cst_129 [1] : vector<16x32xf32> to vector<16xf32>
    %383 = vector.shape_cast %382 : vector<16xf32> to vector<16x1xf32>
    %cst_130 = arith.constant 3.200000e+01 : f32
    %384 = vector.broadcast %cst_130 : f32 to vector<16x1xf32>
    %385 = arith.divf %383, %384 : vector<16x1xf32>
    %386 = vector.broadcast %385 : vector<16x1xf32> to vector<16x32xf32>
    %387 = arith.subf %379, %386 : vector<16x32xf32>
    %388 = arith.mulf %387, %387 : vector<16x32xf32>
    %cst_131 = arith.constant dense<0.000000e+00> : vector<16xf32>
    %389 = vector.multi_reduction <add>, %388, %cst_131 [1] : vector<16x32xf32> to vector<16xf32>
    %390 = vector.shape_cast %389 : vector<16xf32> to vector<16x1xf32>
    %cst_132 = arith.constant 3.200000e+01 : f32
    %391 = vector.broadcast %cst_132 : f32 to vector<16x1xf32>
    %392 = arith.divf %390, %391 : vector<16x1xf32>
    %393 = vector.broadcast %385 : vector<16x1xf32> to vector<16x32xf32>
    %394 = arith.subf %379, %393 : vector<16x32xf32>
    %cst_133 = arith.constant 9.99999974E-6 : f32
    %395 = vector.broadcast %cst_133 : f32 to vector<16x1xf32>
    %396 = arith.addf %392, %395 : vector<16x1xf32>
    %397 = math.rsqrt %396 : vector<16x1xf32>
    %398 = vector.broadcast %397 : vector<16x1xf32> to vector<16x32xf32>
    %399 = arith.mulf %394, %398 : vector<16x32xf32>
    %400 = vector.broadcast %380 : vector<1x32xf32> to vector<16x32xf32>
    %401 = arith.mulf %399, %400 : vector<16x32xf32>
    %402 = vector.broadcast %381 : vector<1x32xf32> to vector<16x32xf32>
    %403 = arith.addf %401, %402 : vector<16x32xf32>
    %c0_134 = arith.constant 0 : index
    %c0_135 = arith.constant 0 : index
    %c0_136 = arith.constant 0 : index
    %404 = vector.load %arg15[%c0_134, %c0_135, %c0_136] : memref<2x12x128xf32, #tpu.memory_space<vmem>>, vector<1x12x128xf32>
    %405 = vector.shape_cast %404 : vector<1x12x128xf32> to vector<12x128xf32>
    %c0_137 = arith.constant 0 : index
    %c0_138 = arith.constant 0 : index
    %c0_139 = arith.constant 0 : index
    %406 = vector.load %arg11[%c0_137, %c0_138, %c0_139] : memref<2x32x128xf32, #tpu.memory_space<vmem>>, vector<1x32x128xf32>
    %407 = vector.shape_cast %406 : vector<1x32x128xf32> to vector<32x128xf32>
    %408 = vector.extract_strided_slice %407 {offsets = [0, 0], sizes = [32, 96], strides = [1, 1]} : vector<32x128xf32> to vector<32x96xf32>
    %cst_140 = arith.constant dense<0.000000e+00> : vector<16x96xf32>
    %409 = tpu.matmul %6, %408, %cst_140 {dimension_numbers = #tpu.dot_dimension_numbers<[1], [0], [0], [1], [0, 0, 1, 1], [], []>} : vector<16x32xf32>, vector<32x96xf32>, vector<16x96xf32> -> vector<16x96xf32>
    %410 = vector.extract_strided_slice %405 {offsets = [0, 0], sizes = [1, 96], strides = [1, 1]} : vector<12x128xf32> to vector<1x96xf32>
    %411 = vector.broadcast %410 : vector<1x96xf32> to vector<16x96xf32>
    %412 = arith.addf %409, %411 : vector<16x96xf32>
    %413 = vector.extract_strided_slice %412 {offsets = [0, 0], sizes = [16, 32], strides = [1, 1]} : vector<16x96xf32> to vector<16x32xf32>
    %414 = vector.extract_strided_slice %412 {offsets = [0, 32], sizes = [16, 32], strides = [1, 1]} : vector<16x96xf32> to vector<16x32xf32>
    %415 = vector.extract_strided_slice %412 {offsets = [0, 64], sizes = [16, 32], strides = [1, 1]} : vector<16x96xf32> to vector<16x32xf32>
    %416 = vector.extract_strided_slice %407 {offsets = [0, 96], sizes = [32, 32], strides = [1, 1]} : vector<32x128xf32> to vector<32x32xf32>
    %417 = vector.extract_strided_slice %405 {offsets = [1, 0], sizes = [1, 32], strides = [1, 1]} : vector<12x128xf32> to vector<1x32xf32>
    %418 = vector.extract_strided_slice %413 {offsets = [0, 0], sizes = [8, 8], strides = [1, 1]} : vector<16x32xf32> to vector<8x8xf32>
    %419 = vector.extract_strided_slice %414 {offsets = [0, 0], sizes = [8, 8], strides = [1, 1]} : vector<16x32xf32> to vector<8x8xf32>
    %cst_141 = arith.constant dense<0.000000e+00> : vector<8x8xf32>
    %420 = tpu.matmul %418, %419, %cst_141 {dimension_numbers = #tpu.dot_dimension_numbers<[1], [1], [0], [0], [0, 0, 1, 0], [], []>} : vector<8x8xf32>, vector<8x8xf32>, vector<8x8xf32> -> vector<8x8xf32>
    %421 = vector.extract_strided_slice %413 {offsets = [0, 8], sizes = [8, 8], strides = [1, 1]} : vector<16x32xf32> to vector<8x8xf32>
    %422 = vector.extract_strided_slice %414 {offsets = [0, 8], sizes = [8, 8], strides = [1, 1]} : vector<16x32xf32> to vector<8x8xf32>
    %cst_142 = arith.constant dense<0.000000e+00> : vector<8x8xf32>
    %423 = tpu.matmul %421, %422, %cst_142 {dimension_numbers = #tpu.dot_dimension_numbers<[1], [1], [0], [0], [0, 0, 1, 0], [], []>} : vector<8x8xf32>, vector<8x8xf32>, vector<8x8xf32> -> vector<8x8xf32>
    %424 = vector.extract_strided_slice %413 {offsets = [0, 16], sizes = [8, 8], strides = [1, 1]} : vector<16x32xf32> to vector<8x8xf32>
    %425 = vector.extract_strided_slice %414 {offsets = [0, 16], sizes = [8, 8], strides = [1, 1]} : vector<16x32xf32> to vector<8x8xf32>
    %cst_143 = arith.constant dense<0.000000e+00> : vector<8x8xf32>
    %426 = tpu.matmul %424, %425, %cst_143 {dimension_numbers = #tpu.dot_dimension_numbers<[1], [1], [0], [0], [0, 0, 1, 0], [], []>} : vector<8x8xf32>, vector<8x8xf32>, vector<8x8xf32> -> vector<8x8xf32>
    %427 = vector.extract_strided_slice %413 {offsets = [0, 24], sizes = [8, 8], strides = [1, 1]} : vector<16x32xf32> to vector<8x8xf32>
    %428 = vector.extract_strided_slice %414 {offsets = [0, 24], sizes = [8, 8], strides = [1, 1]} : vector<16x32xf32> to vector<8x8xf32>
    %cst_144 = arith.constant dense<0.000000e+00> : vector<8x8xf32>
    %429 = tpu.matmul %427, %428, %cst_144 {dimension_numbers = #tpu.dot_dimension_numbers<[1], [1], [0], [0], [0, 0, 1, 0], [], []>} : vector<8x8xf32>, vector<8x8xf32>, vector<8x8xf32> -> vector<8x8xf32>
    %430 = vector.extract_strided_slice %413 {offsets = [8, 0], sizes = [8, 8], strides = [1, 1]} : vector<16x32xf32> to vector<8x8xf32>
    %431 = vector.extract_strided_slice %414 {offsets = [8, 0], sizes = [8, 8], strides = [1, 1]} : vector<16x32xf32> to vector<8x8xf32>
    %cst_145 = arith.constant dense<0.000000e+00> : vector<8x8xf32>
    %432 = tpu.matmul %430, %431, %cst_145 {dimension_numbers = #tpu.dot_dimension_numbers<[1], [1], [0], [0], [0, 0, 1, 0], [], []>} : vector<8x8xf32>, vector<8x8xf32>, vector<8x8xf32> -> vector<8x8xf32>
    %433 = vector.extract_strided_slice %413 {offsets = [8, 8], sizes = [8, 8], strides = [1, 1]} : vector<16x32xf32> to vector<8x8xf32>
    %434 = vector.extract_strided_slice %414 {offsets = [8, 8], sizes = [8, 8], strides = [1, 1]} : vector<16x32xf32> to vector<8x8xf32>
    %cst_146 = arith.constant dense<0.000000e+00> : vector<8x8xf32>
    %435 = tpu.matmul %433, %434, %cst_146 {dimension_numbers = #tpu.dot_dimension_numbers<[1], [1], [0], [0], [0, 0, 1, 0], [], []>} : vector<8x8xf32>, vector<8x8xf32>, vector<8x8xf32> -> vector<8x8xf32>
    %436 = vector.extract_strided_slice %413 {offsets = [8, 16], sizes = [8, 8], strides = [1, 1]} : vector<16x32xf32> to vector<8x8xf32>
    %437 = vector.extract_strided_slice %414 {offsets = [8, 16], sizes = [8, 8], strides = [1, 1]} : vector<16x32xf32> to vector<8x8xf32>
    %cst_147 = arith.constant dense<0.000000e+00> : vector<8x8xf32>
    %438 = tpu.matmul %436, %437, %cst_147 {dimension_numbers = #tpu.dot_dimension_numbers<[1], [1], [0], [0], [0, 0, 1, 0], [], []>} : vector<8x8xf32>, vector<8x8xf32>, vector<8x8xf32> -> vector<8x8xf32>
    %439 = vector.extract_strided_slice %413 {offsets = [8, 24], sizes = [8, 8], strides = [1, 1]} : vector<16x32xf32> to vector<8x8xf32>
    %440 = vector.extract_strided_slice %414 {offsets = [8, 24], sizes = [8, 8], strides = [1, 1]} : vector<16x32xf32> to vector<8x8xf32>
    %cst_148 = arith.constant dense<0.000000e+00> : vector<8x8xf32>
    %441 = tpu.matmul %439, %440, %cst_148 {dimension_numbers = #tpu.dot_dimension_numbers<[1], [1], [0], [0], [0, 0, 1, 0], [], []>} : vector<8x8xf32>, vector<8x8xf32>, vector<8x8xf32> -> vector<8x8xf32>
    %442 = tpu.concatenate %420, %423, %426, %429, %432, %435, %438, %441 in 0 : vector<8x8xf32>, vector<8x8xf32>, vector<8x8xf32>, vector<8x8xf32>, vector<8x8xf32>, vector<8x8xf32>, vector<8x8xf32>, vector<8x8xf32> -> vector<64x8xf32>
    %cst_149 = arith.constant 0.353553385 : f32
    %443 = vector.broadcast %cst_149 : f32 to vector<64x8xf32>
    %444 = arith.mulf %442, %443 : vector<64x8xf32>
    %cst_150 = arith.constant dense<0xFF800000> : vector<64xf32>
    %445 = vector.multi_reduction <maximumf>, %444, %cst_150 [1] : vector<64x8xf32> to vector<64xf32>
    %446 = vector.shape_cast %445 : vector<64xf32> to vector<64x1xf32>
    %447 = vector.broadcast %446 : vector<64x1xf32> to vector<64x8xf32>
    %448 = arith.subf %444, %447 : vector<64x8xf32>
    %449 = math.exp %448 : vector<64x8xf32>
    %cst_151 = arith.constant dense<0.000000e+00> : vector<64xf32>
    %450 = vector.multi_reduction <add>, %449, %cst_151 [1] : vector<64x8xf32> to vector<64xf32>
    %451 = vector.shape_cast %450 : vector<64xf32> to vector<64x1xf32>
    %452 = tpu.reciprocal %451 : vector<64x1xf32> -> vector<64x1xf32>
    %453 = vector.broadcast %452 : vector<64x1xf32> to vector<64x8xf32>
    %454 = arith.mulf %449, %453 : vector<64x8xf32>
    %455 = vector.extract_strided_slice %454 {offsets = [0, 0], sizes = [8, 8], strides = [1, 1]} : vector<64x8xf32> to vector<8x8xf32>
    %456 = vector.extract_strided_slice %415 {offsets = [0, 0], sizes = [8, 8], strides = [1, 1]} : vector<16x32xf32> to vector<8x8xf32>
    %cst_152 = arith.constant dense<0.000000e+00> : vector<8x8xf32>
    %457 = tpu.matmul %455, %456, %cst_152 {dimension_numbers = #tpu.dot_dimension_numbers<[1], [0], [0], [1], [0, 0, 1, 1], [], []>} : vector<8x8xf32>, vector<8x8xf32>, vector<8x8xf32> -> vector<8x8xf32>
    %458 = vector.extract_strided_slice %454 {offsets = [8, 0], sizes = [8, 8], strides = [1, 1]} : vector<64x8xf32> to vector<8x8xf32>
    %459 = vector.extract_strided_slice %415 {offsets = [0, 8], sizes = [8, 8], strides = [1, 1]} : vector<16x32xf32> to vector<8x8xf32>
    %cst_153 = arith.constant dense<0.000000e+00> : vector<8x8xf32>
    %460 = tpu.matmul %458, %459, %cst_153 {dimension_numbers = #tpu.dot_dimension_numbers<[1], [0], [0], [1], [0, 0, 1, 1], [], []>} : vector<8x8xf32>, vector<8x8xf32>, vector<8x8xf32> -> vector<8x8xf32>
    %461 = vector.extract_strided_slice %454 {offsets = [16, 0], sizes = [8, 8], strides = [1, 1]} : vector<64x8xf32> to vector<8x8xf32>
    %462 = vector.extract_strided_slice %415 {offsets = [0, 16], sizes = [8, 8], strides = [1, 1]} : vector<16x32xf32> to vector<8x8xf32>
    %cst_154 = arith.constant dense<0.000000e+00> : vector<8x8xf32>
    %463 = tpu.matmul %461, %462, %cst_154 {dimension_numbers = #tpu.dot_dimension_numbers<[1], [0], [0], [1], [0, 0, 1, 1], [], []>} : vector<8x8xf32>, vector<8x8xf32>, vector<8x8xf32> -> vector<8x8xf32>
    %464 = vector.extract_strided_slice %454 {offsets = [24, 0], sizes = [8, 8], strides = [1, 1]} : vector<64x8xf32> to vector<8x8xf32>
    %465 = vector.extract_strided_slice %415 {offsets = [0, 24], sizes = [8, 8], strides = [1, 1]} : vector<16x32xf32> to vector<8x8xf32>
    %cst_155 = arith.constant dense<0.000000e+00> : vector<8x8xf32>
    %466 = tpu.matmul %464, %465, %cst_155 {dimension_numbers = #tpu.dot_dimension_numbers<[1], [0], [0], [1], [0, 0, 1, 1], [], []>} : vector<8x8xf32>, vector<8x8xf32>, vector<8x8xf32> -> vector<8x8xf32>
    %467 = tpu.concatenate %457, %460, %463, %466 in 1 : vector<8x8xf32>, vector<8x8xf32>, vector<8x8xf32>, vector<8x8xf32> -> vector<8x32xf32>
    %468 = vector.extract_strided_slice %454 {offsets = [32, 0], sizes = [8, 8], strides = [1, 1]} : vector<64x8xf32> to vector<8x8xf32>
    %469 = vector.extract_strided_slice %415 {offsets = [8, 0], sizes = [8, 8], strides = [1, 1]} : vector<16x32xf32> to vector<8x8xf32>
    %cst_156 = arith.constant dense<0.000000e+00> : vector<8x8xf32>
    %470 = tpu.matmul %468, %469, %cst_156 {dimension_numbers = #tpu.dot_dimension_numbers<[1], [0], [0], [1], [0, 0, 1, 1], [], []>} : vector<8x8xf32>, vector<8x8xf32>, vector<8x8xf32> -> vector<8x8xf32>
    %471 = vector.extract_strided_slice %454 {offsets = [40, 0], sizes = [8, 8], strides = [1, 1]} : vector<64x8xf32> to vector<8x8xf32>
    %472 = vector.extract_strided_slice %415 {offsets = [8, 8], sizes = [8, 8], strides = [1, 1]} : vector<16x32xf32> to vector<8x8xf32>
    %cst_157 = arith.constant dense<0.000000e+00> : vector<8x8xf32>
    %473 = tpu.matmul %471, %472, %cst_157 {dimension_numbers = #tpu.dot_dimension_numbers<[1], [0], [0], [1], [0, 0, 1, 1], [], []>} : vector<8x8xf32>, vector<8x8xf32>, vector<8x8xf32> -> vector<8x8xf32>
    %474 = vector.extract_strided_slice %454 {offsets = [48, 0], sizes = [8, 8], strides = [1, 1]} : vector<64x8xf32> to vector<8x8xf32>
    %475 = vector.extract_strided_slice %415 {offsets = [8, 16], sizes = [8, 8], strides = [1, 1]} : vector<16x32xf32> to vector<8x8xf32>
    %cst_158 = arith.constant dense<0.000000e+00> : vector<8x8xf32>
    %476 = tpu.matmul %474, %475, %cst_158 {dimension_numbers = #tpu.dot_dimension_numbers<[1], [0], [0], [1], [0, 0, 1, 1], [], []>} : vector<8x8xf32>, vector<8x8xf32>, vector<8x8xf32> -> vector<8x8xf32>
    %477 = vector.extract_strided_slice %454 {offsets = [56, 0], sizes = [8, 8], strides = [1, 1]} : vector<64x8xf32> to vector<8x8xf32>
    %478 = vector.extract_strided_slice %415 {offsets = [8, 24], sizes = [8, 8], strides = [1, 1]} : vector<16x32xf32> to vector<8x8xf32>
    %cst_159 = arith.constant dense<0.000000e+00> : vector<8x8xf32>
    %479 = tpu.matmul %477, %478, %cst_159 {dimension_numbers = #tpu.dot_dimension_numbers<[1], [0], [0], [1], [0, 0, 1, 1], [], []>} : vector<8x8xf32>, vector<8x8xf32>, vector<8x8xf32> -> vector<8x8xf32>
    %480 = tpu.concatenate %470, %473, %476, %479 in 1 : vector<8x8xf32>, vector<8x8xf32>, vector<8x8xf32>, vector<8x8xf32> -> vector<8x32xf32>
    %481 = tpu.concatenate %467, %480 in 0 : vector<8x32xf32>, vector<8x32xf32> -> vector<16x32xf32>
    %cst_160 = arith.constant dense<0.000000e+00> : vector<16x32xf32>
    %482 = tpu.matmul %481, %416, %cst_160 {dimension_numbers = #tpu.dot_dimension_numbers<[1], [0], [0], [1], [0, 0, 1, 1], [], []>} : vector<16x32xf32>, vector<32x32xf32>, vector<16x32xf32> -> vector<16x32xf32>
    %483 = vector.broadcast %417 : vector<1x32xf32> to vector<16x32xf32>
    %484 = arith.addf %482, %483 : vector<16x32xf32>
    %485 = arith.addf %6, %484 : vector<16x32xf32>
    %486 = vector.extract_strided_slice %405 {offsets = [6, 0], sizes = [1, 32], strides = [1, 1]} : vector<12x128xf32> to vector<1x32xf32>
    %487 = vector.extract_strided_slice %405 {offsets = [7, 0], sizes = [1, 32], strides = [1, 1]} : vector<12x128xf32> to vector<1x32xf32>
    %cst_161 = arith.constant dense<0.000000e+00> : vector<16xf32>
    %488 = vector.multi_reduction <add>, %485, %cst_161 [1] : vector<16x32xf32> to vector<16xf32>
    %489 = vector.shape_cast %488 : vector<16xf32> to vector<16x1xf32>
    %cst_162 = arith.constant 3.200000e+01 : f32
    %490 = vector.broadcast %cst_162 : f32 to vector<16x1xf32>
    %491 = arith.divf %489, %490 : vector<16x1xf32>
    %492 = vector.broadcast %491 : vector<16x1xf32> to vector<16x32xf32>
    %493 = arith.subf %485, %492 : vector<16x32xf32>
    %494 = arith.mulf %493, %493 : vector<16x32xf32>
    %cst_163 = arith.constant dense<0.000000e+00> : vector<16xf32>
    %495 = vector.multi_reduction <add>, %494, %cst_163 [1] : vector<16x32xf32> to vector<16xf32>
    %496 = vector.shape_cast %495 : vector<16xf32> to vector<16x1xf32>
    %cst_164 = arith.constant 3.200000e+01 : f32
    %497 = vector.broadcast %cst_164 : f32 to vector<16x1xf32>
    %498 = arith.divf %496, %497 : vector<16x1xf32>
    %499 = vector.broadcast %491 : vector<16x1xf32> to vector<16x32xf32>
    %500 = arith.subf %485, %499 : vector<16x32xf32>
    %cst_165 = arith.constant 9.99999974E-6 : f32
    %501 = vector.broadcast %cst_165 : f32 to vector<16x1xf32>
    %502 = arith.addf %498, %501 : vector<16x1xf32>
    %503 = math.rsqrt %502 : vector<16x1xf32>
    %504 = vector.broadcast %503 : vector<16x1xf32> to vector<16x32xf32>
    %505 = arith.mulf %500, %504 : vector<16x32xf32>
    %506 = vector.broadcast %486 : vector<1x32xf32> to vector<16x32xf32>
    %507 = arith.mulf %505, %506 : vector<16x32xf32>
    %508 = vector.broadcast %487 : vector<1x32xf32> to vector<16x32xf32>
    %509 = arith.addf %507, %508 : vector<16x32xf32>
    %c0_166 = arith.constant 0 : index
    %c0_167 = arith.constant 0 : index
    %c0_168 = arith.constant 0 : index
    %510 = vector.load %arg12[%c0_166, %c0_167, %c0_168] : memref<2x32x128xf32, #tpu.memory_space<vmem>>, vector<1x32x128xf32>
    %511 = vector.shape_cast %510 : vector<1x32x128xf32> to vector<32x128xf32>
    %512 = vector.extract_strided_slice %511 {offsets = [0, 0], sizes = [32, 32], strides = [1, 1]} : vector<32x128xf32> to vector<32x32xf32>
    %cst_169 = arith.constant dense<0.000000e+00> : vector<16x32xf32>
    %513 = tpu.matmul %509, %512, %cst_169 {dimension_numbers = #tpu.dot_dimension_numbers<[1], [0], [0], [1], [0, 0, 1, 1], [], []>} : vector<16x32xf32>, vector<32x32xf32>, vector<16x32xf32> -> vector<16x32xf32>
    %514 = vector.extract_strided_slice %405 {offsets = [2, 0], sizes = [1, 32], strides = [1, 1]} : vector<12x128xf32> to vector<1x32xf32>
    %515 = vector.broadcast %514 : vector<1x32xf32> to vector<16x32xf32>
    %516 = arith.addf %513, %515 : vector<16x32xf32>
    %517 = vector.extract_strided_slice %511 {offsets = [0, 32], sizes = [32, 64], strides = [1, 1]} : vector<32x128xf32> to vector<32x64xf32>
    %cst_170 = arith.constant dense<0.000000e+00> : vector<16x64xf32>
    %518 = tpu.matmul %403, %517, %cst_170 {dimension_numbers = #tpu.dot_dimension_numbers<[1], [0], [0], [1], [0, 0, 1, 1], [], []>} : vector<16x32xf32>, vector<32x64xf32>, vector<16x64xf32> -> vector<16x64xf32>
    %519 = vector.extract_strided_slice %405 {offsets = [2, 32], sizes = [1, 64], strides = [1, 1]} : vector<12x128xf32> to vector<1x64xf32>
    %520 = vector.broadcast %519 : vector<1x64xf32> to vector<16x64xf32>
    %521 = arith.addf %518, %520 : vector<16x64xf32>
    %522 = vector.extract_strided_slice %521 {offsets = [0, 0], sizes = [16, 32], strides = [1, 1]} : vector<16x64xf32> to vector<16x32xf32>
    %523 = vector.extract_strided_slice %521 {offsets = [0, 32], sizes = [16, 32], strides = [1, 1]} : vector<16x64xf32> to vector<16x32xf32>
    %524 = vector.extract_strided_slice %511 {offsets = [0, 96], sizes = [32, 32], strides = [1, 1]} : vector<32x128xf32> to vector<32x32xf32>
    %525 = vector.extract_strided_slice %405 {offsets = [3, 0], sizes = [1, 32], strides = [1, 1]} : vector<12x128xf32> to vector<1x32xf32>
    %526 = vector.extract_strided_slice %516 {offsets = [0, 0], sizes = [8, 8], strides = [1, 1]} : vector<16x32xf32> to vector<8x8xf32>
    %527 = vector.extract_strided_slice %522 {offsets = [0, 0], sizes = [8, 8], strides = [1, 1]} : vector<16x32xf32> to vector<8x8xf32>
    %cst_171 = arith.constant dense<0.000000e+00> : vector<8x8xf32>
    %528 = tpu.matmul %526, %527, %cst_171 {dimension_numbers = #tpu.dot_dimension_numbers<[1], [1], [0], [0], [0, 0, 1, 0], [], []>} : vector<8x8xf32>, vector<8x8xf32>, vector<8x8xf32> -> vector<8x8xf32>
    %529 = vector.extract_strided_slice %516 {offsets = [0, 8], sizes = [8, 8], strides = [1, 1]} : vector<16x32xf32> to vector<8x8xf32>
    %530 = vector.extract_strided_slice %522 {offsets = [0, 8], sizes = [8, 8], strides = [1, 1]} : vector<16x32xf32> to vector<8x8xf32>
    %cst_172 = arith.constant dense<0.000000e+00> : vector<8x8xf32>
    %531 = tpu.matmul %529, %530, %cst_172 {dimension_numbers = #tpu.dot_dimension_numbers<[1], [1], [0], [0], [0, 0, 1, 0], [], []>} : vector<8x8xf32>, vector<8x8xf32>, vector<8x8xf32> -> vector<8x8xf32>
    %532 = vector.extract_strided_slice %516 {offsets = [0, 16], sizes = [8, 8], strides = [1, 1]} : vector<16x32xf32> to vector<8x8xf32>
    %533 = vector.extract_strided_slice %522 {offsets = [0, 16], sizes = [8, 8], strides = [1, 1]} : vector<16x32xf32> to vector<8x8xf32>
    %cst_173 = arith.constant dense<0.000000e+00> : vector<8x8xf32>
    %534 = tpu.matmul %532, %533, %cst_173 {dimension_numbers = #tpu.dot_dimension_numbers<[1], [1], [0], [0], [0, 0, 1, 0], [], []>} : vector<8x8xf32>, vector<8x8xf32>, vector<8x8xf32> -> vector<8x8xf32>
    %535 = vector.extract_strided_slice %516 {offsets = [0, 24], sizes = [8, 8], strides = [1, 1]} : vector<16x32xf32> to vector<8x8xf32>
    %536 = vector.extract_strided_slice %522 {offsets = [0, 24], sizes = [8, 8], strides = [1, 1]} : vector<16x32xf32> to vector<8x8xf32>
    %cst_174 = arith.constant dense<0.000000e+00> : vector<8x8xf32>
    %537 = tpu.matmul %535, %536, %cst_174 {dimension_numbers = #tpu.dot_dimension_numbers<[1], [1], [0], [0], [0, 0, 1, 0], [], []>} : vector<8x8xf32>, vector<8x8xf32>, vector<8x8xf32> -> vector<8x8xf32>
    %538 = vector.extract_strided_slice %516 {offsets = [8, 0], sizes = [8, 8], strides = [1, 1]} : vector<16x32xf32> to vector<8x8xf32>
    %539 = vector.extract_strided_slice %522 {offsets = [8, 0], sizes = [8, 8], strides = [1, 1]} : vector<16x32xf32> to vector<8x8xf32>
    %cst_175 = arith.constant dense<0.000000e+00> : vector<8x8xf32>
    %540 = tpu.matmul %538, %539, %cst_175 {dimension_numbers = #tpu.dot_dimension_numbers<[1], [1], [0], [0], [0, 0, 1, 0], [], []>} : vector<8x8xf32>, vector<8x8xf32>, vector<8x8xf32> -> vector<8x8xf32>
    %541 = vector.extract_strided_slice %516 {offsets = [8, 8], sizes = [8, 8], strides = [1, 1]} : vector<16x32xf32> to vector<8x8xf32>
    %542 = vector.extract_strided_slice %522 {offsets = [8, 8], sizes = [8, 8], strides = [1, 1]} : vector<16x32xf32> to vector<8x8xf32>
    %cst_176 = arith.constant dense<0.000000e+00> : vector<8x8xf32>
    %543 = tpu.matmul %541, %542, %cst_176 {dimension_numbers = #tpu.dot_dimension_numbers<[1], [1], [0], [0], [0, 0, 1, 0], [], []>} : vector<8x8xf32>, vector<8x8xf32>, vector<8x8xf32> -> vector<8x8xf32>
    %544 = vector.extract_strided_slice %516 {offsets = [8, 16], sizes = [8, 8], strides = [1, 1]} : vector<16x32xf32> to vector<8x8xf32>
    %545 = vector.extract_strided_slice %522 {offsets = [8, 16], sizes = [8, 8], strides = [1, 1]} : vector<16x32xf32> to vector<8x8xf32>
    %cst_177 = arith.constant dense<0.000000e+00> : vector<8x8xf32>
    %546 = tpu.matmul %544, %545, %cst_177 {dimension_numbers = #tpu.dot_dimension_numbers<[1], [1], [0], [0], [0, 0, 1, 0], [], []>} : vector<8x8xf32>, vector<8x8xf32>, vector<8x8xf32> -> vector<8x8xf32>
    %547 = vector.extract_strided_slice %516 {offsets = [8, 24], sizes = [8, 8], strides = [1, 1]} : vector<16x32xf32> to vector<8x8xf32>
    %548 = vector.extract_strided_slice %522 {offsets = [8, 24], sizes = [8, 8], strides = [1, 1]} : vector<16x32xf32> to vector<8x8xf32>
    %cst_178 = arith.constant dense<0.000000e+00> : vector<8x8xf32>
    %549 = tpu.matmul %547, %548, %cst_178 {dimension_numbers = #tpu.dot_dimension_numbers<[1], [1], [0], [0], [0, 0, 1, 0], [], []>} : vector<8x8xf32>, vector<8x8xf32>, vector<8x8xf32> -> vector<8x8xf32>
    %550 = tpu.concatenate %528, %531, %534, %537, %540, %543, %546, %549 in 0 : vector<8x8xf32>, vector<8x8xf32>, vector<8x8xf32>, vector<8x8xf32>, vector<8x8xf32>, vector<8x8xf32>, vector<8x8xf32>, vector<8x8xf32> -> vector<64x8xf32>
    %cst_179 = arith.constant 0.353553385 : f32
    %551 = vector.broadcast %cst_179 : f32 to vector<64x8xf32>
    %552 = arith.mulf %550, %551 : vector<64x8xf32>
    %cst_180 = arith.constant dense<0xFF800000> : vector<64xf32>
    %553 = vector.multi_reduction <maximumf>, %552, %cst_180 [1] : vector<64x8xf32> to vector<64xf32>
    %554 = vector.shape_cast %553 : vector<64xf32> to vector<64x1xf32>
    %555 = vector.broadcast %554 : vector<64x1xf32> to vector<64x8xf32>
    %556 = arith.subf %552, %555 : vector<64x8xf32>
    %557 = math.exp %556 : vector<64x8xf32>
    %cst_181 = arith.constant dense<0.000000e+00> : vector<64xf32>
    %558 = vector.multi_reduction <add>, %557, %cst_181 [1] : vector<64x8xf32> to vector<64xf32>
    %559 = vector.shape_cast %558 : vector<64xf32> to vector<64x1xf32>
    %560 = tpu.reciprocal %559 : vector<64x1xf32> -> vector<64x1xf32>
    %561 = vector.broadcast %560 : vector<64x1xf32> to vector<64x8xf32>
    %562 = arith.mulf %557, %561 : vector<64x8xf32>
    %563 = vector.extract_strided_slice %562 {offsets = [0, 0], sizes = [8, 8], strides = [1, 1]} : vector<64x8xf32> to vector<8x8xf32>
    %564 = vector.extract_strided_slice %523 {offsets = [0, 0], sizes = [8, 8], strides = [1, 1]} : vector<16x32xf32> to vector<8x8xf32>
    %cst_182 = arith.constant dense<0.000000e+00> : vector<8x8xf32>
    %565 = tpu.matmul %563, %564, %cst_182 {dimension_numbers = #tpu.dot_dimension_numbers<[1], [0], [0], [1], [0, 0, 1, 1], [], []>} : vector<8x8xf32>, vector<8x8xf32>, vector<8x8xf32> -> vector<8x8xf32>
    %566 = vector.extract_strided_slice %562 {offsets = [8, 0], sizes = [8, 8], strides = [1, 1]} : vector<64x8xf32> to vector<8x8xf32>
    %567 = vector.extract_strided_slice %523 {offsets = [0, 8], sizes = [8, 8], strides = [1, 1]} : vector<16x32xf32> to vector<8x8xf32>
    %cst_183 = arith.constant dense<0.000000e+00> : vector<8x8xf32>
    %568 = tpu.matmul %566, %567, %cst_183 {dimension_numbers = #tpu.dot_dimension_numbers<[1], [0], [0], [1], [0, 0, 1, 1], [], []>} : vector<8x8xf32>, vector<8x8xf32>, vector<8x8xf32> -> vector<8x8xf32>
    %569 = vector.extract_strided_slice %562 {offsets = [16, 0], sizes = [8, 8], strides = [1, 1]} : vector<64x8xf32> to vector<8x8xf32>
    %570 = vector.extract_strided_slice %523 {offsets = [0, 16], sizes = [8, 8], strides = [1, 1]} : vector<16x32xf32> to vector<8x8xf32>
    %cst_184 = arith.constant dense<0.000000e+00> : vector<8x8xf32>
    %571 = tpu.matmul %569, %570, %cst_184 {dimension_numbers = #tpu.dot_dimension_numbers<[1], [0], [0], [1], [0, 0, 1, 1], [], []>} : vector<8x8xf32>, vector<8x8xf32>, vector<8x8xf32> -> vector<8x8xf32>
    %572 = vector.extract_strided_slice %562 {offsets = [24, 0], sizes = [8, 8], strides = [1, 1]} : vector<64x8xf32> to vector<8x8xf32>
    %573 = vector.extract_strided_slice %523 {offsets = [0, 24], sizes = [8, 8], strides = [1, 1]} : vector<16x32xf32> to vector<8x8xf32>
    %cst_185 = arith.constant dense<0.000000e+00> : vector<8x8xf32>
    %574 = tpu.matmul %572, %573, %cst_185 {dimension_numbers = #tpu.dot_dimension_numbers<[1], [0], [0], [1], [0, 0, 1, 1], [], []>} : vector<8x8xf32>, vector<8x8xf32>, vector<8x8xf32> -> vector<8x8xf32>
    %575 = tpu.concatenate %565, %568, %571, %574 in 1 : vector<8x8xf32>, vector<8x8xf32>, vector<8x8xf32>, vector<8x8xf32> -> vector<8x32xf32>
    %576 = vector.extract_strided_slice %562 {offsets = [32, 0], sizes = [8, 8], strides = [1, 1]} : vector<64x8xf32> to vector<8x8xf32>
    %577 = vector.extract_strided_slice %523 {offsets = [8, 0], sizes = [8, 8], strides = [1, 1]} : vector<16x32xf32> to vector<8x8xf32>
    %cst_186 = arith.constant dense<0.000000e+00> : vector<8x8xf32>
    %578 = tpu.matmul %576, %577, %cst_186 {dimension_numbers = #tpu.dot_dimension_numbers<[1], [0], [0], [1], [0, 0, 1, 1], [], []>} : vector<8x8xf32>, vector<8x8xf32>, vector<8x8xf32> -> vector<8x8xf32>
    %579 = vector.extract_strided_slice %562 {offsets = [40, 0], sizes = [8, 8], strides = [1, 1]} : vector<64x8xf32> to vector<8x8xf32>
    %580 = vector.extract_strided_slice %523 {offsets = [8, 8], sizes = [8, 8], strides = [1, 1]} : vector<16x32xf32> to vector<8x8xf32>
    %cst_187 = arith.constant dense<0.000000e+00> : vector<8x8xf32>
    %581 = tpu.matmul %579, %580, %cst_187 {dimension_numbers = #tpu.dot_dimension_numbers<[1], [0], [0], [1], [0, 0, 1, 1], [], []>} : vector<8x8xf32>, vector<8x8xf32>, vector<8x8xf32> -> vector<8x8xf32>
    %582 = vector.extract_strided_slice %562 {offsets = [48, 0], sizes = [8, 8], strides = [1, 1]} : vector<64x8xf32> to vector<8x8xf32>
    %583 = vector.extract_strided_slice %523 {offsets = [8, 16], sizes = [8, 8], strides = [1, 1]} : vector<16x32xf32> to vector<8x8xf32>
    %cst_188 = arith.constant dense<0.000000e+00> : vector<8x8xf32>
    %584 = tpu.matmul %582, %583, %cst_188 {dimension_numbers = #tpu.dot_dimension_numbers<[1], [0], [0], [1], [0, 0, 1, 1], [], []>} : vector<8x8xf32>, vector<8x8xf32>, vector<8x8xf32> -> vector<8x8xf32>
    %585 = vector.extract_strided_slice %562 {offsets = [56, 0], sizes = [8, 8], strides = [1, 1]} : vector<64x8xf32> to vector<8x8xf32>
    %586 = vector.extract_strided_slice %523 {offsets = [8, 24], sizes = [8, 8], strides = [1, 1]} : vector<16x32xf32> to vector<8x8xf32>
    %cst_189 = arith.constant dense<0.000000e+00> : vector<8x8xf32>
    %587 = tpu.matmul %585, %586, %cst_189 {dimension_numbers = #tpu.dot_dimension_numbers<[1], [0], [0], [1], [0, 0, 1, 1], [], []>} : vector<8x8xf32>, vector<8x8xf32>, vector<8x8xf32> -> vector<8x8xf32>
    %588 = tpu.concatenate %578, %581, %584, %587 in 1 : vector<8x8xf32>, vector<8x8xf32>, vector<8x8xf32>, vector<8x8xf32> -> vector<8x32xf32>
    %589 = tpu.concatenate %575, %588 in 0 : vector<8x32xf32>, vector<8x32xf32> -> vector<16x32xf32>
    %cst_190 = arith.constant dense<0.000000e+00> : vector<16x32xf32>
    %590 = tpu.matmul %589, %524, %cst_190 {dimension_numbers = #tpu.dot_dimension_numbers<[1], [0], [0], [1], [0, 0, 1, 1], [], []>} : vector<16x32xf32>, vector<32x32xf32>, vector<16x32xf32> -> vector<16x32xf32>
    %591 = vector.broadcast %525 : vector<1x32xf32> to vector<16x32xf32>
    %592 = arith.addf %590, %591 : vector<16x32xf32>
    %593 = arith.addf %509, %592 : vector<16x32xf32>
    %594 = vector.extract_strided_slice %405 {offsets = [8, 0], sizes = [1, 32], strides = [1, 1]} : vector<12x128xf32> to vector<1x32xf32>
    %595 = vector.extract_strided_slice %405 {offsets = [9, 0], sizes = [1, 32], strides = [1, 1]} : vector<12x128xf32> to vector<1x32xf32>
    %cst_191 = arith.constant dense<0.000000e+00> : vector<16xf32>
    %596 = vector.multi_reduction <add>, %593, %cst_191 [1] : vector<16x32xf32> to vector<16xf32>
    %597 = vector.shape_cast %596 : vector<16xf32> to vector<16x1xf32>
    %cst_192 = arith.constant 3.200000e+01 : f32
    %598 = vector.broadcast %cst_192 : f32 to vector<16x1xf32>
    %599 = arith.divf %597, %598 : vector<16x1xf32>
    %600 = vector.broadcast %599 : vector<16x1xf32> to vector<16x32xf32>
    %601 = arith.subf %593, %600 : vector<16x32xf32>
    %602 = arith.mulf %601, %601 : vector<16x32xf32>
    %cst_193 = arith.constant dense<0.000000e+00> : vector<16xf32>
    %603 = vector.multi_reduction <add>, %602, %cst_193 [1] : vector<16x32xf32> to vector<16xf32>
    %604 = vector.shape_cast %603 : vector<16xf32> to vector<16x1xf32>
    %cst_194 = arith.constant 3.200000e+01 : f32
    %605 = vector.broadcast %cst_194 : f32 to vector<16x1xf32>
    %606 = arith.divf %604, %605 : vector<16x1xf32>
    %607 = vector.broadcast %599 : vector<16x1xf32> to vector<16x32xf32>
    %608 = arith.subf %593, %607 : vector<16x32xf32>
    %cst_195 = arith.constant 9.99999974E-6 : f32
    %609 = vector.broadcast %cst_195 : f32 to vector<16x1xf32>
    %610 = arith.addf %606, %609 : vector<16x1xf32>
    %611 = math.rsqrt %610 : vector<16x1xf32>
    %612 = vector.broadcast %611 : vector<16x1xf32> to vector<16x32xf32>
    %613 = arith.mulf %608, %612 : vector<16x32xf32>
    %614 = vector.broadcast %594 : vector<1x32xf32> to vector<16x32xf32>
    %615 = arith.mulf %613, %614 : vector<16x32xf32>
    %616 = vector.broadcast %595 : vector<1x32xf32> to vector<16x32xf32>
    %617 = arith.addf %615, %616 : vector<16x32xf32>
    %c0_196 = arith.constant 0 : index
    %c0_197 = arith.constant 0 : index
    %c0_198 = arith.constant 0 : index
    %618 = vector.load %arg13[%c0_196, %c0_197, %c0_198] : memref<2x32x64xf32, #tpu.memory_space<vmem>>, vector<1x32x64xf32>
    %619 = vector.shape_cast %618 : vector<1x32x64xf32> to vector<32x64xf32>
    %cst_199 = arith.constant dense<0.000000e+00> : vector<16x64xf32>
    %620 = tpu.matmul %617, %619, %cst_199 {dimension_numbers = #tpu.dot_dimension_numbers<[1], [0], [0], [1], [0, 0, 1, 1], [], []>} : vector<16x32xf32>, vector<32x64xf32>, vector<16x64xf32> -> vector<16x64xf32>
    %621 = vector.extract_strided_slice %405 {offsets = [4, 0], sizes = [1, 64], strides = [1, 1]} : vector<12x128xf32> to vector<1x64xf32>
    %622 = vector.broadcast %621 : vector<1x64xf32> to vector<16x64xf32>
    %623 = arith.addf %620, %622 : vector<16x64xf32>
    %cst_200 = arith.constant 5.000000e-01 : f32
    %624 = vector.broadcast %cst_200 : f32 to vector<16x64xf32>
    %625 = arith.mulf %624, %623 : vector<16x64xf32>
    %cst_201 = arith.constant 0.707106769 : f32
    %626 = vector.broadcast %cst_201 : f32 to vector<16x64xf32>
    %627 = arith.mulf %623, %626 : vector<16x64xf32>
    %628 = math.absf %627 : vector<16x64xf32>
    %cst_202 = arith.constant 0.327591091 : f32
    %629 = vector.broadcast %cst_202 : f32 to vector<16x64xf32>
    %630 = arith.mulf %629, %628 : vector<16x64xf32>
    %cst_203 = arith.constant 1.000000e+00 : f32
    %631 = vector.broadcast %cst_203 : f32 to vector<16x64xf32>
    %632 = arith.addf %631, %630 : vector<16x64xf32>
    %633 = tpu.reciprocal %632 : vector<16x64xf32> -> vector<16x64xf32>
    %cst_204 = arith.constant 1.06140542 : f32
    %634 = vector.broadcast %cst_204 : f32 to vector<16x64xf32>
    %635 = arith.mulf %634, %633 : vector<16x64xf32>
    %cst_205 = arith.constant -1.45315206 : f32
    %636 = vector.broadcast %cst_205 : f32 to vector<16x64xf32>
    %637 = arith.addf %635, %636 : vector<16x64xf32>
    %638 = arith.mulf %637, %633 : vector<16x64xf32>
    %cst_206 = arith.constant 1.42141378 : f32
    %639 = vector.broadcast %cst_206 : f32 to vector<16x64xf32>
    %640 = arith.addf %638, %639 : vector<16x64xf32>
    %641 = arith.mulf %640, %633 : vector<16x64xf32>
    %cst_207 = arith.constant -0.284496725 : f32
    %642 = vector.broadcast %cst_207 : f32 to vector<16x64xf32>
    %643 = arith.addf %641, %642 : vector<16x64xf32>
    %644 = arith.mulf %643, %633 : vector<16x64xf32>
    %cst_208 = arith.constant 0.254829586 : f32
    %645 = vector.broadcast %cst_208 : f32 to vector<16x64xf32>
    %646 = arith.addf %644, %645 : vector<16x64xf32>
    %647 = arith.mulf %646, %633 : vector<16x64xf32>
    %cst_209 = arith.constant 0.000000e+00 : f32
    %648 = vector.broadcast %cst_209 : f32 to vector<16x64xf32>
    %649 = arith.subf %648, %628 : vector<16x64xf32>
    %650 = arith.mulf %649, %628 : vector<16x64xf32>
    %651 = math.exp %650 : vector<16x64xf32>
    %652 = arith.mulf %647, %651 : vector<16x64xf32>
    %cst_210 = arith.constant 1.000000e+00 : f32
    %653 = vector.broadcast %cst_210 : f32 to vector<16x64xf32>
    %654 = arith.subf %653, %652 : vector<16x64xf32>
    %cst_211 = arith.constant 0.000000e+00 : f32
    %655 = vector.broadcast %cst_211 : f32 to vector<16x64xf32>
    %656 = arith.cmpf oge, %627, %655 : vector<16x64xf32>
    %cst_212 = arith.constant 0.000000e+00 : f32
    %657 = vector.broadcast %cst_212 : f32 to vector<16x64xf32>
    %658 = arith.subf %657, %654 : vector<16x64xf32>
    %659 = arith.select %656, %654, %658 : vector<16x64xi1>, vector<16x64xf32>
    %cst_213 = arith.constant 1.000000e+00 : f32
    %660 = vector.broadcast %cst_213 : f32 to vector<16x64xf32>
    %661 = arith.addf %660, %659 : vector<16x64xf32>
    %662 = arith.mulf %625, %661 : vector<16x64xf32>
    %c0_214 = arith.constant 0 : index
    %c0_215 = arith.constant 0 : index
    %c0_216 = arith.constant 0 : index
    %663 = vector.load %arg14[%c0_214, %c0_215, %c0_216] : memref<2x64x32xf32, #tpu.memory_space<vmem>>, vector<1x64x32xf32>
    %664 = vector.shape_cast %663 : vector<1x64x32xf32> to vector<64x32xf32>
    %cst_217 = arith.constant dense<0.000000e+00> : vector<16x32xf32>
    %665 = tpu.matmul %662, %664, %cst_217 {dimension_numbers = #tpu.dot_dimension_numbers<[1], [0], [0], [1], [0, 0, 1, 1], [], []>} : vector<16x64xf32>, vector<64x32xf32>, vector<16x32xf32> -> vector<16x32xf32>
    %666 = vector.extract_strided_slice %405 {offsets = [5, 0], sizes = [1, 32], strides = [1, 1]} : vector<12x128xf32> to vector<1x32xf32>
    %667 = vector.broadcast %666 : vector<1x32xf32> to vector<16x32xf32>
    %668 = arith.addf %665, %667 : vector<16x32xf32>
    %669 = arith.addf %617, %668 : vector<16x32xf32>
    %670 = vector.extract_strided_slice %405 {offsets = [10, 0], sizes = [1, 32], strides = [1, 1]} : vector<12x128xf32> to vector<1x32xf32>
    %671 = vector.extract_strided_slice %405 {offsets = [11, 0], sizes = [1, 32], strides = [1, 1]} : vector<12x128xf32> to vector<1x32xf32>
    %cst_218 = arith.constant dense<0.000000e+00> : vector<16xf32>
    %672 = vector.multi_reduction <add>, %669, %cst_218 [1] : vector<16x32xf32> to vector<16xf32>
    %673 = vector.shape_cast %672 : vector<16xf32> to vector<16x1xf32>
    %cst_219 = arith.constant 3.200000e+01 : f32
    %674 = vector.broadcast %cst_219 : f32 to vector<16x1xf32>
    %675 = arith.divf %673, %674 : vector<16x1xf32>
    %676 = vector.broadcast %675 : vector<16x1xf32> to vector<16x32xf32>
    %677 = arith.subf %669, %676 : vector<16x32xf32>
    %678 = arith.mulf %677, %677 : vector<16x32xf32>
    %cst_220 = arith.constant dense<0.000000e+00> : vector<16xf32>
    %679 = vector.multi_reduction <add>, %678, %cst_220 [1] : vector<16x32xf32> to vector<16xf32>
    %680 = vector.shape_cast %679 : vector<16xf32> to vector<16x1xf32>
    %cst_221 = arith.constant 3.200000e+01 : f32
    %681 = vector.broadcast %cst_221 : f32 to vector<16x1xf32>
    %682 = arith.divf %680, %681 : vector<16x1xf32>
    %683 = vector.broadcast %675 : vector<16x1xf32> to vector<16x32xf32>
    %684 = arith.subf %669, %683 : vector<16x32xf32>
    %cst_222 = arith.constant 9.99999974E-6 : f32
    %685 = vector.broadcast %cst_222 : f32 to vector<16x1xf32>
    %686 = arith.addf %682, %685 : vector<16x1xf32>
    %687 = math.rsqrt %686 : vector<16x1xf32>
    %688 = vector.broadcast %687 : vector<16x1xf32> to vector<16x32xf32>
    %689 = arith.mulf %684, %688 : vector<16x32xf32>
    %690 = vector.broadcast %670 : vector<1x32xf32> to vector<16x32xf32>
    %691 = arith.mulf %689, %690 : vector<16x32xf32>
    %692 = vector.broadcast %671 : vector<1x32xf32> to vector<16x32xf32>
    %693 = arith.addf %691, %692 : vector<16x32xf32>
    %c1_223 = arith.constant 1 : index
    %c0_224 = arith.constant 0 : index
    %c0_225 = arith.constant 0 : index
    %694 = vector.load %arg15[%c1_223, %c0_224, %c0_225] : memref<2x12x128xf32, #tpu.memory_space<vmem>>, vector<1x12x128xf32>
    %695 = vector.shape_cast %694 : vector<1x12x128xf32> to vector<12x128xf32>
    %c1_226 = arith.constant 1 : index
    %c0_227 = arith.constant 0 : index
    %c0_228 = arith.constant 0 : index
    %696 = vector.load %arg11[%c1_226, %c0_227, %c0_228] : memref<2x32x128xf32, #tpu.memory_space<vmem>>, vector<1x32x128xf32>
    %697 = vector.shape_cast %696 : vector<1x32x128xf32> to vector<32x128xf32>
    %698 = vector.extract_strided_slice %697 {offsets = [0, 0], sizes = [32, 96], strides = [1, 1]} : vector<32x128xf32> to vector<32x96xf32>
    %cst_229 = arith.constant dense<0.000000e+00> : vector<16x96xf32>
    %699 = tpu.matmul %693, %698, %cst_229 {dimension_numbers = #tpu.dot_dimension_numbers<[1], [0], [0], [1], [0, 0, 1, 1], [], []>} : vector<16x32xf32>, vector<32x96xf32>, vector<16x96xf32> -> vector<16x96xf32>
    %700 = vector.extract_strided_slice %695 {offsets = [0, 0], sizes = [1, 96], strides = [1, 1]} : vector<12x128xf32> to vector<1x96xf32>
    %701 = vector.broadcast %700 : vector<1x96xf32> to vector<16x96xf32>
    %702 = arith.addf %699, %701 : vector<16x96xf32>
    %703 = vector.extract_strided_slice %702 {offsets = [0, 0], sizes = [16, 32], strides = [1, 1]} : vector<16x96xf32> to vector<16x32xf32>
    %704 = vector.extract_strided_slice %702 {offsets = [0, 32], sizes = [16, 32], strides = [1, 1]} : vector<16x96xf32> to vector<16x32xf32>
    %705 = vector.extract_strided_slice %702 {offsets = [0, 64], sizes = [16, 32], strides = [1, 1]} : vector<16x96xf32> to vector<16x32xf32>
    %706 = vector.extract_strided_slice %697 {offsets = [0, 96], sizes = [32, 32], strides = [1, 1]} : vector<32x128xf32> to vector<32x32xf32>
    %707 = vector.extract_strided_slice %695 {offsets = [1, 0], sizes = [1, 32], strides = [1, 1]} : vector<12x128xf32> to vector<1x32xf32>
    %708 = vector.extract_strided_slice %703 {offsets = [0, 0], sizes = [8, 8], strides = [1, 1]} : vector<16x32xf32> to vector<8x8xf32>
    %709 = vector.extract_strided_slice %704 {offsets = [0, 0], sizes = [8, 8], strides = [1, 1]} : vector<16x32xf32> to vector<8x8xf32>
    %cst_230 = arith.constant dense<0.000000e+00> : vector<8x8xf32>
    %710 = tpu.matmul %708, %709, %cst_230 {dimension_numbers = #tpu.dot_dimension_numbers<[1], [1], [0], [0], [0, 0, 1, 0], [], []>} : vector<8x8xf32>, vector<8x8xf32>, vector<8x8xf32> -> vector<8x8xf32>
    %711 = vector.extract_strided_slice %703 {offsets = [0, 8], sizes = [8, 8], strides = [1, 1]} : vector<16x32xf32> to vector<8x8xf32>
    %712 = vector.extract_strided_slice %704 {offsets = [0, 8], sizes = [8, 8], strides = [1, 1]} : vector<16x32xf32> to vector<8x8xf32>
    %cst_231 = arith.constant dense<0.000000e+00> : vector<8x8xf32>
    %713 = tpu.matmul %711, %712, %cst_231 {dimension_numbers = #tpu.dot_dimension_numbers<[1], [1], [0], [0], [0, 0, 1, 0], [], []>} : vector<8x8xf32>, vector<8x8xf32>, vector<8x8xf32> -> vector<8x8xf32>
    %714 = vector.extract_strided_slice %703 {offsets = [0, 16], sizes = [8, 8], strides = [1, 1]} : vector<16x32xf32> to vector<8x8xf32>
    %715 = vector.extract_strided_slice %704 {offsets = [0, 16], sizes = [8, 8], strides = [1, 1]} : vector<16x32xf32> to vector<8x8xf32>
    %cst_232 = arith.constant dense<0.000000e+00> : vector<8x8xf32>
    %716 = tpu.matmul %714, %715, %cst_232 {dimension_numbers = #tpu.dot_dimension_numbers<[1], [1], [0], [0], [0, 0, 1, 0], [], []>} : vector<8x8xf32>, vector<8x8xf32>, vector<8x8xf32> -> vector<8x8xf32>
    %717 = vector.extract_strided_slice %703 {offsets = [0, 24], sizes = [8, 8], strides = [1, 1]} : vector<16x32xf32> to vector<8x8xf32>
    %718 = vector.extract_strided_slice %704 {offsets = [0, 24], sizes = [8, 8], strides = [1, 1]} : vector<16x32xf32> to vector<8x8xf32>
    %cst_233 = arith.constant dense<0.000000e+00> : vector<8x8xf32>
    %719 = tpu.matmul %717, %718, %cst_233 {dimension_numbers = #tpu.dot_dimension_numbers<[1], [1], [0], [0], [0, 0, 1, 0], [], []>} : vector<8x8xf32>, vector<8x8xf32>, vector<8x8xf32> -> vector<8x8xf32>
    %720 = vector.extract_strided_slice %703 {offsets = [8, 0], sizes = [8, 8], strides = [1, 1]} : vector<16x32xf32> to vector<8x8xf32>
    %721 = vector.extract_strided_slice %704 {offsets = [8, 0], sizes = [8, 8], strides = [1, 1]} : vector<16x32xf32> to vector<8x8xf32>
    %cst_234 = arith.constant dense<0.000000e+00> : vector<8x8xf32>
    %722 = tpu.matmul %720, %721, %cst_234 {dimension_numbers = #tpu.dot_dimension_numbers<[1], [1], [0], [0], [0, 0, 1, 0], [], []>} : vector<8x8xf32>, vector<8x8xf32>, vector<8x8xf32> -> vector<8x8xf32>
    %723 = vector.extract_strided_slice %703 {offsets = [8, 8], sizes = [8, 8], strides = [1, 1]} : vector<16x32xf32> to vector<8x8xf32>
    %724 = vector.extract_strided_slice %704 {offsets = [8, 8], sizes = [8, 8], strides = [1, 1]} : vector<16x32xf32> to vector<8x8xf32>
    %cst_235 = arith.constant dense<0.000000e+00> : vector<8x8xf32>
    %725 = tpu.matmul %723, %724, %cst_235 {dimension_numbers = #tpu.dot_dimension_numbers<[1], [1], [0], [0], [0, 0, 1, 0], [], []>} : vector<8x8xf32>, vector<8x8xf32>, vector<8x8xf32> -> vector<8x8xf32>
    %726 = vector.extract_strided_slice %703 {offsets = [8, 16], sizes = [8, 8], strides = [1, 1]} : vector<16x32xf32> to vector<8x8xf32>
    %727 = vector.extract_strided_slice %704 {offsets = [8, 16], sizes = [8, 8], strides = [1, 1]} : vector<16x32xf32> to vector<8x8xf32>
    %cst_236 = arith.constant dense<0.000000e+00> : vector<8x8xf32>
    %728 = tpu.matmul %726, %727, %cst_236 {dimension_numbers = #tpu.dot_dimension_numbers<[1], [1], [0], [0], [0, 0, 1, 0], [], []>} : vector<8x8xf32>, vector<8x8xf32>, vector<8x8xf32> -> vector<8x8xf32>
    %729 = vector.extract_strided_slice %703 {offsets = [8, 24], sizes = [8, 8], strides = [1, 1]} : vector<16x32xf32> to vector<8x8xf32>
    %730 = vector.extract_strided_slice %704 {offsets = [8, 24], sizes = [8, 8], strides = [1, 1]} : vector<16x32xf32> to vector<8x8xf32>
    %cst_237 = arith.constant dense<0.000000e+00> : vector<8x8xf32>
    %731 = tpu.matmul %729, %730, %cst_237 {dimension_numbers = #tpu.dot_dimension_numbers<[1], [1], [0], [0], [0, 0, 1, 0], [], []>} : vector<8x8xf32>, vector<8x8xf32>, vector<8x8xf32> -> vector<8x8xf32>
    %732 = tpu.concatenate %710, %713, %716, %719, %722, %725, %728, %731 in 0 : vector<8x8xf32>, vector<8x8xf32>, vector<8x8xf32>, vector<8x8xf32>, vector<8x8xf32>, vector<8x8xf32>, vector<8x8xf32>, vector<8x8xf32> -> vector<64x8xf32>
    %cst_238 = arith.constant 0.353553385 : f32
    %733 = vector.broadcast %cst_238 : f32 to vector<64x8xf32>
    %734 = arith.mulf %732, %733 : vector<64x8xf32>
    %cst_239 = arith.constant dense<0xFF800000> : vector<64xf32>
    %735 = vector.multi_reduction <maximumf>, %734, %cst_239 [1] : vector<64x8xf32> to vector<64xf32>
    %736 = vector.shape_cast %735 : vector<64xf32> to vector<64x1xf32>
    %737 = vector.broadcast %736 : vector<64x1xf32> to vector<64x8xf32>
    %738 = arith.subf %734, %737 : vector<64x8xf32>
    %739 = math.exp %738 : vector<64x8xf32>
    %cst_240 = arith.constant dense<0.000000e+00> : vector<64xf32>
    %740 = vector.multi_reduction <add>, %739, %cst_240 [1] : vector<64x8xf32> to vector<64xf32>
    %741 = vector.shape_cast %740 : vector<64xf32> to vector<64x1xf32>
    %742 = tpu.reciprocal %741 : vector<64x1xf32> -> vector<64x1xf32>
    %743 = vector.broadcast %742 : vector<64x1xf32> to vector<64x8xf32>
    %744 = arith.mulf %739, %743 : vector<64x8xf32>
    %745 = vector.extract_strided_slice %744 {offsets = [0, 0], sizes = [8, 8], strides = [1, 1]} : vector<64x8xf32> to vector<8x8xf32>
    %746 = vector.extract_strided_slice %705 {offsets = [0, 0], sizes = [8, 8], strides = [1, 1]} : vector<16x32xf32> to vector<8x8xf32>
    %cst_241 = arith.constant dense<0.000000e+00> : vector<8x8xf32>
    %747 = tpu.matmul %745, %746, %cst_241 {dimension_numbers = #tpu.dot_dimension_numbers<[1], [0], [0], [1], [0, 0, 1, 1], [], []>} : vector<8x8xf32>, vector<8x8xf32>, vector<8x8xf32> -> vector<8x8xf32>
    %748 = vector.extract_strided_slice %744 {offsets = [8, 0], sizes = [8, 8], strides = [1, 1]} : vector<64x8xf32> to vector<8x8xf32>
    %749 = vector.extract_strided_slice %705 {offsets = [0, 8], sizes = [8, 8], strides = [1, 1]} : vector<16x32xf32> to vector<8x8xf32>
    %cst_242 = arith.constant dense<0.000000e+00> : vector<8x8xf32>
    %750 = tpu.matmul %748, %749, %cst_242 {dimension_numbers = #tpu.dot_dimension_numbers<[1], [0], [0], [1], [0, 0, 1, 1], [], []>} : vector<8x8xf32>, vector<8x8xf32>, vector<8x8xf32> -> vector<8x8xf32>
    %751 = vector.extract_strided_slice %744 {offsets = [16, 0], sizes = [8, 8], strides = [1, 1]} : vector<64x8xf32> to vector<8x8xf32>
    %752 = vector.extract_strided_slice %705 {offsets = [0, 16], sizes = [8, 8], strides = [1, 1]} : vector<16x32xf32> to vector<8x8xf32>
    %cst_243 = arith.constant dense<0.000000e+00> : vector<8x8xf32>
    %753 = tpu.matmul %751, %752, %cst_243 {dimension_numbers = #tpu.dot_dimension_numbers<[1], [0], [0], [1], [0, 0, 1, 1], [], []>} : vector<8x8xf32>, vector<8x8xf32>, vector<8x8xf32> -> vector<8x8xf32>
    %754 = vector.extract_strided_slice %744 {offsets = [24, 0], sizes = [8, 8], strides = [1, 1]} : vector<64x8xf32> to vector<8x8xf32>
    %755 = vector.extract_strided_slice %705 {offsets = [0, 24], sizes = [8, 8], strides = [1, 1]} : vector<16x32xf32> to vector<8x8xf32>
    %cst_244 = arith.constant dense<0.000000e+00> : vector<8x8xf32>
    %756 = tpu.matmul %754, %755, %cst_244 {dimension_numbers = #tpu.dot_dimension_numbers<[1], [0], [0], [1], [0, 0, 1, 1], [], []>} : vector<8x8xf32>, vector<8x8xf32>, vector<8x8xf32> -> vector<8x8xf32>
    %757 = tpu.concatenate %747, %750, %753, %756 in 1 : vector<8x8xf32>, vector<8x8xf32>, vector<8x8xf32>, vector<8x8xf32> -> vector<8x32xf32>
    %758 = vector.extract_strided_slice %744 {offsets = [32, 0], sizes = [8, 8], strides = [1, 1]} : vector<64x8xf32> to vector<8x8xf32>
    %759 = vector.extract_strided_slice %705 {offsets = [8, 0], sizes = [8, 8], strides = [1, 1]} : vector<16x32xf32> to vector<8x8xf32>
    %cst_245 = arith.constant dense<0.000000e+00> : vector<8x8xf32>
    %760 = tpu.matmul %758, %759, %cst_245 {dimension_numbers = #tpu.dot_dimension_numbers<[1], [0], [0], [1], [0, 0, 1, 1], [], []>} : vector<8x8xf32>, vector<8x8xf32>, vector<8x8xf32> -> vector<8x8xf32>
    %761 = vector.extract_strided_slice %744 {offsets = [40, 0], sizes = [8, 8], strides = [1, 1]} : vector<64x8xf32> to vector<8x8xf32>
    %762 = vector.extract_strided_slice %705 {offsets = [8, 8], sizes = [8, 8], strides = [1, 1]} : vector<16x32xf32> to vector<8x8xf32>
    %cst_246 = arith.constant dense<0.000000e+00> : vector<8x8xf32>
    %763 = tpu.matmul %761, %762, %cst_246 {dimension_numbers = #tpu.dot_dimension_numbers<[1], [0], [0], [1], [0, 0, 1, 1], [], []>} : vector<8x8xf32>, vector<8x8xf32>, vector<8x8xf32> -> vector<8x8xf32>
    %764 = vector.extract_strided_slice %744 {offsets = [48, 0], sizes = [8, 8], strides = [1, 1]} : vector<64x8xf32> to vector<8x8xf32>
    %765 = vector.extract_strided_slice %705 {offsets = [8, 16], sizes = [8, 8], strides = [1, 1]} : vector<16x32xf32> to vector<8x8xf32>
    %cst_247 = arith.constant dense<0.000000e+00> : vector<8x8xf32>
    %766 = tpu.matmul %764, %765, %cst_247 {dimension_numbers = #tpu.dot_dimension_numbers<[1], [0], [0], [1], [0, 0, 1, 1], [], []>} : vector<8x8xf32>, vector<8x8xf32>, vector<8x8xf32> -> vector<8x8xf32>
    %767 = vector.extract_strided_slice %744 {offsets = [56, 0], sizes = [8, 8], strides = [1, 1]} : vector<64x8xf32> to vector<8x8xf32>
    %768 = vector.extract_strided_slice %705 {offsets = [8, 24], sizes = [8, 8], strides = [1, 1]} : vector<16x32xf32> to vector<8x8xf32>
    %cst_248 = arith.constant dense<0.000000e+00> : vector<8x8xf32>
    %769 = tpu.matmul %767, %768, %cst_248 {dimension_numbers = #tpu.dot_dimension_numbers<[1], [0], [0], [1], [0, 0, 1, 1], [], []>} : vector<8x8xf32>, vector<8x8xf32>, vector<8x8xf32> -> vector<8x8xf32>
    %770 = tpu.concatenate %760, %763, %766, %769 in 1 : vector<8x8xf32>, vector<8x8xf32>, vector<8x8xf32>, vector<8x8xf32> -> vector<8x32xf32>
    %771 = tpu.concatenate %757, %770 in 0 : vector<8x32xf32>, vector<8x32xf32> -> vector<16x32xf32>
    %cst_249 = arith.constant dense<0.000000e+00> : vector<16x32xf32>
    %772 = tpu.matmul %771, %706, %cst_249 {dimension_numbers = #tpu.dot_dimension_numbers<[1], [0], [0], [1], [0, 0, 1, 1], [], []>} : vector<16x32xf32>, vector<32x32xf32>, vector<16x32xf32> -> vector<16x32xf32>
    %773 = vector.broadcast %707 : vector<1x32xf32> to vector<16x32xf32>
    %774 = arith.addf %772, %773 : vector<16x32xf32>
    %775 = arith.addf %693, %774 : vector<16x32xf32>
    %776 = vector.extract_strided_slice %695 {offsets = [6, 0], sizes = [1, 32], strides = [1, 1]} : vector<12x128xf32> to vector<1x32xf32>
    %777 = vector.extract_strided_slice %695 {offsets = [7, 0], sizes = [1, 32], strides = [1, 1]} : vector<12x128xf32> to vector<1x32xf32>
    %cst_250 = arith.constant dense<0.000000e+00> : vector<16xf32>
    %778 = vector.multi_reduction <add>, %775, %cst_250 [1] : vector<16x32xf32> to vector<16xf32>
    %779 = vector.shape_cast %778 : vector<16xf32> to vector<16x1xf32>
    %cst_251 = arith.constant 3.200000e+01 : f32
    %780 = vector.broadcast %cst_251 : f32 to vector<16x1xf32>
    %781 = arith.divf %779, %780 : vector<16x1xf32>
    %782 = vector.broadcast %781 : vector<16x1xf32> to vector<16x32xf32>
    %783 = arith.subf %775, %782 : vector<16x32xf32>
    %784 = arith.mulf %783, %783 : vector<16x32xf32>
    %cst_252 = arith.constant dense<0.000000e+00> : vector<16xf32>
    %785 = vector.multi_reduction <add>, %784, %cst_252 [1] : vector<16x32xf32> to vector<16xf32>
    %786 = vector.shape_cast %785 : vector<16xf32> to vector<16x1xf32>
    %cst_253 = arith.constant 3.200000e+01 : f32
    %787 = vector.broadcast %cst_253 : f32 to vector<16x1xf32>
    %788 = arith.divf %786, %787 : vector<16x1xf32>
    %789 = vector.broadcast %781 : vector<16x1xf32> to vector<16x32xf32>
    %790 = arith.subf %775, %789 : vector<16x32xf32>
    %cst_254 = arith.constant 9.99999974E-6 : f32
    %791 = vector.broadcast %cst_254 : f32 to vector<16x1xf32>
    %792 = arith.addf %788, %791 : vector<16x1xf32>
    %793 = math.rsqrt %792 : vector<16x1xf32>
    %794 = vector.broadcast %793 : vector<16x1xf32> to vector<16x32xf32>
    %795 = arith.mulf %790, %794 : vector<16x32xf32>
    %796 = vector.broadcast %776 : vector<1x32xf32> to vector<16x32xf32>
    %797 = arith.mulf %795, %796 : vector<16x32xf32>
    %798 = vector.broadcast %777 : vector<1x32xf32> to vector<16x32xf32>
    %799 = arith.addf %797, %798 : vector<16x32xf32>
    %c1_255 = arith.constant 1 : index
    %c0_256 = arith.constant 0 : index
    %c0_257 = arith.constant 0 : index
    %800 = vector.load %arg12[%c1_255, %c0_256, %c0_257] : memref<2x32x128xf32, #tpu.memory_space<vmem>>, vector<1x32x128xf32>
    %801 = vector.shape_cast %800 : vector<1x32x128xf32> to vector<32x128xf32>
    %802 = vector.extract_strided_slice %801 {offsets = [0, 0], sizes = [32, 32], strides = [1, 1]} : vector<32x128xf32> to vector<32x32xf32>
    %cst_258 = arith.constant dense<0.000000e+00> : vector<16x32xf32>
    %803 = tpu.matmul %799, %802, %cst_258 {dimension_numbers = #tpu.dot_dimension_numbers<[1], [0], [0], [1], [0, 0, 1, 1], [], []>} : vector<16x32xf32>, vector<32x32xf32>, vector<16x32xf32> -> vector<16x32xf32>
    %804 = vector.extract_strided_slice %695 {offsets = [2, 0], sizes = [1, 32], strides = [1, 1]} : vector<12x128xf32> to vector<1x32xf32>
    %805 = vector.broadcast %804 : vector<1x32xf32> to vector<16x32xf32>
    %806 = arith.addf %803, %805 : vector<16x32xf32>
    %807 = vector.extract_strided_slice %801 {offsets = [0, 32], sizes = [32, 64], strides = [1, 1]} : vector<32x128xf32> to vector<32x64xf32>
    %cst_259 = arith.constant dense<0.000000e+00> : vector<16x64xf32>
    %808 = tpu.matmul %403, %807, %cst_259 {dimension_numbers = #tpu.dot_dimension_numbers<[1], [0], [0], [1], [0, 0, 1, 1], [], []>} : vector<16x32xf32>, vector<32x64xf32>, vector<16x64xf32> -> vector<16x64xf32>
    %809 = vector.extract_strided_slice %695 {offsets = [2, 32], sizes = [1, 64], strides = [1, 1]} : vector<12x128xf32> to vector<1x64xf32>
    %810 = vector.broadcast %809 : vector<1x64xf32> to vector<16x64xf32>
    %811 = arith.addf %808, %810 : vector<16x64xf32>
    %812 = vector.extract_strided_slice %811 {offsets = [0, 0], sizes = [16, 32], strides = [1, 1]} : vector<16x64xf32> to vector<16x32xf32>
    %813 = vector.extract_strided_slice %811 {offsets = [0, 32], sizes = [16, 32], strides = [1, 1]} : vector<16x64xf32> to vector<16x32xf32>
    %814 = vector.extract_strided_slice %801 {offsets = [0, 96], sizes = [32, 32], strides = [1, 1]} : vector<32x128xf32> to vector<32x32xf32>
    %815 = vector.extract_strided_slice %695 {offsets = [3, 0], sizes = [1, 32], strides = [1, 1]} : vector<12x128xf32> to vector<1x32xf32>
    %816 = vector.extract_strided_slice %806 {offsets = [0, 0], sizes = [8, 8], strides = [1, 1]} : vector<16x32xf32> to vector<8x8xf32>
    %817 = vector.extract_strided_slice %812 {offsets = [0, 0], sizes = [8, 8], strides = [1, 1]} : vector<16x32xf32> to vector<8x8xf32>
    %cst_260 = arith.constant dense<0.000000e+00> : vector<8x8xf32>
    %818 = tpu.matmul %816, %817, %cst_260 {dimension_numbers = #tpu.dot_dimension_numbers<[1], [1], [0], [0], [0, 0, 1, 0], [], []>} : vector<8x8xf32>, vector<8x8xf32>, vector<8x8xf32> -> vector<8x8xf32>
    %819 = vector.extract_strided_slice %806 {offsets = [0, 8], sizes = [8, 8], strides = [1, 1]} : vector<16x32xf32> to vector<8x8xf32>
    %820 = vector.extract_strided_slice %812 {offsets = [0, 8], sizes = [8, 8], strides = [1, 1]} : vector<16x32xf32> to vector<8x8xf32>
    %cst_261 = arith.constant dense<0.000000e+00> : vector<8x8xf32>
    %821 = tpu.matmul %819, %820, %cst_261 {dimension_numbers = #tpu.dot_dimension_numbers<[1], [1], [0], [0], [0, 0, 1, 0], [], []>} : vector<8x8xf32>, vector<8x8xf32>, vector<8x8xf32> -> vector<8x8xf32>
    %822 = vector.extract_strided_slice %806 {offsets = [0, 16], sizes = [8, 8], strides = [1, 1]} : vector<16x32xf32> to vector<8x8xf32>
    %823 = vector.extract_strided_slice %812 {offsets = [0, 16], sizes = [8, 8], strides = [1, 1]} : vector<16x32xf32> to vector<8x8xf32>
    %cst_262 = arith.constant dense<0.000000e+00> : vector<8x8xf32>
    %824 = tpu.matmul %822, %823, %cst_262 {dimension_numbers = #tpu.dot_dimension_numbers<[1], [1], [0], [0], [0, 0, 1, 0], [], []>} : vector<8x8xf32>, vector<8x8xf32>, vector<8x8xf32> -> vector<8x8xf32>
    %825 = vector.extract_strided_slice %806 {offsets = [0, 24], sizes = [8, 8], strides = [1, 1]} : vector<16x32xf32> to vector<8x8xf32>
    %826 = vector.extract_strided_slice %812 {offsets = [0, 24], sizes = [8, 8], strides = [1, 1]} : vector<16x32xf32> to vector<8x8xf32>
    %cst_263 = arith.constant dense<0.000000e+00> : vector<8x8xf32>
    %827 = tpu.matmul %825, %826, %cst_263 {dimension_numbers = #tpu.dot_dimension_numbers<[1], [1], [0], [0], [0, 0, 1, 0], [], []>} : vector<8x8xf32>, vector<8x8xf32>, vector<8x8xf32> -> vector<8x8xf32>
    %828 = vector.extract_strided_slice %806 {offsets = [8, 0], sizes = [8, 8], strides = [1, 1]} : vector<16x32xf32> to vector<8x8xf32>
    %829 = vector.extract_strided_slice %812 {offsets = [8, 0], sizes = [8, 8], strides = [1, 1]} : vector<16x32xf32> to vector<8x8xf32>
    %cst_264 = arith.constant dense<0.000000e+00> : vector<8x8xf32>
    %830 = tpu.matmul %828, %829, %cst_264 {dimension_numbers = #tpu.dot_dimension_numbers<[1], [1], [0], [0], [0, 0, 1, 0], [], []>} : vector<8x8xf32>, vector<8x8xf32>, vector<8x8xf32> -> vector<8x8xf32>
    %831 = vector.extract_strided_slice %806 {offsets = [8, 8], sizes = [8, 8], strides = [1, 1]} : vector<16x32xf32> to vector<8x8xf32>
    %832 = vector.extract_strided_slice %812 {offsets = [8, 8], sizes = [8, 8], strides = [1, 1]} : vector<16x32xf32> to vector<8x8xf32>
    %cst_265 = arith.constant dense<0.000000e+00> : vector<8x8xf32>
    %833 = tpu.matmul %831, %832, %cst_265 {dimension_numbers = #tpu.dot_dimension_numbers<[1], [1], [0], [0], [0, 0, 1, 0], [], []>} : vector<8x8xf32>, vector<8x8xf32>, vector<8x8xf32> -> vector<8x8xf32>
    %834 = vector.extract_strided_slice %806 {offsets = [8, 16], sizes = [8, 8], strides = [1, 1]} : vector<16x32xf32> to vector<8x8xf32>
    %835 = vector.extract_strided_slice %812 {offsets = [8, 16], sizes = [8, 8], strides = [1, 1]} : vector<16x32xf32> to vector<8x8xf32>
    %cst_266 = arith.constant dense<0.000000e+00> : vector<8x8xf32>
    %836 = tpu.matmul %834, %835, %cst_266 {dimension_numbers = #tpu.dot_dimension_numbers<[1], [1], [0], [0], [0, 0, 1, 0], [], []>} : vector<8x8xf32>, vector<8x8xf32>, vector<8x8xf32> -> vector<8x8xf32>
    %837 = vector.extract_strided_slice %806 {offsets = [8, 24], sizes = [8, 8], strides = [1, 1]} : vector<16x32xf32> to vector<8x8xf32>
    %838 = vector.extract_strided_slice %812 {offsets = [8, 24], sizes = [8, 8], strides = [1, 1]} : vector<16x32xf32> to vector<8x8xf32>
    %cst_267 = arith.constant dense<0.000000e+00> : vector<8x8xf32>
    %839 = tpu.matmul %837, %838, %cst_267 {dimension_numbers = #tpu.dot_dimension_numbers<[1], [1], [0], [0], [0, 0, 1, 0], [], []>} : vector<8x8xf32>, vector<8x8xf32>, vector<8x8xf32> -> vector<8x8xf32>
    %840 = tpu.concatenate %818, %821, %824, %827, %830, %833, %836, %839 in 0 : vector<8x8xf32>, vector<8x8xf32>, vector<8x8xf32>, vector<8x8xf32>, vector<8x8xf32>, vector<8x8xf32>, vector<8x8xf32>, vector<8x8xf32> -> vector<64x8xf32>
    %cst_268 = arith.constant 0.353553385 : f32
    %841 = vector.broadcast %cst_268 : f32 to vector<64x8xf32>
    %842 = arith.mulf %840, %841 : vector<64x8xf32>
    %cst_269 = arith.constant dense<0xFF800000> : vector<64xf32>
    %843 = vector.multi_reduction <maximumf>, %842, %cst_269 [1] : vector<64x8xf32> to vector<64xf32>
    %844 = vector.shape_cast %843 : vector<64xf32> to vector<64x1xf32>
    %845 = vector.broadcast %844 : vector<64x1xf32> to vector<64x8xf32>
    %846 = arith.subf %842, %845 : vector<64x8xf32>
    %847 = math.exp %846 : vector<64x8xf32>
    %cst_270 = arith.constant dense<0.000000e+00> : vector<64xf32>
    %848 = vector.multi_reduction <add>, %847, %cst_270 [1] : vector<64x8xf32> to vector<64xf32>
    %849 = vector.shape_cast %848 : vector<64xf32> to vector<64x1xf32>
    %850 = tpu.reciprocal %849 : vector<64x1xf32> -> vector<64x1xf32>
    %851 = vector.broadcast %850 : vector<64x1xf32> to vector<64x8xf32>
    %852 = arith.mulf %847, %851 : vector<64x8xf32>
    %853 = vector.extract_strided_slice %852 {offsets = [0, 0], sizes = [8, 8], strides = [1, 1]} : vector<64x8xf32> to vector<8x8xf32>
    %854 = vector.extract_strided_slice %813 {offsets = [0, 0], sizes = [8, 8], strides = [1, 1]} : vector<16x32xf32> to vector<8x8xf32>
    %cst_271 = arith.constant dense<0.000000e+00> : vector<8x8xf32>
    %855 = tpu.matmul %853, %854, %cst_271 {dimension_numbers = #tpu.dot_dimension_numbers<[1], [0], [0], [1], [0, 0, 1, 1], [], []>} : vector<8x8xf32>, vector<8x8xf32>, vector<8x8xf32> -> vector<8x8xf32>
    %856 = vector.extract_strided_slice %852 {offsets = [8, 0], sizes = [8, 8], strides = [1, 1]} : vector<64x8xf32> to vector<8x8xf32>
    %857 = vector.extract_strided_slice %813 {offsets = [0, 8], sizes = [8, 8], strides = [1, 1]} : vector<16x32xf32> to vector<8x8xf32>
    %cst_272 = arith.constant dense<0.000000e+00> : vector<8x8xf32>
    %858 = tpu.matmul %856, %857, %cst_272 {dimension_numbers = #tpu.dot_dimension_numbers<[1], [0], [0], [1], [0, 0, 1, 1], [], []>} : vector<8x8xf32>, vector<8x8xf32>, vector<8x8xf32> -> vector<8x8xf32>
    %859 = vector.extract_strided_slice %852 {offsets = [16, 0], sizes = [8, 8], strides = [1, 1]} : vector<64x8xf32> to vector<8x8xf32>
    %860 = vector.extract_strided_slice %813 {offsets = [0, 16], sizes = [8, 8], strides = [1, 1]} : vector<16x32xf32> to vector<8x8xf32>
    %cst_273 = arith.constant dense<0.000000e+00> : vector<8x8xf32>
    %861 = tpu.matmul %859, %860, %cst_273 {dimension_numbers = #tpu.dot_dimension_numbers<[1], [0], [0], [1], [0, 0, 1, 1], [], []>} : vector<8x8xf32>, vector<8x8xf32>, vector<8x8xf32> -> vector<8x8xf32>
    %862 = vector.extract_strided_slice %852 {offsets = [24, 0], sizes = [8, 8], strides = [1, 1]} : vector<64x8xf32> to vector<8x8xf32>
    %863 = vector.extract_strided_slice %813 {offsets = [0, 24], sizes = [8, 8], strides = [1, 1]} : vector<16x32xf32> to vector<8x8xf32>
    %cst_274 = arith.constant dense<0.000000e+00> : vector<8x8xf32>
    %864 = tpu.matmul %862, %863, %cst_274 {dimension_numbers = #tpu.dot_dimension_numbers<[1], [0], [0], [1], [0, 0, 1, 1], [], []>} : vector<8x8xf32>, vector<8x8xf32>, vector<8x8xf32> -> vector<8x8xf32>
    %865 = tpu.concatenate %855, %858, %861, %864 in 1 : vector<8x8xf32>, vector<8x8xf32>, vector<8x8xf32>, vector<8x8xf32> -> vector<8x32xf32>
    %866 = vector.extract_strided_slice %852 {offsets = [32, 0], sizes = [8, 8], strides = [1, 1]} : vector<64x8xf32> to vector<8x8xf32>
    %867 = vector.extract_strided_slice %813 {offsets = [8, 0], sizes = [8, 8], strides = [1, 1]} : vector<16x32xf32> to vector<8x8xf32>
    %cst_275 = arith.constant dense<0.000000e+00> : vector<8x8xf32>
    %868 = tpu.matmul %866, %867, %cst_275 {dimension_numbers = #tpu.dot_dimension_numbers<[1], [0], [0], [1], [0, 0, 1, 1], [], []>} : vector<8x8xf32>, vector<8x8xf32>, vector<8x8xf32> -> vector<8x8xf32>
    %869 = vector.extract_strided_slice %852 {offsets = [40, 0], sizes = [8, 8], strides = [1, 1]} : vector<64x8xf32> to vector<8x8xf32>
    %870 = vector.extract_strided_slice %813 {offsets = [8, 8], sizes = [8, 8], strides = [1, 1]} : vector<16x32xf32> to vector<8x8xf32>
    %cst_276 = arith.constant dense<0.000000e+00> : vector<8x8xf32>
    %871 = tpu.matmul %869, %870, %cst_276 {dimension_numbers = #tpu.dot_dimension_numbers<[1], [0], [0], [1], [0, 0, 1, 1], [], []>} : vector<8x8xf32>, vector<8x8xf32>, vector<8x8xf32> -> vector<8x8xf32>
    %872 = vector.extract_strided_slice %852 {offsets = [48, 0], sizes = [8, 8], strides = [1, 1]} : vector<64x8xf32> to vector<8x8xf32>
    %873 = vector.extract_strided_slice %813 {offsets = [8, 16], sizes = [8, 8], strides = [1, 1]} : vector<16x32xf32> to vector<8x8xf32>
    %cst_277 = arith.constant dense<0.000000e+00> : vector<8x8xf32>
    %874 = tpu.matmul %872, %873, %cst_277 {dimension_numbers = #tpu.dot_dimension_numbers<[1], [0], [0], [1], [0, 0, 1, 1], [], []>} : vector<8x8xf32>, vector<8x8xf32>, vector<8x8xf32> -> vector<8x8xf32>
    %875 = vector.extract_strided_slice %852 {offsets = [56, 0], sizes = [8, 8], strides = [1, 1]} : vector<64x8xf32> to vector<8x8xf32>
    %876 = vector.extract_strided_slice %813 {offsets = [8, 24], sizes = [8, 8], strides = [1, 1]} : vector<16x32xf32> to vector<8x8xf32>
    %cst_278 = arith.constant dense<0.000000e+00> : vector<8x8xf32>
    %877 = tpu.matmul %875, %876, %cst_278 {dimension_numbers = #tpu.dot_dimension_numbers<[1], [0], [0], [1], [0, 0, 1, 1], [], []>} : vector<8x8xf32>, vector<8x8xf32>, vector<8x8xf32> -> vector<8x8xf32>
    %878 = tpu.concatenate %868, %871, %874, %877 in 1 : vector<8x8xf32>, vector<8x8xf32>, vector<8x8xf32>, vector<8x8xf32> -> vector<8x32xf32>
    %879 = tpu.concatenate %865, %878 in 0 : vector<8x32xf32>, vector<8x32xf32> -> vector<16x32xf32>
    %cst_279 = arith.constant dense<0.000000e+00> : vector<16x32xf32>
    %880 = tpu.matmul %879, %814, %cst_279 {dimension_numbers = #tpu.dot_dimension_numbers<[1], [0], [0], [1], [0, 0, 1, 1], [], []>} : vector<16x32xf32>, vector<32x32xf32>, vector<16x32xf32> -> vector<16x32xf32>
    %881 = vector.broadcast %815 : vector<1x32xf32> to vector<16x32xf32>
    %882 = arith.addf %880, %881 : vector<16x32xf32>
    %883 = arith.addf %799, %882 : vector<16x32xf32>
    %884 = vector.extract_strided_slice %695 {offsets = [8, 0], sizes = [1, 32], strides = [1, 1]} : vector<12x128xf32> to vector<1x32xf32>
    %885 = vector.extract_strided_slice %695 {offsets = [9, 0], sizes = [1, 32], strides = [1, 1]} : vector<12x128xf32> to vector<1x32xf32>
    %cst_280 = arith.constant dense<0.000000e+00> : vector<16xf32>
    %886 = vector.multi_reduction <add>, %883, %cst_280 [1] : vector<16x32xf32> to vector<16xf32>
    %887 = vector.shape_cast %886 : vector<16xf32> to vector<16x1xf32>
    %cst_281 = arith.constant 3.200000e+01 : f32
    %888 = vector.broadcast %cst_281 : f32 to vector<16x1xf32>
    %889 = arith.divf %887, %888 : vector<16x1xf32>
    %890 = vector.broadcast %889 : vector<16x1xf32> to vector<16x32xf32>
    %891 = arith.subf %883, %890 : vector<16x32xf32>
    %892 = arith.mulf %891, %891 : vector<16x32xf32>
    %cst_282 = arith.constant dense<0.000000e+00> : vector<16xf32>
    %893 = vector.multi_reduction <add>, %892, %cst_282 [1] : vector<16x32xf32> to vector<16xf32>
    %894 = vector.shape_cast %893 : vector<16xf32> to vector<16x1xf32>
    %cst_283 = arith.constant 3.200000e+01 : f32
    %895 = vector.broadcast %cst_283 : f32 to vector<16x1xf32>
    %896 = arith.divf %894, %895 : vector<16x1xf32>
    %897 = vector.broadcast %889 : vector<16x1xf32> to vector<16x32xf32>
    %898 = arith.subf %883, %897 : vector<16x32xf32>
    %cst_284 = arith.constant 9.99999974E-6 : f32
    %899 = vector.broadcast %cst_284 : f32 to vector<16x1xf32>
    %900 = arith.addf %896, %899 : vector<16x1xf32>
    %901 = math.rsqrt %900 : vector<16x1xf32>
    %902 = vector.broadcast %901 : vector<16x1xf32> to vector<16x32xf32>
    %903 = arith.mulf %898, %902 : vector<16x32xf32>
    %904 = vector.broadcast %884 : vector<1x32xf32> to vector<16x32xf32>
    %905 = arith.mulf %903, %904 : vector<16x32xf32>
    %906 = vector.broadcast %885 : vector<1x32xf32> to vector<16x32xf32>
    %907 = arith.addf %905, %906 : vector<16x32xf32>
    %c1_285 = arith.constant 1 : index
    %c0_286 = arith.constant 0 : index
    %c0_287 = arith.constant 0 : index
    %908 = vector.load %arg13[%c1_285, %c0_286, %c0_287] : memref<2x32x64xf32, #tpu.memory_space<vmem>>, vector<1x32x64xf32>
    %909 = vector.shape_cast %908 : vector<1x32x64xf32> to vector<32x64xf32>
    %cst_288 = arith.constant dense<0.000000e+00> : vector<16x64xf32>
    %910 = tpu.matmul %907, %909, %cst_288 {dimension_numbers = #tpu.dot_dimension_numbers<[1], [0], [0], [1], [0, 0, 1, 1], [], []>} : vector<16x32xf32>, vector<32x64xf32>, vector<16x64xf32> -> vector<16x64xf32>
    %911 = vector.extract_strided_slice %695 {offsets = [4, 0], sizes = [1, 64], strides = [1, 1]} : vector<12x128xf32> to vector<1x64xf32>
    %912 = vector.broadcast %911 : vector<1x64xf32> to vector<16x64xf32>
    %913 = arith.addf %910, %912 : vector<16x64xf32>
    %cst_289 = arith.constant 5.000000e-01 : f32
    %914 = vector.broadcast %cst_289 : f32 to vector<16x64xf32>
    %915 = arith.mulf %914, %913 : vector<16x64xf32>
    %cst_290 = arith.constant 0.707106769 : f32
    %916 = vector.broadcast %cst_290 : f32 to vector<16x64xf32>
    %917 = arith.mulf %913, %916 : vector<16x64xf32>
    %918 = math.absf %917 : vector<16x64xf32>
    %cst_291 = arith.constant 0.327591091 : f32
    %919 = vector.broadcast %cst_291 : f32 to vector<16x64xf32>
    %920 = arith.mulf %919, %918 : vector<16x64xf32>
    %cst_292 = arith.constant 1.000000e+00 : f32
    %921 = vector.broadcast %cst_292 : f32 to vector<16x64xf32>
    %922 = arith.addf %921, %920 : vector<16x64xf32>
    %923 = tpu.reciprocal %922 : vector<16x64xf32> -> vector<16x64xf32>
    %cst_293 = arith.constant 1.06140542 : f32
    %924 = vector.broadcast %cst_293 : f32 to vector<16x64xf32>
    %925 = arith.mulf %924, %923 : vector<16x64xf32>
    %cst_294 = arith.constant -1.45315206 : f32
    %926 = vector.broadcast %cst_294 : f32 to vector<16x64xf32>
    %927 = arith.addf %925, %926 : vector<16x64xf32>
    %928 = arith.mulf %927, %923 : vector<16x64xf32>
    %cst_295 = arith.constant 1.42141378 : f32
    %929 = vector.broadcast %cst_295 : f32 to vector<16x64xf32>
    %930 = arith.addf %928, %929 : vector<16x64xf32>
    %931 = arith.mulf %930, %923 : vector<16x64xf32>
    %cst_296 = arith.constant -0.284496725 : f32
    %932 = vector.broadcast %cst_296 : f32 to vector<16x64xf32>
    %933 = arith.addf %931, %932 : vector<16x64xf32>
    %934 = arith.mulf %933, %923 : vector<16x64xf32>
    %cst_297 = arith.constant 0.254829586 : f32
    %935 = vector.broadcast %cst_297 : f32 to vector<16x64xf32>
    %936 = arith.addf %934, %935 : vector<16x64xf32>
    %937 = arith.mulf %936, %923 : vector<16x64xf32>
    %cst_298 = arith.constant 0.000000e+00 : f32
    %938 = vector.broadcast %cst_298 : f32 to vector<16x64xf32>
    %939 = arith.subf %938, %918 : vector<16x64xf32>
    %940 = arith.mulf %939, %918 : vector<16x64xf32>
    %941 = math.exp %940 : vector<16x64xf32>
    %942 = arith.mulf %937, %941 : vector<16x64xf32>
    %cst_299 = arith.constant 1.000000e+00 : f32
    %943 = vector.broadcast %cst_299 : f32 to vector<16x64xf32>
    %944 = arith.subf %943, %942 : vector<16x64xf32>
    %cst_300 = arith.constant 0.000000e+00 : f32
    %945 = vector.broadcast %cst_300 : f32 to vector<16x64xf32>
    %946 = arith.cmpf oge, %917, %945 : vector<16x64xf32>
    %cst_301 = arith.constant 0.000000e+00 : f32
    %947 = vector.broadcast %cst_301 : f32 to vector<16x64xf32>
    %948 = arith.subf %947, %944 : vector<16x64xf32>
    %949 = arith.select %946, %944, %948 : vector<16x64xi1>, vector<16x64xf32>
    %cst_302 = arith.constant 1.000000e+00 : f32
    %950 = vector.broadcast %cst_302 : f32 to vector<16x64xf32>
    %951 = arith.addf %950, %949 : vector<16x64xf32>
    %952 = arith.mulf %915, %951 : vector<16x64xf32>
    %c1_303 = arith.constant 1 : index
    %c0_304 = arith.constant 0 : index
    %c0_305 = arith.constant 0 : index
    %953 = vector.load %arg14[%c1_303, %c0_304, %c0_305] : memref<2x64x32xf32, #tpu.memory_space<vmem>>, vector<1x64x32xf32>
    %954 = vector.shape_cast %953 : vector<1x64x32xf32> to vector<64x32xf32>
    %cst_306 = arith.constant dense<0.000000e+00> : vector<16x32xf32>
    %955 = tpu.matmul %952, %954, %cst_306 {dimension_numbers = #tpu.dot_dimension_numbers<[1], [0], [0], [1], [0, 0, 1, 1], [], []>} : vector<16x64xf32>, vector<64x32xf32>, vector<16x32xf32> -> vector<16x32xf32>
    %956 = vector.extract_strided_slice %695 {offsets = [5, 0], sizes = [1, 32], strides = [1, 1]} : vector<12x128xf32> to vector<1x32xf32>
    %957 = vector.broadcast %956 : vector<1x32xf32> to vector<16x32xf32>
    %958 = arith.addf %955, %957 : vector<16x32xf32>
    %959 = arith.addf %907, %958 : vector<16x32xf32>
    %960 = vector.extract_strided_slice %695 {offsets = [10, 0], sizes = [1, 32], strides = [1, 1]} : vector<12x128xf32> to vector<1x32xf32>
    %961 = vector.extract_strided_slice %695 {offsets = [11, 0], sizes = [1, 32], strides = [1, 1]} : vector<12x128xf32> to vector<1x32xf32>
    %cst_307 = arith.constant dense<0.000000e+00> : vector<16xf32>
    %962 = vector.multi_reduction <add>, %959, %cst_307 [1] : vector<16x32xf32> to vector<16xf32>
    %963 = vector.shape_cast %962 : vector<16xf32> to vector<16x1xf32>
    %cst_308 = arith.constant 3.200000e+01 : f32
    %964 = vector.broadcast %cst_308 : f32 to vector<16x1xf32>
    %965 = arith.divf %963, %964 : vector<16x1xf32>
    %966 = vector.broadcast %965 : vector<16x1xf32> to vector<16x32xf32>
    %967 = arith.subf %959, %966 : vector<16x32xf32>
    %968 = arith.mulf %967, %967 : vector<16x32xf32>
    %cst_309 = arith.constant dense<0.000000e+00> : vector<16xf32>
    %969 = vector.multi_reduction <add>, %968, %cst_309 [1] : vector<16x32xf32> to vector<16xf32>
    %970 = vector.shape_cast %969 : vector<16xf32> to vector<16x1xf32>
    %cst_310 = arith.constant 3.200000e+01 : f32
    %971 = vector.broadcast %cst_310 : f32 to vector<16x1xf32>
    %972 = arith.divf %970, %971 : vector<16x1xf32>
    %973 = vector.broadcast %965 : vector<16x1xf32> to vector<16x32xf32>
    %974 = arith.subf %959, %973 : vector<16x32xf32>
    %cst_311 = arith.constant 9.99999974E-6 : f32
    %975 = vector.broadcast %cst_311 : f32 to vector<16x1xf32>
    %976 = arith.addf %972, %975 : vector<16x1xf32>
    %977 = math.rsqrt %976 : vector<16x1xf32>
    %978 = vector.broadcast %977 : vector<16x1xf32> to vector<16x32xf32>
    %979 = arith.mulf %974, %978 : vector<16x32xf32>
    %980 = vector.broadcast %960 : vector<1x32xf32> to vector<16x32xf32>
    %981 = arith.mulf %979, %980 : vector<16x32xf32>
    %982 = vector.broadcast %961 : vector<1x32xf32> to vector<16x32xf32>
    %983 = arith.addf %981, %982 : vector<16x32xf32>
    %984 = vector.extract_strided_slice %0 {offsets = [4, 0], sizes = [1, 32], strides = [1, 1]} : vector<8x32xf32> to vector<1x32xf32>
    %985 = vector.extract_strided_slice %0 {offsets = [5, 0], sizes = [1, 32], strides = [1, 1]} : vector<8x32xf32> to vector<1x32xf32>
    %cst_312 = arith.constant dense<0.000000e+00> : vector<16xf32>
    %986 = vector.multi_reduction <add>, %983, %cst_312 [1] : vector<16x32xf32> to vector<16xf32>
    %987 = vector.shape_cast %986 : vector<16xf32> to vector<16x1xf32>
    %cst_313 = arith.constant 3.200000e+01 : f32
    %988 = vector.broadcast %cst_313 : f32 to vector<16x1xf32>
    %989 = arith.divf %987, %988 : vector<16x1xf32>
    %990 = vector.broadcast %989 : vector<16x1xf32> to vector<16x32xf32>
    %991 = arith.subf %983, %990 : vector<16x32xf32>
    %992 = arith.mulf %991, %991 : vector<16x32xf32>
    %cst_314 = arith.constant dense<0.000000e+00> : vector<16xf32>
    %993 = vector.multi_reduction <add>, %992, %cst_314 [1] : vector<16x32xf32> to vector<16xf32>
    %994 = vector.shape_cast %993 : vector<16xf32> to vector<16x1xf32>
    %cst_315 = arith.constant 3.200000e+01 : f32
    %995 = vector.broadcast %cst_315 : f32 to vector<16x1xf32>
    %996 = arith.divf %994, %995 : vector<16x1xf32>
    %997 = vector.broadcast %989 : vector<16x1xf32> to vector<16x32xf32>
    %998 = arith.subf %983, %997 : vector<16x32xf32>
    %cst_316 = arith.constant 9.99999974E-6 : f32
    %999 = vector.broadcast %cst_316 : f32 to vector<16x1xf32>
    %1000 = arith.addf %996, %999 : vector<16x1xf32>
    %1001 = math.rsqrt %1000 : vector<16x1xf32>
    %1002 = vector.broadcast %1001 : vector<16x1xf32> to vector<16x32xf32>
    %1003 = arith.mulf %998, %1002 : vector<16x32xf32>
    %1004 = vector.broadcast %984 : vector<1x32xf32> to vector<16x32xf32>
    %1005 = arith.mulf %1003, %1004 : vector<16x32xf32>
    %1006 = vector.broadcast %985 : vector<1x32xf32> to vector<16x32xf32>
    %1007 = arith.addf %1005, %1006 : vector<16x32xf32>
    %1008 = vector.extract_strided_slice %1007 {offsets = [0, 0], sizes = [1, 32], strides = [1, 1]} : vector<16x32xf32> to vector<1x32xf32>
    %1009 = vector.extract_strided_slice %1007 {offsets = [8, 0], sizes = [1, 32], strides = [1, 1]} : vector<16x32xf32> to vector<1x32xf32>
    %1010 = tpu.concatenate %1008, %1009 in 0 : vector<1x32xf32>, vector<1x32xf32> -> vector<2x32xf32>
    %1011 = vector.extract_strided_slice %0 {offsets = [6, 0], sizes = [1, 32], strides = [1, 1]} : vector<8x32xf32> to vector<1x32xf32>
    %1012 = vector.broadcast %1011 : vector<1x32xf32> to vector<2x32xf32>
    %1013 = arith.mulf %1010, %1012 : vector<2x32xf32>
    %cst_317 = arith.constant dense<0.000000e+00> : vector<2xf32>
    %1014 = vector.multi_reduction <add>, %1013, %cst_317 [1] : vector<2x32xf32> to vector<2xf32>
    %1015 = vector.shape_cast %1014 : vector<2xf32> to vector<2x1xf32>
    %1016 = vector.extract_strided_slice %0 {offsets = [7, 0], sizes = [1, 1], strides = [1, 1]} : vector<8x32xf32> to vector<1x1xf32>
    %1017 = vector.broadcast %1016 : vector<1x1xf32> to vector<2x1xf32>
    %1018 = arith.addf %1015, %1017 : vector<2x1xf32>
    %1019 = vector.shape_cast %1018 : vector<2x1xf32> to vector<1x2x1xf32>
    %c0_318 = arith.constant 0 : index
    %c0_319 = arith.constant 0 : index
    %c0_320 = arith.constant 0 : index
    %1020 = vector.load %arg16[%c0_318, %c0_319, %c0_320] : memref<1x2x1xf32, #tpu.memory_space<vmem>>, vector<1x2x1xf32>
    tpu.vector_store %arg16[%c0_318, %c0_319, %c0_320], %1019 {strides = array<i32>} : memref<1x2x1xf32, #tpu.memory_space<vmem>>, vector<1x2x1xf32>,
    return
  }
  func.func @transform_0(%arg0: i32) -> (i32, i32) {
    %c0_i32 = arith.constant 0 : i32
    %c0_i32_0 = arith.constant 0 : i32
    return %arg0, %c0_i32 : i32, i32
  }
  func.func @transform_1(%arg0: i32) -> (i32, i32) {
    %c0_i32 = arith.constant 0 : i32
    %c0_i32_0 = arith.constant 0 : i32
    return %arg0, %c0_i32 : i32, i32
  }
  func.func @transform_2(%arg0: i32) -> (i32, i32) {
    %c0_i32 = arith.constant 0 : i32
    %c0_i32_0 = arith.constant 0 : i32
    %c0_i32_1 = arith.constant 0 : i32
    return %c0_i32, %c0_i32_0 : i32, i32
  }
  func.func @transform_3(%arg0: i32) -> (i32, i32) {
    %c0_i32 = arith.constant 0 : i32
    %c0_i32_0 = arith.constant 0 : i32
    %c0_i32_1 = arith.constant 0 : i32
    return %c0_i32, %c0_i32_0 : i32, i32
  }
  func.func @transform_4(%arg0: i32) -> (i32, i32) {
    %c0_i32 = arith.constant 0 : i32
    %c0_i32_0 = arith.constant 0 : i32
    %c0_i32_1 = arith.constant 0 : i32
    return %c0_i32, %c0_i32_0 : i32, i32
  }
  func.func @transform_5(%arg0: i32) -> (i32, i32) {
    %c0_i32 = arith.constant 0 : i32
    %c0_i32_0 = arith.constant 0 : i32
    %c0_i32_1 = arith.constant 0 : i32
    return %c0_i32, %c0_i32_0 : i32, i32
  }
  func.func @transform_6(%arg0: i32) -> (i32, i32, i32) {
    %c0_i32 = arith.constant 0 : i32
    %c0_i32_0 = arith.constant 0 : i32
    %c0_i32_1 = arith.constant 0 : i32
    %c0_i32_2 = arith.constant 0 : i32
    return %c0_i32, %c0_i32_0, %c0_i32_1 : i32, i32, i32
  }
  func.func @transform_7(%arg0: i32) -> (i32, i32, i32) {
    %c0_i32 = arith.constant 0 : i32
    %c0_i32_0 = arith.constant 0 : i32
    %c0_i32_1 = arith.constant 0 : i32
    %c0_i32_2 = arith.constant 0 : i32
    return %c0_i32, %c0_i32_0, %c0_i32_1 : i32, i32, i32
  }
  func.func @transform_8(%arg0: i32) -> (i32, i32, i32) {
    %c0_i32 = arith.constant 0 : i32
    %c0_i32_0 = arith.constant 0 : i32
    %c0_i32_1 = arith.constant 0 : i32
    %c0_i32_2 = arith.constant 0 : i32
    return %c0_i32, %c0_i32_0, %c0_i32_1 : i32, i32, i32
  }
  func.func @transform_9(%arg0: i32) -> (i32, i32, i32) {
    %c0_i32 = arith.constant 0 : i32
    %c0_i32_0 = arith.constant 0 : i32
    %c0_i32_1 = arith.constant 0 : i32
    %c0_i32_2 = arith.constant 0 : i32
    return %c0_i32, %c0_i32_0, %c0_i32_1 : i32, i32, i32
  }
  func.func @transform_10(%arg0: i32) -> (i32, i32, i32) {
    %c0_i32 = arith.constant 0 : i32
    %c0_i32_0 = arith.constant 0 : i32
    %c0_i32_1 = arith.constant 0 : i32
    %c0_i32_2 = arith.constant 0 : i32
    return %c0_i32, %c0_i32_0, %c0_i32_1 : i32, i32, i32
  }
  func.func @transform_11(%arg0: i32) -> (i32, i32, i32) {
    %c0_i32 = arith.constant 0 : i32
    %c0_i32_0 = arith.constant 0 : i32
    %c0_i32_1 = arith.constant 0 : i32
    %c0_i32_2 = arith.constant 0 : i32
    return %c0_i32, %c0_i32_0, %c0_i32_1 : i32, i32, i32
  }
  func.func @transform_12(%arg0: i32) -> (i32, i32, i32) {
    %c0_i32 = arith.constant 0 : i32
    %c0_i32_0 = arith.constant 0 : i32
    %c0_i32_1 = arith.constant 0 : i32
    %c0_i32_2 = arith.constant 0 : i32
    return %c0_i32, %c0_i32_0, %c0_i32_1 : i32, i32, i32
  }
  func.func @transform_13(%arg0: i32) -> (i32, i32, i32) {
    %c0_i32 = arith.constant 0 : i32
    %c0_i32_0 = arith.constant 0 : i32
    %c0_i32_1 = arith.constant 0 : i32
    %c0_i32_2 = arith.constant 0 : i32
    return %c0_i32, %c0_i32_0, %c0_i32_1 : i32, i32, i32
  }
  func.func @transform_14(%arg0: i32) -> (i32, i32, i32) {
    %c0_i32 = arith.constant 0 : i32
    %c0_i32_0 = arith.constant 0 : i32
    %c0_i32_1 = arith.constant 0 : i32
    %c0_i32_2 = arith.constant 0 : i32
    return %c0_i32, %c0_i32_0, %c0_i32_1 : i32, i32, i32
  }
  func.func @transform_15(%arg0: i32) -> (i32, i32, i32) {
    %c0_i32 = arith.constant 0 : i32
    %c0_i32_0 = arith.constant 0 : i32
    %c0_i32_1 = arith.constant 0 : i32
    return %arg0, %c0_i32, %c0_i32_0 : i32, i32, i32
  }
}

</mosaic_0001>

<bundles_post_ra>
// kernel: forward.1
= control target key start
LH: loop header
LB: loop body
LE: loop exit
PB: predicated region body
PF: predicated region fallthrough
CT: control target
= control target key end

     0   :  { %20 = vsyncpa [#allocation3], 0  ;;  %s8715_s0 = inlined_call_operand.vmem [shape: f32[16,5], index: 0, kind: input, shape index: {}]   ;;  %s8716_s1 = inlined_call_operand.vmem [shape: f32[16,6], index: 1, kind: input, shape index: {}]   ;;  %s8717_s2 = inlined_call_operand.hbm [shape: f32[5,32], index: 2, kind: input, shape index: {}]   ;;  %s8718_s3 = inlined_call_operand.hbm [shape: f32[6,32], index: 3, kind: input, shape index: {}]   ;;  %s8719_s4 = inlined_call_operand.hbm [shape: f32[8,32], index: 4, kind: input, shape index: {}]   ;;  %s8720_s5 = inlined_call_operand.hbm [shape: f32[8,32], index: 5, kind: input, shape index: {}]   ;;  %s8721_s6 = inlined_call_operand.hbm [shape: f32[2,32,128], index: 6, kind: input, shape index: {}]   ;;  %s8722_s7 = inlined_call_operand.hbm [shape: f32[2,32,64], index: 7, kind: input, shape index: {}]   ;;  %s8723_s8 = inlined_call_operand.hbm [shape: f32[2,64,32], index: 8, kind: input, shape index: {}]   ;;  %s8724_s9 = inlined_call_operand.hbm [shape: f32[2,8,128], index: 9, kind: input, shape index: {}]   ;;  %s8725_s10 = inlined_call_operand.hbm [shape: f32[2,32,128], index: 10, kind: input, shape index: {}]   ;;  %s8726_s11 = inlined_call_operand.hbm [shape: f32[2,32,128], index: 11, kind: input, shape index: {}]   ;;  %s8727_s12 = inlined_call_operand.vmem [shape: f32[2,32,64], index: 12, kind: input, shape index: {}]   ;;  %s8728_s13 = inlined_call_operand.hbm [shape: f32[2,64,32], index: 13, kind: input, shape index: {}]   ;;  %s8729_s14 = inlined_call_operand.hbm [shape: f32[2,12,128], index: 14, kind: input, shape index: {}]   ;;  %s8730_s15 = inlined_call_operand.vmem [shape: f32[1,2,1], index: 15, kind: output, shape index: {}]  }
   0x1   :  { %21 = vsyncpa [#allocation5], 0 }
   0x2   :  { %22 = vsyncpa [#allocation8], 0 }
   0x3   :  { %23 = vsyncpa [#allocation11], 0 }
   0x4   :  { %24 = vsyncpa [#allocation14], 0 }
   0x5   :  { %25 = vsyncpa [#allocation17], 0  ;;  %s47_s20 = sshll.u32 %s8718_s3, 4  ;;  %s48_s20 = int_to_ptr.hbm [resolvable:$true] %s47_s20 }
   0x6   :  { %26 = vsyncpa [#allocation20], 0  ;;  %s7033_s21 = smov [#allocation4]   ;;  %s69_s25 = sshll.u32 %s8720_s5, 4  ;;  %s70_s25 = int_to_ptr.hbm [resolvable:$true] %s69_s25 }
   0x7   :  { %s49_s22 = sshll.u32 %s7033_s21, 4  ;;  %s7034_s26 = smov [#allocation7]   ;;  %s50_s22 = int_to_ptr.vmem [resolvable:$true] %s49_s22 }
   0x8   :  { %52 = dma.hbm_to_vmem [thread:$0]  %s48_s20, 128, %s50_s22, [#allocation5]  }
   0x9   :  { %s71_s27 = sshll.u32 %s7034_s26, 4  ;;  %s92_s30 = sshll.u32 %s8722_s7, 4  ;;  %s72_s27 = int_to_ptr.vmem [resolvable:$true] %s71_s27  ;;  %s93_s30 = int_to_ptr.hbm [resolvable:$true] %s92_s30 }
   0xa   :  { %74 = dma.hbm_to_vmem [thread:$0]  %s70_s25, 128, %s72_s27, [#allocation8]  }
   0xb   :  { %s7035_s3 = smov [#allocation10]   ;;  %s118_s19 = sshll.u32 %s8724_s9, 4  ;;  %s119_s19 = int_to_ptr.hbm [resolvable:$true] %s118_s19 }
   0xc   :  { %s94_s16 = sshll.u32 %s7035_s3, 4  ;;  %s7036_s21 = smov 128   ;;  %s95_s16 = int_to_ptr.vmem [resolvable:$true] %s94_s16 }
   0xd   :  { %s7037_s5 = smov 8   ;;  %s7038_s20 = smov [#allocation13]  }
   0xe   :  { %100 = dma.hbm_to_vmem [thread:$0]  %s93_s30, 1024, %s95_s16, [#allocation11], %s7036_s21, %s7036_s21, %s7037_s5  }
   0xf   :  { %s120_s22 = sshll.u32 %s7038_s20, 4  ;;  %s144_s7 = sshll.u32 %s8726_s11, 4  ;;  %s121_s22 = int_to_ptr.vmem [resolvable:$true] %s120_s22  ;;  %s145_s7 = int_to_ptr.hbm [resolvable:$true] %s144_s7 }
  0x10   :  { %126 = dma.hbm_to_vmem [thread:$0]  %s119_s19, 256, %s121_s22, [#allocation14], %s7036_s21, %s7036_s21, %s7037_s5  }
  0x11   :  { %s36_s26 = sshll.u32 %s8717_s2, 4  ;;  %s7039_s27 = smov [#allocation16]   ;;  %s37_s26 = int_to_ptr.hbm [resolvable:$true] %s36_s26 }
  0x12   :  { %s146_s28 = sshll.u32 %s7039_s27, 4  ;;  %s7040_s29 = smov [#allocation2]   ;;  %s147_s28 = int_to_ptr.vmem [resolvable:$true] %s146_s28 }
  0x13   :  { %152 = dma.hbm_to_vmem [thread:$0]  %s145_s7, 1024, %s147_s28, [#allocation17], %s7036_s21, %s7036_s21, %s7037_s5  }
  0x14   :  { %s38_s11 = sshll.u32 %s7040_s29, 4  ;;  %s58_s16 = sshll.u32 %s8719_s4, 4  ;;  %s39_s11 = int_to_ptr.vmem [resolvable:$true] %s38_s11  ;;  %s59_s16 = int_to_ptr.hbm [resolvable:$true] %s58_s16 }
  0x15   :  { %41 = dma.hbm_to_vmem [thread:$0]  %s37_s26, 128, %s39_s11, [#allocation3]  }
  0x16   :  { %s79_s2 = sshll.u32 %s8721_s6, 4  ;;  %s7041_s19 = smov [#allocation6]   ;;  %s80_s2 = int_to_ptr.hbm [resolvable:$true] %s79_s2 }
  0x17   :  { %s60_s20 = sshll.u32 %s7041_s19, 4  ;;  %s7042_s22 = smov [#allocation9]   ;;  %s61_s20 = int_to_ptr.vmem [resolvable:$true] %s60_s20 }
  0x18   :  { %63 = dma.hbm_to_vmem [thread:$0]  %s59_s16, 128, %s61_s20, [#allocation5]  }
  0x19   :  { %s81_s23 = sshll.u32 %s7042_s22, 4  ;;  %s105_s9 = sshll.u32 %s8723_s8, 4  ;;  %s82_s23 = int_to_ptr.vmem [resolvable:$true] %s81_s23  ;;  %s106_s9 = int_to_ptr.hbm [resolvable:$true] %s105_s9 }
  0x1a   :  { %87 = dma.hbm_to_vmem [thread:$0]  %s80_s2, 1024, %s82_s23, [#allocation8], %s7036_s21, %s7036_s21, %s7037_s5  }
  0x1b   :  { %s131_s6 = sshll.u32 %s8725_s10, 4  ;;  %s7043_s26 = smov [#allocation12]   ;;  %s132_s6 = int_to_ptr.hbm [resolvable:$true] %s131_s6 }
  0x1c   :  { %s107_s27 = sshll.u32 %s7043_s26, 4  ;;  %s7044_s28 = smov [#allocation15]   ;;  %s108_s27 = int_to_ptr.vmem [resolvable:$true] %s107_s27 }
  0x1d   :  { %113 = dma.hbm_to_vmem [thread:$0]  %s106_s9, 2048, %s108_s27, [#allocation11], %s7036_s21, %s7036_s21, %s7037_s5  }
  0x1e   :  { %s133_s8 = sshll.u32 %s7044_s28, 4  ;;  %s159_s30 = sshll.u32 %s8728_s13, 4  ;;  %s134_s8 = int_to_ptr.vmem [resolvable:$true] %s133_s8  ;;  %s160_s30 = int_to_ptr.hbm [resolvable:$true] %s159_s30 }
  0x1f   :  { %139 = dma.hbm_to_vmem [thread:$0]  %s132_s6, 1024, %s134_s8, [#allocation14], %s7036_s21, %s7036_s21, %s7037_s5  }
  0x20   :  { %s172_s16 = sshll.u32 %s8729_s14, 4  ;;  %s7045_s17 = smov [#allocation18]   ;;  %s173_s16 = int_to_ptr.hbm [resolvable:$true] %s172_s16 }
  0x21   :  { %s161_s18 = sshll.u32 %s7045_s17, 4  ;;  %s7046_s2 = smov [#allocation19]   ;;  %s162_s18 = int_to_ptr.vmem [resolvable:$true] %s161_s18 }
  0x22   :  { %167 = dma.hbm_to_vmem [thread:$0]  %s160_s30, 2048, %s162_s18, [#allocation17], %s7036_s21, %s7036_s21, %s7037_s5  }
  0x23   :  { %s174_s13 = sshll.u32 %s7046_s2, 4  ;;  %s175_s13 = int_to_ptr.vmem [resolvable:$true] %s174_s13 }
  0x24   :  { %180 = dma.hbm_to_vmem [thread:$0]  %s173_s16, 512, %s175_s13, [#allocation20], %s7036_s21, %s7036_s21, %s7037_s5  }
  0x25   :  { %7019 = dma.done.wait [#allocation3], 128  }
  0x26   :  { %7020 = vsyncadd [#allocation3], 4294967168 }
  0x27   :  { %7021 = dma.done.wait [#allocation5], 256  }
  0x28   :  { %7022 = vsyncadd [#allocation5], 4294967040 }
  0x29   :  { %7023 = dma.done.wait [#allocation8], 1152  }
  0x2a   :  { %7024 = vsyncadd [#allocation8], 4294966144 }
  0x2b   :  { %7025 = dma.done.wait [#allocation11], 3072  }
  0x2c   :  { %7026 = vsyncadd [#allocation11], 4294964224 }
  0x2d   :  { %7027 = dma.done.wait [#allocation14], 1280  }
  0x2e   :  { %7028 = vsyncadd [#allocation14], 4294966016 }
  0x2f   :  { %7029 = dma.done.wait [#allocation17], 3072  }
  0x30   :  { %7030 = vsyncadd [#allocation17], 4294964224 }
  0x31   :  { %7031 = dma.done.wait [#allocation20], 512  }
  0x32   :  { %7032 = vsyncadd [#allocation20], 4294966784  ;;  %vm280_vm0 = vcmask 1045504   ;;  %vm273_vm1 = vcmask 48128   ;;  %v271_v0 = vld [vmem:[#allocation4] sm:$0x3f] }
  0x33   :  { %v269_v1 = vld [vmem:[%s8716_s1] sm:$0xff]  ;;  %6105 = vmatpush.msk.msra.mxu1 %vm280_vm0, %v271_v0  ;;  %v7205_v2 = vld [vmem:[#allocation9 + $0x18] sm:$0xff]  ;;  %v270_v3 = vld [vmem:[%s8716_s1 + $0x8] sm:$0xff]  ;;  %vm315_vm2 = vcmask 261120   ;;  %s7047_s1 = smov 72   ;;  %s7048_s22 = smov 120  }
  0x34   :  { %6106 = vmatmul.msk.f32.vlgmr.msra.gmra.mxu1 %vm273_vm1, %v269_v1  ;;  %334 = vmatpush.msra.mxu2 %v7205_v2  ;;  %v7211_v4 = vld [vmem:[#allocation9 + $0x10] sm:$0xff]  ;;  %v7214_v5 = vld [vmem:[#allocation9 + $0x8] sm:$0xff]  ;;  %v7217_v6 = vld [vmem:[#allocation9] sm:$0xff]  ;;  %s7049_s23 = smov 96   ;;  %s7050_s24 = smov 112   ;;  %vm241_vm3 = vcmask 1044480  }
  0x35   :  { %v6339_v7 = vpack.i.bf16 %v7217_v6, %v7214_v5  ;;  %v229_v8 = vld [vmem:[#allocation7] sm:$0xff]  ;;  %v268_v10 = vld [vmem:[#allocation6] sm:$0xff]  ;;  %v7230_v17 = vld [vmem:[#allocation13] sm:$0xff]  ;;  %s7051_s7 = smov 80   ;;  %s7052_s9 = smov 88   ;;  %vm234_vm4 = vcmask 39936  }
  0x36   :  { %335 = vmatpush.msra.mxu2 %v7211_v4  ;;  %v272_v9 = vperm.slane %v229_v8, 1  ;;  %v314_v18 = vperm.slane %v7230_v17, 0  ;;  %s7053_s4 = smov 104   ;;  %v232_v23 = vld [vmem:[#allocation2] sm:$0x1f]  ;;  %v231_v25 = vld [vmem:[%s8715_s0 + $0x8] sm:$0xff] }
  0x37   :  { %v230_v24 = vld [vmem:[%s8715_s0] sm:$0xff]  ;;  %6102 = vmatpush.msk.msra.mxu0 %vm241_vm3, %v232_v23  ;;  %vm348_vm5 = vcmask 64512   ;;  %s7054_s0 = smov 56   ;;  %s7055_s28 = smov 40  }
  0x38   :  { %336 = vmatpush.msra.mxu2 %v7214_v5  ;;  %6103 = vmatmul.msk.f32.vlgmr.msra.gmra.mxu0 %vm234_vm4, %v230_v24  ;;  %s7056_s8 = smov 48   ;;  %s7057_s29 = smov 64  }
  0x39   :  { %s7058_s11 = smov 32   ;;  %s7059_s30 = smov 16  }
  0x3a   :  { %337 = vmatpush.msra.mxu2 %v7217_v6  ;;  %s7060_s10 = smov 24  }
  0x3c   :  { %6107 = vmatmul.msk.f32.gmra.mxu1 %vm273_vm1, %v270_v3 }
  0x40   :  { %6104 = vmatmul.msk.f32.gmra.mxu0 %vm234_vm4, %v231_v25 }
  0xb1   :  { %v301_v11 = vpop.f32.mrf.mxu1 }
  0xb2   :  { %v302_v12 = vadd.f32 %v301_v11, %v272_v9 }
  0xb4   :  { %v7222_v13 = vadd.f32 %v302_v12, %v268_v10 }
  0xb5   :  { %v7289_v40 = vpop.f32.mrf.mxu0 }
  0xb6   :  { %6108 = vmatmul.msk.f32.vlgmr.msra.gmra.mxu2 %vm315_vm2, %v7222_v13 }
  0xb9   :  { %v304_v14 = vpop.f32.mrf.mxu1 }
  0xba   :  { %v305_v15 = vadd.f32 %v304_v14, %v272_v9 }
  0xbc   :  { %v7226_v16 = vadd.f32 %v305_v15, %v268_v10 }
  0xbd   :  { %v7291_v41 = vpop.f32.mrf.mxu0 }
  0xbe   :  { %6109 = vmatmul.msk.f32.gmra.mxu2 %vm315_vm2, %v7226_v16 }
 0x139   :  { %v339_v19 = vpop.f32.mrf.mxu2 }
 0x13a   :  { %v7233_v20 = vadd.f32 %v339_v19, %v314_v18 }
 0x13c   :  { %431 = vrot.lane.b32.xlu2 %v7233_v20, %s7047_s1  ;;  %373 = vrot.lane.b32.xlu1 %v7233_v20, %s7048_s22 }
 0x13d   :  { %346 = vrot.lane.b32.xlu0 %v7233_v20, %s7049_s23 }
 0x141   :  { %v342_v21 = vpop.f32.mrf.mxu2 }
 0x142   :  { %v7247_v22 = vadd.f32 %v342_v21, %v314_v18 }
 0x144   :  { %401 = vrot.lane.b32.xlu2 %v7233_v20, %s7050_s24  ;;  %403 = vrot.lane.b32.xlu1 %v7233_v20, %s7051_s7 }
 0x145   :  { %375 = vrot.lane.b32.xlu0 %v7233_v20, %s7052_s9 }
 0x14c   :  { %484 = vrot.lane.b32.xlu2 %v7247_v22, %s7048_s22  ;;  %429 = vrot.lane.b32.xlu1 %v7233_v20, %s7053_s4 }
 0x14d   :  { %486 = vrot.lane.b32.xlu0 %v7247_v22, %s7052_s9 }
 0x154   :  { %512 = vrot.lane.b32.xlu2 %v7247_v22, %s7050_s24  ;;  %542 = vrot.lane.b32.xlu1 %v7247_v22, %s7047_s1 }
 0x155   :  { %514 = vrot.lane.b32.xlu0 %v7247_v22, %s7051_s7 }
 0x15c   :  { %458 = vrot.lane.b32.xlu1 %v7247_v22, %s7049_s23 }
 0x15d   :  { %540 = vrot.lane.b32.xlu0 %v7247_v22, %s7053_s4 }
 0x196   :  { %v432_v26 = vpop.permute.xlu2 %431 }
 0x197   :  { %6116 = vmatpush.xpose.msk.msrb.mxu1 %vm348_vm5, %v432_v26 }
 0x19e   :  { %v402_v29 = vpop.permute.xlu2 %401 }
 0x1a6   :  { %v485_v34 = vpop.permute.xlu2 %484 }
 0x1ae   :  { %v374_v27 = vpop.permute.xlu1 %373  ;;  %v513_v37 = vpop.permute.xlu2 %512 }
 0x1af   :  { %v347_v28 = vpop.permute.xlu0 %346 }
 0x1b0   :  { %6110 = vmatpush.xpose.msk.msra.mxu3 %vm348_vm5, %v347_v28 }
 0x1b3   :  { %6111 = vmatmul.msk.f32.vlgmr.msra.gmra.mxu3 %vm348_vm5, %v7233_v20 }
 0x1b6   :  { %v404_v30 = vpop.permute.xlu1 %403 }
 0x1b7   :  { %v376_v31 = vpop.permute.xlu0 %375  ;;  %6114 = vmatpush.xpose.msk.msrb.mxu0 %vm348_vm5, %v404_v30 }
 0x1b8   :  { %6112 = vmatpush.xpose.msk.msrb.mxu3 %vm348_vm5, %v376_v31 }
 0x1ba   :  { %6115 = vmatmul.msk.f32.vlgmr.msrb.gmra.mxu0 %vm348_vm5, %v402_v29 }
 0x1bb   :  { %6113 = vmatmul.msk.f32.vlgmr.msrb.gmra.mxu3 %vm348_vm5, %v374_v27 }
 0x1be   :  { %v430_v32 = vpop.permute.xlu1 %429 }
 0x1bf   :  { %v487_v33 = vpop.permute.xlu0 %486  ;;  %6117 = vmatmul.msk.f32.vlgmr.msrb.gmra.mxu1 %vm348_vm5, %v430_v32 }
 0x1c0   :  { %6120 = vmatpush.xpose.msk.msrb.mxu2 %vm348_vm5, %v487_v33 }
 0x1c3   :  { %6121 = vmatmul.msk.f32.vlgmr.msrb.gmra.mxu2 %vm348_vm5, %v485_v34 }
 0x1c6   :  { %v543_v35 = vpop.permute.xlu1 %542 }
 0x1c7   :  { %v515_v36 = vpop.permute.xlu0 %514  ;;  %6124 = vmatpush.xpose.msk.msra.mxu1 %vm348_vm5, %v543_v35 }
 0x1c8   :  { %6122 = vmatpush.xpose.msk.msra.mxu0 %vm348_vm5, %v515_v36  ;;  %v6329_v36 = vpack.i.bf16 %v7247_v22, %v7233_v20 }
 0x1cb   :  { %6123 = vmatmul.msk.f32.vlgmr.msra.gmra.mxu0 %vm348_vm5, %v513_v37 }
 0x1ce   :  { %v459_v38 = vpop.permute.xlu1 %458 }
 0x1cf   :  { %v541_v39 = vpop.permute.xlu0 %540  ;;  %6118 = vmatpush.xpose.msk.msra.mxu3 %vm348_vm5, %v459_v38 }
 0x1d0   :  { %6125 = vmatmul.msk.f32.vlgmr.msra.gmra.mxu1 %vm348_vm5, %v541_v39 }
 0x1d2   :  { %6119 = vmatmul.msk.f32.vlgmr.msra.gmra.mxu3 %vm348_vm5, %v7247_v22 }
 0x236   :  { %v370_v42 = vpop.f32.mrf.mxu3 }
 0x237   :  { %v426_v43 = vpop.f32.mrf.mxu0  ;;  %v7296_v52 = vmul.f32 0.35355338, %v370_v42 }
 0x238   :  { %v570_v44 = vmul.f32 0.35355338, %v426_v43 }
 0x239   :  { %v576_v53 = vsel %vm348_vm5, %v7296_v52, -inf }
 0x23a   :  { %v582_v45 = vsel %vm348_vm5, %v570_v44, -inf }
 0x23b   :  { %583 = vmax.xlane.f32.xlu0 %v582_v45 }
 0x23c   :  { %v454_v46 = vpop.f32.mrf.mxu1 }
 0x23d   :  { %v571_v47 = vmul.f32 0.35355338, %v454_v46 }
 0x23e   :  { %v398_v48 = vpop.f32.mrf.mxu3 }
 0x23f   :  { %v569_v49 = vmul.f32 0.35355338, %v398_v48  ;;  %v585_v50 = vsel %vm348_vm5, %v571_v47, -inf }
 0x240   :  { %586 = vmax.xlane.f32.xlu1 %v585_v50 }
 0x241   :  { %v579_v51 = vsel %vm348_vm5, %v569_v49, -inf }
 0x242   :  { %580 = vmax.xlane.f32.xlu2 %v579_v51 }
 0x246   :  { %v509_v57 = vpop.f32.mrf.mxu2 }
 0x247   :  { %v7301_v60 = vmul.f32 0.35355338, %v509_v57 }
 0x248   :  { %v537_v54 = vpop.f32.mrf.mxu0  ;;  %577 = vmax.xlane.f32.xlu1 %v576_v53 }
 0x249   :  { %v574_v55 = vmul.f32 0.35355338, %v537_v54  ;;  %v591_v62 = vsel %vm348_vm5, %v7301_v60, -inf }
 0x24b   :  { %v594_v56 = vsel %vm348_vm5, %v574_v55, -inf }
 0x24c   :  { %595 = vmax.xlane.f32.xlu2 %v594_v56 }
 0x24d   :  { %v565_v58 = vpop.f32.mrf.mxu1 }
 0x24e   :  { %v575_v59 = vmul.f32 0.35355338, %v565_v58 }
 0x250   :  { %v597_v61 = vsel %vm348_vm5, %v575_v59, -inf }
 0x251   :  { %598 = vmax.xlane.f32.xlu0 %v597_v61 }
 0x254   :  { %592 = vmax.xlane.f32.xlu2 %v591_v62 }
 0x255   :  { %v481_v63 = vpop.f32.mrf.mxu3 }
 0x256   :  { %v7306_v0 = vmul.f32 0.35355338, %v481_v63 }
 0x258   :  { %v588_v1 = vsel %vm348_vm5, %v7306_v0, -inf }
 0x259   :  { %589 = vmax.xlane.f32.xlu0 %v588_v1 }
 0x2ae   :  { %v584_v3 = vpop.xlane.xlu0 %583 }
 0x2af   :  { %v602_v8 = vsub.f32 %v570_v44, %v584_v3 }
 0x2b1   :  { %v612_v9 = vmul.f32 1.442695, %v602_v8 }
 0x2b3   :  { %6449 = vpow2.f32 %v612_v9  ;;  %v587_v10 = vpop.xlane.xlu1 %586 }
 0x2b4   :  { %v603_v11 = vsub.f32 %v571_v47, %v587_v10 }
 0x2b5   :  { %v581_v14 = vpop.xlane.xlu2 %580 }
 0x2b6   :  { %v614_v12 = vmul.f32 1.442695, %v603_v11  ;;  %v601_v25 = vsub.f32 %v569_v49, %v581_v14 }
 0x2b8   :  { %6451 = vpow2.f32 %v614_v12  ;;  %v610_v29 = vmul.f32 1.442695, %v601_v25 }
 0x2b9   :  { %v7310_v15 = vpop.eup %6449 }
 0x2ba   :  { %v630_v18 = vsel %vm348_vm5, %v7310_v15, 0.0 }
 0x2bb   :  { %631 = vadd.xlane.f32.xlu1 %v630_v18  ;;  %v578_v38 = vpop.xlane.xlu1 %577 }
 0x2bc   :  { %v600_v39 = vsub.f32 %v7296_v52, %v578_v38 }
 0x2be   :  { %v7314_v19 = vpop.eup %6451  ;;  %v608_v42 = vmul.f32 1.442695, %v600_v39 }
 0x2bf   :  { %v596_v21 = vpop.xlane.xlu2 %595  ;;  %v633_v23 = vsel %vm348_vm5, %v7314_v19, 0.0 }
 0x2c0   :  { %v606_v24 = vsub.f32 %v574_v55, %v596_v21  ;;  %634 = vadd.xlane.f32.xlu2 %v633_v23 }
 0x2c2   :  { %v620_v26 = vmul.f32 1.442695, %v606_v24 }
 0x2c4   :  { %6453 = vpow2.f32 %v620_v26  ;;  %v599_v27 = vpop.xlane.xlu0 %598 }
 0x2c5   :  { %v607_v28 = vsub.f32 %v575_v59, %v599_v27 }
 0x2c7   :  { %v622_v30 = vmul.f32 1.442695, %v607_v28  ;;  %v593_v44 = vpop.xlane.xlu2 %592 }
 0x2c8   :  { %v605_v45 = vsub.f32 %v7301_v60, %v593_v44 }
 0x2c9   :  { %6455 = vpow2.f32 %v622_v30 }
 0x2ca   :  { %v7318_v31 = vpop.eup %6453  ;;  %6457 = vpow2.f32 %v610_v29  ;;  %v618_v47 = vmul.f32 1.442695, %v605_v45 }
 0x2cb   :  { %v642_v32 = vsel %vm348_vm5, %v7318_v31, 0.0  ;;  %6459 = vpow2.f32 %v608_v42 }
 0x2cc   :  { %643 = vadd.xlane.f32.xlu2 %v642_v32  ;;  %6461 = vpow2.f32 %v618_v47  ;;  %v590_v53 = vpop.xlane.xlu0 %589 }
 0x2cf   :  { %v7322_v33 = vpop.eup %6455 }
 0x2d0   :  { %v7324_v34 = vpop.eup %6457  ;;  %v645_v35 = vsel %vm348_vm5, %v7322_v33, 0.0 }
 0x2d1   :  { %646 = vadd.xlane.f32.xlu0 %v645_v35  ;;  %v627_v37 = vsel %vm348_vm5, %v7324_v34, 0.0  ;;  %v7340_v43 = vpop.eup %6459 }
 0x2d2   :  { %v624_v46 = vsel %vm348_vm5, %v7340_v43, 0.0  ;;  %v7349_v48 = vpop.eup %6461 }
 0x2d3   :  { %v639_v49 = vsel %vm348_vm5, %v7349_v48, 0.0 }
 0x2d4   :  { %628 = vadd.xlane.f32.xlu2 %v627_v37  ;;  %6330 = vrot.lane.b32.xlu1 %v6329_v36, %s7054_s0 }
 0x2e5   :  { %846 = vrot.lane.b32.xlu0 %v7233_v20, %s7055_s28 }
 0x2ec   :  { %820 = vrot.lane.b32.xlu2 %v7233_v20, %s7056_s8 }
 0x2f4   :  { %967 = vrot.lane.b32.xlu2 %v7247_v22, %s7055_s28 }
 0x2fc   :  { %768 = vrot.lane.b32.xlu2 %v7233_v20, %s7057_s29  ;;  %v6334_v20 = vpack.i.bf16 %v7211_v4, %v7205_v2  ;;  %v604_v2 = vsub.f32 %v7306_v0, %v590_v53 }
 0x2fe   :  { %625 = vadd.xlane.f32.xlu1 %v624_v46  ;;  %v616_v56 = vmul.f32 1.442695, %v604_v2 }
 0x304   :  { %889 = vrot.lane.b32.xlu2 %v7247_v22, %s7057_s29 }
 0x30c   :  { %6335 = vrot.lane.b32.xlu2 %v6334_v20, %s7058_s11 }
 0x30f   :  { %640 = vadd.xlane.f32.xlu0 %v639_v49 }
 0x314   :  { %6340 = vrot.lane.b32.xlu2 %v6339_v7, %s7058_s11 }
 0x323   :  { %941 = vrot.lane.b32.xlu0 %v7247_v22, %s7056_s8 }
 0x32e   :  { %v632_v50 = vpop.xlane.xlu1 %631 }
 0x32f   :  { %6463 = vrcp.f32 %v632_v50  ;;  %v687_v59 = vand.u32 2147483648, %v632_v50  ;;  %vm681_vm7 = vweird.f32 %v632_v50  ;;  %v685_v61 = vand.u32 2147483647, %v632_v50 }
 0x331   :  { %v688_v9 = vor.u32 1.1754944e-38, %v687_v59  ;;  %vm686_vm9 = vcmp.eq.f32.partialorder %v685_v61, 8.507059e+37 }
 0x333   :  { %v635_v51 = vpop.xlane.xlu2 %634 }
 0x334   :  { %6465 = vrcp.f32 %v635_v51  ;;  %v701_v23 = vand.u32 2147483648, %v635_v51  ;;  %vm695_vm11 = vweird.f32 %v635_v51  ;;  %v699_v25 = vand.u32 2147483647, %v635_v51 }
 0x335   :  { %v6464_v52 = vpop.eup %6463  ;;  %6467 = vpow2.f32 %v616_v56 }
 0x336   :  { %v677_v54 = vmul.f32 %v6464_v52, %v632_v50  ;;  %vm682_vm6 = vweird.f32 %v6464_v52  ;;  %v702_v35 = vor.u32 1.1754944e-38, %v701_v23  ;;  %vm700_vm13 = vcmp.eq.f32.partialorder %v699_v25, 8.507059e+37 }
 0x337   :  { %vm683_vm8 = vmor %vm681_vm7, %vm682_vm6 }
 0x338   :  { %v678_v4 = vsub.f32 1.0, %v677_v54 }
 0x33a   :  { %v6466_v55 = vpop.eup %6465  ;;  %v679_v58 = vmul.f32 %v6464_v52, %v678_v4 }
 0x33b   :  { %v691_v5 = vmul.f32 %v6466_v55, %v635_v51  ;;  %v7368_v63 = vpop.eup %6467  ;;  %vm696_vm10 = vweird.f32 %v6466_v55 }
 0x33c   :  { %v680_v7 = vadd.f32 %v6464_v52, %v679_v58  ;;  %v636_v12 = vsel %vm348_vm5, %v7368_v63, 0.0  ;;  %vm697_vm12 = vmor %vm695_vm11, %vm696_vm10 }
 0x33d   :  { %v692_v22 = vsub.f32 1.0, %v691_v5 }
 0x33e   :  { %v684_v0 = vsel %vm683_vm8, %v6464_v52, %v680_v7 }
 0x33f   :  { %v7363_v57 = vpop.xlane.xlu2 %643  ;;  %v693_v1 = vmul.f32 %v6466_v55, %v692_v22  ;;  %v689_v14 = vsel %vm686_vm9, %v688_v9, %v684_v0 }
 0x340   :  { %v762_v28 = vmul.f32 %v7310_v15, %v689_v14  ;;  %v743_v14 = vand.u32 2147483648, %v7363_v57 }
 0x341   :  { %v694_v18 = vadd.f32 %v6466_v55, %v693_v1 }
 0x343   :  { %v698_v29 = vsel %vm697_vm12, %v6466_v55, %v694_v18 }
 0x344   :  { %v7365_v6 = vpop.xlane.xlu0 %646  ;;  %v703_v39 = vsel %vm700_vm13, %v702_v35, %v698_v29  ;;  %vm737_vm13 = vweird.f32 %v7363_v57 }
 0x345   :  { %6469 = vrcp.f32 %v7365_v6  ;;  %vm751_vm1 = vweird.f32 %v7365_v6  ;;  %v757_v15 = vand.u32 2147483648, %v7365_v6  ;;  %v755_v46 = vand.u32 2147483647, %v7365_v6 }
 0x346   :  { %v6331_v60 = vpop.permute.xlu1 %6330  ;;  %v763_v50 = vmul.f32 %v7314_v19, %v703_v39 }
 0x347   :  { %v629_v62 = vpop.xlane.xlu2 %628  ;;  %v6333_v3 = vunpack.i.h.bf16 %v6331_v60  ;;  %v6332_v8 = vunpack.i.l.bf16 %v6331_v60  ;;  %v758_v54 = vor.u32 1.1754944e-38, %v757_v15  ;;  %vm756_vm7 = vcmp.eq.f32.partialorder %v755_v46, 8.507059e+37 }
 0x348   :  { %6471 = vrcp.f32 %v629_v62  ;;  %v673_v36 = vand.u32 2147483648, %v629_v62  ;;  %v671_v38 = vand.u32 2147483647, %v629_v62  ;;  %vm667_vm0 = vweird.f32 %v629_v62 }
 0x349   :  { %815 = vmatpush.msra.mxu2 %v6332_v8 }
 0x34a   :  { %v674_v45 = vor.u32 1.1754944e-38, %v673_v36  ;;  %vm672_vm4 = vcmp.eq.f32.partialorder %v671_v38, 8.507059e+37 }
 0x34b   :  { %v6470_v10 = vpop.eup %6469  ;;  %936 = vmatpush.msrb.mxu2 %v6333_v3 }
 0x34c   :  { %v747_v11 = vmul.f32 %v6470_v10, %v7365_v6  ;;  %vm752_vm15 = vweird.f32 %v6470_v10 }
 0x34d   :  { %637 = vadd.xlane.f32.xlu0 %v636_v12  ;;  %vm753_vm6 = vmor %vm751_vm1, %vm752_vm15 }
 0x34e   :  { %v6472_v21 = vpop.eup %6471  ;;  %v748_v24 = vsub.f32 1.0, %v747_v11 }
 0x34f   :  { %v663_v26 = vmul.f32 %v6472_v21, %v629_v62  ;;  %v821_v27 = vpop.permute.xlu2 %820  ;;  %vm668_vm14 = vweird.f32 %v6472_v21 }
 0x350   :  { %841 = vmatpush.msrb.mxu0 %v821_v27  ;;  %v749_v30 = vmul.f32 %v6470_v10, %v748_v24  ;;  %vm669_vm3 = vmor %vm667_vm0, %vm668_vm14 }
 0x351   :  { %v664_v32 = vsub.f32 1.0, %v663_v26  ;;  %6128 = vmatmul.msk.f32.vlgmr.msrb.gmra.mxu0 %vm348_vm5, %v762_v28  ;;  %v744_v26 = vor.u32 1.1754944e-38, %v743_v14 }
 0x352   :  { %v750_v42 = vadd.f32 %v6470_v10, %v749_v30 }
 0x353   :  { %v665_v37 = vmul.f32 %v6472_v21, %v664_v32 }
 0x354   :  { %v754_v52 = vsel %vm753_vm6, %v6470_v10, %v750_v42 }
 0x355   :  { %v666_v44 = vadd.f32 %v6472_v21, %v665_v37  ;;  %v759_v2 = vsel %vm756_vm7, %v758_v54, %v754_v52 }
 0x356   :  { %v767_v55 = vmul.f32 %v7322_v33, %v759_v2 }
 0x357   :  { %v670_v47 = vsel %vm669_vm3, %v6472_v21, %v666_v44  ;;  %v968_v49 = vpop.permute.xlu2 %967  ;;  %v847_v20 = vpop.permute.xlu0 %846  ;;  %v741_v21 = vand.u32 2147483647, %v7363_v57 }
 0x358   :  { %867 = vmatpush.msrb.mxu1 %v847_v20  ;;  %v675_v51 = vsel %vm672_vm4, %v674_v45, %v670_v47 }
 0x359   :  { %6129 = vmatmul.msk.f32.vlgmr.msrb.gmra.mxu1 %vm348_vm5, %v763_v50  ;;  %v761_v53 = vmul.f32 %v7324_v34, %v675_v51  ;;  %vm742_vm1 = vcmp.eq.f32.partialorder %v741_v21, 8.507059e+37 }
 0x35a   :  { %988 = vmatpush.msra.mxu1 %v968_v49 }
 0x35b   :  { %6127 = vmatmul.msk.f32.vlgmr.msra.gmra.mxu2 %vm348_vm5, %v761_v53 }
 0x35f   :  { %v769_v4 = vpop.permute.xlu2 %768 }
 0x360   :  { %789 = vmatpush.msrb.mxu3 %v769_v4 }
 0x361   :  { %6133 = vmatmul.msk.f32.vlgmr.msra.gmra.mxu1 %vm348_vm5, %v767_v55 }
 0x367   :  { %v890_v19 = vpop.permute.xlu2 %889 }
 0x368   :  { %910 = vmatpush.msra.mxu3 %v890_v19 }
 0x36f   :  { %v6336_v52 = vpop.permute.xlu2 %6335 }
 0x370   :  { %v6338_v53 = vunpack.i.h.bf16 %v6336_v52  ;;  %v6337_v54 = vunpack.i.l.bf16 %v6336_v52 }
 0x371   :  { %v626_v56 = vpop.xlane.xlu1 %625 }
 0x372   :  { %6473 = vrcp.f32 %v626_v56  ;;  %v659_v7 = vand.u32 2147483648, %v626_v56  ;;  %v657_v59 = vand.u32 2147483647, %v626_v56  ;;  %vm653_vm9 = vweird.f32 %v626_v56 }
 0x373   :  { %6475 = vrcp.f32 %v7363_v57 }
 0x374   :  { %v660_v61 = vor.u32 1.1754944e-38, %v659_v7  ;;  %vm658_vm11 = vcmp.eq.f32.partialorder %v657_v59, 8.507059e+37 }
 0x377   :  { %v6341_v2 = vpop.permute.xlu2 %6340 }
 0x378   :  { %v6474_v58 = vpop.eup %6473  ;;  %v6343_v4 = vunpack.i.h.bf16 %v6341_v2  ;;  %v6342_v55 = vunpack.i.l.bf16 %v6341_v2 }
 0x379   :  { %v649_v34 = vmul.f32 %v6474_v58, %v626_v56  ;;  %v6476_v6 = vpop.eup %6475  ;;  %vm654_vm8 = vweird.f32 %v6474_v58 }
 0x37a   :  { %v733_v60 = vmul.f32 %v6476_v6, %v7363_v57  ;;  %vm655_vm10 = vmor %vm653_vm9, %vm654_vm8  ;;  %vm738_vm12 = vweird.f32 %v6476_v6 }
 0x37b   :  { %v650_v5 = vsub.f32 1.0, %v649_v34  ;;  %vm739_vm14 = vmor %vm737_vm13, %vm738_vm12 }
 0x37c   :  { %v734_v3 = vsub.f32 1.0, %v733_v60 }
 0x37d   :  { %v651_v22 = vmul.f32 %v6474_v58, %v650_v5 }
 0x37e   :  { %v735_v9 = vmul.f32 %v6476_v6, %v734_v3 }
 0x37f   :  { %v652_v33 = vadd.f32 %v6474_v58, %v651_v22 }
 0x380   :  { %v736_v12 = vadd.f32 %v6476_v6, %v735_v9 }
 0x381   :  { %v656_v62 = vsel %vm655_vm10, %v6474_v58, %v652_v33  ;;  %vm885_vm10 = vcmask 130048  }
 0x382   :  { %v641_v0 = vpop.xlane.xlu0 %640  ;;  %v661_v1 = vsel %vm658_vm11, %v660_v61, %v656_v62  ;;  %vm887_vm11 = vcmask 195584  }
 0x383   :  { %6477 = vrcp.f32 %v641_v0  ;;  %v760_v8 = vmul.f32 %v7340_v43, %v661_v1  ;;  %v729_v23 = vand.u32 2147483648, %v641_v0  ;;  %v727_v25 = vand.u32 2147483647, %v641_v0 }
 0x384   :  { %v740_v43 = vsel %vm739_vm14, %v6476_v6, %v736_v12  ;;  %vm723_vm0 = vweird.f32 %v641_v0 }
 0x385   :  { %6126 = vmatmul.msk.f32.vlgmr.msrb.gmra.mxu3 %vm348_vm5, %v760_v8  ;;  %v730_v28 = vor.u32 1.1754944e-38, %v729_v23  ;;  %vm728_vm4 = vcmp.eq.f32.partialorder %v727_v25, 8.507059e+37  ;;  %v745_v30 = vsel %vm742_vm1, %v744_v26, %v740_v43  ;;  %v1008_v8 = vperm.slane %v7230_v17, 1 }
 0x386   :  { %v766_v57 = vmul.f32 %v7318_v31, %v745_v30  ;;  %1043 = vmatpush.msrb.mxu3 %v6337_v54 }
 0x388   :  { %1044 = vmatpush.msrb.mxu3 %v6338_v53  ;;  %v1107_v53 = vperm.slane %v7230_v17, 4 }
 0x389   :  { %v6478_v10 = vpop.eup %6477 }
 0x38a   :  { %v719_v11 = vmul.f32 %v6478_v10, %v641_v0  ;;  %vm724_vm15 = vweird.f32 %v6478_v10  ;;  %1045 = vmatpush.msrb.mxu3 %v6342_v55 }
 0x38b   :  { %vm725_vm3 = vmor %vm723_vm0, %vm724_vm15 }
 0x38c   :  { %v720_v18 = vsub.f32 1.0, %v719_v11  ;;  %1046 = vmatpush.msrb.mxu3 %v6343_v4  ;;  %v1110_v4 = vperm.slane %v7230_v17, 5 }
 0x38e   :  { %v721_v24 = vmul.f32 %v6478_v10, %v720_v18 }
 0x390   :  { %v722_v27 = vadd.f32 %v6478_v10, %v721_v24  ;;  %v7061_v24 = vmov 32.0  }
 0x392   :  { %v726_v29 = vsel %vm725_vm3, %v6478_v10, %v722_v27 }
 0x393   :  { %v731_v32 = vsel %vm728_vm4, %v730_v28, %v726_v29 }
 0x394   :  { %v765_v35 = vmul.f32 %v7349_v48, %v731_v32 }
 0x395   :  { %v942_v36 = vpop.permute.xlu0 %941 }
 0x396   :  { %6131 = vmatmul.msk.f32.vlgmr.msrb.gmra.mxu2 %vm348_vm5, %v765_v35  ;;  %962 = vmatpush.msra.mxu0 %v942_v36 }
 0x397   :  { %6132 = vmatmul.msk.f32.vlgmr.msra.gmra.mxu0 %vm348_vm5, %v766_v57 }
 0x3c0   :  { %v638_v37 = vpop.xlane.xlu0 %637 }
 0x3c1   :  { %6479 = vrcp.f32 %v638_v37  ;;  %v715_v44 = vand.u32 2147483648, %v638_v37  ;;  %v713_v45 = vand.u32 2147483647, %v638_v37  ;;  %vm709_vm7 = vweird.f32 %v638_v37 }
 0x3c2   :  { %6481 = vrcp.f32 %v7061_v24 }
 0x3c3   :  { %v716_v47 = vor.u32 1.1754944e-38, %v715_v44  ;;  %vm714_vm9 = vcmp.eq.f32.partialorder %v713_v45, 8.507059e+37  ;;  %v1115_v44 = vld [vmem:[#allocation10 + $0x10] sm:$0xff]  ;;  %v1113_v45 = vld [vmem:[#allocation10] sm:$0xff] }
 0x3c7   :  { %v6480_v38 = vpop.eup %6479 }
 0x3c8   :  { %v705_v39 = vmul.f32 %v6480_v38, %v638_v37  ;;  %vm710_vm6 = vweird.f32 %v6480_v38  ;;  %v6482_v25 = vpop.eup %6481 }
 0x3c9   :  { %vm711_vm8 = vmor %vm709_vm7, %vm710_vm6  ;;  %v1063_v43 = vmul.f32 32.0, %v6482_v25  ;;  %vm1067_vm12 = vweird.f32 %v6482_v25 }
 0x3ca   :  { %v706_v42 = vsub.f32 1.0, %v705_v39 }
 0x3cb   :  { %v1064_v26 = vsub.f32 1.0, %v1063_v43  ;;  %v1227_v43 = vld [vmem:[#allocation12 + $0x10] sm:$0xff] }
 0x3cc   :  { %v707_v15 = vmul.f32 %v6480_v38, %v706_v42  ;;  %v1116_v42 = vld [vmem:[#allocation10 + $0x18] sm:$0xff] }
 0x3cd   :  { %v1065_v27 = vmul.f32 %v6482_v25, %v1064_v26  ;;  %1136 = vmatpush.msrb.mxu0 %v1116_v42 }
 0x3ce   :  { %v708_v46 = vadd.f32 %v6480_v38, %v707_v15  ;;  %v843_v48 = vpop.f32.mrf.mxu0  ;;  %v1114_v15 = vld [vmem:[#allocation10 + $0x8] sm:$0xff] }
 0x3cf   :  { %877 = vrot.lane.b32.xlu2 %v843_v48, %s7059_s30  ;;  %v1066_v28 = vadd.f32 %v6482_v25, %v1065_v27  ;;  %1137 = vmatpush.msrb.mxu0 %v1115_v44 }
 0x3d0   :  { %v712_v31 = vsel %vm711_vm8, %v6480_v38, %v708_v46 }
 0x3d1   :  { %v717_v49 = vsel %vm714_vm9, %v716_v47, %v712_v31  ;;  %v7416_v29 = vsel %vm1067_vm12, %v6482_v25, %v1066_v28  ;;  %1138 = vmatpush.msrb.mxu0 %v1114_v15  ;;  %v1228_v25 = vld [vmem:[#allocation12 + $0x18] sm:$0xff]  ;;  %vm1234_vm12 = vcmask 523264  }
 0x3d2   :  { %v764_v20 = vmul.f32 %v7368_v63, %v717_v49 }
 0x3d3   :  { %1139 = vmatpush.msrb.mxu0 %v1113_v45 }
 0x3d4   :  { %6130 = vmatmul.msk.f32.vlgmr.msra.gmra.mxu3 %vm348_vm5, %v764_v20 }
 0x3d6   :  { %v869_v50 = vpop.f32.mrf.mxu1 }
 0x3d7   :  { %881 = vrot.lane.b32.xlu0 %v869_v50, %s7060_s10 }
 0x3de   :  { %v817_v51 = vpop.f32.mrf.mxu2  ;;  %v990_v56 = vpop.f32.mrf.mxu1 }
 0x3df   :  { %873 = vrot.lane.b32.xlu1 %v817_v51, %s7037_s5 }
 0x408   :  { %v791_v58 = vpop.f32.mrf.mxu3 }
 0x414   :  { %v964_v63 = vpop.f32.mrf.mxu0 }
 0x415   :  { %998 = vrot.lane.b32.xlu1 %v964_v63, %s7059_s30 }
 0x419   :  { %v938_v19 = vpop.f32.mrf.mxu2 }
 0x41a   :  { %994 = vrot.lane.b32.xlu2 %v938_v19, %s7037_s5 }
 0x422   :  { %1002 = vrot.lane.b32.xlu2 %v990_v56, %s7060_s10 }
 0x429   :  { %v878_v5 = vpop.permute.xlu2 %877 }
 0x449   :  { %v882_v7 = vpop.permute.xlu0 %881 }
 0x451   :  { %v874_v34 = vpop.permute.xlu1 %873 }
 0x452   :  { %v884_v6 = vsel %vm348_vm5, %v791_v58, %v874_v34 }
 0x453   :  { %v886_v22 = vsel %vm885_vm10, %v884_v6, %v878_v5 }
 0x454   :  { %v888_v59 = vsel %vm887_vm11, %v886_v22, %v882_v7 }
 0x455   :  { %6134 = vmatmul.msk.f32.vlgmr.msrb.gmra.mxu3 %vm315_vm2, %v888_v59 }
 0x457   :  { %v912_v33 = vpop.f32.mrf.mxu3 }
 0x474   :  { %v995_v60 = vpop.permute.xlu2 %994 }
 0x475   :  { %v1005_v61 = vsel %vm348_vm5, %v912_v33, %v995_v60 }
 0x47c   :  { %v1003_v0 = vpop.permute.xlu2 %1002 }
 0x487   :  { %v999_v62 = vpop.permute.xlu1 %998 }
 0x488   :  { %v1006_v1 = vsel %vm885_vm10, %v1005_v61, %v999_v62 }
 0x489   :  { %v1007_v3 = vsel %vm887_vm11, %v1006_v1, %v1003_v0  ;;  %v1117_v0 = vperm.slane %v7230_v17, 2 }
 0x48a   :  { %6135 = vmatmul.msk.f32.gmra.mxu3 %vm315_vm2, %v1007_v3 }
 0x4d8   :  { %v1048_v9 = vpop.f32.mrf.mxu3 }
 0x4d9   :  { %v1049_v10 = vadd.f32 %v1048_v9, %v1008_v8 }
 0x4db   :  { %v1054_v11 = vadd.f32 %v1049_v10, %v7222_v13 }
 0x4dd   :  { %v1056_v12 = vsel %vm315_vm2, %v1054_v11, 0.0 }
 0x4de   :  { %1057 = vadd.xlane.f32.xlu1 %v1056_v12  ;;  %v1232_v12 = vld [vmem:[#allocation12 + $0x38] sm:$0xff] }
 0x4df   :  { %1249 = vmatpush.msra.mxu0 %v1232_v12 }
 0x50d   :  { %v1051_v14 = vpop.f32.mrf.mxu3 }
 0x50e   :  { %v1052_v18 = vadd.f32 %v1051_v14, %v1008_v8  ;;  %v1231_v14 = vld [vmem:[#allocation12 + $0x30] sm:$0xff] }
 0x50f   :  { %1250 = vmatpush.msra.mxu0 %v1231_v14 }
 0x510   :  { %v1055_v21 = vadd.f32 %v1052_v18, %v7226_v16  ;;  %v1230_v18 = vld [vmem:[#allocation12 + $0x28] sm:$0xff] }
 0x511   :  { %1251 = vmatpush.msra.mxu0 %v1230_v18 }
 0x512   :  { %v1059_v23 = vsel %vm315_vm2, %v1055_v21, 0.0 }
 0x513   :  { %1060 = vadd.xlane.f32.xlu2 %v1059_v23 }
 0x551   :  { %v1058_v13 = vpop.xlane.xlu1 %1057 }
 0x552   :  { %v1069_v30 = vmul.f32 %v7416_v29, %v1058_v13  ;;  %v1226_v13 = vld [vmem:[#allocation12 + $0x8] sm:$0xff] }
 0x554   :  { %v1071_v32 = vsub.f32 %v1054_v11, %v1069_v30 }
 0x556   :  { %v1073_v35 = vmul.f32 %v1071_v32, %v1071_v32 }
 0x558   :  { %v1075_v16 = vsel %vm315_vm2, %v1073_v35, 0.0 }
 0x559   :  { %1076 = vadd.xlane.f32.xlu0 %v1075_v16 }
 0x586   :  { %v1061_v36 = vpop.xlane.xlu2 %1060 }
 0x587   :  { %v1070_v57 = vmul.f32 %v7416_v29, %v1061_v36 }
 0x589   :  { %v1072_v37 = vsub.f32 %v1055_v21, %v1070_v57  ;;  %v1229_v21 = vld [vmem:[#allocation12 + $0x20] sm:$0xff] }
 0x58a   :  { %1252 = vmatpush.msra.mxu0 %v1229_v21 }
 0x58b   :  { %v1074_v38 = vmul.f32 %v1072_v37, %v1072_v37 }
 0x58c   :  { %1253 = vmatpush.msra.mxu0 %v1228_v25 }
 0x58d   :  { %v1078_v39 = vsel %vm315_vm2, %v1074_v38, 0.0 }
 0x58e   :  { %1079 = vadd.xlane.f32.xlu1 %v1078_v39  ;;  %1254 = vmatpush.msra.mxu0 %v1227_v43 }
 0x590   :  { %1255 = vmatpush.msra.mxu0 %v1226_v13 }
 0x5cc   :  { %v1077_v46 = vpop.xlane.xlu0 %1076 }
 0x5cd   :  { %v1081_v48 = vmul.f32 %v1077_v46, %v7416_v29 }
 0x5cf   :  { %v1083_v47 = vadd.f32 1e-05, %v1081_v48 }
 0x5d1   :  { %6483 = vrsqrt.f32 %v1083_v47  ;;  %vm1091_vm14 = vweird.f32 %v1083_v47 }
 0x5d7   :  { %v6484_v31 = vpop.eup %6483 }
 0x5d8   :  { %v1086_v49 = vmul.f32 %v6484_v31, %v1083_v47  ;;  %vm1092_vm13 = vweird.f32 %v6484_v31 }
 0x5d9   :  { %vm1093_vm15 = vmor %vm1091_vm14, %vm1092_vm13 }
 0x5da   :  { %v1087_v20 = vmul.f32 %v6484_v31, %v1086_v49 }
 0x5dc   :  { %v1088_v50 = vmul.f32 0.5, %v1087_v20 }
 0x5de   :  { %v1089_v51 = vsub.f32 1.5, %v1088_v50 }
 0x5e0   :  { %v1090_v52 = vmul.f32 %v6484_v31, %v1089_v51 }
 0x5e2   :  { %v1094_v54 = vsel %vm1093_vm15, %v6484_v31, %v1090_v52 }
 0x5e3   :  { %v1105_v2 = vmul.f32 %v1094_v54, %v1071_v32  ;;  %v1225_v32 = vld [vmem:[#allocation12] sm:$0xff] }
 0x5e4   :  { %1256 = vmatpush.msra.mxu0 %v1225_v32 }
 0x5e5   :  { %v1108_v55 = vmul.f32 %v1107_v53, %v1105_v2 }
 0x5e7   :  { %v7425_v63 = vadd.f32 %v1110_v4, %v1108_v55 }
 0x5e9   :  { %6136 = vmatmul.msk.f32.vlgmr.msrb.gmra.mxu0 %vm315_vm2, %v7425_v63 }
 0x601   :  { %v1080_v19 = vpop.xlane.xlu1 %1079 }
 0x602   :  { %v1082_v56 = vmul.f32 %v1080_v19, %v7416_v29 }
 0x604   :  { %v1084_v58 = vadd.f32 1e-05, %v1082_v56 }
 0x606   :  { %6485 = vrsqrt.f32 %v1084_v58  ;;  %vm1101_vm1 = vweird.f32 %v1084_v58 }
 0x60c   :  { %v6486_v34 = vpop.eup %6485 }
 0x60d   :  { %v1096_v5 = vmul.f32 %v6486_v34, %v1084_v58  ;;  %vm1102_vm0 = vweird.f32 %v6486_v34 }
 0x60e   :  { %vm1103_vm3 = vmor %vm1101_vm1, %vm1102_vm0 }
 0x60f   :  { %v1097_v6 = vmul.f32 %v6486_v34, %v1096_v5 }
 0x611   :  { %v1098_v7 = vmul.f32 0.5, %v1097_v6 }
 0x613   :  { %v1099_v22 = vsub.f32 1.5, %v1098_v7 }
 0x615   :  { %v1100_v59 = vmul.f32 %v6486_v34, %v1099_v22 }
 0x617   :  { %v1104_v60 = vsel %vm1103_vm3, %v6486_v34, %v1100_v59 }
 0x618   :  { %v1106_v33 = vmul.f32 %v1104_v60, %v1072_v37 }
 0x61a   :  { %v1109_v61 = vmul.f32 %v1107_v53, %v1106_v33 }
 0x61c   :  { %v7430_v62 = vadd.f32 %v1110_v4, %v1109_v61 }
 0x61e   :  { %6137 = vmatmul.msk.f32.gmra.mxu0 %vm315_vm2, %v7430_v62 }
 0x666   :  { %v1141_v1 = vpop.f32.mrf.mxu0 }
 0x667   :  { %v1142_v3 = vadd.f32 %v1141_v1, %v1117_v0 }
 0x669   :  { %v1149_v8 = vmul.f32 0.70710677, %v1142_v3  ;;  %v1147_v53 = vmul.f32 0.5, %v1142_v3 }
 0x66b   :  { %v1151_v9 = vand.u32 2147483647, %v1149_v8  ;;  %vm1215_vm9 = vcmp.ge.f32.partialorder %v1149_v8, 0.0 }
 0x66d   :  { %v1153_v10 = vmul.f32 0.3275911, %v1151_v9  ;;  %v1203_v57 = vsub.f32 0.0, %v1151_v9 }
 0x66f   :  { %v1155_v11 = vadd.f32 1.0, %v1153_v10  ;;  %v1205_v39 = vmul.f32 %v1203_v57, %v1151_v9 }
 0x671   :  { %6487 = vrcp.f32 %v1155_v11  ;;  %v1168_v26 = vand.u32 2147483648, %v1155_v11  ;;  %v1166_v28 = vand.u32 2147483647, %v1155_v11  ;;  %vm1162_vm6 = vweird.f32 %v1155_v11 }
 0x672   :  { %v1207_v15 = vmul.f32 1.442695, %v1205_v39 }
 0x673   :  { %v1169_v35 = vor.u32 1.1754944e-38, %v1168_v26  ;;  %vm1167_vm8 = vcmp.eq.f32.partialorder %v1166_v28, 8.507059e+37 }
 0x674   :  { %6489 = vpow2.f32 %v1207_v15 }
 0x677   :  { %v6488_v23 = vpop.eup %6487 }
 0x678   :  { %v1158_v24 = vmul.f32 %v6488_v23, %v1155_v11  ;;  %vm1163_vm4 = vweird.f32 %v6488_v23 }
 0x679   :  { %vm1164_vm7 = vmor %vm1162_vm6, %vm1163_vm4 }
 0x67a   :  { %v1159_v17 = vsub.f32 1.0, %v1158_v24  ;;  %v6490_v49 = vpop.eup %6489 }
 0x67c   :  { %v1160_v27 = vmul.f32 %v6488_v23, %v1159_v17 }
 0x67e   :  { %v1161_v30 = vadd.f32 %v6488_v23, %v1160_v27 }
 0x680   :  { %v1165_v16 = vsel %vm1164_vm7, %v6488_v23, %v1161_v30 }
 0x681   :  { %v1170_v36 = vsel %vm1167_vm8, %v1169_v35, %v1165_v16  ;;  %v7437_v35 = vld [vmem:[#allocation13] sm:$0xff] }
 0x682   :  { %v1185_v37 = vmul.f32 1.0614054, %v1170_v36  ;;  %v1233_v16 = vperm.slane %v7437_v35, 3 }
 0x684   :  { %v1187_v38 = vadd.f32 -1.4531521, %v1185_v37 }
 0x686   :  { %v1189_v42 = vmul.f32 %v1187_v38, %v1170_v36 }
 0x688   :  { %v1191_v44 = vadd.f32 1.4214138, %v1189_v42 }
 0x68a   :  { %v1193_v45 = vmul.f32 %v1191_v44, %v1170_v36 }
 0x68c   :  { %v1195_v46 = vadd.f32 -0.28449672, %v1193_v45 }
 0x68e   :  { %v1197_v48 = vmul.f32 %v1195_v46, %v1170_v36 }
 0x690   :  { %v1199_v47 = vadd.f32 0.2548296, %v1197_v48 }
 0x692   :  { %v1201_v31 = vmul.f32 %v1199_v47, %v1170_v36 }
 0x694   :  { %v1211_v20 = vmul.f32 %v6490_v49, %v1201_v31 }
 0x696   :  { %v1213_v50 = vsub.f32 1.0, %v1211_v20 }
 0x698   :  { %v1217_v51 = vsub.f32 0.0, %v1213_v50 }
 0x69a   :  { %v1219_v52 = vsel %vm1215_vm9, %v1213_v50, %v1217_v51 }
 0x69b   :  { %v1221_v54 = vadd.f32 1.0, %v1219_v52  ;;  %v1144_v2 = vpop.f32.mrf.mxu0  ;;  %v7451_v52 = vld [vmem:[#allocation9 + $0x30] sm:$0xff] }
 0x69c   :  { %v1145_v4 = vadd.f32 %v1144_v2, %v1117_v0  ;;  %v7458_v2 = vld [vmem:[#allocation9 + $0x20] sm:$0xff] }
 0x69d   :  { %v1223_v55 = vmul.f32 %v1221_v54, %v1147_v53  ;;  %v7456_v54 = vld [vmem:[#allocation9 + $0x28] sm:$0xff] }
 0x69e   :  { %v1150_v19 = vmul.f32 0.70710677, %v1145_v4  ;;  %v1148_v13 = vmul.f32 0.5, %v1145_v4  ;;  %v6364_v4 = vpack.i.bf16 %v7458_v2, %v7456_v54 }
 0x69f   :  { %6138 = vmatmul.msk.f32.vlgmr.msra.gmra.mxu0 %vm1234_vm12, %v1223_v55 }
 0x6a0   :  { %v1152_v56 = vand.u32 2147483647, %v1150_v19  ;;  %vm1216_vm1 = vcmp.ge.f32.partialorder %v1150_v19, 0.0 }
 0x6a2   :  { %v1154_v58 = vmul.f32 0.3275911, %v1152_v56  ;;  %v1204_v1 = vsub.f32 0.0, %v1152_v56 }
 0x6a4   :  { %v1156_v34 = vadd.f32 1.0, %v1154_v58  ;;  %v1206_v10 = vmul.f32 %v1204_v1, %v1152_v56 }
 0x6a6   :  { %6491 = vrcp.f32 %v1156_v34  ;;  %v1182_v22 = vand.u32 2147483648, %v1156_v34  ;;  %v1180_v60 = vand.u32 2147483647, %v1156_v34  ;;  %vm1176_vm14 = vweird.f32 %v1156_v34 }
 0x6a7   :  { %v1209_v14 = vmul.f32 1.442695, %v1206_v10 }
 0x6a8   :  { %v1183_v61 = vor.u32 1.1754944e-38, %v1182_v22  ;;  %vm1181_vm0 = vcmp.eq.f32.partialorder %v1180_v60, 8.507059e+37 }
 0x6a9   :  { %6493 = vpow2.f32 %v1209_v14 }
 0x6ac   :  { %v6492_v5 = vpop.eup %6491 }
 0x6ad   :  { %v1172_v6 = vmul.f32 %v6492_v5, %v1156_v34  ;;  %vm1177_vm13 = vweird.f32 %v6492_v5 }
 0x6ae   :  { %vm1178_vm15 = vmor %vm1176_vm14, %vm1177_vm13 }
 0x6af   :  { %v1173_v7 = vsub.f32 1.0, %v1172_v6  ;;  %v6494_v17 = vpop.eup %6493 }
 0x6b1   :  { %v1174_v59 = vmul.f32 %v6492_v5, %v1173_v7 }
 0x6b3   :  { %v1175_v33 = vadd.f32 %v6492_v5, %v1174_v59  ;;  %v1310_v59 = vperm.slane %v7437_v35, 6 }
 0x6b5   :  { %v1179_v0 = vsel %vm1178_vm15, %v6492_v5, %v1175_v33 }
 0x6b6   :  { %v1184_v3 = vsel %vm1181_vm0, %v1183_v61, %v1179_v0  ;;  %v1313_v61 = vperm.slane %v7437_v35, 7 }
 0x6b7   :  { %v1186_v8 = vmul.f32 1.0614054, %v1184_v3 }
 0x6b9   :  { %v1188_v9 = vadd.f32 -1.4531521, %v1186_v8 }
 0x6bb   :  { %v1190_v11 = vmul.f32 %v1188_v9, %v1184_v3 }
 0x6bd   :  { %v1192_v12 = vadd.f32 1.4214138, %v1190_v11 }
 0x6bf   :  { %v1194_v18 = vmul.f32 %v1192_v12, %v1184_v3 }
 0x6c1   :  { %v1196_v21 = vadd.f32 -0.28449672, %v1194_v18 }
 0x6c3   :  { %v1198_v23 = vmul.f32 %v1196_v21, %v1184_v3 }
 0x6c5   :  { %v1200_v24 = vadd.f32 0.2548296, %v1198_v23 }
 0x6c7   :  { %v1202_v25 = vmul.f32 %v1200_v24, %v1184_v3 }
 0x6c9   :  { %v1212_v43 = vmul.f32 %v6494_v17, %v1202_v25 }
 0x6cb   :  { %v1214_v26 = vsub.f32 1.0, %v1212_v43  ;;  %v7476_v43 = vld [vmem:[#allocation13 + $0x8] sm:$0xff] }
 0x6cd   :  { %v1218_v27 = vsub.f32 0.0, %v1214_v26 }
 0x6cf   :  { %v1220_v28 = vsel %vm1216_vm1, %v1214_v26, %v1218_v27  ;;  %v1323_v26 = vperm.slane %v7476_v43, 0 }
 0x6d0   :  { %v1222_v30 = vadd.f32 1.0, %v1220_v28 }
 0x6d2   :  { %v1224_v32 = vmul.f32 %v1222_v30, %v1148_v13 }
 0x6d4   :  { %6139 = vmatmul.msk.f32.gmra.mxu0 %vm1234_vm12, %v1224_v32 }
 0x71c   :  { %v1258_v36 = vpop.f32.mrf.mxu0 }
 0x71d   :  { %v1259_v57 = vadd.f32 %v1258_v36, %v1233_v16 }
 0x71f   :  { %v1264_v37 = vadd.f32 %v1259_v57, %v7425_v63 }
 0x721   :  { %v1266_v38 = vsel %vm315_vm2, %v1264_v37, 0.0 }
 0x722   :  { %1267 = vadd.xlane.f32.xlu2 %v1266_v38 }
 0x751   :  { %v1261_v39 = vpop.f32.mrf.mxu0 }
 0x752   :  { %v1262_v42 = vadd.f32 %v1261_v39, %v1233_v16 }
 0x754   :  { %v1265_v44 = vadd.f32 %v1262_v42, %v7430_v62  ;;  %v7448_v62 = vld [vmem:[#allocation9 + $0x38] sm:$0xff] }
 0x755   :  { %1342 = vmatpush.msrb.mxu1 %v7448_v62  ;;  %v6359_v53 = vpack.i.bf16 %v7451_v52, %v7448_v62 }
 0x756   :  { %v1269_v15 = vsel %vm315_vm2, %v1265_v44, 0.0 }
 0x757   :  { %1270 = vadd.xlane.f32.xlu0 %v1269_v15  ;;  %1343 = vmatpush.msrb.mxu1 %v7451_v52 }
 0x759   :  { %1344 = vmatpush.msrb.mxu1 %v7456_v54 }
 0x75b   :  { %1345 = vmatpush.msrb.mxu1 %v7458_v2 }
 0x795   :  { %v1268_v45 = vpop.xlane.xlu2 %1267 }
 0x796   :  { %v1272_v46 = vmul.f32 %v1268_v45, %v7416_v29 }
 0x798   :  { %v1274_v48 = vsub.f32 %v1264_v37, %v1272_v46 }
 0x79a   :  { %v1276_v47 = vmul.f32 %v1274_v48, %v1274_v48 }
 0x79c   :  { %v1278_v31 = vsel %vm315_vm2, %v1276_v47, 0.0 }
 0x79d   :  { %1279 = vadd.xlane.f32.xlu1 %v1278_v31 }
 0x7ca   :  { %v1271_v49 = vpop.xlane.xlu0 %1270 }
 0x7cb   :  { %v1273_v63 = vmul.f32 %v1271_v49, %v7416_v29 }
 0x7cd   :  { %v1275_v20 = vsub.f32 %v1265_v44, %v1273_v63 }
 0x7cf   :  { %v1277_v50 = vmul.f32 %v1275_v20, %v1275_v20 }
 0x7d1   :  { %v1281_v51 = vsel %vm315_vm2, %v1277_v50, 0.0 }
 0x7d2   :  { %1282 = vadd.xlane.f32.xlu2 %v1281_v51 }
 0x810   :  { %v1280_v55 = vpop.xlane.xlu1 %1279 }
 0x811   :  { %v1284_v19 = vmul.f32 %v1280_v55, %v7416_v29 }
 0x813   :  { %v1286_v56 = vadd.f32 1e-05, %v1284_v19 }
 0x815   :  { %6495 = vrsqrt.f32 %v1286_v56  ;;  %vm1294_vm4 = vweird.f32 %v1286_v56 }
 0x81b   :  { %v6496_v58 = vpop.eup %6495 }
 0x81c   :  { %v1289_v34 = vmul.f32 %v6496_v58, %v1286_v56  ;;  %vm1295_vm3 = vweird.f32 %v6496_v58 }
 0x81d   :  { %vm1296_vm6 = vmor %vm1294_vm4, %vm1295_vm3 }
 0x81e   :  { %v1290_v5 = vmul.f32 %v6496_v58, %v1289_v34 }
 0x820   :  { %v1291_v6 = vmul.f32 0.5, %v1290_v5 }
 0x822   :  { %v1292_v7 = vsub.f32 1.5, %v1291_v6 }
 0x824   :  { %v1293_v22 = vmul.f32 %v6496_v58, %v1292_v7 }
 0x826   :  { %v1297_v60 = vsel %vm1296_vm6, %v6496_v58, %v1293_v22 }
 0x827   :  { %v1308_v33 = vmul.f32 %v1297_v60, %v1274_v48 }
 0x829   :  { %v1311_v0 = vmul.f32 %v1310_v59, %v1308_v33 }
 0x82b   :  { %v7467_v1 = vadd.f32 %v1313_v61, %v1311_v0 }
 0x82d   :  { %6140 = vmatmul.msk.f32.vlgmr.msrb.gmra.mxu1 %vm315_vm2, %v7467_v1 }
 0x845   :  { %v1283_v3 = vpop.xlane.xlu2 %1282 }
 0x846   :  { %v1285_v8 = vmul.f32 %v1283_v3, %v7416_v29 }
 0x848   :  { %v1287_v9 = vadd.f32 1e-05, %v1285_v8 }
 0x84a   :  { %6497 = vrsqrt.f32 %v1287_v9  ;;  %vm1304_vm8 = vweird.f32 %v1287_v9 }
 0x850   :  { %v6498_v10 = vpop.eup %6497 }
 0x851   :  { %v1299_v11 = vmul.f32 %v6498_v10, %v1287_v9  ;;  %vm1305_vm7 = vweird.f32 %v6498_v10 }
 0x852   :  { %vm1306_vm9 = vmor %vm1304_vm8, %vm1305_vm7 }
 0x853   :  { %v1300_v12 = vmul.f32 %v6498_v10, %v1299_v11 }
 0x855   :  { %v1301_v14 = vmul.f32 0.5, %v1300_v12 }
 0x857   :  { %v1302_v18 = vsub.f32 1.5, %v1301_v14 }
 0x859   :  { %v1303_v21 = vmul.f32 %v6498_v10, %v1302_v18 }
 0x85b   :  { %v1307_v23 = vsel %vm1306_vm9, %v6498_v10, %v1303_v21 }
 0x85c   :  { %v1309_v24 = vmul.f32 %v1307_v23, %v1275_v20 }
 0x85e   :  { %v1312_v25 = vmul.f32 %v1310_v59, %v1309_v24 }
 0x860   :  { %v7472_v17 = vadd.f32 %v1313_v61, %v1312_v25 }
 0x862   :  { %6141 = vmatmul.msk.f32.gmra.mxu1 %vm315_vm2, %v7472_v17 }
 0x8aa   :  { %v1347_v27 = vpop.f32.mrf.mxu1 }
 0x8ab   :  { %v7479_v28 = vadd.f32 %v1347_v27, %v1323_v26 }
 0x8ad   :  { %1438 = vrot.lane.b32.xlu1 %v7479_v28, %s7047_s1  ;;  %1354 = vrot.lane.b32.xlu0 %v7479_v28, %s7049_s23 }
 0x8ae   :  { %1436 = vrot.lane.b32.xlu2 %v7479_v28, %s7053_s4 }
 0x8b5   :  { %1380 = vrot.lane.b32.xlu1 %v7479_v28, %s7048_s22  ;;  %1382 = vrot.lane.b32.xlu0 %v7479_v28, %s7052_s9 }
 0x8b6   :  { %1410 = vrot.lane.b32.xlu2 %v7479_v28, %s7051_s7 }
 0x8df   :  { %v1350_v13 = vpop.f32.mrf.mxu1 }
 0x8e0   :  { %v7493_v30 = vadd.f32 %v1350_v13, %v1323_v26 }
 0x8e2   :  { %1493 = vrot.lane.b32.xlu2 %v7493_v30, %s7052_s9  ;;  %1547 = vrot.lane.b32.xlu1 %v7493_v30, %s7053_s4 }
 0x8e3   :  { %1549 = vrot.lane.b32.xlu0 %v7493_v30, %s7047_s1 }
 0x8ea   :  { %1519 = vrot.lane.b32.xlu2 %v7493_v30, %s7050_s24  ;;  %1521 = vrot.lane.b32.xlu1 %v7493_v30, %s7051_s7 }
 0x8eb   :  { %1408 = vrot.lane.b32.xlu0 %v7479_v28, %s7050_s24 }
 0x8f2   :  { %1465 = vrot.lane.b32.xlu1 %v7493_v30, %s7049_s23 }
 0x8f3   :  { %1491 = vrot.lane.b32.xlu0 %v7493_v30, %s7048_s22 }
 0x908   :  { %v1437_v32 = vpop.permute.xlu2 %1436 }
 0x910   :  { %v1411_v35 = vpop.permute.xlu2 %1410 }
 0x911   :  { %6146 = vmatpush.xpose.msk.msra.mxu1 %vm348_vm5, %v1411_v35 }
 0x91f   :  { %v1439_v16 = vpop.permute.xlu1 %1438  ;;  %v1355_v36 = vpop.permute.xlu0 %1354 }
 0x920   :  { %6142 = vmatpush.xpose.msk.msra.mxu3 %vm348_vm5, %v1355_v36 }
 0x923   :  { %6143 = vmatmul.msk.f32.vlgmr.msra.gmra.mxu3 %vm348_vm5, %v7479_v28 }
 0x924   :  { %6148 = vmatpush.xpose.msk.msrb.mxu3 %vm348_vm5, %v1439_v16 }
 0x927   :  { %v1383_v57 = vpop.permute.xlu0 %1382  ;;  %v1381_v37 = vpop.permute.xlu1 %1380 }
 0x928   :  { %6144 = vmatpush.xpose.msk.msra.mxu2 %vm348_vm5, %v1383_v57 }
 0x92b   :  { %6145 = vmatmul.msk.f32.vlgmr.msra.gmra.mxu2 %vm348_vm5, %v1381_v37  ;;  %6149 = vmatmul.msk.f32.vlgmr.msrb.gmra.mxu3 %vm348_vm5, %v1437_v32 }
 0x93c   :  { %v1494_v38 = vpop.permute.xlu2 %1493 }
 0x93d   :  { %6152 = vmatpush.xpose.msk.msrb.mxu0 %vm348_vm5, %v1494_v38 }
 0x944   :  { %v1520_v46 = vpop.permute.xlu2 %1519 }
 0x954   :  { %v1548_v39 = vpop.permute.xlu1 %1547 }
 0x955   :  { %v1550_v42 = vpop.permute.xlu0 %1549 }
 0x956   :  { %6156 = vmatpush.xpose.msk.msra.mxu3 %vm348_vm5, %v1550_v42 }
 0x959   :  { %6157 = vmatmul.msk.f32.vlgmr.msra.gmra.mxu3 %vm348_vm5, %v1548_v39 }
 0x95c   :  { %v1522_v44 = vpop.permute.xlu1 %1521 }
 0x95d   :  { %v1409_v15 = vpop.permute.xlu0 %1408  ;;  %6154 = vmatpush.xpose.msk.msrb.mxu1 %vm348_vm5, %v1522_v44 }
 0x95e   :  { %6147 = vmatmul.msk.f32.vlgmr.msra.gmra.mxu1 %vm348_vm5, %v1409_v15 }
 0x964   :  { %v1466_v45 = vpop.permute.xlu1 %1465 }
 0x965   :  { %v1492_v48 = vpop.permute.xlu0 %1491  ;;  %6150 = vmatpush.xpose.msk.msrb.mxu2 %vm348_vm5, %v1466_v45 }
 0x966   :  { %6153 = vmatmul.msk.f32.vlgmr.msrb.gmra.mxu0 %vm348_vm5, %v1492_v48  ;;  %6155 = vmatmul.msk.f32.vlgmr.msrb.gmra.mxu1 %vm348_vm5, %v1520_v46 }
 0x968   :  { %6151 = vmatmul.msk.f32.vlgmr.msrb.gmra.mxu2 %vm348_vm5, %v7493_v30 }
 0x9a6   :  { %v1377_v47 = vpop.f32.mrf.mxu3 }
 0x9a7   :  { %v7533_v6 = vmul.f32 0.35355338, %v1377_v47 }
 0x9a9   :  { %v1583_v0 = vsel %vm348_vm5, %v7533_v6, -inf }
 0x9ae   :  { %v1405_v31 = vpop.f32.mrf.mxu2  ;;  %v1461_v49 = vpop.f32.mrf.mxu3 }
 0x9af   :  { %v1576_v63 = vmul.f32 0.35355338, %v1405_v31  ;;  %v1578_v20 = vmul.f32 0.35355338, %v1461_v49 }
 0x9b1   :  { %v1592_v50 = vsel %vm348_vm5, %v1578_v20, -inf  ;;  %v1586_v51 = vsel %vm348_vm5, %v1576_v63, -inf }
 0x9b2   :  { %1593 = vmax.xlane.f32.xlu0 %v1592_v50  ;;  %1587 = vmax.xlane.f32.xlu2 %v1586_v51 }
 0x9db   :  { %v1433_v55 = vpop.f32.mrf.mxu1 }
 0x9dc   :  { %v1577_v19 = vmul.f32 0.35355338, %v1433_v55  ;;  %v1572_v56 = vpop.f32.mrf.mxu3 }
 0x9dd   :  { %v1582_v58 = vmul.f32 0.35355338, %v1572_v56 }
 0x9de   :  { %v1589_v34 = vsel %vm348_vm5, %v1577_v19, -inf }
 0x9df   :  { %1590 = vmax.xlane.f32.xlu1 %v1589_v34  ;;  %v1604_v5 = vsel %vm348_vm5, %v1582_v58, -inf }
 0x9e0   :  { %1605 = vmax.xlane.f32.xlu2 %v1604_v5 }
 0x9e3   :  { %v1516_v7 = vpop.f32.mrf.mxu0  ;;  %v1544_v22 = vpop.f32.mrf.mxu1 }
 0x9e4   :  { %v1580_v59 = vmul.f32 0.35355338, %v1516_v7  ;;  %v1581_v60 = vmul.f32 0.35355338, %v1544_v22 }
 0x9e6   :  { %v1601_v33 = vsel %vm348_vm5, %v1581_v60, -inf  ;;  %v1598_v61 = vsel %vm348_vm5, %v1580_v59, -inf }
 0x9e7   :  { %1602 = vmax.xlane.f32.xlu1 %v1601_v33  ;;  %1599 = vmax.xlane.f32.xlu0 %v1598_v61 }
 0x9e8   :  { %1584 = vmax.xlane.f32.xlu2 %v1583_v0  ;;  %v7598_v0 = vld [vmem:[#allocation15 + $0x18] sm:$0xff] }
 0x9eb   :  { %v1488_v3 = vpop.f32.mrf.mxu2 }
 0x9ec   :  { %v1579_v8 = vmul.f32 0.35355338, %v1488_v3  ;;  %v7600_v3 = vld [vmem:[#allocation15 + $0x10] sm:$0xff] }
 0x9ee   :  { %v1595_v9 = vsel %vm348_vm5, %v1579_v8, -inf }
 0x9ef   :  { %1596 = vmax.xlane.f32.xlu0 %v1595_v9 }
 0xa25   :  { %v1588_v10 = vpop.xlane.xlu2 %1587  ;;  %v1594_v11 = vpop.xlane.xlu0 %1593 }
 0xa26   :  { %v1608_v12 = vsub.f32 %v1576_v63, %v1588_v10  ;;  %v1610_v14 = vsub.f32 %v1578_v20, %v1594_v11  ;;  %v6344_v20 = vpack.i.bf16 %v7493_v30, %v7479_v28  ;;  %v6369_v11 = vpack.i.bf16 %v7600_v3, %v7598_v0 }
 0xa28   :  { %v1617_v18 = vmul.f32 1.442695, %v1608_v12  ;;  %v1621_v21 = vmul.f32 1.442695, %v1610_v14 }
 0xa2a   :  { %6499 = vpow2.f32 %v1617_v18 }
 0xa2b   :  { %6501 = vpow2.f32 %v1621_v21 }
 0xa30   :  { %v7540_v23 = vpop.eup %6499 }
 0xa31   :  { %v7542_v24 = vpop.eup %6501  ;;  %v1634_v25 = vsel %vm348_vm5, %v7540_v23, 0.0 }
 0xa32   :  { %1635 = vadd.xlane.f32.xlu2 %v1634_v25  ;;  %v1640_v26 = vsel %vm348_vm5, %v7542_v24, 0.0 }
 0xa33   :  { %1641 = vadd.xlane.f32.xlu1 %v1640_v26 }
 0xa52   :  { %v1591_v27 = vpop.xlane.xlu1 %1590 }
 0xa53   :  { %v1609_v13 = vsub.f32 %v1577_v19, %v1591_v27  ;;  %v1606_v32 = vpop.xlane.xlu2 %1605 }
 0xa54   :  { %v1614_v35 = vsub.f32 %v1582_v58, %v1606_v32  ;;  %v7620_v32 = vld [vmem:[#allocation15] sm:$0xff] }
 0xa55   :  { %v1619_v16 = vmul.f32 1.442695, %v1609_v13  ;;  %v7618_v13 = vld [vmem:[#allocation15 + $0x8] sm:$0xff] }
 0xa56   :  { %v1629_v36 = vmul.f32 1.442695, %v1614_v35 }
 0xa57   :  { %6503 = vpow2.f32 %v1619_v16 }
 0xa58   :  { %6505 = vpow2.f32 %v1629_v36  ;;  %v6374_v36 = vpack.i.bf16 %v7620_v32, %v7618_v13 }
 0xa5a   :  { %v1603_v57 = vpop.xlane.xlu1 %1602  ;;  %v1600_v37 = vpop.xlane.xlu0 %1599 }
 0xa5b   :  { %v1613_v38 = vsub.f32 %v1581_v60, %v1603_v57  ;;  %v1612_v39 = vsub.f32 %v1580_v59, %v1600_v37  ;;  %v1585_v50 = vpop.xlane.xlu2 %1584 }
 0xa5c   :  { %v1607_v51 = vsub.f32 %v7533_v6, %v1585_v50 }
 0xa5d   :  { %v7548_v42 = vpop.eup %6503  ;;  %v1627_v44 = vmul.f32 1.442695, %v1613_v38  ;;  %v1625_v15 = vmul.f32 1.442695, %v1612_v39 }
 0xa5e   :  { %v7550_v45 = vpop.eup %6505  ;;  %v1637_v46 = vsel %vm348_vm5, %v7548_v42, 0.0  ;;  %v1615_v19 = vmul.f32 1.442695, %v1607_v51 }
 0xa5f   :  { %6507 = vpow2.f32 %v1627_v44  ;;  %1638 = vadd.xlane.f32.xlu0 %v1637_v46  ;;  %v1652_v48 = vsel %vm348_vm5, %v7550_v45, 0.0 }
 0xa60   :  { %6509 = vpow2.f32 %v1625_v15  ;;  %1653 = vadd.xlane.f32.xlu1 %v1652_v48 }
 0xa61   :  { %6511 = vpow2.f32 %v1615_v19 }
 0xa62   :  { %v1597_v55 = vpop.xlane.xlu0 %1596 }
 0xa63   :  { %v1611_v56 = vsub.f32 %v1579_v8, %v1597_v55 }
 0xa65   :  { %v7556_v47 = vpop.eup %6507 }
 0xa66   :  { %v7558_v31 = vpop.eup %6509  ;;  %v1649_v49 = vsel %vm348_vm5, %v7556_v47, 0.0 }
 0xa67   :  { %1650 = vadd.xlane.f32.xlu0 %v1649_v49  ;;  %v1646_v63 = vsel %vm348_vm5, %v7558_v31, 0.0 }
 0xa68   :  { %1647 = vadd.xlane.f32.xlu2 %v1646_v63 }
 0xa79   :  { %6345 = vrot.lane.b32.xlu1 %v6344_v20, %s7055_s28 }
 0xa7b   :  { %6355 = vrot.lane.b32.xlu0 %v6344_v20, %s7056_s8 }
 0xa80   :  { %6350 = vrot.lane.b32.xlu2 %v6344_v20, %s7054_s0 }
 0xa81   :  { %1775 = vrot.lane.b32.xlu1 %v7479_v28, %s7057_s29  ;;  %v1623_v28 = vmul.f32 1.442695, %v1611_v56 }
 0xa83   :  { %6513 = vpow2.f32 %v1623_v28 }
 0xa89   :  { %1894 = vrot.lane.b32.xlu1 %v7493_v30, %s7057_s29  ;;  %v7582_v30 = vpop.eup %6511 }
 0xa8a   :  { %v1631_v58 = vsel %vm348_vm5, %v7582_v30, 0.0  ;;  %v7586_v62 = vpop.eup %6513 }
 0xa8b   :  { %v1643_v52 = vsel %vm348_vm5, %v7586_v62, 0.0 }
 0xa91   :  { %6360 = vrot.lane.b32.xlu1 %v6359_v53, %s7058_s11 }
 0xa99   :  { %6365 = vrot.lane.b32.xlu1 %v6364_v4, %s7058_s11 }
 0xaa5   :  { %1632 = vadd.xlane.f32.xlu0 %v1631_v58  ;;  %v1636_v53 = vpop.xlane.xlu2 %1635 }
 0xaa6   :  { %6515 = vrcp.f32 %v1636_v53  ;;  %v1642_v34 = vpop.xlane.xlu1 %1641  ;;  %v1680_v12 = vand.u32 2147483648, %v1636_v53  ;;  %vm1674_vm14 = vweird.f32 %v1636_v53  ;;  %v1678_v21 = vand.u32 2147483647, %v1636_v53 }
 0xaa7   :  { %6517 = vrcp.f32 %v1642_v34  ;;  %v1708_v16 = vand.u32 2147483648, %v1642_v34  ;;  %vm1702_vm1 = vweird.f32 %v1642_v34  ;;  %v1706_v37 = vand.u32 2147483647, %v1642_v34 }
 0xaa8   :  { %v1681_v57 = vor.u32 1.1754944e-38, %v1680_v12  ;;  %vm1679_vm3 = vcmp.eq.f32.partialorder %v1678_v21, 8.507059e+37 }
 0xaa9   :  { %1644 = vadd.xlane.f32.xlu2 %v1643_v52  ;;  %v1709_v63 = vor.u32 1.1754944e-38, %v1708_v16  ;;  %vm1707_vm6 = vcmp.eq.f32.partialorder %v1706_v37, 8.507059e+37 }
 0xaac   :  { %v6516_v54 = vpop.eup %6515 }
 0xaad   :  { %v6518_v2 = vpop.eup %6517  ;;  %v1670_v4 = vmul.f32 %v6516_v54, %v1636_v53  ;;  %vm1675_vm13 = vweird.f32 %v6516_v54 }
 0xaae   :  { %v1698_v5 = vmul.f32 %v6518_v2, %v1642_v34  ;;  %vm7614_vm15 = vmor %vm1674_vm14, %vm1675_vm13  ;;  %vm1703_vm0 = vweird.f32 %v6518_v2 }
 0xaaf   :  { %v1671_v6 = vsub.f32 1.0, %v1670_v4  ;;  %vm7628_vm4 = vmor %vm1702_vm1, %vm1703_vm0 }
 0xab0   :  { %v1699_v59 = vsub.f32 1.0, %v1698_v5 }
 0xab1   :  { %v1672_v60 = vmul.f32 %v6516_v54, %v1671_v6 }
 0xab2   :  { %v1700_v61 = vmul.f32 %v6518_v2, %v1699_v59 }
 0xab3   :  { %v1673_v8 = vadd.f32 %v6516_v54, %v1672_v60 }
 0xab4   :  { %v1701_v26 = vadd.f32 %v6518_v2, %v1700_v61 }
 0xab5   :  { %v1677_v35 = vsel %vm7614_vm15, %v6516_v54, %v1673_v8 }
 0xab6   :  { %v1705_v15 = vsel %vm7628_vm4, %v6518_v2, %v1701_v26  ;;  %v1682_v48 = vsel %vm1679_vm3, %v1681_v57, %v1677_v35 }
 0xab7   :  { %v1768_v28 = vmul.f32 %v7540_v23, %v1682_v48  ;;  %v1710_v58 = vsel %vm1707_vm6, %v1709_v63, %v1705_v15 }
 0xad2   :  { %v7590_v7 = vpop.xlane.xlu0 %1638 }
 0xad3   :  { %6519 = vrcp.f32 %v7590_v7  ;;  %v7593_v22 = vpop.xlane.xlu1 %1653  ;;  %vm1688_vm8 = vweird.f32 %v7590_v7  ;;  %v1692_v54 = vand.u32 2147483647, %v7590_v7  ;;  %v1694_v2 = vand.u32 2147483648, %v7590_v7 }
 0xad4   :  { %6521 = vrcp.f32 %v7593_v22  ;;  %vm1758_vm14 = vweird.f32 %v7593_v22  ;;  %v1764_v12 = vand.u32 2147483648, %v7593_v22 }
 0xad5   :  { %vm1693_vm0 = vcmp.eq.f32.partialorder %v1692_v54, 8.507059e+37 }
 0xad9   :  { %v7596_v33 = vpop.eup %6519 }
 0xada   :  { %v1684_v9 = vmul.f32 %v7596_v33, %v7590_v7  ;;  %v7604_v10 = vpop.xlane.xlu0 %1650  ;;  %v7611_v18 = vpop.eup %6521  ;;  %vm1689_vm7 = vweird.f32 %v7596_v33  ;;  %v1770_v7 = vmul.f32 %v7542_v24, %v1710_v58 }
 0xadb   :  { %v7608_v14 = vpop.xlane.xlu2 %1647  ;;  %6523 = vrcp.f32 %v7604_v10  ;;  %v1754_v38 = vmul.f32 %v7611_v18, %v7593_v22  ;;  %vm7650_vm13 = vmor %vm1688_vm8, %vm1689_vm7  ;;  %vm1759_vm3 = vweird.f32 %v7611_v18  ;;  %v1750_v15 = vand.u32 2147483648, %v7604_v10 }
 0xadc   :  { %6525 = vrcp.f32 %v7608_v14  ;;  %v1685_v27 = vsub.f32 1.0, %v1684_v9  ;;  %v1736_v4 = vand.u32 2147483648, %v7608_v14  ;;  %v1734_v23 = vand.u32 2147483647, %v7608_v14  ;;  %vm7670_vm7 = vmor %vm1758_vm14, %vm1759_vm3 }
 0xadd   :  { %v1755_v50 = vsub.f32 1.0, %v1754_v38  ;;  %vm1730_vm15 = vweird.f32 %v7608_v14  ;;  %v1695_v9 = vor.u32 1.1754944e-38, %v1694_v2  ;;  %vm1744_vm8 = vweird.f32 %v7604_v10 }
 0xade   :  { %v1686_v46 = vmul.f32 %v7596_v33, %v1685_v27  ;;  %v1737_v21 = vor.u32 1.1754944e-38, %v1736_v4  ;;  %vm1735_vm4 = vcmp.eq.f32.partialorder %v1734_v23, 8.507059e+37  ;;  %v1748_v63 = vand.u32 2147483647, %v7604_v10 }
 0xadf   :  { %v1756_v5 = vmul.f32 %v7611_v18, %v1755_v50 }
 0xae0   :  { %v1687_v52 = vadd.f32 %v7596_v33, %v1686_v46  ;;  %vm1749_vm14 = vcmp.eq.f32.partialorder %v1748_v63, 8.507059e+37 }
 0xae1   :  { %v7632_v44 = vpop.eup %6523  ;;  %v1757_v25 = vadd.f32 %v7611_v18, %v1756_v5 }
 0xae2   :  { %v6526_v49 = vpop.eup %6525  ;;  %v1740_v20 = vmul.f32 %v7632_v44, %v7604_v10  ;;  %v1691_v60 = vsel %vm7650_vm13, %v7596_v33, %v1687_v52  ;;  %vm1745_vm6 = vweird.f32 %v7632_v44  ;;  %v1751_v10 = vor.u32 1.1754944e-38, %v1750_v15 }
 0xae3   :  { %v1726_v51 = vmul.f32 %v6526_v49, %v7608_v14  ;;  %v6351_v55 = vpop.permute.xlu2 %6350  ;;  %vm1731_vm9 = vweird.f32 %v6526_v49  ;;  %v1696_v16 = vsel %vm1693_vm0, %v1695_v9, %v1691_v60  ;;  %v1762_v14 = vand.u32 2147483647, %v7593_v22 }
 0xae4   :  { %v6353_v19 = vunpack.i.h.bf16 %v6351_v55  ;;  %v6352_v56 = vunpack.i.l.bf16 %v6351_v55  ;;  %v1741_v34 = vsub.f32 1.0, %v1740_v20  ;;  %vm1732_vm1 = vmor %vm1730_vm15, %vm1731_vm9  ;;  %v1765_v22 = vor.u32 1.1754944e-38, %v1764_v12  ;;  %v6724_v55 = vld [vmem:[#allocation7] sm:$0xff] }
 0xae5   :  { %v1727_v53 = vsub.f32 1.0, %v1726_v51  ;;  %vm1746_vm9 = vmor %vm1744_vm8, %vm1745_vm6  ;;  %vm1763_vm13 = vcmp.eq.f32.partialorder %v1762_v14, 8.507059e+37 }
 0xae6   :  { %1822 = vmatpush.msra.mxu0 %v6352_v56  ;;  %v1742_v8 = vmul.f32 %v7632_v44, %v1741_v34 }
 0xae7   :  { %v1728_v6 = vmul.f32 %v6526_v49, %v1727_v53  ;;  %6159 = vmatmul.msk.f32.vlgmr.msra.gmra.mxu0 %vm348_vm5, %v1768_v28 }
 0xae8   :  { %1941 = vmatpush.msrb.mxu0 %v6353_v19  ;;  %v1743_v57 = vadd.f32 %v7632_v44, %v1742_v8  ;;  %v233_v19 = vperm.slane %v6724_v55, 0 }
 0xae9   :  { %v1729_v61 = vadd.f32 %v6526_v49, %v1728_v6 }
 0xaea   :  { %v1747_v20 = vsel %vm1746_vm9, %v7632_v44, %v1743_v57  ;;  %v7696_v28 = vadd.f32 %v7289_v40, %v233_v19 }
 0xaeb   :  { %v1733_v24 = vsel %vm1732_vm1, %v6526_v49, %v1729_v61  ;;  %v6346_v26 = vpop.permute.xlu1 %6345  ;;  %v1761_v49 = vsel %vm7670_vm7, %v7611_v18, %v1757_v25 }
 0xaec   :  { %v6348_v27 = vunpack.i.h.bf16 %v6346_v26  ;;  %v6347_v33 = vunpack.i.l.bf16 %v6346_v26  ;;  %v1738_v35 = vsel %vm1735_vm4, %v1737_v21, %v1733_v24  ;;  %v1766_v18 = vsel %vm1763_vm13, %v1765_v22, %v1761_v49 }
 0xaed   :  { %v6356_v37 = vpop.permute.xlu0 %6355  ;;  %v1772_v38 = vmul.f32 %v7558_v31, %v1738_v35  ;;  %v1769_v31 = vmul.f32 %v7548_v42, %v1696_v16  ;;  %v1752_v42 = vsel %vm1749_vm14, %v1751_v10, %v1747_v20  ;;  %v1774_v51 = vmul.f32 %v7550_v45, %v1766_v18 }
 0xaee   :  { %v6358_v46 = vunpack.i.h.bf16 %v6356_v37  ;;  %v6357_v48 = vunpack.i.l.bf16 %v6356_v37  ;;  %1874 = vmatpush.msrb.mxu3 %v6347_v33  ;;  %v1773_v44 = vmul.f32 %v7556_v47, %v1752_v42  ;;  %v7701_v45 = vadd.f32 %v7291_v41, %v233_v19 }
 0xaef   :  { %6163 = vmatmul.msk.f32.vlgmr.msrb.gmra.mxu0 %vm348_vm5, %v1772_v38  ;;  %6161 = vmatmul.msk.f32.vlgmr.msrb.gmra.mxu3 %vm348_vm5, %v1770_v7  ;;  %v2013_v19 = vperm.slane %v7476_v43, 1 }
 0xaf0   :  { %1993 = vmatpush.msra.mxu3 %v6348_v27  ;;  %1848 = vmatpush.msra.mxu1 %v6357_v48 }
 0xaf1   :  { %6160 = vmatmul.msk.f32.vlgmr.msra.gmra.mxu1 %vm348_vm5, %v1769_v31 }
 0xaf2   :  { %2390 = vmatpush.msrb.mxu3 %v7598_v0  ;;  %1967 = vmatpush.msrb.mxu1 %v6358_v46 }
 0xaf3   :  { %v1776_v50 = vpop.permute.xlu1 %1775 }
 0xaf4   :  { %2391 = vmatpush.msrb.mxu3 %v7600_v3  ;;  %1796 = vmatpush.msra.mxu2 %v1776_v50 }
 0xaf6   :  { %2392 = vmatpush.msrb.mxu3 %v7618_v13 }
 0xaf7   :  { %6165 = vmatmul.msk.f32.vlgmr.msra.gmra.mxu3 %vm348_vm5, %v1774_v51 }
 0xaf8   :  { %2393 = vmatpush.msrb.mxu3 %v7620_v32 }
 0xaf9   :  { %6164 = vmatmul.msk.f32.vlgmr.msrb.gmra.mxu1 %vm348_vm5, %v1773_v44 }
 0xafb   :  { %v1895_v56 = vpop.permute.xlu1 %1894 }
 0xafc   :  { %1915 = vmatpush.msrb.mxu2 %v1895_v56 }
 0xaff   :  { %6172 = vmatmul.msk.f32.vlgmr.msrb.gmra.mxu3 %vm315_vm2, %v7696_v28 }
 0xb07   :  { %6173 = vmatmul.msk.f32.gmra.mxu3 %vm315_vm2, %v7701_v45 }
 0xb18   :  { %v1633_v47 = vpop.xlane.xlu0 %1632 }
 0xb19   :  { %6527 = vrcp.f32 %v1633_v47  ;;  %v1666_v2 = vand.u32 2147483648, %v1633_v47  ;;  %v1664_v4 = vand.u32 2147483647, %v1633_v47  ;;  %vm1660_vm0 = vweird.f32 %v1633_v47 }
 0xb1b   :  { %v1667_v23 = vor.u32 1.1754944e-38, %v1666_v2  ;;  %vm1665_vm3 = vcmp.eq.f32.partialorder %v1664_v4, 8.507059e+37 }
 0xb1c   :  { %v1645_v58 = vpop.xlane.xlu2 %1644 }
 0xb1d   :  { %6529 = vrcp.f32 %v1645_v58  ;;  %v1722_v60 = vand.u32 2147483648, %v1645_v58  ;;  %vm1716_vm6 = vweird.f32 %v1645_v58  ;;  %v1720_v9 = vand.u32 2147483647, %v1645_v58 }
 0xb1f   :  { %v6528_v52 = vpop.eup %6527  ;;  %v1723_v25 = vor.u32 1.1754944e-38, %v1722_v60  ;;  %vm1721_vm8 = vcmp.eq.f32.partialorder %v1720_v9, 8.507059e+37  ;;  %v2112_v9 = vld [vmem:[#allocation10 + $0x20] sm:$0xff] }
 0xb20   :  { %v1656_v53 = vmul.f32 %v6528_v52, %v1633_v47  ;;  %vm1661_vm15 = vweird.f32 %v6528_v52 }
 0xb21   :  { %vm1662_vm1 = vmor %vm1660_vm0, %vm1661_vm15 }
 0xb22   :  { %v1657_v34 = vsub.f32 1.0, %v1656_v53 }
 0xb23   :  { %v6530_v54 = vpop.eup %6529 }
 0xb24   :  { %v1658_v40 = vmul.f32 %v6528_v52, %v1657_v34  ;;  %v1712_v5 = vmul.f32 %v6530_v54, %v1645_v58  ;;  %vm1717_vm4 = vweird.f32 %v6530_v54 }
 0xb25   :  { %vm1718_vm7 = vmor %vm1716_vm6, %vm1717_vm4 }
 0xb26   :  { %v1659_v6 = vadd.f32 %v6528_v52, %v1658_v40  ;;  %v1713_v41 = vsub.f32 1.0, %v1712_v5  ;;  %v2365_v40 = vld [vmem:[#allocation19] sm:$0xff] }
 0xb27   :  { %v2371_v4 = vperm.slane %v2365_v40, 0 }
 0xb28   :  { %v1663_v59 = vsel %vm1662_vm1, %v6528_v52, %v1659_v6  ;;  %v1714_v7 = vmul.f32 %v6530_v54, %v1713_v41 }
 0xb29   :  { %v1668_v61 = vsel %vm1665_vm3, %v1667_v23, %v1663_v59  ;;  %v2115_v59 = vld [vmem:[#allocation10 + $0x38] sm:$0xff] }
 0xb2a   :  { %v1715_v8 = vadd.f32 %v6530_v54, %v1714_v7  ;;  %v1767_v12 = vmul.f32 %v7582_v30, %v1668_v61  ;;  %v2114_v7 = vld [vmem:[#allocation10 + $0x30] sm:$0xff]  ;;  %2135 = vmatpush.msra.mxu0 %v2115_v59  ;;  %v2113_v61 = vld [vmem:[#allocation10 + $0x28] sm:$0xff] }
 0xb2c   :  { %v1719_v21 = vsel %vm1718_vm7, %v6530_v54, %v1715_v8  ;;  %6158 = vmatmul.msk.f32.vlgmr.msra.gmra.mxu2 %vm348_vm5, %v1767_v12  ;;  %2136 = vmatpush.msra.mxu0 %v2114_v7 }
 0xb2d   :  { %v1724_v24 = vsel %vm1721_vm8, %v1723_v25, %v1719_v21 }
 0xb2e   :  { %v1771_v26 = vmul.f32 %v7586_v62, %v1724_v24  ;;  %v6361_v62 = vpop.permute.xlu1 %6360  ;;  %2137 = vmatpush.msra.mxu0 %v2113_v61  ;;  %v2232_v24 = vld [vmem:[#allocation12 + $0x78] sm:$0xff] }
 0xb2f   :  { %v6363_v57 = vunpack.i.h.bf16 %v6361_v62  ;;  %v6362_v37 = vunpack.i.l.bf16 %v6361_v62  ;;  %2248 = vmatpush.msra.mxu1 %v2232_v24  ;;  %v2227_v62 = vld [vmem:[#allocation12 + $0x50] sm:$0xff]  ;;  %v2116_v24 = vperm.slane %v7476_v43, 2 }
 0xb30   :  { %2138 = vmatpush.msra.mxu0 %v2112_v9 }
 0xb31   :  { %2048 = vmatpush.msra.mxu2 %v6362_v37  ;;  %v2225_v37 = vld [vmem:[#allocation12 + $0x40] sm:$0xff] }
 0xb33   :  { %2049 = vmatpush.msra.mxu2 %v6363_v57  ;;  %v2226_v57 = vld [vmem:[#allocation12 + $0x48] sm:$0xff] }
 0xb34   :  { %6162 = vmatmul.msk.f32.vlgmr.msrb.gmra.mxu2 %vm348_vm5, %v1771_v26  ;;  %v2231_v26 = vld [vmem:[#allocation12 + $0x70] sm:$0xff] }
 0xb35   :  { %2249 = vmatpush.msra.mxu1 %v2231_v26 }
 0xb36   :  { %v6366_v38 = vpop.permute.xlu1 %6365 }
 0xb37   :  { %v6368_v39 = vunpack.i.h.bf16 %v6366_v38  ;;  %v6367_v15 = vunpack.i.l.bf16 %v6366_v38 }
 0xb39   :  { %2050 = vmatpush.msra.mxu2 %v6367_v15 }
 0xb3b   :  { %2051 = vmatpush.msra.mxu2 %v6368_v39 }
 0xb64   :  { %v1824_v27 = vpop.f32.mrf.mxu0 }
 0xb65   :  { %1880 = vrot.lane.b32.xlu1 %v1824_v27, %s7037_s5 }
 0xb6c   :  { %v1943_v33 = vpop.f32.mrf.mxu0 }
 0xb6d   :  { %1999 = vrot.lane.b32.xlu2 %v1943_v33, %s7037_s5  ;;  %v2230_v33 = vld [vmem:[#allocation12 + $0x68] sm:$0xff] }
 0xb6e   :  { %v1850_v35 = vpop.f32.mrf.mxu1  ;;  %2250 = vmatpush.msra.mxu1 %v2230_v33 }
 0xb6f   :  { %1884 = vrot.lane.b32.xlu0 %v1850_v35, %s7059_s30 }
 0xb72   :  { %v1876_v16 = vpop.f32.mrf.mxu3 }
 0xb76   :  { %v1969_v30 = vpop.f32.mrf.mxu1 }
 0xb77   :  { %2003 = vrot.lane.b32.xlu1 %v1969_v30, %s7059_s30  ;;  %v2229_v30 = vld [vmem:[#allocation12 + $0x60] sm:$0xff] }
 0xb78   :  { %2251 = vmatpush.msra.mxu1 %v2229_v30 }
 0xb7a   :  { %v1995_v14 = vpop.f32.mrf.mxu3 }
 0xb7f   :  { %1888 = vrot.lane.b32.xlu1 %v1876_v16, %s7060_s10 }
 0xb82   :  { %v2395_v5 = vpop.f32.mrf.mxu3 }
 0xb83   :  { %v7728_v6 = vadd.f32 %v2395_v5, %v2371_v4 }
 0xb87   :  { %2007 = vrot.lane.b32.xlu1 %v1995_v14, %s7060_s10  ;;  %v2228_v14 = vld [vmem:[#allocation12 + $0x58] sm:$0xff] }
 0xb88   :  { %2252 = vmatpush.msra.mxu1 %v2228_v14 }
 0xb8a   :  { %2253 = vmatpush.msra.mxu1 %v2227_v62 }
 0xb8c   :  { %2254 = vmatpush.msra.mxu1 %v2226_v57 }
 0xb8e   :  { %2255 = vmatpush.msra.mxu1 %v2225_v37 }
 0xbaf   :  { %v1798_v49 = vpop.f32.mrf.mxu2 }
 0xbb7   :  { %v1917_v50 = vpop.f32.mrf.mxu2 }
 0xbc7   :  { %v2000_v18 = vpop.permute.xlu2 %1999 }
 0xbc8   :  { %v2010_v42 = vsel %vm348_vm5, %v1917_v50, %v2000_v18 }
 0xbd7   :  { %v1881_v46 = vpop.permute.xlu1 %1880 }
 0xbd8   :  { %v1891_v31 = vsel %vm348_vm5, %v1798_v49, %v1881_v46 }
 0xbe1   :  { %v1885_v63 = vpop.permute.xlu0 %1884 }
 0xbe2   :  { %v1892_v22 = vsel %vm885_vm10, %v1891_v31, %v1885_v63 }
 0xbe9   :  { %v2004_v48 = vpop.permute.xlu1 %2003 }
 0xbea   :  { %v2011_v51 = vsel %vm885_vm10, %v2010_v42, %v2004_v48 }
 0xbf1   :  { %v1889_v20 = vpop.permute.xlu1 %1888 }
 0xbf2   :  { %v1893_v10 = vsel %vm887_vm11, %v1892_v22, %v1889_v20 }
 0xbf3   :  { %6166 = vmatmul.msk.f32.vlgmr.msra.gmra.mxu2 %vm315_vm2, %v1893_v10 }
 0xbf9   :  { %v2008_v44 = vpop.permute.xlu1 %2007 }
 0xbfa   :  { %v2012_v55 = vsel %vm887_vm11, %v2011_v51, %v2008_v44 }
 0xbfb   :  { %6167 = vmatmul.msk.f32.gmra.mxu2 %vm315_vm2, %v2012_v55 }
 0xc76   :  { %v2053_v56 = vpop.f32.mrf.mxu2 }
 0xc77   :  { %v2054_v47 = vadd.f32 %v2053_v56, %v2013_v19 }
 0xc79   :  { %v2059_v58 = vadd.f32 %v2054_v47, %v7467_v1  ;;  %v2398_v1 = vpop.f32.mrf.mxu3 }
 0xc7a   :  { %v7734_v41 = vadd.f32 %v2398_v1, %v2371_v4 }
 0xc7b   :  { %v2061_v52 = vsel %vm315_vm2, %v2059_v58, 0.0 }
 0xc7c   :  { %2062 = vadd.xlane.f32.xlu0 %v2061_v52 }
 0xc7e   :  { %v2056_v53 = vpop.f32.mrf.mxu2 }
 0xc7f   :  { %v2057_v34 = vadd.f32 %v2056_v53, %v2013_v19 }
 0xc81   :  { %v2060_v54 = vadd.f32 %v2057_v34, %v7472_v17 }
 0xc83   :  { %v2064_v2 = vsel %vm315_vm2, %v2060_v54, 0.0 }
 0xc84   :  { %2065 = vadd.xlane.f32.xlu1 %v2064_v2 }
 0xc9d   :  { %2458 = vrot.lane.b32.xlu1 %v7728_v6, %s7051_s7 }
 0xca5   :  { %2430 = vrot.lane.b32.xlu1 %v7728_v6, %s7052_s9 }
 0xcad   :  { %2597 = vrot.lane.b32.xlu1 %v7734_v41, %s7047_s1 }
 0xcb5   :  { %2541 = vrot.lane.b32.xlu1 %v7734_v41, %s7052_s9 }
 0xcef   :  { %v2063_v17 = vpop.xlane.xlu0 %2062 }
 0xcf0   :  { %v2067_v23 = vmul.f32 %v2063_v17, %v7416_v29 }
 0xcf2   :  { %v7741_v60 = vsub.f32 %v2059_v58, %v2067_v23  ;;  %v2105_v58 = vperm.slane %v7476_v43, 4 }
 0xcf4   :  { %v2071_v8 = vmul.f32 %v7741_v60, %v7741_v60 }
 0xcf6   :  { %v2073_v12 = vsel %vm315_vm2, %v2071_v8, 0.0 }
 0xcf7   :  { %2074 = vadd.xlane.f32.xlu2 %v2073_v12  ;;  %v2066_v21 = vpop.xlane.xlu1 %2065 }
 0xcf8   :  { %v2068_v25 = vmul.f32 %v2066_v21, %v7416_v29 }
 0xcfa   :  { %v7747_v27 = vsub.f32 %v2060_v54, %v2068_v25  ;;  %v2108_v54 = vperm.slane %v7476_v43, 5 }
 0xcfc   :  { %v2072_v35 = vmul.f32 %v7747_v27, %v7747_v27 }
 0xcfe   :  { %v2076_v16 = vsel %vm315_vm2, %v2072_v35, 0.0 }
 0xcff   :  { %2077 = vadd.xlane.f32.xlu0 %v2076_v16 }
 0xd0f   :  { %v2459_v38 = vpop.permute.xlu1 %2458  ;;  %2402 = vrot.lane.b32.xlu2 %v7728_v6, %s7049_s23 }
 0xd10   :  { %6178 = vmatpush.xpose.msk.msra.mxu3 %vm348_vm5, %v2459_v38 }
 0xd13   :  { %2486 = vrot.lane.b32.xlu0 %v7728_v6, %s7047_s1 }
 0xd17   :  { %v2431_v39 = vpop.permute.xlu1 %2430  ;;  %2484 = vrot.lane.b32.xlu2 %v7728_v6, %s7053_s4 }
 0xd18   :  { %6176 = vmatpush.xpose.msk.msrb.mxu0 %vm348_vm5, %v2431_v39 }
 0xd1b   :  { %2456 = vrot.lane.b32.xlu0 %v7728_v6, %s7050_s24 }
 0xd1f   :  { %v2598_v15 = vpop.permute.xlu1 %2597  ;;  %2569 = vrot.lane.b32.xlu2 %v7734_v41, %s7051_s7 }
 0xd23   :  { %2428 = vrot.lane.b32.xlu0 %v7728_v6, %s7048_s22 }
 0xd27   :  { %v2542_v46 = vpop.permute.xlu1 %2541  ;;  %2595 = vrot.lane.b32.xlu2 %v7734_v41, %s7053_s4 }
 0xd28   :  { %6184 = vmatpush.xpose.msk.msrb.mxu1 %vm348_vm5, %v2542_v46 }
 0xd2b   :  { %2567 = vrot.lane.b32.xlu0 %v7734_v41, %s7050_s24 }
 0xd2f   :  { %2513 = vrot.lane.b32.xlu2 %v7734_v41, %s7049_s23 }
 0xd33   :  { %2539 = vrot.lane.b32.xlu0 %v7734_v41, %s7048_s22 }
 0xd6a   :  { %v2075_v48 = vpop.xlane.xlu2 %2074 }
 0xd6b   :  { %v2079_v49 = vmul.f32 %v2075_v48, %v7416_v29 }
 0xd6d   :  { %v2081_v63 = vadd.f32 1e-05, %v2079_v49 }
 0xd6f   :  { %6531 = vrsqrt.f32 %v2081_v63  ;;  %vm2089_vm13 = vweird.f32 %v2081_v63 }
 0xd72   :  { %v2078_v31 = vpop.xlane.xlu0 %2077  ;;  %v2403_v22 = vpop.permute.xlu2 %2402 }
 0xd73   :  { %v2080_v20 = vmul.f32 %v2078_v31, %v7416_v29  ;;  %6174 = vmatpush.xpose.msk.msrb.mxu2 %vm348_vm5, %v2403_v22 }
 0xd75   :  { %v6532_v10 = vpop.eup %6531  ;;  %v2082_v18 = vadd.f32 1e-05, %v2080_v20 }
 0xd76   :  { %v2084_v50 = vmul.f32 %v6532_v10, %v2081_v63  ;;  %6175 = vmatmul.msk.f32.vlgmr.msrb.gmra.mxu2 %vm348_vm5, %v7728_v6  ;;  %vm2090_vm9 = vweird.f32 %v6532_v10 }
 0xd77   :  { %6533 = vrsqrt.f32 %v2082_v18  ;;  %vm2091_vm14 = vmor %vm2089_vm13, %vm2090_vm9  ;;  %vm2099_vm0 = vweird.f32 %v2082_v18 }
 0xd78   :  { %v2085_v42 = vmul.f32 %v6532_v10, %v2084_v50 }
 0xd7a   :  { %v2086_v51 = vmul.f32 0.5, %v2085_v42  ;;  %v2485_v44 = vpop.permute.xlu2 %2484 }
 0xd7c   :  { %v2087_v55 = vsub.f32 1.5, %v2086_v51 }
 0xd7d   :  { %v6534_v19 = vpop.eup %6533 }
 0xd7e   :  { %v2088_v56 = vmul.f32 %v6532_v10, %v2087_v55  ;;  %v2094_v47 = vmul.f32 %v6534_v19, %v2082_v18  ;;  %vm2100_vm15 = vweird.f32 %v6534_v19 }
 0xd7f   :  { %vm2101_vm1 = vmor %vm2099_vm0, %vm2100_vm15 }
 0xd80   :  { %v2092_v52 = vsel %vm2091_vm14, %v6532_v10, %v2088_v56  ;;  %v2095_v53 = vmul.f32 %v6534_v19, %v2094_v47 }
 0xd81   :  { %v2103_v34 = vmul.f32 %v2092_v52, %v7741_v60 }
 0xd82   :  { %v2096_v2 = vmul.f32 0.5, %v2095_v53  ;;  %v2570_v40 = vpop.permute.xlu2 %2569 }
 0xd83   :  { %v2106_v4 = vmul.f32 %v2105_v58, %v2103_v34  ;;  %6186 = vmatpush.xpose.msk.msrb.mxu3 %vm348_vm5, %v2570_v40 }
 0xd84   :  { %v2097_v5 = vsub.f32 1.5, %v2096_v2 }
 0xd85   :  { %v2487_v1 = vpop.permute.xlu0 %2486  ;;  %v7784_v17 = vadd.f32 %v2108_v54, %v2106_v4 }
 0xd86   :  { %v2098_v23 = vmul.f32 %v6534_v19, %v2097_v5  ;;  %6180 = vmatpush.xpose.msk.msra.mxu2 %vm348_vm5, %v2487_v1 }
 0xd87   :  { %6168 = vmatmul.msk.f32.vlgmr.msra.gmra.mxu0 %vm315_vm2, %v7784_v17 }
 0xd88   :  { %v2102_v59 = vsel %vm2101_vm1, %v6534_v19, %v2098_v23 }
 0xd89   :  { %6181 = vmatmul.msk.f32.vlgmr.msra.gmra.mxu2 %vm348_vm5, %v2485_v44  ;;  %v2104_v7 = vmul.f32 %v2102_v59, %v7747_v27 }
 0xd8a   :  { %6188 = vmatpush.xpose.msk.msrb.mxu2 %vm348_vm5, %v2598_v15  ;;  %v2596_v60 = vpop.permute.xlu2 %2595 }
 0xd8b   :  { %v2107_v61 = vmul.f32 %v2105_v58, %v2104_v7 }
 0xd8d   :  { %v2457_v8 = vpop.permute.xlu0 %2456  ;;  %v7792_v9 = vadd.f32 %v2108_v54, %v2107_v61 }
 0xd8e   :  { %6179 = vmatmul.msk.f32.vlgmr.msra.gmra.mxu3 %vm348_vm5, %v2457_v8 }
 0xd8f   :  { %6169 = vmatmul.msk.f32.gmra.mxu0 %vm315_vm2, %v7792_v9 }
 0xd91   :  { %6189 = vmatmul.msk.f32.vlgmr.msrb.gmra.mxu2 %vm348_vm5, %v2596_v60 }
 0xd92   :  { %v2514_v12 = vpop.permute.xlu2 %2513 }
 0xd93   :  { %6182 = vmatpush.xpose.msk.msra.mxu0 %vm348_vm5, %v2514_v12 }
 0xd95   :  { %v2429_v21 = vpop.permute.xlu0 %2428 }
 0xd97   :  { %6177 = vmatmul.msk.f32.vlgmr.msrb.gmra.mxu0 %vm348_vm5, %v2429_v21 }
 0xd9d   :  { %v2568_v25 = vpop.permute.xlu0 %2567 }
 0xd9e   :  { %6187 = vmatmul.msk.f32.vlgmr.msrb.gmra.mxu3 %vm348_vm5, %v2568_v25 }
 0xd9f   :  { %6183 = vmatmul.msk.f32.vlgmr.msra.gmra.mxu0 %vm348_vm5, %v7734_v41 }
 0xdf9   :  { %v7804_v26 = vpop.f32.mrf.mxu2 }
 0xe04   :  { %v2140_v27 = vpop.f32.mrf.mxu0 }
 0xe05   :  { %v7806_v33 = vadd.f32 %v2140_v27, %v2116_v24 }
 0xe07   :  { %v7809_v35 = vmul.f32 0.70710677, %v7806_v33 }
 0xe09   :  { %v2150_v30 = vand.u32 2147483647, %v7809_v35  ;;  %vm2214_vm15 = vcmp.ge.f32.partialorder %v7809_v35, 0.0 }
 0xe0b   :  { %v2152_v16 = vmul.f32 0.3275911, %v2150_v30  ;;  %v2202_v2 = vsub.f32 0.0, %v2150_v30 }
 0xe0c   :  { %v2143_v14 = vpop.f32.mrf.mxu0  ;;  %v2509_v62 = vpop.f32.mrf.mxu2 }
 0xe0d   :  { %v2154_v57 = vadd.f32 1.0, %v2152_v16  ;;  %v7812_v37 = vadd.f32 %v2143_v14, %v2116_v24  ;;  %v7814_v38 = vmul.f32 0.35355338, %v2509_v62  ;;  %v2204_v60 = vmul.f32 %v2202_v2, %v2150_v30 }
 0xe0e   :  { %v7839_v62 = vmul.f32 0.35355338, %v7804_v26  ;;  %v2146_v2 = vmul.f32 0.5, %v7806_v33 }
 0xe0f   :  { %6535 = vrcp.f32 %v2154_v57  ;;  %v7817_v43 = vmul.f32 0.70710677, %v7812_v37  ;;  %v2640_v39 = vsel %vm348_vm5, %v7814_v38, -inf  ;;  %v2167_v19 = vand.u32 2147483648, %v2154_v57 }
 0xe10   :  { %2641 = vmax.xlane.f32.xlu0 %v2640_v39  ;;  %v2165_v47 = vand.u32 2147483647, %v2154_v57  ;;  %vm2161_vm4 = vweird.f32 %v2154_v57  ;;  %v2206_v16 = vmul.f32 1.442695, %v2204_v60 }
 0xe11   :  { %v2481_v15 = vpop.f32.mrf.mxu3  ;;  %v2151_v46 = vand.u32 2147483647, %v7817_v43  ;;  %v2168_v52 = vor.u32 1.1754944e-38, %v2167_v19  ;;  %vm2215_vm0 = vcmp.ge.f32.partialorder %v7817_v43, 0.0 }
 0xe12   :  { %v7822_v48 = vmul.f32 0.35355338, %v2481_v15  ;;  %vm2166_vm7 = vcmp.eq.f32.partialorder %v2165_v47, 8.507059e+37 }
 0xe13   :  { %v2153_v49 = vmul.f32 0.3275911, %v2151_v46 }
 0xe14   :  { %v2453_v63 = vpop.f32.mrf.mxu0  ;;  %v2620_v31 = vpop.f32.mrf.mxu2  ;;  %v2637_v22 = vsel %vm348_vm5, %v7822_v48, -inf }
 0xe15   :  { %v6536_v20 = vpop.eup %6535  ;;  %v7826_v10 = vmul.f32 0.35355338, %v2453_v63  ;;  %v7828_v18 = vmul.f32 0.35355338, %v2620_v31  ;;  %2638 = vmax.xlane.f32.xlu1 %v2637_v22  ;;  %v2155_v42 = vadd.f32 1.0, %v2153_v49 }
 0xe16   :  { %v2157_v50 = vmul.f32 %v6536_v20, %v2154_v57  ;;  %vm2162_vm3 = vweird.f32 %v6536_v20  ;;  %v2203_v57 = vsub.f32 0.0, %v2151_v46 }
 0xe17   :  { %v2634_v51 = vsel %vm348_vm5, %v7826_v10, -inf  ;;  %v2652_v44 = vsel %vm348_vm5, %v7828_v18, -inf  ;;  %6537 = vrcp.f32 %v2155_v42  ;;  %vm2163_vm6 = vmor %vm2161_vm4, %vm2162_vm3  ;;  %v2181_v59 = vand.u32 2147483648, %v2155_v42 }
 0xe18   :  { %v2158_v55 = vsub.f32 1.0, %v2157_v50  ;;  %2635 = vmax.xlane.f32.xlu2 %v2634_v51  ;;  %2653 = vmax.xlane.f32.xlu0 %v2652_v44  ;;  %v2179_v8 = vand.u32 2147483647, %v2155_v42  ;;  %vm2175_vm9 = vweird.f32 %v2155_v42  ;;  %6539 = vpow2.f32 %v2206_v16 }
 0xe19   :  { %v2182_v27 = vor.u32 1.1754944e-38, %v2181_v59  ;;  %v2205_v22 = vmul.f32 %v2203_v57, %v2151_v46 }
 0xe1a   :  { %v2159_v56 = vmul.f32 %v6536_v20, %v2158_v55  ;;  %vm2180_vm14 = vcmp.eq.f32.partialorder %v2179_v8, 8.507059e+37 }
 0xe1b   :  { %v2208_v55 = vmul.f32 1.442695, %v2205_v22 }
 0xe1c   :  { %v2160_v58 = vadd.f32 %v6536_v20, %v2159_v56 }
 0xe1d   :  { %v6538_v53 = vpop.eup %6537  ;;  %6541 = vpow2.f32 %v2208_v55 }
 0xe1e   :  { %v2164_v34 = vsel %vm2163_vm6, %v6536_v20, %v2160_v58  ;;  %v2171_v40 = vmul.f32 %v6538_v53, %v2155_v42  ;;  %vm2176_vm8 = vweird.f32 %v6538_v53  ;;  %v2631_v20 = vsel %vm348_vm5, %v7839_v62, -inf  ;;  %v6540_v26 = vpop.eup %6539 }
 0xe1f   :  { %v2169_v54 = vsel %vm2166_vm7, %v2168_v52, %v2164_v34  ;;  %vm2177_vm13 = vmor %vm2175_vm9, %vm2176_vm8 }
 0xe20   :  { %v2184_v4 = vmul.f32 1.0614054, %v2169_v54  ;;  %v2172_v5 = vsub.f32 1.0, %v2171_v40 }
 0xe21   :  { %v2592_v1 = vpop.f32.mrf.mxu3 }
 0xe22   :  { %v2186_v23 = vadd.f32 -1.4531521, %v2184_v4  ;;  %v7834_v7 = vmul.f32 0.35355338, %v2592_v1  ;;  %v2173_v61 = vmul.f32 %v6538_v53, %v2172_v5 }
 0xe23   :  { %v6542_v5 = vpop.eup %6541 }
 0xe24   :  { %v2188_v12 = vmul.f32 %v2186_v23, %v2169_v54  ;;  %v2649_v21 = vsel %vm348_vm5, %v7834_v7, -inf  ;;  %v2174_v25 = vadd.f32 %v6538_v53, %v2173_v61  ;;  %v2147_v61 = vmul.f32 0.5, %v7812_v37 }
 0xe25   :  { %2650 = vmax.xlane.f32.xlu1 %v2649_v21 }
 0xe26   :  { %v2190_v24 = vadd.f32 1.4214138, %v2188_v12  ;;  %v2178_v14 = vsel %vm2177_vm13, %v6538_v53, %v2174_v25  ;;  %v2540_v12 = vpop.permute.xlu0 %2539 }
 0xe27   :  { %v2183_v39 = vsel %vm2180_vm14, %v2182_v27, %v2178_v14 }
 0xe28   :  { %v2192_v30 = vmul.f32 %v2190_v24, %v2169_v54  ;;  %v2185_v15 = vmul.f32 1.0614054, %v2183_v39 }
 0xe2a   :  { %v2194_v49 = vadd.f32 -0.28449672, %v2192_v30  ;;  %v2187_v63 = vadd.f32 -1.4531521, %v2185_v15 }
 0xe2c   :  { %v2196_v31 = vmul.f32 %v2194_v49, %v2169_v54  ;;  %v2189_v50 = vmul.f32 %v2187_v63, %v2183_v39  ;;  %v2536_v63 = vpop.f32.mrf.mxu0 }
 0xe2d   :  { %2632 = vmax.xlane.f32.xlu1 %v2631_v20 }
 0xe2e   :  { %v2198_v42 = vadd.f32 0.2548296, %v2196_v31  ;;  %v2191_v51 = vadd.f32 1.4214138, %v2189_v50  ;;  %v2627_v31 = vmul.f32 0.35355338, %v2536_v63 }
 0xe30   :  { %v2200_v44 = vmul.f32 %v2198_v42, %v2169_v54  ;;  %v2193_v19 = vmul.f32 %v2191_v51, %v2183_v39  ;;  %v2643_v20 = vsel %vm348_vm5, %v2627_v31, -inf }
 0xe32   :  { %v2210_v56 = vmul.f32 %v6540_v26, %v2200_v44  ;;  %v2195_v47 = vadd.f32 -0.28449672, %v2193_v19  ;;  %v7881_v44 = vld [vmem:[#allocation13 + $0x8] sm:$0xff] }
 0xe33   :  { %v2233_v55 = vperm.slane %v7881_v44, 3 }
 0xe34   :  { %v2212_v58 = vsub.f32 1.0, %v2210_v56  ;;  %v2197_v52 = vmul.f32 %v2195_v47, %v2183_v39 }
 0xe36   :  { %v2216_v53 = vsub.f32 0.0, %v2212_v58  ;;  %v2199_v46 = vadd.f32 0.2548296, %v2197_v52 }
 0xe38   :  { %v2218_v34 = vsel %vm2214_vm15, %v2212_v58, %v2216_v53  ;;  %v2201_v4 = vmul.f32 %v2199_v46, %v2183_v39 }
 0xe39   :  { %v2220_v40 = vadd.f32 1.0, %v2218_v34 }
 0xe3a   :  { %v2211_v54 = vmul.f32 %v6542_v5, %v2201_v4 }
 0xe3b   :  { %v2222_v1 = vmul.f32 %v2220_v40, %v2146_v2 }
 0xe3c   :  { %v2213_v23 = vsub.f32 1.0, %v2211_v54 }
 0xe3d   :  { %6170 = vmatmul.msk.f32.vlgmr.msra.gmra.mxu1 %vm1234_vm12, %v2222_v1 }
 0xe3e   :  { %v2217_v59 = vsub.f32 0.0, %v2213_v23 }
 0xe40   :  { %v2219_v60 = vsel %vm2215_vm0, %v2213_v23, %v2217_v59 }
 0xe41   :  { %v2221_v8 = vadd.f32 1.0, %v2219_v60 }
 0xe43   :  { %v2223_v35 = vmul.f32 %v2221_v8, %v2147_v61 }
 0xe45   :  { %6171 = vmatmul.msk.f32.gmra.mxu1 %vm1234_vm12, %v2223_v35 }
 0xe4d   :  { %6185 = vmatmul.msk.f32.vlgmr.msrb.gmra.mxu1 %vm348_vm5, %v2540_v12 }
 0xe83   :  { %v2642_v33 = vpop.xlane.xlu0 %2641 }
 0xe84   :  { %v2658_v21 = vsub.f32 %v7814_v38, %v2642_v33 }
 0xe86   :  { %v2669_v25 = vmul.f32 1.442695, %v2658_v21 }
 0xe88   :  { %v2639_v24 = vpop.xlane.xlu1 %2638  ;;  %6543 = vpow2.f32 %v2669_v25 }
 0xe89   :  { %v2657_v27 = vsub.f32 %v7822_v48, %v2639_v24 }
 0xe8b   :  { %v2667_v16 = vmul.f32 1.442695, %v2657_v27  ;;  %v2636_v43 = vpop.xlane.xlu2 %2635  ;;  %v2654_v14 = vpop.xlane.xlu0 %2653 }
 0xe8c   :  { %v2656_v37 = vsub.f32 %v7826_v10, %v2636_v43  ;;  %v2662_v30 = vsub.f32 %v7828_v18, %v2654_v14 }
 0xe8d   :  { %6545 = vpow2.f32 %v2667_v16 }
 0xe8e   :  { %v2665_v57 = vmul.f32 1.442695, %v2656_v37  ;;  %v7854_v39 = vpop.eup %6543  ;;  %v2677_v15 = vmul.f32 1.442695, %v2662_v30 }
 0xe8f   :  { %v2688_v38 = vsel %vm348_vm5, %v7854_v39, 0.0 }
 0xe90   :  { %6547 = vpow2.f32 %v2665_v57  ;;  %2689 = vadd.xlane.f32.xlu2 %v2688_v38 }
 0xe91   :  { %6549 = vpow2.f32 %v2677_v15 }
 0xe93   :  { %v7858_v49 = vpop.eup %6545 }
 0xe94   :  { %v2685_v48 = vsel %vm348_vm5, %v7858_v49, 0.0 }
 0xe95   :  { %2686 = vadd.xlane.f32.xlu0 %v2685_v48 }
 0xe96   :  { %v7862_v10 = vpop.eup %6547 }
 0xe97   :  { %v2682_v18 = vsel %vm348_vm5, %v7862_v10, 0.0  ;;  %v7866_v22 = vpop.eup %6549 }
 0xe98   :  { %2683 = vadd.xlane.f32.xlu1 %v2682_v18  ;;  %v2700_v50 = vsel %vm348_vm5, %v7866_v22, 0.0  ;;  %v2651_v51 = vpop.xlane.xlu1 %2650 }
 0xe99   :  { %v2661_v56 = vsub.f32 %v7834_v7, %v2651_v51 }
 0xe9b   :  { %v2675_v47 = vmul.f32 1.442695, %v2661_v56 }
 0xe9d   :  { %2644 = vmax.xlane.f32.xlu0 %v2643_v20  ;;  %6551 = vpow2.f32 %v2675_v47 }
 0xea0   :  { %2701 = vadd.xlane.f32.xlu1 %v2700_v50  ;;  %v2633_v7 = vpop.xlane.xlu1 %2632 }
 0xea1   :  { %v2655_v4 = vsub.f32 %v7839_v62, %v2633_v7 }
 0xea3   :  { %v7893_v46 = vpop.eup %6551  ;;  %v2663_v60 = vmul.f32 1.442695, %v2655_v4 }
 0xea4   :  { %v2697_v34 = vsel %vm348_vm5, %v7893_v46, 0.0 }
 0xeb1   :  { %2875 = vrot.lane.b32.xlu0 %v7728_v6, %s7056_s8 }
 0xeb9   :  { %2994 = vrot.lane.b32.xlu0 %v7734_v41, %s7056_s8  ;;  %2849 = vrot.lane.b32.xlu1 %v7728_v6, %s7054_s0 }
 0xeba   :  { %v7877_v42 = vpop.f32.mrf.mxu1 }
 0xebb   :  { %v2258_v13 = vadd.f32 %v7877_v42, %v2233_v55 }
 0xec1   :  { %2968 = vrot.lane.b32.xlu0 %v7734_v41, %s7054_s0 }
 0xec2   :  { %v2260_v26 = vpop.f32.mrf.mxu1 }
 0xec3   :  { %v7886_v19 = vadd.f32 %v2260_v26, %v2233_v55 }
 0xeca   :  { %v2564_v58 = vpop.f32.mrf.mxu1 }
 0xecb   :  { %v7889_v52 = vmul.f32 0.35355338, %v2564_v58 }
 0xecd   :  { %v2646_v53 = vsel %vm348_vm5, %v7889_v52, -inf }
 0xece   :  { %2647 = vmax.xlane.f32.xlu2 %v2646_v53 }
 0xed6   :  { %2698 = vadd.xlane.f32.xlu2 %v2697_v34 }
 0xeee   :  { %2901 = vrot.lane.b32.xlu2 %v7728_v6, %s7055_s28 }
 0xef6   :  { %3020 = vrot.lane.b32.xlu2 %v7734_v41, %s7055_s28 }
 0xf03   :  { %v2690_v58 = vpop.xlane.xlu2 %2689 }
 0xf04   :  { %vm2750_vm15 = vweird.f32 %v2690_v58 }
 0xf08   :  { %v2687_v2 = vpop.xlane.xlu0 %2686 }
 0xf09   :  { %6553 = vrcp.f32 %v2687_v2  ;;  %v2742_v25 = vand.u32 2147483648, %v2687_v2  ;;  %vm2736_vm3 = vweird.f32 %v2687_v2  ;;  %v2740_v62 = vand.u32 2147483647, %v2687_v2 }
 0xf0b   :  { %v2684_v40 = vpop.xlane.xlu1 %2683  ;;  %v2743_v37 = vor.u32 1.1754944e-38, %v2742_v25  ;;  %vm2741_vm6 = vcmp.eq.f32.partialorder %v2740_v62, 8.507059e+37 }
 0xf0c   :  { %6555 = vrcp.f32 %v2684_v40  ;;  %v2728_v15 = vand.u32 2147483648, %v2684_v40  ;;  %vm2722_vm8 = vweird.f32 %v2684_v40  ;;  %v2726_v48 = vand.u32 2147483647, %v2684_v40 }
 0xf0e   :  { %v2729_v50 = vor.u32 1.1754944e-38, %v2728_v15  ;;  %vm2727_vm13 = vcmp.eq.f32.partialorder %v2726_v48, 8.507059e+37 }
 0xf0f   :  { %v6554_v5 = vpop.eup %6553 }
 0xf10   :  { %v2732_v1 = vmul.f32 %v6554_v5, %v2687_v2  ;;  %v2645_v54 = vpop.xlane.xlu0 %2644  ;;  %vm2737_vm1 = vweird.f32 %v6554_v5 }
 0xf11   :  { %v2659_v23 = vsub.f32 %v2627_v31, %v2645_v54  ;;  %vm2738_vm4 = vmor %vm2736_vm3, %vm2737_vm1 }
 0xf12   :  { %v6556_v59 = vpop.eup %6555  ;;  %v2733_v61 = vsub.f32 1.0, %v2732_v1 }
 0xf13   :  { %v2671_v8 = vmul.f32 1.442695, %v2659_v23  ;;  %v2718_v12 = vmul.f32 %v6556_v59, %v2684_v40  ;;  %vm2723_vm7 = vweird.f32 %v6556_v59  ;;  %v7910_v63 = vpop.xlane.xlu1 %2701 }
 0xf14   :  { %v2734_v35 = vmul.f32 %v6554_v5, %v2733_v61  ;;  %vm2724_vm9 = vmor %vm2722_vm8, %vm2723_vm7 }
 0xf15   :  { %6557 = vpow2.f32 %v2671_v8  ;;  %v2719_v21 = vsub.f32 1.0, %v2718_v12 }
 0xf16   :  { %6559 = vpow2.f32 %v2663_v60  ;;  %v2735_v33 = vadd.f32 %v6554_v5, %v2734_v35  ;;  %v2754_v60 = vand.u32 2147483647, %v2690_v58 }
 0xf17   :  { %v2720_v14 = vmul.f32 %v6556_v59, %v2719_v21  ;;  %6561 = vrcp.f32 %v2690_v58 }
 0xf18   :  { %v2739_v43 = vsel %vm2738_vm4, %v6554_v5, %v2735_v33  ;;  %6563 = vrcp.f32 %v7910_v63  ;;  %vm2755_vm1 = vcmp.eq.f32.partialorder %v2754_v60, 8.507059e+37  ;;  %vm2806_vm4 = vweird.f32 %v7910_v63 }
 0xf19   :  { %v2744_v57 = vsel %vm2741_vm6, %v2743_v37, %v2739_v43  ;;  %v2721_v38 = vadd.f32 %v6556_v59, %v2720_v14  ;;  %v2810_v43 = vand.u32 2147483647, %v7910_v63 }
 0xf1a   :  { %v2817_v31 = vmul.f32 %v7858_v49, %v2744_v57 }
 0xf1b   :  { %v7902_v24 = vpop.eup %6557  ;;  %v2725_v20 = vsel %vm2724_vm9, %v6556_v59, %v2721_v38  ;;  %v2756_v59 = vand.u32 2147483648, %v2690_v58  ;;  %vm2811_vm7 = vcmp.eq.f32.partialorder %v2810_v43, 8.507059e+37 }
 0xf1c   :  { %v7904_v27 = vpop.eup %6559  ;;  %v2691_v16 = vsel %vm348_vm5, %v7902_v24, 0.0  ;;  %v2730_v51 = vsel %vm2727_vm13, %v2729_v50, %v2725_v20 }
 0xf1d   :  { %2692 = vadd.xlane.f32.xlu0 %v2691_v16  ;;  %v2679_v30 = vsel %vm348_vm5, %v7904_v27, 0.0  ;;  %v2816_v47 = vmul.f32 %v7862_v10, %v2730_v51  ;;  %v6562_v49 = vpop.eup %6561  ;;  %v2757_v33 = vor.u32 1.1754944e-38, %v2756_v59  ;;  %v2812_v16 = vand.u32 2147483648, %v7910_v63 }
 0xf1e   :  { %v2746_v34 = vmul.f32 %v6562_v49, %v2690_v58  ;;  %v6564_v2 = vpop.eup %6563  ;;  %vm2751_vm14 = vweird.f32 %v6562_v49 }
 0xf1f   :  { %2680 = vadd.xlane.f32.xlu2 %v2679_v30  ;;  %v2802_v10 = vmul.f32 %v6564_v2, %v7910_v63  ;;  %vm2752_vm0 = vmor %vm2750_vm15, %vm2751_vm14  ;;  %vm2807_vm3 = vweird.f32 %v6564_v2  ;;  %v2813_v15 = vor.u32 1.1754944e-38, %v2812_v16 }
 0xf20   :  { %v2747_v7 = vsub.f32 1.0, %v2746_v34  ;;  %vm2808_vm6 = vmor %vm2806_vm4, %vm2807_vm3 }
 0xf21   :  { %v2803_v23 = vsub.f32 1.0, %v2802_v10 }
 0xf22   :  { %v2748_v5 = vmul.f32 %v6562_v49, %v2747_v7 }
 0xf23   :  { %v2876_v18 = vpop.permute.xlu0 %2875  ;;  %v2804_v35 = vmul.f32 %v6564_v2, %v2803_v23 }
 0xf24   :  { %2896 = vmatpush.msra.mxu3 %v2876_v18  ;;  %v2749_v54 = vadd.f32 %v6562_v49, %v2748_v5 }
 0xf25   :  { %6192 = vmatmul.msk.f32.vlgmr.msra.gmra.mxu3 %vm348_vm5, %v2817_v31  ;;  %v2805_v25 = vadd.f32 %v6564_v2, %v2804_v35 }
 0xf26   :  { %v2753_v8 = vsel %vm2752_vm0, %v6562_v49, %v2749_v54 }
 0xf27   :  { %v2758_v21 = vsel %vm2755_vm1, %v2757_v33, %v2753_v8  ;;  %v2809_v57 = vsel %vm2808_vm6, %v6564_v2, %v2805_v25 }
 0xf28   :  { %v2818_v30 = vmul.f32 %v7854_v39, %v2758_v21  ;;  %v2814_v20 = vsel %vm2811_vm7, %v2813_v15, %v2809_v57 }
 0xf2b   :  { %v2995_v26 = vpop.permute.xlu0 %2994  ;;  %v2850_v56 = vpop.permute.xlu1 %2849 }
 0xf2c   :  { %2870 = vmatpush.msra.mxu1 %v2850_v56  ;;  %3015 = vmatpush.msrb.mxu3 %v2995_v26  ;;  %v2822_v26 = vmul.f32 %v7866_v22, %v2814_v20 }
 0xf2d   :  { %6191 = vmatmul.msk.f32.vlgmr.msra.gmra.mxu1 %vm348_vm5, %v2816_v47 }
 0xf33   :  { %v2969_v53 = vpop.permute.xlu0 %2968 }
 0xf34   :  { %2989 = vmatpush.msrb.mxu1 %v2969_v53 }
 0xf41   :  { %v2648_v40 = vpop.xlane.xlu2 %2647 }
 0xf42   :  { %v2660_v4 = vsub.f32 %v7889_v52, %v2648_v40  ;;  %v7950_v40 = vadd.f32 %v2258_v13, %v7784_v17 }
 0xf44   :  { %v2673_v1 = vmul.f32 1.442695, %v2660_v4  ;;  %v2265_v42 = vsel %vm315_vm2, %v7950_v40, 0.0 }
 0xf46   :  { %6565 = vpow2.f32 %v2673_v1 }
 0xf49   :  { %v2699_v61 = vpop.xlane.xlu2 %2698 }
 0xf4a   :  { %6567 = vrcp.f32 %v2699_v61  ;;  %v2798_v48 = vand.u32 2147483648, %v2699_v61  ;;  %v2796_v31 = vand.u32 2147483647, %v2699_v61  ;;  %vm2792_vm9 = vweird.f32 %v2699_v61 }
 0xf4c   :  { %v7919_v12 = vpop.eup %6565  ;;  %v2799_v63 = vor.u32 1.1754944e-38, %v2798_v48  ;;  %vm2797_vm14 = vcmp.eq.f32.partialorder %v2796_v31, 8.507059e+37 }
 0xf4d   :  { %v2694_v52 = vsel %vm348_vm5, %v7919_v12, 0.0 }
 0xf4e   :  { %2695 = vadd.xlane.f32.xlu1 %v2694_v52 }
 0xf50   :  { %v6568_v62 = vpop.eup %6567 }
 0xf51   :  { %v2788_v14 = vmul.f32 %v6568_v62, %v2699_v61  ;;  %v2902_v37 = vpop.permute.xlu2 %2901  ;;  %vm2793_vm8 = vweird.f32 %v6568_v62 }
 0xf52   :  { %2922 = vmatpush.msra.mxu2 %v2902_v37  ;;  %vm2794_vm13 = vmor %vm2792_vm9, %vm2793_vm8 }
 0xf53   :  { %v2789_v38 = vsub.f32 1.0, %v2788_v14  ;;  %6193 = vmatmul.msk.f32.vlgmr.msra.gmra.mxu2 %vm348_vm5, %v2818_v30 }
 0xf55   :  { %v2790_v18 = vmul.f32 %v6568_v62, %v2789_v38 }
 0xf57   :  { %v2791_v50 = vadd.f32 %v6568_v62, %v2790_v18 }
 0xf59   :  { %v2795_v51 = vsel %vm2794_vm13, %v6568_v62, %v2791_v50  ;;  %v3021_v39 = vpop.permute.xlu2 %3020 }
 0xf5a   :  { %3041 = vmatpush.msrb.mxu2 %v3021_v39  ;;  %v2800_v56 = vsel %vm2797_vm14, %v2799_v63, %v2795_v51 }
 0xf5b   :  { %6197 = vmatmul.msk.f32.vlgmr.msrb.gmra.mxu2 %vm348_vm5, %v2822_v26  ;;  %v2821_v47 = vmul.f32 %v7893_v46, %v2800_v56 }
 0xf5d   :  { %6196 = vmatmul.msk.f32.vlgmr.msrb.gmra.mxu3 %vm348_vm5, %v2821_v47 }
 0xf67   :  { %2823 = vrot.lane.b32.xlu1 %v7728_v6, %s7057_s29 }
 0xf6f   :  { %2942 = vrot.lane.b32.xlu1 %v7734_v41, %s7057_s29 }
 0xf77   :  { %6370 = vrot.lane.b32.xlu1 %v6369_v11, %s7058_s11 }
 0xf7f   :  { %6375 = vrot.lane.b32.xlu1 %v6374_v36, %s7058_s11 }
 0xf90   :  { %v2693_v58 = vpop.xlane.xlu0 %2692 }
 0xf91   :  { %v2770_v62 = vand.u32 2147483648, %v2693_v58  ;;  %vm2764_vm13 = vweird.f32 %v2693_v58  ;;  %v2768_v16 = vand.u32 2147483647, %v2693_v58 }
 0xf92   :  { %v2681_v6 = vpop.xlane.xlu2 %2680 }
 0xf93   :  { %6569 = vrcp.f32 %v2681_v6  ;;  %v2714_v23 = vand.u32 2147483648, %v2681_v6  ;;  %vm2708_vm4 = vweird.f32 %v2681_v6  ;;  %v2712_v55 = vand.u32 2147483647, %v2681_v6 }
 0xf94   :  { %6571 = vrcp.f32 %v2693_v58 }
 0xf95   :  { %v2715_v33 = vor.u32 1.1754944e-38, %v2714_v23  ;;  %vm2713_vm8 = vcmp.eq.f32.partialorder %v2712_v55, 8.507059e+37  ;;  %v7980_v55 = vld [vmem:[#allocation19] sm:$0xff] }
 0xf99   :  { %v6570_v41 = vpop.eup %6569 }
 0xf9a   :  { %v2704_v0 = vmul.f32 %v6570_v41, %v2681_v6  ;;  %v6572_v3 = vpop.eup %6571  ;;  %vm2709_vm0 = vweird.f32 %v6570_v41 }
 0xf9b   :  { %v2760_v36 = vmul.f32 %v6572_v3, %v2693_v58  ;;  %vm2710_vm7 = vmor %vm2708_vm4, %vm2709_vm0  ;;  %vm2765_vm9 = vweird.f32 %v6572_v3 }
 0xf9c   :  { %v2705_v11 = vsub.f32 1.0, %v2704_v0  ;;  %vm2766_vm14 = vmor %vm2764_vm13, %vm2765_vm9 }
 0xf9d   :  { %v2761_v10 = vsub.f32 1.0, %v2760_v36 }
 0xf9e   :  { %v2706_v34 = vmul.f32 %v6570_v41, %v2705_v11 }
 0xf9f   :  { %v2762_v61 = vmul.f32 %v6572_v3, %v2761_v10 }
 0xfa0   :  { %v2707_v1 = vadd.f32 %v6570_v41, %v2706_v34 }
 0xfa1   :  { %v2763_v25 = vadd.f32 %v6572_v3, %v2762_v61  ;;  %v2312_v61 = vperm.slane %v7881_v44, 7 }
 0xfa2   :  { %v2711_v8 = vsel %vm2710_vm7, %v6570_v41, %v2707_v1 }
 0xfa3   :  { %v2716_v21 = vsel %vm2713_vm8, %v2715_v33, %v2711_v8  ;;  %v2767_v37 = vsel %vm2766_vm14, %v6572_v3, %v2763_v25  ;;  %v2264_v3 = vadd.f32 %v7886_v19, %v7792_v9 }
 0xfa4   :  { %v2815_v14 = vmul.f32 %v7904_v27, %v2716_v21 }
 0xfa5   :  { %v2268_v11 = vsel %vm315_vm2, %v2264_v3, 0.0 }
 0xfa8   :  { %v2898_v22 = vpop.f32.mrf.mxu3 }
 0xfa9   :  { %2932 = vrot.lane.b32.xlu2 %v2898_v22, %s7059_s30 }
 0xfaa   :  { %v2872_v46 = vpop.f32.mrf.mxu1 }
 0xfab   :  { %2928 = vrot.lane.b32.xlu1 %v2872_v46, %s7037_s5 }
 0xfc1   :  { %v2696_v53 = vpop.xlane.xlu1 %2695 }
 0xfc2   :  { %6573 = vrcp.f32 %v2696_v53  ;;  %v2784_v2 = vand.u32 2147483648, %v2696_v53  ;;  %v2782_v5 = vand.u32 2147483647, %v2696_v53  ;;  %vm2778_vm1 = vweird.f32 %v2696_v53 }
 0xfc4   :  { %v2785_v59 = vor.u32 1.1754944e-38, %v2784_v2  ;;  %vm2783_vm6 = vcmp.eq.f32.partialorder %v2782_v5, 8.507059e+37 }
 0xfc8   :  { %v6574_v49 = vpop.eup %6573 }
 0xfc9   :  { %v2774_v32 = vmul.f32 %v6574_v49, %v2696_v53  ;;  %vm2779_vm15 = vweird.f32 %v6574_v49 }
 0xfca   :  { %vm2780_vm3 = vmor %vm2778_vm1, %vm2779_vm15  ;;  %vm2769_vm15 = vcmp.eq.f32.partialorder %v2768_v16, 8.507059e+37 }
 0xfcb   :  { %v2775_v7 = vsub.f32 1.0, %v2774_v32 }
 0xfcd   :  { %v2776_v4 = vmul.f32 %v6574_v49, %v2775_v7 }
 0xfcf   :  { %v2777_v54 = vadd.f32 %v6574_v49, %v2776_v4 }
 0xfd1   :  { %v2781_v60 = vsel %vm2780_vm3, %v6574_v49, %v2777_v54 }
 0xfd2   :  { %2266 = vadd.xlane.f32.xlu2 %v2265_v42  ;;  %v2786_v17 = vsel %vm2783_vm6, %v2785_v59, %v2781_v60  ;;  %v2309_v59 = vperm.slane %v7881_v44, 6  ;;  %v3061_v60 = vperm.slane %v7980_v55, 1 }
 0xfd3   :  { %v2820_v35 = vmul.f32 %v7919_v12, %v2786_v17  ;;  %v2771_v12 = vor.u32 1.1754944e-38, %v2770_v62 }
 0xfd5   :  { %6195 = vmatmul.msk.f32.vlgmr.msrb.gmra.mxu1 %vm348_vm5, %v2820_v35  ;;  %v2772_v30 = vsel %vm2769_vm15, %v2771_v12, %v2767_v37 }
 0xfd6   :  { %v2924_v52 = vpop.f32.mrf.mxu2  ;;  %v2819_v15 = vmul.f32 %v7902_v24, %v2772_v30 }
 0xfd7   :  { %2936 = vrot.lane.b32.xlu1 %v2924_v52, %s7060_s10 }
 0xfd9   :  { %v2824_v43 = vpop.permute.xlu1 %2823 }
 0xfda   :  { %2844 = vmatpush.msrb.mxu0 %v2824_v43 }
 0xfdb   :  { %6190 = vmatmul.msk.f32.vlgmr.msrb.gmra.mxu0 %vm348_vm5, %v2815_v14 }
 0xfde   :  { %v3043_v48 = vpop.f32.mrf.mxu2 }
 0xfe0   :  { %v3017_v57 = vpop.f32.mrf.mxu3 }
 0xfe1   :  { %v2943_v38 = vpop.permute.xlu1 %2942  ;;  %3051 = vrot.lane.b32.xlu1 %v3017_v57, %s7059_s30 }
 0xfe2   :  { %2963 = vmatpush.msra.mxu0 %v2943_v38 }
 0xfe3   :  { %6194 = vmatmul.msk.f32.vlgmr.msra.gmra.mxu0 %vm348_vm5, %v2819_v15 }
 0xfe9   :  { %3055 = vrot.lane.b32.xlu1 %v3043_v48, %s7060_s10  ;;  %v6371_v27 = vpop.permute.xlu1 %6370 }
 0xfea   :  { %v6373_v18 = vunpack.i.h.bf16 %v6371_v27  ;;  %v6372_v31 = vunpack.i.l.bf16 %v6371_v27 }
 0xfec   :  { %3096 = vmatpush.msrb.mxu0 %v6372_v31 }
 0xfee   :  { %3097 = vmatpush.msrb.mxu0 %v6373_v18 }
 0xff1   :  { %v6376_v20 = vpop.permute.xlu1 %6375 }
 0xff2   :  { %v6378_v50 = vunpack.i.h.bf16 %v6376_v20  ;;  %v6377_v63 = vunpack.i.l.bf16 %v6376_v20 }
 0xff4   :  { %3098 = vmatpush.msrb.mxu0 %v6377_v63 }
 0xff6   :  { %3099 = vmatpush.msrb.mxu0 %v6378_v50 }
0x1003   :  { %v2933_v51 = vpop.permute.xlu2 %2932 }
0x101d   :  { %v2929_v22 = vpop.permute.xlu1 %2928 }
0x1045   :  { %v2267_v39 = vpop.xlane.xlu2 %2266 }
0x1046   :  { %v2271_v24 = vmul.f32 %v2267_v39, %v7416_v29 }
0x1048   :  { %v2273_v26 = vsub.f32 %v7950_v40, %v2271_v24 }
0x1049   :  { %v2937_v41 = vpop.permute.xlu1 %2936 }
0x104a   :  { %v2275_v56 = vmul.f32 %v2273_v26, %v2273_v26 }
0x104c   :  { %v2277_v47 = vsel %vm315_vm2, %v2275_v56, 0.0 }
0x104d   :  { %2278 = vadd.xlane.f32.xlu1 %v2277_v47 }
0x1052   :  { %v2991_v46 = vpop.f32.mrf.mxu1 }
0x1053   :  { %3047 = vrot.lane.b32.xlu0 %v2991_v46, %s7037_s5  ;;  %v3052_v49 = vpop.permute.xlu1 %3051 }
0x1058   :  { %v2846_v6 = vpop.f32.mrf.mxu0 }
0x1059   :  { %v2939_v58 = vsel %vm348_vm5, %v2846_v6, %v2929_v22 }
0x105a   :  { %v2940_v53 = vsel %vm885_vm10, %v2939_v58, %v2933_v51 }
0x105b   :  { %v2941_v0 = vsel %vm887_vm11, %v2940_v53, %v2937_v41  ;;  %v3056_v13 = vpop.permute.xlu1 %3055 }
0x105c   :  { %6198 = vmatmul.msk.f32.vlgmr.msrb.gmra.mxu0 %vm315_vm2, %v2941_v0 }
0x1060   :  { %v2965_v7 = vpop.f32.mrf.mxu0 }
0x107d   :  { %2269 = vadd.xlane.f32.xlu0 %v2268_v11 }
0x10c0   :  { %v2279_v32 = vpop.xlane.xlu1 %2278 }
0x10c1   :  { %v2283_v36 = vmul.f32 %v2279_v32, %v7416_v29 }
0x10c3   :  { %v2285_v34 = vadd.f32 1e-05, %v2283_v36 }
0x10c5   :  { %6575 = vrsqrt.f32 %v2285_v34  ;;  %v3048_v2 = vpop.permute.xlu0 %3047  ;;  %vm2293_vm1 = vweird.f32 %v2285_v34 }
0x10c6   :  { %v3058_v40 = vsel %vm348_vm5, %v2965_v7, %v3048_v2  ;;  %v3162_v7 = vld [vmem:[#allocation16 + $0x18] sm:$0xff] }
0x10c7   :  { %v3059_v4 = vsel %vm885_vm10, %v3058_v40, %v3052_v49  ;;  %3182 = vmatpush.msra.mxu1 %v3162_v7  ;;  %v3160_v40 = vld [vmem:[#allocation16 + $0x8] sm:$0xff] }
0x10c8   :  { %v3060_v5 = vsel %vm887_vm11, %v3059_v4, %v3056_v13  ;;  %v3159_v4 = vld [vmem:[#allocation16] sm:$0xff] }
0x10c9   :  { %6199 = vmatmul.msk.f32.gmra.mxu0 %vm315_vm2, %v3060_v5 }
0x10cb   :  { %v6576_v9 = vpop.eup %6575 }
0x10cc   :  { %v2288_v19 = vmul.f32 %v6576_v9, %v2285_v34  ;;  %vm2294_vm0 = vweird.f32 %v6576_v9  ;;  %v3161_v34 = vld [vmem:[#allocation16 + $0x10] sm:$0xff] }
0x10cd   :  { %vm2295_vm3 = vmor %vm2293_vm1, %vm2294_vm0  ;;  %v8003_v2 = vpack.i.bf16 %v3161_v34, %v3162_v7  ;;  %3183 = vmatpush.msra.mxu1 %v3161_v34 }
0x10ce   :  { %v2289_v10 = vmul.f32 %v6576_v9, %v2288_v19 }
0x10cf   :  { %3184 = vmatpush.msra.mxu1 %v3160_v40 }
0x10d0   :  { %v2290_v1 = vmul.f32 0.5, %v2289_v10 }
0x10d1   :  { %3185 = vmatpush.msra.mxu1 %v3159_v4 }
0x10d2   :  { %v2291_v54 = vsub.f32 1.5, %v2290_v1 }
0x10d4   :  { %v2292_v23 = vmul.f32 %v6576_v9, %v2291_v54 }
0x10d6   :  { %v2296_v42 = vsel %vm2295_vm3, %v6576_v9, %v2292_v23 }
0x10d7   :  { %v2307_v17 = vmul.f32 %v2296_v42, %v2273_v26 }
0x10d9   :  { %v2310_v8 = vmul.f32 %v2309_v59, %v2307_v17  ;;  %v3101_v35 = vpop.f32.mrf.mxu0 }
0x10da   :  { %v3102_v33 = vadd.f32 %v3101_v35, %v3061_v60 }
0x10db   :  { %v2313_v52 = vadd.f32 %v2312_v61, %v2310_v8  ;;  %v8014_v8 = vpack.i.bf16 %v3159_v4, %v3160_v40 }
0x10dc   :  { %v3107_v21 = vadd.f32 %v3102_v33, %v7696_v28 }
0x10dd   :  { %v2315_v25 = vsel %vm315_vm2, %v2313_v52, 0.0 }
0x10de   :  { %2316 = vadd.xlane.f32.xlu0 %v2315_v25  ;;  %v3109_v62 = vsel %vm315_vm2, %v3107_v21, 0.0 }
0x10df   :  { %3110 = vadd.xlane.f32.xlu1 %v3109_v62  ;;  %v3156_v62 = vperm.slane %v7980_v55, 7 }
0x10f0   :  { %v2270_v16 = vpop.xlane.xlu0 %2269 }
0x10f1   :  { %v2272_v43 = vmul.f32 %v2270_v16, %v7416_v29 }
0x10f3   :  { %v2274_v14 = vsub.f32 %v2264_v3, %v2272_v43 }
0x10f5   :  { %v2276_v37 = vmul.f32 %v2274_v14, %v2274_v14 }
0x10f7   :  { %v2280_v12 = vsel %vm315_vm2, %v2276_v37, 0.0 }
0x10f8   :  { %2281 = vadd.xlane.f32.xlu2 %v2280_v12 }
0x1146   :  { %v3104_v44 = vpop.f32.mrf.mxu0 }
0x1147   :  { %v3105_v30 = vadd.f32 %v3104_v44, %v3061_v60 }
0x1149   :  { %v3108_v57 = vadd.f32 %v3105_v30, %v7701_v45 }
0x114b   :  { %v3112_v28 = vsel %vm315_vm2, %v3108_v57, 0.0 }
0x114c   :  { %3113 = vadd.xlane.f32.xlu0 %v3112_v28 }
0x1151   :  { %v2317_v38 = vpop.xlane.xlu0 %2316 }
0x1152   :  { %v2321_v15 = vmul.f32 %v2317_v38, %v7416_v29  ;;  %v3111_v56 = vpop.xlane.xlu1 %3110 }
0x1153   :  { %v3115_v46 = vmul.f32 %v3111_v56, %v7416_v29 }
0x1154   :  { %v7992_v48 = vsub.f32 %v2313_v52, %v2321_v15  ;;  %v3153_v52 = vperm.slane %v7980_v55, 6 }
0x1155   :  { %v3117_v41 = vsub.f32 %v3107_v21, %v3115_v46 }
0x1156   :  { %v2325_v27 = vmul.f32 %v7992_v48, %v7992_v48 }
0x1157   :  { %v3119_v0 = vmul.f32 %v3117_v41, %v3117_v41 }
0x1158   :  { %v2327_v18 = vsel %vm315_vm2, %v2325_v27, 0.0 }
0x1159   :  { %2328 = vadd.xlane.f32.xlu1 %v2327_v18  ;;  %v3121_v3 = vsel %vm315_vm2, %v3119_v0, 0.0 }
0x116b   :  { %v2282_v31 = vpop.xlane.xlu2 %2281 }
0x116c   :  { %v2284_v20 = vmul.f32 %v2282_v31, %v7416_v29 }
0x116e   :  { %v2286_v50 = vadd.f32 1e-05, %v2284_v20 }
0x1170   :  { %6577 = vrsqrt.f32 %v2286_v50  ;;  %vm2303_vm6 = vweird.f32 %v2286_v50 }
0x1172   :  { %6380 = vrot.lane.b32.xlu1 %v8003_v2, %s7049_s23 }
0x1176   :  { %v6578_v45 = vpop.eup %6577 }
0x1177   :  { %v2298_v63 = vmul.f32 %v6578_v45, %v2286_v50  ;;  %vm2304_vm4 = vweird.f32 %v6578_v45 }
0x1178   :  { %vm2305_vm7 = vmor %vm2303_vm6, %vm2304_vm4 }
0x1179   :  { %v2299_v51 = vmul.f32 %v6578_v45, %v2298_v63 }
0x117b   :  { %v2300_v39 = vmul.f32 0.5, %v2299_v51 }
0x117d   :  { %v2301_v24 = vsub.f32 1.5, %v2300_v39 }
0x117f   :  { %v2302_v26 = vmul.f32 %v6578_v45, %v2301_v24 }
0x1181   :  { %v2306_v47 = vsel %vm2305_vm7, %v6578_v45, %v2302_v26 }
0x1182   :  { %v2308_v22 = vmul.f32 %v2306_v47, %v2274_v14 }
0x1184   :  { %v2311_v6 = vmul.f32 %v2309_v59, %v2308_v22 }
0x1186   :  { %v2314_v58 = vadd.f32 %v2312_v61, %v2311_v6 }
0x1188   :  { %v2318_v53 = vsel %vm315_vm2, %v2314_v58, 0.0 }
0x1189   :  { %2319 = vadd.xlane.f32.xlu2 %v2318_v53 }
0x1191   :  { %3122 = vadd.xlane.f32.xlu2 %v3121_v3 }
0x11bf   :  { %v3114_v11 = vpop.xlane.xlu0 %3113 }
0x11c0   :  { %v3116_v49 = vmul.f32 %v3114_v11, %v7416_v29 }
0x11c2   :  { %v3118_v13 = vsub.f32 %v3108_v57, %v3116_v49 }
0x11c4   :  { %v3120_v32 = vmul.f32 %v3118_v13, %v3118_v13 }
0x11c6   :  { %v3124_v36 = vsel %vm315_vm2, %v3120_v32, 0.0  ;;  %v6727_v32 = vld [vmem:[#allocation7] sm:$0xff] }
0x11c7   :  { %3125 = vadd.xlane.f32.xlu2 %v3124_v36  ;;  %v2359_v36 = vperm.slane %v6727_v32, 2 }
0x11cc   :  { %v2329_v50 = vpop.xlane.xlu1 %2328 }
0x11cd   :  { %v2333_v45 = vmul.f32 %v2329_v50, %v7416_v29 }
0x11cf   :  { %v2335_v63 = vadd.f32 1e-05, %v2333_v45 }
0x11d1   :  { %vm2343_vm3 = vweird.f32 %v2335_v63 }
0x11e4   :  { %v6381_v51 = vpop.permute.xlu1 %6380 }
0x11e5   :  { %v6382_v39 = vunpack.i.l.bf16 %v6381_v51  ;;  %v6383_v24 = vunpack.i.h.bf16 %v6381_v51 }
0x11e7   :  { %3231 = vmatpush.msra.mxu3 %v6382_v39 }
0x11e9   :  { %3232 = vmatpush.msra.mxu3 %v6383_v24 }
0x11fc   :  { %v2320_v5 = vpop.xlane.xlu2 %2319 }
0x11fd   :  { %v2322_v9 = vmul.f32 %v2320_v5, %v7416_v29  ;;  %v2362_v5 = vperm.slane %v6727_v32, 3 }
0x11ff   :  { %v8008_v19 = vsub.f32 %v2314_v58, %v2322_v9  ;;  %v3163_v58 = vperm.slane %v7980_v55, 2 }
0x1201   :  { %v2326_v10 = vmul.f32 %v8008_v19, %v8008_v19  ;;  %3210 = vrot.lane.b32.xlu2 %v3163_v58, %s7049_s23 }
0x1203   :  { %v2330_v1 = vsel %vm315_vm2, %v2326_v10, 0.0 }
0x1204   :  { %2331 = vadd.xlane.f32.xlu0 %v2330_v1  ;;  %v3123_v54 = vpop.xlane.xlu2 %3122 }
0x1205   :  { %v3127_v23 = vmul.f32 %v3123_v54, %v7416_v29 }
0x1207   :  { %v3129_v59 = vadd.f32 1e-05, %v3127_v23 }
0x1209   :  { %6579 = vrsqrt.f32 %v3129_v59  ;;  %vm3137_vm9 = vweird.f32 %v3129_v59 }
0x120f   :  { %v6580_v42 = vpop.eup %6579 }
0x1210   :  { %v3132_v60 = vmul.f32 %v6580_v42, %v3129_v59  ;;  %vm3138_vm8 = vweird.f32 %v6580_v42 }
0x1211   :  { %vm3139_vm13 = vmor %vm3137_vm9, %vm3138_vm8 }
0x1212   :  { %v3133_v17 = vmul.f32 %v6580_v42, %v3132_v60 }
0x1214   :  { %v3134_v61 = vmul.f32 0.5, %v3133_v17 }
0x1216   :  { %v3135_v35 = vsub.f32 1.5, %v3134_v61 }
0x1218   :  { %v3136_v33 = vmul.f32 %v6580_v42, %v3135_v35  ;;  %6385 = vrot.lane.b32.xlu0 %v8014_v8, %s7049_s23 }
0x121a   :  { %v3140_v21 = vsel %vm3139_vm13, %v6580_v42, %v3136_v33 }
0x121b   :  { %v3151_v25 = vmul.f32 %v3140_v21, %v3117_v41 }
0x121d   :  { %v3154_v16 = vmul.f32 %v3153_v52, %v3151_v25 }
0x121f   :  { %v8020_v43 = vadd.f32 %v3156_v62, %v3154_v16 }
0x1221   :  { %6200 = vmatmul.msk.f32.vlgmr.msra.gmra.mxu1 %vm315_vm2, %v8020_v43 }
0x123a   :  { %v3126_v14 = vpop.xlane.xlu2 %3125 }
0x123b   :  { %v3128_v37 = vmul.f32 %v3126_v14, %v7416_v29 }
0x123d   :  { %v3130_v12 = vadd.f32 1e-05, %v3128_v37 }
0x123f   :  { %6581 = vrsqrt.f32 %v3130_v12  ;;  %vm3147_vm15 = vweird.f32 %v3130_v12 }
0x1240   :  { %6583 = vrsqrt.f32 %v2335_v63 }
0x1245   :  { %v6582_v44 = vpop.eup %6581 }
0x1246   :  { %v3142_v30 = vmul.f32 %v6582_v44, %v3130_v12  ;;  %vm3148_vm14 = vweird.f32 %v6582_v44  ;;  %v6584_v26 = vpop.eup %6583 }
0x1247   :  { %vm3149_vm0 = vmor %vm3147_vm15, %vm3148_vm14  ;;  %v2338_v56 = vmul.f32 %v6584_v26, %v2335_v63  ;;  %vm2344_vm1 = vweird.f32 %v6584_v26 }
0x1248   :  { %v3143_v57 = vmul.f32 %v6582_v44, %v3142_v30  ;;  %vm2345_vm4 = vmor %vm2343_vm3, %vm2344_vm1 }
0x1249   :  { %v2339_v47 = vmul.f32 %v6584_v26, %v2338_v56 }
0x124a   :  { %v3144_v28 = vmul.f32 0.5, %v3143_v57 }
0x124b   :  { %v2340_v22 = vmul.f32 0.5, %v2339_v47 }
0x124c   :  { %v3145_v38 = vsub.f32 1.5, %v3144_v28 }
0x124d   :  { %v2341_v53 = vsub.f32 1.5, %v2340_v22 }
0x124e   :  { %v3146_v15 = vmul.f32 %v6582_v44, %v3145_v38 }
0x124f   :  { %v2342_v0 = vmul.f32 %v6584_v26, %v2341_v53 }
0x1250   :  { %v3150_v27 = vsel %vm3149_vm0, %v6582_v44, %v3146_v15 }
0x1251   :  { %v3152_v18 = vmul.f32 %v3150_v27, %v3118_v13  ;;  %v2346_v11 = vsel %vm2345_vm4, %v6584_v26, %v2342_v0 }
0x1252   :  { %v2357_v34 = vmul.f32 %v2346_v11, %v7992_v48 }
0x1253   :  { %v3155_v31 = vmul.f32 %v3153_v52, %v3152_v18 }
0x1254   :  { %v2360_v55 = vmul.f32 %v2359_v36, %v2357_v34 }
0x1255   :  { %v8025_v20 = vadd.f32 %v3156_v62, %v3155_v31 }
0x1256   :  { %v8034_v23 = vadd.f32 %v2362_v5, %v2360_v55 }
0x1257   :  { %6201 = vmatmul.msk.f32.gmra.mxu1 %vm315_vm2, %v8025_v20 }
0x1277   :  { %v2332_v46 = vpop.xlane.xlu0 %2331 }
0x1278   :  { %v2334_v6 = vmul.f32 %v2332_v46, %v7416_v29 }
0x127a   :  { %v2336_v41 = vadd.f32 1e-05, %v2334_v6 }
0x127c   :  { %6585 = vrsqrt.f32 %v2336_v41  ;;  %vm2353_vm7 = vweird.f32 %v2336_v41 }
0x1282   :  { %v6586_v3 = vpop.eup %6585 }
0x1283   :  { %v2348_v49 = vmul.f32 %v6586_v3, %v2336_v41  ;;  %vm2354_vm6 = vweird.f32 %v6586_v3 }
0x1284   :  { %vm2355_vm8 = vmor %vm2353_vm7, %vm2354_vm6 }
0x1285   :  { %v2349_v13 = vmul.f32 %v6586_v3, %v2348_v49 }
0x1287   :  { %v2350_v7 = vmul.f32 0.5, %v2349_v13 }
0x1289   :  { %v2351_v40 = vsub.f32 1.5, %v2350_v7 }
0x128a   :  { %v6386_v4 = vpop.permute.xlu0 %6385 }
0x128b   :  { %v2352_v9 = vmul.f32 %v6586_v3, %v2351_v40  ;;  %v6387_v10 = vunpack.i.l.bf16 %v6386_v4  ;;  %v6388_v1 = vunpack.i.h.bf16 %v6386_v4 }
0x128d   :  { %3233 = vmatpush.msra.mxu3 %v6387_v10  ;;  %v2356_v54 = vsel %vm2355_vm8, %v6586_v3, %v2352_v9 }
0x128e   :  { %v2358_v59 = vmul.f32 %v2356_v54, %v8008_v19  ;;  %v3211_v19 = vpop.permute.xlu2 %3210 }
0x128f   :  { %3234 = vmatpush.msra.mxu3 %v6388_v1 }
0x1290   :  { %6202 = vmatmul.msk.f32.vlgmr.msra.gmra.mxu3 %vm315_vm2, %v8034_v23  ;;  %v2361_v48 = vmul.f32 %v2359_v36, %v2358_v59 }
0x1292   :  { %v8039_v42 = vadd.f32 %v2362_v5, %v2361_v48 }
0x1298   :  { %6203 = vmatmul.msk.f32.gmra.mxu3 %vm315_vm2, %v8039_v42 }
0x129e   :  { %v3187_v60 = vpop.f32.mrf.mxu1 }
0x129f   :  { %v3188_v17 = vadd.f32 %v3187_v60, %v3163_v58 }
0x12a1   :  { %3296 = vrot.lane.b32.xlu2 %v3188_v17, %s7050_s24  ;;  %3268 = vrot.lane.b32.xlu0 %v3188_v17, %s7048_s22 }
0x12d4   :  { %v3190_v61 = vpop.f32.mrf.mxu1 }
0x12d5   :  { %v3191_v35 = vadd.f32 %v3190_v61, %v3163_v58 }
0x12d7   :  { %3378 = vrot.lane.b32.xlu2 %v3191_v35, %s7048_s22 }
0x12df   :  { %3406 = vrot.lane.b32.xlu2 %v3191_v35, %s7050_s24 }
0x12fb   :  { %v3297_v44 = vpop.permute.xlu2 %3296 }
0x1313   :  { %v3236_v33 = vpop.f32.mrf.mxu3  ;;  %v3269_v62 = vpop.permute.xlu0 %3268 }
0x1314   :  { %v8047_v52 = vadd.f32 %v3236_v33, %v3211_v19 }
0x1316   :  { %3326 = vrot.lane.b32.xlu0 %v8047_v52, %s7053_s4  ;;  %3270 = vrot.lane.b32.xlu1 %v8047_v52, %s7048_s22 }
0x1317   :  { %6204 = vmatpush.xpose.msk.msra.mxu2 %vm348_vm5, %v8047_v52 }
0x131a   :  { %6205 = vmatmul.msk.f32.vlgmr.msra.gmra.mxu2 %vm348_vm5, %v3188_v17 }
0x131b   :  { %v3239_v21 = vpop.f32.mrf.mxu3 }
0x131c   :  { %v8056_v25 = vadd.f32 %v3239_v21, %v3211_v19 }
0x131e   :  { %6212 = vmatpush.xpose.msk.msrb.mxu3 %vm348_vm5, %v8056_v25  ;;  %3324 = vrot.lane.b32.xlu0 %v3188_v17, %s7053_s4 }
0x131f   :  { %3298 = vrot.lane.b32.xlu1 %v8047_v52, %s7050_s24 }
0x1321   :  { %6213 = vmatmul.msk.f32.vlgmr.msrb.gmra.mxu3 %vm348_vm5, %v3191_v35 }
0x1326   :  { %3436 = vrot.lane.b32.xlu0 %v8056_v25, %s7053_s4 }
0x1327   :  { %3380 = vrot.lane.b32.xlu1 %v8056_v25, %s7048_s22 }
0x132f   :  { %3408 = vrot.lane.b32.xlu1 %v8056_v25, %s7050_s24 }
0x1331   :  { %v3379_v28 = vpop.permute.xlu2 %3378 }
0x1337   :  { %3434 = vrot.lane.b32.xlu1 %v3191_v35, %s7053_s4 }
0x1339   :  { %v3407_v15 = vpop.permute.xlu2 %3406 }
0x1388   :  { %v3327_v16 = vpop.permute.xlu0 %3326  ;;  %v3271_v14 = vpop.permute.xlu1 %3270 }
0x1389   :  { %6206 = vmatpush.xpose.msk.msrb.mxu2 %vm348_vm5, %v3271_v14  ;;  %6210 = vmatpush.xpose.msk.msrb.mxu1 %vm348_vm5, %v3327_v16  ;;  %v6389_v14 = vpack.i.bf16 %v8056_v25, %v8047_v52 }
0x138c   :  { %6207 = vmatmul.msk.f32.vlgmr.msrb.gmra.mxu2 %vm348_vm5, %v3269_v62 }
0x1390   :  { %v3325_v37 = vpop.permute.xlu0 %3324 }
0x1391   :  { %v3299_v12 = vpop.permute.xlu1 %3298  ;;  %6211 = vmatmul.msk.f32.vlgmr.msrb.gmra.mxu1 %vm348_vm5, %v3325_v37 }
0x1392   :  { %6208 = vmatpush.xpose.msk.msra.mxu0 %vm348_vm5, %v3299_v12 }
0x1395   :  { %6209 = vmatmul.msk.f32.vlgmr.msra.gmra.mxu0 %vm348_vm5, %v3297_v44 }
0x1398   :  { %v3437_v30 = vpop.permute.xlu0 %3436 }
0x1399   :  { %v3381_v57 = vpop.permute.xlu1 %3380  ;;  %6218 = vmatpush.xpose.msk.msra.mxu1 %vm348_vm5, %v3437_v30 }
0x139a   :  { %6214 = vmatpush.xpose.msk.msra.mxu2 %vm348_vm5, %v3381_v57 }
0x139d   :  { %6215 = vmatmul.msk.f32.vlgmr.msra.gmra.mxu2 %vm348_vm5, %v3379_v28  ;;  %v3265_v18 = vpop.f32.mrf.mxu2 }
0x139e   :  { %v3462_v53 = vmul.f32 0.35355338, %v3265_v18 }
0x13a0   :  { %v3470_v13 = vsel %vm348_vm5, %v3462_v53, -inf }
0x13a1   :  { %v3409_v38 = vpop.permute.xlu1 %3408 }
0x13a2   :  { %6216 = vmatpush.xpose.msk.msrb.mxu0 %vm348_vm5, %v3409_v38 }
0x13a4   :  { %v3375_v49 = vpop.f32.mrf.mxu3 }
0x13a5   :  { %6217 = vmatmul.msk.f32.vlgmr.msrb.gmra.mxu0 %vm348_vm5, %v3407_v15  ;;  %v8093_v32 = vmul.f32 0.35355338, %v3375_v49 }
0x13a7   :  { %v3482_v36 = vsel %vm348_vm5, %v8093_v32, -inf }
0x13a9   :  { %v3435_v27 = vpop.permute.xlu1 %3434 }
0x13aa   :  { %6219 = vmatmul.msk.f32.vlgmr.msra.gmra.mxu1 %vm348_vm5, %v3435_v27 }
0x140e   :  { %v3349_v31 = vpop.f32.mrf.mxu1 }
0x140f   :  { %v3465_v50 = vmul.f32 0.35355338, %v3349_v31  ;;  %v3293_v45 = vpop.f32.mrf.mxu2 }
0x1410   :  { %v3463_v63 = vmul.f32 0.35355338, %v3293_v45 }
0x1411   :  { %v3479_v51 = vsel %vm348_vm5, %v3465_v50, -inf }
0x1412   :  { %v3321_v39 = vpop.f32.mrf.mxu0  ;;  %3480 = vmax.xlane.f32.xlu1 %v3479_v51  ;;  %v3473_v24 = vsel %vm348_vm5, %v3463_v63, -inf }
0x1413   :  { %v3464_v26 = vmul.f32 0.35355338, %v3321_v39  ;;  %3474 = vmax.xlane.f32.xlu0 %v3473_v24 }
0x1415   :  { %v3476_v56 = vsel %vm348_vm5, %v3464_v26, -inf }
0x1416   :  { %3477 = vmax.xlane.f32.xlu2 %v3476_v56 }
0x1420   :  { %v3403_v47 = vpop.f32.mrf.mxu2 }
0x1421   :  { %v3467_v22 = vmul.f32 0.35355338, %v3403_v47 }
0x1422   :  { %v3431_v46 = vpop.f32.mrf.mxu0 }
0x1423   :  { %v8086_v6 = vmul.f32 0.35355338, %v3431_v46  ;;  %v3485_v58 = vsel %vm348_vm5, %v3467_v22, -inf }
0x1424   :  { %3486 = vmax.xlane.f32.xlu0 %v3485_v58 }
0x1425   :  { %v3488_v41 = vsel %vm348_vm5, %v8086_v6, -inf }
0x1426   :  { %3489 = vmax.xlane.f32.xlu2 %v3488_v41 }
0x1427   :  { %v3459_v0 = vpop.f32.mrf.mxu1 }
0x1428   :  { %v3469_v3 = vmul.f32 0.35355338, %v3459_v0 }
0x142a   :  { %v3491_v11 = vsel %vm348_vm5, %v3469_v3, -inf }
0x142b   :  { %3492 = vmax.xlane.f32.xlu1 %v3491_v11 }
0x142c   :  { %3471 = vmax.xlane.f32.xlu0 %v3470_v13 }
0x1433   :  { %3483 = vmax.xlane.f32.xlu1 %v3482_v36 }
0x144c   :  { %3740 = vrot.lane.b32.xlu1 %v8047_v52, %s7047_s1 }
0x1454   :  { %3859 = vrot.lane.b32.xlu1 %v8056_v25, %s7047_s1 }
0x1485   :  { %v3481_v34 = vpop.xlane.xlu1 %3480 }
0x1486   :  { %v3475_v7 = vpop.xlane.xlu0 %3474  ;;  %v3497_v55 = vsub.f32 %v3465_v50, %v3481_v34 }
0x1487   :  { %v3495_v40 = vsub.f32 %v3463_v63, %v3475_v7 }
0x1488   :  { %v3508_v1 = vmul.f32 1.442695, %v3497_v55 }
0x1489   :  { %v3504_v4 = vmul.f32 1.442695, %v3495_v40  ;;  %v3478_v5 = vpop.xlane.xlu2 %3477 }
0x148a   :  { %v3496_v9 = vsub.f32 %v3464_v26, %v3478_v5 }
0x148b   :  { %6587 = vpow2.f32 %v3504_v4 }
0x148c   :  { %v3506_v10 = vmul.f32 1.442695, %v3496_v9 }
0x148e   :  { %6589 = vpow2.f32 %v3506_v10 }
0x148f   :  { %6591 = vpow2.f32 %v3508_v1 }
0x1491   :  { %v8101_v54 = vpop.eup %6587 }
0x1492   :  { %v3521_v59 = vsel %vm348_vm5, %v8101_v54, 0.0 }
0x1493   :  { %3522 = vadd.xlane.f32.xlu2 %v3521_v59 }
0x1494   :  { %v8105_v48 = vpop.eup %6589 }
0x1495   :  { %v3524_v60 = vsel %vm348_vm5, %v8105_v48, 0.0  ;;  %v8109_v17 = vpop.eup %6591 }
0x1496   :  { %3525 = vadd.xlane.f32.xlu0 %v3524_v60  ;;  %v3527_v61 = vsel %vm348_vm5, %v8109_v17, 0.0 }
0x1497   :  { %v3487_v35 = vpop.xlane.xlu0 %3486 }
0x1498   :  { %v3499_v21 = vsub.f32 %v3467_v22, %v3487_v35 }
0x1499   :  { %v3490_v31 = vpop.xlane.xlu2 %3489 }
0x149a   :  { %v3512_v16 = vmul.f32 1.442695, %v3499_v21  ;;  %v3500_v50 = vsub.f32 %v8086_v6, %v3490_v31 }
0x149b   :  { %3528 = vadd.xlane.f32.xlu2 %v3527_v61 }
0x149c   :  { %v3514_v45 = vmul.f32 1.442695, %v3500_v50 }
0x149e   :  { %v3493_v19 = vpop.xlane.xlu1 %3492 }
0x149f   :  { %v3501_v33 = vsub.f32 %v3469_v3, %v3493_v19  ;;  %v3472_v38 = vpop.xlane.xlu0 %3471 }
0x14a0   :  { %v3494_v15 = vsub.f32 %v3462_v53, %v3472_v38 }
0x14a1   :  { %v3516_v62 = vmul.f32 1.442695, %v3501_v33 }
0x14a2   :  { %v3502_v27 = vmul.f32 1.442695, %v3494_v15 }
0x14a3   :  { %6593 = vpow2.f32 %v3516_v62 }
0x14a4   :  { %6595 = vpow2.f32 %v3512_v16 }
0x14a5   :  { %6597 = vpow2.f32 %v3502_v27 }
0x14a6   :  { %v3484_v57 = vpop.xlane.xlu1 %3483  ;;  %6599 = vpow2.f32 %v3514_v45 }
0x14a7   :  { %v3498_v56 = vsub.f32 %v8093_v32, %v3484_v57 }
0x14a9   :  { %v8115_v37 = vpop.eup %6593  ;;  %v3510_v6 = vmul.f32 1.442695, %v3498_v56 }
0x14aa   :  { %6390 = vrot.lane.b32.xlu0 %v6389_v14, %s7052_s9  ;;  %v3539_v12 = vsel %vm348_vm5, %v8115_v37, 0.0  ;;  %v8120_v44 = vpop.eup %6595 }
0x14ab   :  { %3540 = vadd.xlane.f32.xlu1 %v3539_v12  ;;  %v3533_v30 = vsel %vm348_vm5, %v8120_v44, 0.0  ;;  %v8129_v63 = vpop.eup %6597 }
0x14ac   :  { %v3518_v51 = vsel %vm348_vm5, %v8129_v63, 0.0  ;;  %v8135_v39 = vpop.eup %6599 }
0x14ad   :  { %v3536_v24 = vsel %vm348_vm5, %v8135_v39, 0.0 }
0x14b3   :  { %3534 = vadd.xlane.f32.xlu1 %v3533_v30  ;;  %3714 = vrot.lane.b32.xlu2 %v8047_v52, %s7051_s7 }
0x14be   :  { %v3741_v28 = vpop.permute.xlu1 %3740 }
0x14bf   :  { %3761 = vmatpush.msrb.mxu1 %v3741_v28 }
0x14c6   :  { %v3860_v18 = vpop.permute.xlu1 %3859 }
0x14c7   :  { %3880 = vmatpush.msra.mxu1 %v3860_v18 }
0x14cc   :  { %3662 = vrot.lane.b32.xlu1 %v8047_v52, %s7049_s23 }
0x14d4   :  { %3781 = vrot.lane.b32.xlu1 %v8056_v25, %s7049_s23  ;;  %3519 = vadd.xlane.f32.xlu0 %v3518_v51 }
0x14dc   :  { %3537 = vadd.xlane.f32.xlu2 %v3536_v24  ;;  %6400 = vrot.lane.b32.xlu1 %v8014_v8, %s7058_s11 }
0x14e8   :  { %6395 = vrot.lane.b32.xlu0 %v8003_v2, %s7058_s11 }
0x14f4   :  { %3833 = vrot.lane.b32.xlu2 %v8056_v25, %s7051_s7 }
0x1506   :  { %v3523_v52 = vpop.xlane.xlu2 %3522 }
0x1507   :  { %6601 = vrcp.f32 %v3523_v52  ;;  %v3565_v25 = vand.u32 2147483647, %v3523_v52  ;;  %v3567_v36 = vand.u32 2147483648, %v3523_v52  ;;  %vm3561_vm14 = vweird.f32 %v3523_v52 }
0x1509   :  { %v3526_v26 = vpop.xlane.xlu0 %3525  ;;  %vm3566_vm1 = vcmp.eq.f32.partialorder %v3565_v25, 8.507059e+37  ;;  %v3568_v59 = vor.u32 1.1754944e-38, %v3567_v36 }
0x150a   :  { %6603 = vrcp.f32 %v3526_v26  ;;  %v3581_v49 = vand.u32 2147483648, %v3526_v26  ;;  %v3579_v32 = vand.u32 2147483647, %v3526_v26  ;;  %vm3575_vm0 = vweird.f32 %v3526_v26 }
0x150c   :  { %v3582_v9 = vor.u32 1.1754944e-38, %v3581_v49  ;;  %vm3580_vm4 = vcmp.eq.f32.partialorder %v3579_v32, 8.507059e+37 }
0x150d   :  { %v6602_v47 = vpop.eup %6601 }
0x150e   :  { %v3557_v22 = vmul.f32 %v6602_v47, %v3523_v52  ;;  %v3529_v46 = vpop.xlane.xlu2 %3528  ;;  %vm3562_vm9 = vweird.f32 %v6602_v47 }
0x150f   :  { %6605 = vrcp.f32 %v3529_v46  ;;  %vm8142_vm15 = vmor %vm3561_vm14, %vm3562_vm9  ;;  %v3595_v61 = vand.u32 2147483648, %v3529_v46  ;;  %v3593_v33 = vand.u32 2147483647, %v3529_v46  ;;  %vm3589_vm7 = vweird.f32 %v3529_v46 }
0x1510   :  { %v6604_v58 = vpop.eup %6603  ;;  %v3558_v41 = vsub.f32 1.0, %v3557_v22  ;;  %6607 = vpow2.f32 %v3510_v6 }
0x1511   :  { %v3571_v53 = vmul.f32 %v6604_v58, %v3526_v26  ;;  %vm3576_vm13 = vweird.f32 %v6604_v58  ;;  %v3596_v30 = vor.u32 1.1754944e-38, %v3595_v61  ;;  %vm3594_vm9 = vcmp.eq.f32.partialorder %v3593_v33, 8.507059e+37 }
0x1512   :  { %v3559_v0 = vmul.f32 %v6602_v47, %v3558_v41  ;;  %vm3577_vm3 = vmor %vm3575_vm0, %vm3576_vm13 }
0x1513   :  { %v3572_v3 = vsub.f32 1.0, %v3571_v53 }
0x1514   :  { %v3560_v11 = vadd.f32 %v6602_v47, %v3559_v0 }
0x1515   :  { %v6606_v13 = vpop.eup %6605  ;;  %v3573_v34 = vmul.f32 %v6604_v58, %v3572_v3 }
0x1516   :  { %v3585_v7 = vmul.f32 %v6606_v13, %v3529_v46  ;;  %v3715_v40 = vpop.permute.xlu2 %3714  ;;  %v3564_v5 = vsel %vm8142_vm15, %v6602_v47, %v3560_v11  ;;  %v8148_v1 = vpop.eup %6607  ;;  %vm3590_vm6 = vweird.f32 %v6606_v13 }
0x1517   :  { %v3574_v4 = vadd.f32 %v6604_v58, %v3573_v34  ;;  %3735 = vmatpush.msra.mxu0 %v3715_v40  ;;  %v3569_v21 = vsel %vm3566_vm1, %v3568_v59, %v3564_v5  ;;  %v3530_v12 = vsel %vm348_vm5, %v8148_v1, 0.0  ;;  %vm3591_vm8 = vmor %vm3589_vm7, %vm3590_vm6 }
0x1518   :  { %v3586_v10 = vsub.f32 1.0, %v3585_v7  ;;  %v3655_v27 = vmul.f32 %v8101_v54, %v3569_v21 }
0x1519   :  { %v3578_v60 = vsel %vm3577_vm3, %v6604_v58, %v3574_v4 }
0x151a   :  { %v3583_v35 = vsel %vm3580_vm4, %v3582_v9, %v3578_v60  ;;  %v3587_v19 = vmul.f32 %v6606_v13, %v3586_v10 }
0x151b   :  { %v3656_v62 = vmul.f32 %v8105_v48, %v3583_v35 }
0x151c   :  { %v3588_v16 = vadd.f32 %v6606_v13, %v3587_v19  ;;  %v6391_v14 = vpop.permute.xlu0 %6390 }
0x151d   :  { %v6393_v57 = vunpack.i.h.bf16 %v6391_v14  ;;  %v6392_v28 = vunpack.i.l.bf16 %v6391_v14  ;;  %6222 = vmatmul.msk.f32.vlgmr.msra.gmra.mxu0 %vm348_vm5, %v3656_v62  ;;  %3531 = vadd.xlane.f32.xlu2 %v3530_v12 }
0x151e   :  { %v3592_v38 = vsel %vm3591_vm8, %v6606_v13, %v3588_v16  ;;  %v3541_v15 = vpop.xlane.xlu1 %3540 }
0x151f   :  { %v3597_v18 = vsel %vm3594_vm9, %v3596_v30, %v3592_v38  ;;  %6609 = vrcp.f32 %v3541_v15  ;;  %3709 = vmatpush.msrb.mxu2 %v6392_v28  ;;  %v3651_v24 = vand.u32 2147483648, %v3541_v15  ;;  %v3649_v26 = vand.u32 2147483647, %v3541_v15 }
0x1520   :  { %6221 = vmatmul.msk.f32.vlgmr.msrb.gmra.mxu2 %vm348_vm5, %v3655_v27  ;;  %v3657_v48 = vmul.f32 %v8109_v17, %v3597_v18  ;;  %vm3645_vm14 = vweird.f32 %v3541_v15 }
0x1521   :  { %3828 = vmatpush.msra.mxu2 %v6393_v57  ;;  %v3652_v47 = vor.u32 1.1754944e-38, %v3651_v24  ;;  %vm3650_vm0 = vcmp.eq.f32.partialorder %v3649_v26, 8.507059e+37 }
0x1522   :  { %6223 = vmatmul.msk.f32.vlgmr.msrb.gmra.mxu1 %vm348_vm5, %v3657_v48 }
0x1525   :  { %v6610_v31 = vpop.eup %6609 }
0x1526   :  { %v3641_v50 = vmul.f32 %v6610_v31, %v3541_v15  ;;  %v3535_v45 = vpop.xlane.xlu1 %3534  ;;  %vm3646_vm13 = vweird.f32 %v6610_v31 }
0x1527   :  { %6611 = vrcp.f32 %v3535_v45  ;;  %vm3647_vm15 = vmor %vm3645_vm14, %vm3646_vm13  ;;  %v3623_v41 = vand.u32 2147483648, %v3535_v45  ;;  %v3621_v0 = vand.u32 2147483647, %v3535_v45  ;;  %vm3617_vm3 = vweird.f32 %v3535_v45 }
0x1528   :  { %v3642_v51 = vsub.f32 1.0, %v3641_v50 }
0x1529   :  { %v3624_v11 = vor.u32 1.1754944e-38, %v3623_v41  ;;  %vm3622_vm6 = vcmp.eq.f32.partialorder %v3621_v0, 8.507059e+37 }
0x152a   :  { %v3643_v52 = vmul.f32 %v6610_v31, %v3642_v51 }
0x152c   :  { %v3644_v54 = vadd.f32 %v6610_v31, %v3643_v52 }
0x152d   :  { %v6612_v56 = vpop.eup %6611 }
0x152e   :  { %v3648_v22 = vsel %vm3647_vm15, %v6610_v31, %v3644_v54  ;;  %v3613_v17 = vmul.f32 %v6612_v56, %v3535_v45  ;;  %vm3618_vm1 = vweird.f32 %v6612_v56 }
0x152f   :  { %v3653_v46 = vsel %vm3650_vm0, %v3652_v47, %v3648_v22  ;;  %vm3619_vm4 = vmor %vm3617_vm3, %vm3618_vm1 }
0x1530   :  { %v3614_v6 = vsub.f32 1.0, %v3613_v17  ;;  %v3661_v58 = vmul.f32 %v8115_v37, %v3653_v46 }
0x1532   :  { %v3615_v53 = vmul.f32 %v6612_v56, %v3614_v6  ;;  %6227 = vmatmul.msk.f32.vlgmr.msra.gmra.mxu1 %vm348_vm5, %v3661_v58 }
0x1534   :  { %v3616_v3 = vadd.f32 %v6612_v56, %v3615_v53 }
0x1536   :  { %v3620_v25 = vsel %vm3619_vm4, %v6612_v56, %v3616_v3 }
0x1537   :  { %v3625_v49 = vsel %vm3622_vm6, %v3624_v11, %v3620_v25 }
0x1538   :  { %v3659_v13 = vmul.f32 %v8120_v44, %v3625_v49 }
0x153a   :  { %6225 = vmatmul.msk.f32.vlgmr.msra.gmra.mxu2 %vm348_vm5, %v3659_v13 }
0x153e   :  { %v3663_v36 = vpop.permute.xlu1 %3662 }
0x153f   :  { %3683 = vmatpush.msra.mxu3 %v3663_v36 }
0x1546   :  { %v3782_v37 = vpop.permute.xlu1 %3781 }
0x1547   :  { %3802 = vmatpush.msrb.mxu3 %v3782_v37  ;;  %v3520_v34 = vpop.xlane.xlu0 %3519 }
0x1548   :  { %6613 = vrcp.f32 %v3520_v34  ;;  %v3553_v4 = vand.u32 2147483648, %v3520_v34  ;;  %v3551_v9 = vand.u32 2147483647, %v3520_v34  ;;  %vm3547_vm8 = vweird.f32 %v3520_v34 }
0x154a   :  { %v3554_v59 = vor.u32 1.1754944e-38, %v3553_v4  ;;  %vm3552_vm13 = vcmp.eq.f32.partialorder %v3551_v9, 8.507059e+37 }
0x154e   :  { %v6614_v32 = vpop.eup %6613  ;;  %v6401_v46 = vpop.permute.xlu1 %6400 }
0x154f   :  { %v3543_v7 = vmul.f32 %v6614_v32, %v3520_v34  ;;  %v3538_v40 = vpop.xlane.xlu2 %3537  ;;  %vm3548_vm7 = vweird.f32 %v6614_v32  ;;  %v6402_v6 = vunpack.i.l.bf16 %v6401_v46  ;;  %v6403_v58 = vunpack.i.h.bf16 %v6401_v46 }
0x1550   :  { %6615 = vrcp.f32 %v3538_v40  ;;  %vm3549_vm9 = vmor %vm3547_vm8, %vm3548_vm7  ;;  %v3637_v62 = vand.u32 2147483648, %v3538_v40  ;;  %v3635_v14 = vand.u32 2147483647, %v3538_v40  ;;  %vm3631_vm15 = vweird.f32 %v3538_v40 }
0x1551   :  { %v3544_v55 = vsub.f32 1.0, %v3543_v7 }
0x1552   :  { %v3638_v30 = vor.u32 1.1754944e-38, %v3637_v62  ;;  %vm3636_vm1 = vcmp.eq.f32.partialorder %v3635_v14, 8.507059e+37 }
0x1553   :  { %v3545_v5 = vmul.f32 %v6614_v32, %v3544_v55  ;;  %v8186_v55 = vld [vmem:[#allocation19] sm:$0xff] }
0x1554   :  { %v3900_v4 = vperm.slane %v8186_v55, 3 }
0x1555   :  { %v3546_v10 = vadd.f32 %v6614_v32, %v3545_v5 }
0x1556   :  { %v6616_v44 = vpop.eup %6615 }
0x1557   :  { %v3550_v60 = vsel %vm3549_vm9, %v6614_v32, %v3546_v10  ;;  %v3627_v61 = vmul.f32 %v6616_v44, %v3538_v40  ;;  %v3834_v35 = vpop.permute.xlu2 %3833  ;;  %vm3632_vm14 = vweird.f32 %v6616_v44 }
0x1558   :  { %v3555_v19 = vsel %vm3552_vm13, %v3554_v59, %v3550_v60  ;;  %3854 = vmatpush.msrb.mxu0 %v3834_v35  ;;  %vm3633_vm0 = vmor %vm3631_vm15, %vm3632_vm14 }
0x1559   :  { %v3628_v33 = vsub.f32 1.0, %v3627_v61  ;;  %v3654_v21 = vmul.f32 %v8129_v63, %v3555_v19 }
0x155a   :  { %v6396_v22 = vpop.permute.xlu0 %6395 }
0x155b   :  { %v3629_v16 = vmul.f32 %v6616_v44, %v3628_v33  ;;  %6220 = vmatmul.msk.f32.vlgmr.msra.gmra.mxu3 %vm348_vm5, %v3654_v21  ;;  %v6398_v17 = vunpack.i.h.bf16 %v6396_v22 }
0x155d   :  { %v3630_v12 = vadd.f32 %v6616_v44, %v3629_v16 }
0x155f   :  { %v3634_v57 = vsel %vm3633_vm0, %v6616_v44, %v3630_v12 }
0x1560   :  { %v3639_v28 = vsel %vm3636_vm1, %v3638_v30, %v3634_v57 }
0x1561   :  { %v3660_v38 = vmul.f32 %v8135_v39, %v3639_v28  ;;  %v3996_v28 = vld [vmem:[%s8727_s12 + $0x10] sm:$0xff] }
0x1563   :  { %6226 = vmatmul.msk.f32.vlgmr.msrb.gmra.mxu0 %vm348_vm5, %v3660_v38  ;;  %v3995_v38 = vld [vmem:[%s8727_s12 + $0x8] sm:$0xff] }
0x1590   :  { %v3532_v63 = vpop.xlane.xlu2 %3531 }
0x1591   :  { %6617 = vrcp.f32 %v3532_v63  ;;  %v3609_v48 = vand.u32 2147483648, %v3532_v63  ;;  %v3607_v50 = vand.u32 2147483647, %v3532_v63  ;;  %vm3603_vm4 = vweird.f32 %v3532_v63 }
0x1593   :  { %v3610_v39 = vor.u32 1.1754944e-38, %v3609_v48  ;;  %vm3608_vm7 = vcmp.eq.f32.partialorder %v3607_v50, 8.507059e+37 }
0x1597   :  { %v6618_v15 = vpop.eup %6617 }
0x1598   :  { %v3599_v27 = vmul.f32 %v6618_v15, %v3532_v63  ;;  %vm3604_vm3 = vweird.f32 %v6618_v15  ;;  %v3994_v63 = vld [vmem:[%s8727_s12] sm:$0xff] }
0x1599   :  { %vm3605_vm6 = vmor %vm3603_vm4, %vm3604_vm3 }
0x159a   :  { %v3600_v18 = vsub.f32 1.0, %v3599_v27  ;;  %v3737_v26 = vpop.f32.mrf.mxu0 }
0x159c   :  { %v3601_v31 = vmul.f32 %v6618_v15, %v3600_v18 }
0x159e   :  { %v3602_v45 = vadd.f32 %v6618_v15, %v3601_v31 }
0x159f   :  { %v3763_v51 = vpop.f32.mrf.mxu1 }
0x15a0   :  { %v3606_v24 = vsel %vm3605_vm6, %v6618_v15, %v3602_v45  ;;  %3775 = vrot.lane.b32.xlu0 %v3763_v51, %s7060_s10 }
0x15a1   :  { %v3611_v2 = vsel %vm3608_vm7, %v3610_v39, %v3606_v24  ;;  %v8210_v39 = vld [vmem:[#allocation19 + $0x8] sm:$0xf] }
0x15a2   :  { %v3658_v8 = vmul.f32 %v8148_v1, %v3611_v2  ;;  %v6397_v1 = vunpack.i.l.bf16 %v6396_v22  ;;  %v3988_v2 = vperm.slane %v8210_v39, 0 }
0x15a3   :  { %v3711_v52 = vpop.f32.mrf.mxu2 }
0x15a4   :  { %3767 = vrot.lane.b32.xlu1 %v3711_v52, %s7037_s5  ;;  %6224 = vmatmul.msk.f32.vlgmr.msrb.gmra.mxu3 %vm348_vm5, %v3658_v8 }
0x15a5   :  { %3931 = vmatpush.msra.mxu3 %v6397_v1 }
0x15a7   :  { %3932 = vmatpush.msra.mxu3 %v6398_v17 }
0x15a9   :  { %3933 = vmatpush.msra.mxu3 %v6402_v6 }
0x15ab   :  { %3934 = vmatpush.msra.mxu3 %v6403_v58 }
0x15ac   :  { %3771 = vrot.lane.b32.xlu1 %v3737_v26, %s7059_s30  ;;  %v3991_v26 = vperm.slane %v8210_v39, 1 }
0x15af   :  { %v3882_v54 = vpop.f32.mrf.mxu1 }
0x15b0   :  { %3894 = vrot.lane.b32.xlu0 %v3882_v54, %s7060_s10 }
0x15bd   :  { %v3830_v56 = vpop.f32.mrf.mxu2 }
0x15be   :  { %3886 = vrot.lane.b32.xlu2 %v3830_v56, %s7037_s5 }
0x15de   :  { %v3685_v53 = vpop.f32.mrf.mxu3 }
0x15e0   :  { %v3856_v47 = vpop.f32.mrf.mxu0 }
0x15e1   :  { %3890 = vrot.lane.b32.xlu1 %v3856_v47, %s7059_s30 }
0x1612   :  { %v3776_v11 = vpop.permute.xlu0 %3775 }
0x1616   :  { %v3768_v41 = vpop.permute.xlu1 %3767 }
0x1617   :  { %v3778_v0 = vsel %vm348_vm5, %v3685_v53, %v3768_v41 }
0x1618   :  { %v3887_v36 = vpop.permute.xlu2 %3886 }
0x161e   :  { %v3772_v3 = vpop.permute.xlu1 %3771 }
0x161f   :  { %v3779_v25 = vsel %vm885_vm10, %v3778_v0, %v3772_v3 }
0x1620   :  { %v3780_v49 = vsel %vm887_vm11, %v3779_v25, %v3776_v11 }
0x1621   :  { %6228 = vmatmul.msk.f32.vlgmr.msra.gmra.mxu3 %vm315_vm2, %v3780_v49  ;;  %v3998_v49 = vperm.slane %v8186_v55, 4 }
0x1622   :  { %v3895_v32 = vpop.permute.xlu0 %3894 }
0x1627   :  { %v3804_v13 = vpop.f32.mrf.mxu3 }
0x1628   :  { %v3897_v37 = vsel %vm348_vm5, %v3804_v13, %v3887_v36 }
0x1653   :  { %v3891_v34 = vpop.permute.xlu1 %3890 }
0x1654   :  { %v3898_v7 = vsel %vm885_vm10, %v3897_v37, %v3891_v34 }
0x1655   :  { %v3899_v40 = vsel %vm887_vm11, %v3898_v7, %v3895_v32 }
0x1656   :  { %6229 = vmatmul.msk.f32.gmra.mxu3 %vm315_vm2, %v3899_v40  ;;  %v4113_v40 = vld [vmem:[#allocation18 + $0x38] sm:$0xff] }
0x1657   :  { %4129 = vmatpush.msra.mxu0 %v4113_v40 }
0x16a4   :  { %v3936_v5 = vpop.f32.mrf.mxu3 }
0x16a5   :  { %v3937_v9 = vadd.f32 %v3936_v5, %v3900_v4  ;;  %v4111_v5 = vld [vmem:[#allocation18 + $0x28] sm:$0xff] }
0x16a7   :  { %v3942_v10 = vadd.f32 %v3937_v9, %v8020_v43  ;;  %v4110_v9 = vld [vmem:[#allocation18 + $0x20] sm:$0xff] }
0x16a9   :  { %v3944_v44 = vsel %vm315_vm2, %v3942_v10, 0.0 }
0x16aa   :  { %3945 = vadd.xlane.f32.xlu1 %v3944_v44 }
0x16d9   :  { %v3939_v59 = vpop.f32.mrf.mxu3 }
0x16da   :  { %v3940_v60 = vadd.f32 %v3939_v59, %v3900_v4  ;;  %v4112_v4 = vld [vmem:[#allocation18 + $0x30] sm:$0xff]  ;;  %v4109_v59 = vld [vmem:[#allocation18 + $0x18] sm:$0xff] }
0x16db   :  { %4130 = vmatpush.msra.mxu0 %v4112_v4 }
0x16dc   :  { %v3943_v61 = vadd.f32 %v3940_v60, %v8025_v20  ;;  %v3997_v20 = vld [vmem:[%s8727_s12 + $0x18] sm:$0xff] }
0x16dd   :  { %4017 = vmatpush.msrb.mxu2 %v3997_v20  ;;  %4131 = vmatpush.msra.mxu0 %v4111_v5 }
0x16de   :  { %v3947_v35 = vsel %vm315_vm2, %v3943_v61, 0.0 }
0x16df   :  { %3948 = vadd.xlane.f32.xlu0 %v3947_v35  ;;  %4018 = vmatpush.msrb.mxu2 %v3996_v28 }
0x16e0   :  { %4132 = vmatpush.msra.mxu0 %v4110_v9 }
0x16e1   :  { %4019 = vmatpush.msrb.mxu2 %v3995_v38 }
0x16e2   :  { %4133 = vmatpush.msra.mxu0 %v4109_v59 }
0x16e3   :  { %4020 = vmatpush.msrb.mxu2 %v3994_v63 }
0x171d   :  { %v3946_v19 = vpop.xlane.xlu1 %3945 }
0x171e   :  { %v3950_v33 = vmul.f32 %v3946_v19, %v7416_v29 }
0x1720   :  { %v3952_v21 = vsub.f32 %v3942_v10, %v3950_v33 }
0x1722   :  { %v3954_v62 = vmul.f32 %v3952_v21, %v3952_v21 }
0x1724   :  { %v3956_v16 = vsel %vm315_vm2, %v3954_v62, 0.0 }
0x1725   :  { %3957 = vadd.xlane.f32.xlu2 %v3956_v16  ;;  %v4106_v16 = vld [vmem:[#allocation18] sm:$0xff] }
0x1752   :  { %v3949_v14 = vpop.xlane.xlu0 %3948 }
0x1753   :  { %v3951_v43 = vmul.f32 %v3949_v14, %v7416_v29 }
0x1755   :  { %v3953_v12 = vsub.f32 %v3943_v61, %v3951_v43  ;;  %v4108_v61 = vld [vmem:[#allocation18 + $0x10] sm:$0xff] }
0x1756   :  { %4134 = vmatpush.msra.mxu0 %v4108_v61 }
0x1757   :  { %v3955_v30 = vmul.f32 %v3953_v12, %v3953_v12 }
0x1759   :  { %v3959_v57 = vsel %vm315_vm2, %v3955_v30, 0.0 }
0x175a   :  { %3960 = vadd.xlane.f32.xlu1 %v3959_v57 }
0x1798   :  { %v3958_v15 = vpop.xlane.xlu2 %3957 }
0x1799   :  { %v3962_v27 = vmul.f32 %v3958_v15, %v7416_v29 }
0x179b   :  { %v3964_v18 = vadd.f32 1e-05, %v3962_v27 }
0x179d   :  { %6619 = vrsqrt.f32 %v3964_v18  ;;  %vm3972_vm9 = vweird.f32 %v3964_v18 }
0x17a3   :  { %v6620_v48 = vpop.eup %6619 }
0x17a4   :  { %v3967_v31 = vmul.f32 %v6620_v48, %v3964_v18  ;;  %vm3973_vm8 = vweird.f32 %v6620_v48 }
0x17a5   :  { %vm3974_vm13 = vmor %vm3972_vm9, %vm3973_vm8 }
0x17a6   :  { %v3968_v50 = vmul.f32 %v6620_v48, %v3967_v31 }
0x17a8   :  { %v3969_v45 = vmul.f32 0.5, %v3968_v50 }
0x17aa   :  { %v3970_v51 = vsub.f32 1.5, %v3969_v45 }
0x17ac   :  { %v3971_v24 = vmul.f32 %v6620_v48, %v3970_v51 }
0x17ae   :  { %v3975_v8 = vsel %vm3974_vm13, %v6620_v48, %v3971_v24 }
0x17af   :  { %v3986_v52 = vmul.f32 %v3975_v8, %v3952_v21  ;;  %v4107_v21 = vld [vmem:[#allocation18 + $0x8] sm:$0xff] }
0x17b0   :  { %4135 = vmatpush.msra.mxu0 %v4107_v21 }
0x17b1   :  { %v3989_v54 = vmul.f32 %v3988_v2, %v3986_v52 }
0x17b2   :  { %4136 = vmatpush.msra.mxu0 %v4106_v16 }
0x17b3   :  { %v8214_v56 = vadd.f32 %v3991_v26, %v3989_v54 }
0x17b5   :  { %6230 = vmatmul.msk.f32.vlgmr.msrb.gmra.mxu2 %vm315_vm2, %v8214_v56 }
0x17cd   :  { %v3961_v47 = vpop.xlane.xlu1 %3960 }
0x17ce   :  { %v3963_v22 = vmul.f32 %v3961_v47, %v7416_v29 }
0x17d0   :  { %v3965_v17 = vadd.f32 1e-05, %v3963_v22 }
0x17d2   :  { %6621 = vrsqrt.f32 %v3965_v17  ;;  %vm3982_vm15 = vweird.f32 %v3965_v17 }
0x17d8   :  { %v6622_v1 = vpop.eup %6621 }
0x17d9   :  { %v3977_v46 = vmul.f32 %v6622_v1, %v3965_v17  ;;  %vm3983_vm14 = vweird.f32 %v6622_v1 }
0x17da   :  { %vm3984_vm0 = vmor %vm3982_vm15, %vm3983_vm14 }
0x17db   :  { %v3978_v6 = vmul.f32 %v6622_v1, %v3977_v46 }
0x17dd   :  { %v3979_v58 = vmul.f32 0.5, %v3978_v6 }
0x17df   :  { %v3980_v41 = vsub.f32 1.5, %v3979_v58 }
0x17e1   :  { %v3981_v53 = vmul.f32 %v6622_v1, %v3980_v41 }
0x17e3   :  { %v3985_v0 = vsel %vm3984_vm0, %v6622_v1, %v3981_v53 }
0x17e4   :  { %v3987_v3 = vmul.f32 %v3985_v0, %v3953_v12 }
0x17e6   :  { %v3990_v11 = vmul.f32 %v3988_v2, %v3987_v3 }
0x17e8   :  { %v8219_v25 = vadd.f32 %v3991_v26, %v3990_v11 }
0x17ea   :  { %6231 = vmatmul.msk.f32.gmra.mxu2 %vm315_vm2, %v8219_v25 }
0x1838   :  { %v4022_v13 = vpop.f32.mrf.mxu2 }
0x1839   :  { %v4023_v36 = vadd.f32 %v4022_v13, %v3998_v49 }
0x183b   :  { %v4030_v37 = vmul.f32 0.70710677, %v4023_v36  ;;  %v4028_v52 = vmul.f32 0.5, %v4023_v36 }
0x183d   :  { %v4032_v34 = vand.u32 2147483647, %v4030_v37  ;;  %vm4096_vm7 = vcmp.ge.f32.partialorder %v4030_v37, 0.0 }
0x183f   :  { %v4034_v32 = vmul.f32 0.3275911, %v4032_v34  ;;  %v4084_v30 = vsub.f32 0.0, %v4032_v34 }
0x1841   :  { %v4036_v7 = vadd.f32 1.0, %v4034_v32  ;;  %v4086_v28 = vmul.f32 %v4084_v30, %v4032_v34 }
0x1843   :  { %6623 = vrcp.f32 %v4036_v7  ;;  %v4049_v35 = vand.u32 2147483648, %v4036_v7  ;;  %v4047_v33 = vand.u32 2147483647, %v4036_v7  ;;  %vm4043_vm3 = vweird.f32 %v4036_v7 }
0x1844   :  { %v4088_v15 = vmul.f32 1.442695, %v4086_v28 }
0x1845   :  { %v4050_v14 = vor.u32 1.1754944e-38, %v4049_v35  ;;  %vm4048_vm6 = vcmp.eq.f32.partialorder %v4047_v33, 8.507059e+37 }
0x1846   :  { %6625 = vpow2.f32 %v4088_v15 }
0x1849   :  { %v6624_v10 = vpop.eup %6623 }
0x184a   :  { %v4039_v44 = vmul.f32 %v6624_v10, %v4036_v7  ;;  %vm4044_vm1 = vweird.f32 %v6624_v10 }
0x184b   :  { %vm4045_vm4 = vmor %vm4043_vm3, %vm4044_vm1 }
0x184c   :  { %v4040_v60 = vsub.f32 1.0, %v4039_v44  ;;  %v6626_v45 = vpop.eup %6625 }
0x184e   :  { %v4041_v19 = vmul.f32 %v6624_v10, %v4040_v60 }
0x1850   :  { %v4042_v62 = vadd.f32 %v6624_v10, %v4041_v19 }
0x1852   :  { %v4046_v43 = vsel %vm4045_vm4, %v6624_v10, %v4042_v62 }
0x1853   :  { %v4051_v12 = vsel %vm4048_vm6, %v4050_v14, %v4046_v43 }
0x1854   :  { %v4066_v57 = vmul.f32 1.0614054, %v4051_v12 }
0x1856   :  { %v4068_v20 = vadd.f32 -1.4531521, %v4066_v57 }
0x1858   :  { %v4070_v38 = vmul.f32 %v4068_v20, %v4051_v12 }
0x185a   :  { %v4072_v63 = vadd.f32 1.4214138, %v4070_v38 }
0x185c   :  { %v4074_v27 = vmul.f32 %v4072_v63, %v4051_v12 }
0x185e   :  { %v4076_v18 = vadd.f32 -0.28449672, %v4074_v27 }
0x1860   :  { %v4078_v48 = vmul.f32 %v4076_v18, %v4051_v12 }
0x1862   :  { %v4080_v31 = vadd.f32 0.2548296, %v4078_v48 }
0x1864   :  { %v4082_v50 = vmul.f32 %v4080_v31, %v4051_v12  ;;  %v4114_v12 = vperm.slane %v8186_v55, 5 }
0x1866   :  { %v4092_v51 = vmul.f32 %v6626_v45, %v4082_v50 }
0x1868   :  { %v4094_v24 = vsub.f32 1.0, %v4092_v51 }
0x186a   :  { %v4098_v2 = vsub.f32 0.0, %v4094_v24 }
0x186c   :  { %v4100_v8 = vsel %vm4096_vm7, %v4094_v24, %v4098_v2 }
0x186d   :  { %v4102_v26 = vadd.f32 1.0, %v4100_v8  ;;  %v4025_v54 = vpop.f32.mrf.mxu2  ;;  %v8238_v8 = vld [vmem:[#allocation15 + $0x30] sm:$0xff] }
0x186e   :  { %v4026_v47 = vadd.f32 %v4025_v54, %v3998_v49  ;;  %v8245_v54 = vld [vmem:[#allocation15 + $0x20] sm:$0xff] }
0x186f   :  { %v4104_v22 = vmul.f32 %v4102_v26, %v4028_v52  ;;  %v8243_v26 = vld [vmem:[#allocation15 + $0x28] sm:$0xff] }
0x1870   :  { %v4031_v17 = vmul.f32 0.70710677, %v4026_v47  ;;  %v4029_v16 = vmul.f32 0.5, %v4026_v47  ;;  %v6424_v47 = vpack.i.bf16 %v8245_v54, %v8243_v26 }
0x1871   :  { %6232 = vmatmul.msk.f32.vlgmr.msra.gmra.mxu0 %vm1234_vm12, %v4104_v22 }
0x1872   :  { %v4033_v1 = vand.u32 2147483647, %v4031_v17  ;;  %vm4097_vm15 = vcmp.ge.f32.partialorder %v4031_v17, 0.0 }
0x1874   :  { %v4035_v46 = vmul.f32 0.3275911, %v4033_v1  ;;  %v4085_v34 = vsub.f32 0.0, %v4033_v1 }
0x1876   :  { %v4037_v6 = vadd.f32 1.0, %v4035_v46  ;;  %v4087_v40 = vmul.f32 %v4085_v34, %v4033_v1 }
0x1878   :  { %6627 = vrcp.f32 %v4037_v6  ;;  %v4063_v0 = vand.u32 2147483648, %v4037_v6  ;;  %v4061_v11 = vand.u32 2147483647, %v4037_v6  ;;  %vm4057_vm9 = vweird.f32 %v4037_v6 }
0x1879   :  { %v4090_v9 = vmul.f32 1.442695, %v4087_v40 }
0x187a   :  { %v4064_v36 = vor.u32 1.1754944e-38, %v4063_v0  ;;  %vm4062_vm14 = vcmp.eq.f32.partialorder %v4061_v11, 8.507059e+37 }
0x187b   :  { %6629 = vpow2.f32 %v4090_v9 }
0x187e   :  { %v6628_v58 = vpop.eup %6627 }
0x187f   :  { %v4053_v41 = vmul.f32 %v6628_v58, %v4037_v6  ;;  %vm4058_vm8 = vweird.f32 %v6628_v58 }
0x1880   :  { %vm4059_vm13 = vmor %vm4057_vm9, %vm4058_vm8 }
0x1881   :  { %v4054_v53 = vsub.f32 1.0, %v4053_v41  ;;  %v6630_v35 = vpop.eup %6629 }
0x1883   :  { %v4055_v3 = vmul.f32 %v6628_v58, %v4054_v53 }
0x1885   :  { %v4056_v13 = vadd.f32 %v6628_v58, %v4055_v3  ;;  %v4190_v3 = vperm.slane %v8210_v39, 2 }
0x1887   :  { %v4060_v49 = vsel %vm4059_vm13, %v6628_v58, %v4056_v13 }
0x1888   :  { %v4065_v37 = vsel %vm4062_vm14, %v4064_v36, %v4060_v49  ;;  %v4193_v36 = vperm.slane %v8210_v39, 3 }
0x1889   :  { %v4067_v32 = vmul.f32 1.0614054, %v4065_v37 }
0x188b   :  { %v4069_v7 = vadd.f32 -1.4531521, %v4067_v32 }
0x188d   :  { %v4071_v4 = vmul.f32 %v4069_v7, %v4065_v37 }
0x188f   :  { %v4073_v5 = vadd.f32 1.4214138, %v4071_v4 }
0x1891   :  { %v4075_v10 = vmul.f32 %v4073_v5, %v4065_v37 }
0x1893   :  { %v4077_v44 = vadd.f32 -0.28449672, %v4075_v10 }
0x1895   :  { %v4079_v59 = vmul.f32 %v4077_v44, %v4065_v37 }
0x1897   :  { %v4081_v60 = vadd.f32 0.2548296, %v4079_v59 }
0x1899   :  { %v4083_v61 = vmul.f32 %v4081_v60, %v4065_v37 }
0x189b   :  { %v4093_v19 = vmul.f32 %v6630_v35, %v4083_v61  ;;  %v8263_v35 = vld [vmem:[#allocation19 + $0x10] sm:$0xff] }
0x189d   :  { %v4095_v33 = vsub.f32 1.0, %v4093_v19  ;;  %v4204_v19 = vperm.slane %v8263_v35, 0 }
0x189f   :  { %v4099_v21 = vsub.f32 0.0, %v4095_v33 }
0x18a1   :  { %v4101_v62 = vsel %vm4097_vm15, %v4095_v33, %v4099_v21 }
0x18a2   :  { %v4103_v14 = vadd.f32 1.0, %v4101_v62 }
0x18a4   :  { %v4105_v43 = vmul.f32 %v4103_v14, %v4029_v16 }
0x18a6   :  { %6233 = vmatmul.msk.f32.gmra.mxu0 %vm1234_vm12, %v4105_v43 }
0x18ee   :  { %v4138_v30 = vpop.f32.mrf.mxu0 }
0x18ef   :  { %v4139_v57 = vadd.f32 %v4138_v30, %v4114_v12 }
0x18f1   :  { %v4144_v20 = vadd.f32 %v4139_v57, %v8214_v56 }
0x18f3   :  { %v4146_v28 = vsel %vm315_vm2, %v4144_v20, 0.0 }
0x18f4   :  { %4147 = vadd.xlane.f32.xlu0 %v4146_v28 }
0x1923   :  { %v4141_v38 = vpop.f32.mrf.mxu0 }
0x1924   :  { %v4142_v63 = vadd.f32 %v4141_v38, %v4114_v12 }
0x1926   :  { %v4145_v15 = vadd.f32 %v4142_v63, %v8219_v25  ;;  %v8235_v25 = vld [vmem:[#allocation15 + $0x38] sm:$0xff] }
0x1927   :  { %4223 = vmatpush.msrb.mxu1 %v8235_v25  ;;  %v6419_v52 = vpack.i.bf16 %v8238_v8, %v8235_v25 }
0x1928   :  { %v4149_v27 = vsel %vm315_vm2, %v4145_v15, 0.0 }
0x1929   :  { %4150 = vadd.xlane.f32.xlu1 %v4149_v27  ;;  %4224 = vmatpush.msrb.mxu1 %v8238_v8 }
0x192b   :  { %4225 = vmatpush.msrb.mxu1 %v8243_v26 }
0x192d   :  { %4226 = vmatpush.msrb.mxu1 %v8245_v54 }
0x1967   :  { %v4148_v18 = vpop.xlane.xlu0 %4147 }
0x1968   :  { %v4152_v48 = vmul.f32 %v4148_v18, %v7416_v29 }
0x196a   :  { %v4154_v31 = vsub.f32 %v4144_v20, %v4152_v48 }
0x196c   :  { %v4156_v50 = vmul.f32 %v4154_v31, %v4154_v31 }
0x196e   :  { %v4158_v55 = vsel %vm315_vm2, %v4156_v50, 0.0 }
0x196f   :  { %4159 = vadd.xlane.f32.xlu2 %v4158_v55 }
0x199c   :  { %v4151_v45 = vpop.xlane.xlu1 %4150 }
0x199d   :  { %v4153_v56 = vmul.f32 %v4151_v45, %v7416_v29 }
0x199f   :  { %v4155_v51 = vsub.f32 %v4145_v15, %v4153_v56 }
0x19a1   :  { %v4157_v24 = vmul.f32 %v4155_v51, %v4155_v51 }
0x19a3   :  { %v4161_v2 = vsel %vm315_vm2, %v4157_v24, 0.0 }
0x19a4   :  { %4162 = vadd.xlane.f32.xlu0 %v4161_v2 }
0x19e2   :  { %v4160_v22 = vpop.xlane.xlu2 %4159 }
0x19e3   :  { %v4164_v17 = vmul.f32 %v4160_v22, %v7416_v29 }
0x19e5   :  { %v4166_v1 = vadd.f32 1e-05, %v4164_v17 }
0x19e7   :  { %6631 = vrsqrt.f32 %v4166_v1  ;;  %vm4174_vm1 = vweird.f32 %v4166_v1 }
0x19ed   :  { %v6632_v46 = vpop.eup %6631 }
0x19ee   :  { %v4169_v6 = vmul.f32 %v6632_v46, %v4166_v1  ;;  %vm4175_vm0 = vweird.f32 %v6632_v46 }
0x19ef   :  { %vm4176_vm3 = vmor %vm4174_vm1, %vm4175_vm0 }
0x19f0   :  { %v4170_v58 = vmul.f32 %v6632_v46, %v4169_v6 }
0x19f2   :  { %v4171_v41 = vmul.f32 0.5, %v4170_v58 }
0x19f4   :  { %v4172_v53 = vsub.f32 1.5, %v4171_v41 }
0x19f6   :  { %v4173_v0 = vmul.f32 %v6632_v46, %v4172_v53 }
0x19f8   :  { %v4177_v11 = vsel %vm4176_vm3, %v6632_v46, %v4173_v0 }
0x19f9   :  { %v4188_v13 = vmul.f32 %v4177_v11, %v4154_v31 }
0x19fb   :  { %v4191_v49 = vmul.f32 %v4190_v3, %v4188_v13 }
0x19fd   :  { %v8254_v37 = vadd.f32 %v4193_v36, %v4191_v49 }
0x19ff   :  { %6234 = vmatmul.msk.f32.vlgmr.msrb.gmra.mxu1 %vm315_vm2, %v8254_v37 }
0x1a17   :  { %v4163_v34 = vpop.xlane.xlu0 %4162 }
0x1a18   :  { %v4165_v32 = vmul.f32 %v4163_v34, %v7416_v29 }
0x1a1a   :  { %v4167_v7 = vadd.f32 1e-05, %v4165_v32 }
0x1a1c   :  { %6633 = vrsqrt.f32 %v4167_v7  ;;  %vm4184_vm6 = vweird.f32 %v4167_v7 }
0x1a22   :  { %v6634_v40 = vpop.eup %6633 }
0x1a23   :  { %v4179_v4 = vmul.f32 %v6634_v40, %v4167_v7  ;;  %vm4185_vm4 = vweird.f32 %v6634_v40 }
0x1a24   :  { %vm4186_vm7 = vmor %vm4184_vm6, %vm4185_vm4 }
0x1a25   :  { %v4180_v5 = vmul.f32 %v6634_v40, %v4179_v4 }
0x1a27   :  { %v4181_v9 = vmul.f32 0.5, %v4180_v5 }
0x1a29   :  { %v4182_v10 = vsub.f32 1.5, %v4181_v9 }
0x1a2b   :  { %v4183_v44 = vmul.f32 %v6634_v40, %v4182_v10 }
0x1a2d   :  { %v4187_v39 = vsel %vm4186_vm7, %v6634_v40, %v4183_v44 }
0x1a2e   :  { %v4189_v59 = vmul.f32 %v4187_v39, %v4155_v51 }
0x1a30   :  { %v4192_v60 = vmul.f32 %v4190_v3, %v4189_v59 }
0x1a32   :  { %v8259_v61 = vadd.f32 %v4193_v36, %v4192_v60 }
0x1a34   :  { %6235 = vmatmul.msk.f32.gmra.mxu1 %vm315_vm2, %v8259_v61 }
0x1a7c   :  { %v4228_v33 = vpop.f32.mrf.mxu1 }
0x1a7d   :  { %v8266_v21 = vadd.f32 %v4228_v33, %v4204_v19 }
0x1a7f   :  { %4317 = vrot.lane.b32.xlu0 %v8266_v21, %s7053_s4  ;;  %4319 = vrot.lane.b32.xlu2 %v8266_v21, %s7047_s1 }
0x1a80   :  { %4235 = vrot.lane.b32.xlu1 %v8266_v21, %s7049_s23 }
0x1a87   :  { %4263 = vrot.lane.b32.xlu0 %v8266_v21, %s7052_s9 }
0x1a88   :  { %4261 = vrot.lane.b32.xlu1 %v8266_v21, %s7048_s22 }
0x1a8f   :  { %4291 = vrot.lane.b32.xlu0 %v8266_v21, %s7051_s7 }
0x1ab1   :  { %v4231_v62 = vpop.f32.mrf.mxu1 }
0x1ab2   :  { %v8280_v16 = vadd.f32 %v4231_v62, %v4204_v19 }
0x1ab4   :  { %4374 = vrot.lane.b32.xlu0 %v8280_v16, %s7052_s9  ;;  %4428 = vrot.lane.b32.xlu1 %v8280_v16, %s7053_s4 }
0x1ab5   :  { %4430 = vrot.lane.b32.xlu2 %v8280_v16, %s7047_s1 }
0x1abc   :  { %4400 = vrot.lane.b32.xlu0 %v8280_v16, %s7050_s24  ;;  %4402 = vrot.lane.b32.xlu1 %v8280_v16, %s7051_s7 }
0x1abd   :  { %4289 = vrot.lane.b32.xlu2 %v8266_v21, %s7050_s24 }
0x1ac4   :  { %4346 = vrot.lane.b32.xlu1 %v8280_v16, %s7049_s23 }
0x1ac5   :  { %4372 = vrot.lane.b32.xlu2 %v8280_v16, %s7048_s22 }
0x1ad9   :  { %v4320_v12 = vpop.permute.xlu2 %4319 }
0x1af1   :  { %v4318_v14 = vpop.permute.xlu0 %4317 }
0x1af2   :  { %v4236_v43 = vpop.permute.xlu1 %4235 }
0x1af3   :  { %6236 = vmatpush.xpose.msk.msrb.mxu3 %vm348_vm5, %v4236_v43 }
0x1af6   :  { %6237 = vmatmul.msk.f32.vlgmr.msrb.gmra.mxu3 %vm348_vm5, %v8266_v21 }
0x1af7   :  { %6242 = vmatpush.xpose.msk.msra.mxu3 %vm348_vm5, %v4320_v12 }
0x1af9   :  { %v4264_v30 = vpop.permute.xlu0 %4263 }
0x1afa   :  { %6238 = vmatpush.xpose.msk.msra.mxu2 %vm348_vm5, %v4264_v30  ;;  %v4262_v57 = vpop.permute.xlu1 %4261 }
0x1afd   :  { %6239 = vmatmul.msk.f32.vlgmr.msra.gmra.mxu2 %vm348_vm5, %v4262_v57 }
0x1afe   :  { %6243 = vmatmul.msk.f32.vlgmr.msra.gmra.mxu3 %vm348_vm5, %v4318_v14 }
0x1b01   :  { %v4292_v20 = vpop.permute.xlu0 %4291 }
0x1b02   :  { %6240 = vmatpush.xpose.msk.msra.mxu1 %vm348_vm5, %v4292_v20 }
0x1b0f   :  { %v4431_v28 = vpop.permute.xlu2 %4430 }
0x1b10   :  { %6250 = vmatpush.xpose.msk.msrb.mxu3 %vm348_vm5, %v4431_v28 }
0x1b17   :  { %v4290_v38 = vpop.permute.xlu2 %4289 }
0x1b18   :  { %6241 = vmatmul.msk.f32.vlgmr.msra.gmra.mxu1 %vm348_vm5, %v4290_v38 }
0x1b1f   :  { %v4373_v27 = vpop.permute.xlu2 %4372 }
0x1b26   :  { %v4429_v63 = vpop.permute.xlu1 %4428  ;;  %v4375_v15 = vpop.permute.xlu0 %4374 }
0x1b27   :  { %6246 = vmatpush.xpose.msk.msrb.mxu0 %vm348_vm5, %v4375_v15  ;;  %6251 = vmatmul.msk.f32.vlgmr.msrb.gmra.mxu3 %vm348_vm5, %v4429_v63 }
0x1b2a   :  { %6247 = vmatmul.msk.f32.vlgmr.msrb.gmra.mxu0 %vm348_vm5, %v4373_v27 }
0x1b2e   :  { %v4403_v18 = vpop.permute.xlu1 %4402  ;;  %v4401_v48 = vpop.permute.xlu0 %4400 }
0x1b2f   :  { %6248 = vmatpush.xpose.msk.msrb.mxu1 %vm348_vm5, %v4403_v18 }
0x1b32   :  { %6249 = vmatmul.msk.f32.vlgmr.msrb.gmra.mxu1 %vm348_vm5, %v4401_v48 }
0x1b36   :  { %v4347_v31 = vpop.permute.xlu1 %4346 }
0x1b37   :  { %6244 = vmatpush.xpose.msk.msrb.mxu2 %vm348_vm5, %v4347_v31 }
0x1b3a   :  { %6245 = vmatmul.msk.f32.vlgmr.msrb.gmra.mxu2 %vm348_vm5, %v8280_v16 }
0x1b79   :  { %v4258_v50 = vpop.f32.mrf.mxu3 }
0x1b7a   :  { %v8319_v46 = vmul.f32 0.35355338, %v4258_v50 }
0x1b7c   :  { %v4464_v6 = vsel %vm348_vm5, %v8319_v46, -inf }
0x1b80   :  { %v4286_v55 = vpop.f32.mrf.mxu2 }
0x1b81   :  { %v4457_v45 = vmul.f32 0.35355338, %v4286_v55  ;;  %v4342_v56 = vpop.f32.mrf.mxu3 }
0x1b82   :  { %v4459_v51 = vmul.f32 0.35355338, %v4342_v56 }
0x1b83   :  { %v4467_v24 = vsel %vm348_vm5, %v4457_v45, -inf }
0x1b84   :  { %v4473_v2 = vsel %vm348_vm5, %v4459_v51, -inf  ;;  %4468 = vmax.xlane.f32.xlu0 %v4467_v24 }
0x1b85   :  { %4474 = vmax.xlane.f32.xlu2 %v4473_v2 }
0x1b95   :  { %v4314_v22 = vpop.f32.mrf.mxu1 }
0x1b96   :  { %v4458_v17 = vmul.f32 0.35355338, %v4314_v22 }
0x1b98   :  { %v4470_v1 = vsel %vm348_vm5, %v4458_v17, -inf }
0x1b99   :  { %4471 = vmax.xlane.f32.xlu1 %v4470_v1 }
0x1ba1   :  { %4465 = vmax.xlane.f32.xlu1 %v4464_v6 }
0x1ba7   :  { %v4397_v58 = vpop.f32.mrf.mxu0 }
0x1ba8   :  { %v4461_v41 = vmul.f32 0.35355338, %v4397_v58 }
0x1baa   :  { %v4479_v53 = vsel %vm348_vm5, %v4461_v41, -inf  ;;  %v4453_v13 = vpop.f32.mrf.mxu3 }
0x1bab   :  { %4480 = vmax.xlane.f32.xlu0 %v4479_v53  ;;  %v4463_v36 = vmul.f32 0.35355338, %v4453_v13 }
0x1bad   :  { %v4485_v49 = vsel %vm348_vm5, %v4463_v36, -inf }
0x1baf   :  { %v4425_v0 = vpop.f32.mrf.mxu1 }
0x1bb0   :  { %v4462_v3 = vmul.f32 0.35355338, %v4425_v0 }
0x1bb2   :  { %v4482_v11 = vsel %vm348_vm5, %v4462_v3, -inf }
0x1bb3   :  { %4483 = vmax.xlane.f32.xlu2 %v4482_v11 }
0x1bbb   :  { %4486 = vmax.xlane.f32.xlu2 %v4485_v49 }
0x1bbd   :  { %v4369_v14 = vpop.f32.mrf.mxu2 }
0x1bbe   :  { %v4460_v43 = vmul.f32 0.35355338, %v4369_v14 }
0x1bc0   :  { %v4476_v57 = vsel %vm348_vm5, %v4460_v43, -inf }
0x1bf7   :  { %v4469_v34 = vpop.xlane.xlu0 %4468 }
0x1bf8   :  { %v4475_v32 = vpop.xlane.xlu2 %4474  ;;  %v4489_v7 = vsub.f32 %v4457_v45, %v4469_v34 }
0x1bf9   :  { %v4491_v40 = vsub.f32 %v4459_v51, %v4475_v32  ;;  %v6409_v51 = vpack.i.bf16 %v8280_v16, %v8266_v21 }
0x1bfa   :  { %v4498_v4 = vmul.f32 1.442695, %v4489_v7 }
0x1bfb   :  { %v4502_v5 = vmul.f32 1.442695, %v4491_v40 }
0x1bfc   :  { %6635 = vpow2.f32 %v4498_v4 }
0x1bfd   :  { %6637 = vpow2.f32 %v4502_v5 }
0x1c02   :  { %v8326_v9 = vpop.eup %6635 }
0x1c03   :  { %v8328_v10 = vpop.eup %6637  ;;  %v4515_v44 = vsel %vm348_vm5, %v8326_v9, 0.0 }
0x1c04   :  { %v4521_v39 = vsel %vm348_vm5, %v8328_v10, 0.0  ;;  %4516 = vadd.xlane.f32.xlu1 %v4515_v44 }
0x1c05   :  { %4522 = vadd.xlane.f32.xlu2 %v4521_v39 }
0x1c0c   :  { %v4472_v59 = vpop.xlane.xlu1 %4471 }
0x1c0d   :  { %v4490_v60 = vsub.f32 %v4458_v17, %v4472_v59 }
0x1c0f   :  { %v4500_v19 = vmul.f32 1.442695, %v4490_v60 }
0x1c11   :  { %6639 = vpow2.f32 %v4500_v19 }
0x1c14   :  { %v4466_v24 = vpop.xlane.xlu1 %4465 }
0x1c15   :  { %v4488_v2 = vsub.f32 %v8319_v46, %v4466_v24 }
0x1c17   :  { %v8334_v33 = vpop.eup %6639  ;;  %v4496_v22 = vmul.f32 1.442695, %v4488_v2 }
0x1c18   :  { %v4518_v62 = vsel %vm348_vm5, %v8334_v33, 0.0 }
0x1c19   :  { %4519 = vadd.xlane.f32.xlu0 %v4518_v62 }
0x1c1e   :  { %v4481_v12 = vpop.xlane.xlu0 %4480 }
0x1c1f   :  { %v4493_v30 = vsub.f32 %v4461_v41, %v4481_v12 }
0x1c21   :  { %v4506_v20 = vmul.f32 1.442695, %v4493_v30  ;;  %4477 = vmax.xlane.f32.xlu0 %v4476_v57 }
0x1c23   :  { %6641 = vpow2.f32 %v4506_v20 }
0x1c26   :  { %v4484_v28 = vpop.xlane.xlu2 %4483 }
0x1c27   :  { %v4494_v38 = vsub.f32 %v4462_v3, %v4484_v28 }
0x1c29   :  { %v8339_v63 = vpop.eup %6641  ;;  %v4508_v15 = vmul.f32 1.442695, %v4494_v38 }
0x1c2a   :  { %v4527_v27 = vsel %vm348_vm5, %v8339_v63, 0.0 }
0x1c2b   :  { %6643 = vpow2.f32 %v4508_v15  ;;  %4528 = vadd.xlane.f32.xlu1 %v4527_v27 }
0x1c2e   :  { %v4487_v18 = vpop.xlane.xlu2 %4486 }
0x1c2f   :  { %v4495_v48 = vsub.f32 %v4463_v36, %v4487_v18 }
0x1c31   :  { %v8343_v31 = vpop.eup %6643  ;;  %v4510_v50 = vmul.f32 1.442695, %v4495_v48 }
0x1c32   :  { %v4530_v55 = vsel %vm348_vm5, %v8343_v31, 0.0 }
0x1c33   :  { %6645 = vpow2.f32 %v4510_v50  ;;  %4531 = vadd.xlane.f32.xlu0 %v4530_v55 }
0x1c34   :  { %6647 = vpow2.f32 %v4496_v22 }
0x1c39   :  { %v8347_v45 = vpop.eup %6645 }
0x1c3a   :  { %v4533_v56 = vsel %vm348_vm5, %v8347_v45, 0.0 }
0x1c3b   :  { %4534 = vadd.xlane.f32.xlu2 %v4533_v56 }
0x1c44   :  { %6410 = vrot.lane.b32.xlu1 %v6409_v51, %s7054_s0 }
0x1c47   :  { %6415 = vrot.lane.b32.xlu0 %v6409_v51, %s7056_s8 }
0x1c4c   :  { %4656 = vrot.lane.b32.xlu1 %v8266_v21, %s7057_s29  ;;  %v8369_v21 = vpop.eup %6647 }
0x1c53   :  { %6405 = vrot.lane.b32.xlu2 %v6409_v51, %s7055_s28 }
0x1c54   :  { %4775 = vrot.lane.b32.xlu1 %v8280_v16, %s7057_s29  ;;  %v4512_v16 = vsel %vm348_vm5, %v8369_v21, 0.0 }
0x1c5c   :  { %6420 = vrot.lane.b32.xlu1 %v6419_v52, %s7058_s11 }
0x1c64   :  { %6425 = vrot.lane.b32.xlu1 %v6424_v47, %s7058_s11 }
0x1c77   :  { %v4517_v25 = vpop.xlane.xlu1 %4516 }
0x1c78   :  { %v4523_v8 = vpop.xlane.xlu2 %4522  ;;  %6649 = vrcp.f32 %v4517_v25  ;;  %vm4555_vm13 = vweird.f32 %v4517_v25  ;;  %v4561_v59 = vand.u32 2147483648, %v4517_v25  ;;  %v4559_v14 = vand.u32 2147483647, %v4517_v25 }
0x1c79   :  { %6651 = vrcp.f32 %v4523_v8  ;;  %v4589_v39 = vand.u32 2147483648, %v4523_v8  ;;  %vm4583_vm14 = vweird.f32 %v4523_v8  ;;  %v4587_v19 = vand.u32 2147483647, %v4523_v8 }
0x1c7a   :  { %v4562_v18 = vor.u32 1.1754944e-38, %v4561_v59  ;;  %vm4560_vm6 = vcmp.eq.f32.partialorder %v4559_v14, 8.507059e+37 }
0x1c7b   :  { %v4590_v27 = vor.u32 1.1754944e-38, %v4589_v39  ;;  %vm4588_vm4 = vcmp.eq.f32.partialorder %v4587_v19, 8.507059e+37 }
0x1c7c   :  { %4513 = vadd.xlane.f32.xlu2 %v4512_v16 }
0x1c7e   :  { %v6650_v54 = vpop.eup %6649 }
0x1c7f   :  { %v6652_v47 = vpop.eup %6651  ;;  %v4551_v6 = vmul.f32 %v6650_v54, %v4517_v25  ;;  %vm4556_vm8 = vweird.f32 %v6650_v54 }
0x1c80   :  { %v4579_v41 = vmul.f32 %v6652_v47, %v4523_v8  ;;  %vm4584_vm9 = vweird.f32 %v6652_v47  ;;  %vm8393_vm15 = vmor %vm4555_vm13, %vm4556_vm8 }
0x1c81   :  { %v4552_v3 = vsub.f32 1.0, %v4551_v6  ;;  %vm8397_vm0 = vmor %vm4583_vm14, %vm4584_vm9 }
0x1c82   :  { %v4580_v13 = vsub.f32 1.0, %v4579_v41 }
0x1c83   :  { %v4553_v36 = vmul.f32 %v6650_v54, %v4552_v3 }
0x1c84   :  { %v4581_v32 = vmul.f32 %v6652_v47, %v4580_v13 }
0x1c85   :  { %v4554_v40 = vadd.f32 %v6650_v54, %v4553_v36 }
0x1c86   :  { %v4582_v5 = vadd.f32 %v6652_v47, %v4581_v32 }
0x1c87   :  { %v4558_v12 = vsel %vm8393_vm15, %v6650_v54, %v4554_v40 }
0x1c88   :  { %v4586_v28 = vsel %vm8397_vm0, %v6652_v47, %v4582_v5  ;;  %v4563_v56 = vsel %vm4560_vm6, %v4562_v18, %v4558_v12 }
0x1c89   :  { %v4591_v55 = vsel %vm4588_vm4, %v4590_v27, %v4586_v28  ;;  %v4649_v25 = vmul.f32 %v8326_v9, %v4563_v56 }
0x1c8a   :  { %v4651_v16 = vmul.f32 %v8328_v10, %v4591_v55 }
0x1c8c   :  { %v8373_v17 = vpop.xlane.xlu0 %4519 }
0x1c8d   :  { %6653 = vrcp.f32 %v8373_v17  ;;  %v4575_v38 = vand.u32 2147483648, %v8373_v17  ;;  %vm4569_vm3 = vweird.f32 %v8373_v17  ;;  %v4573_v48 = vand.u32 2147483647, %v8373_v17 }
0x1c8f   :  { %v4576_v24 = vor.u32 1.1754944e-38, %v4575_v38  ;;  %vm4574_vm8 = vcmp.eq.f32.partialorder %v4573_v48, 8.507059e+37 }
0x1c93   :  { %v6654_v46 = vpop.eup %6653 }
0x1c94   :  { %v4478_v52 = vpop.xlane.xlu0 %4477  ;;  %v4565_v11 = vmul.f32 %v6654_v46, %v8373_v17  ;;  %vm4570_vm1 = vweird.f32 %v6654_v46 }
0x1c95   :  { %v4492_v1 = vsub.f32 %v4460_v43, %v4478_v52  ;;  %vm4571_vm7 = vmor %vm4569_vm3, %vm4570_vm1 }
0x1c96   :  { %v4566_v49 = vsub.f32 1.0, %v4565_v11 }
0x1c97   :  { %v4504_v26 = vmul.f32 1.442695, %v4492_v1 }
0x1c98   :  { %v4567_v4 = vmul.f32 %v6654_v46, %v4566_v49 }
0x1c99   :  { %6655 = vpow2.f32 %v4504_v26 }
0x1c9a   :  { %v4568_v30 = vadd.f32 %v6654_v46, %v4567_v4 }
0x1c9c   :  { %v4572_v51 = vsel %vm4571_vm7, %v6654_v46, %v4568_v30 }
0x1c9d   :  { %v4577_v8 = vsel %vm4574_vm8, %v4576_v24, %v4572_v51 }
0x1c9e   :  { %v8378_v53 = vpop.xlane.xlu1 %4528 }
0x1c9f   :  { %v8376_v58 = vpop.eup %6655  ;;  %6657 = vrcp.f32 %v8378_v53  ;;  %vm4611_vm9 = vweird.f32 %v8378_v53  ;;  %v4615_v17 = vand.u32 2147483647, %v8378_v53  ;;  %v4617_v1 = vand.u32 2147483648, %v8378_v53 }
0x1ca0   :  { %v4524_v0 = vsel %vm348_vm5, %v8376_v58, 0.0 }
0x1ca1   :  { %4525 = vadd.xlane.f32.xlu0 %v4524_v0  ;;  %v4618_v59 = vor.u32 1.1754944e-38, %v4617_v1  ;;  %vm4616_vm6 = vcmp.eq.f32.partialorder %v4615_v17, 8.507059e+37 }
0x1ca5   :  { %v8387_v7 = vpop.eup %6657 }
0x1ca6   :  { %v8384_v34 = vpop.xlane.xlu0 %4531  ;;  %v4607_v44 = vmul.f32 %v8387_v7, %v8378_v53  ;;  %vm4612_vm13 = vweird.f32 %v8387_v7 }
0x1ca7   :  { %6659 = vrcp.f32 %v8384_v34  ;;  %v4631_v9 = vand.u32 2147483648, %v8384_v34  ;;  %vm8430_vm15 = vmor %vm4611_vm9, %vm4612_vm13  ;;  %vm4625_vm1 = vweird.f32 %v8384_v34  ;;  %v4629_v53 = vand.u32 2147483647, %v8384_v34 }
0x1ca8   :  { %v4608_v15 = vsub.f32 1.0, %v4607_v44  ;;  %v4650_v44 = vmul.f32 %v8334_v33, %v4577_v8 }
0x1ca9   :  { %v4632_v14 = vor.u32 1.1754944e-38, %v4631_v9  ;;  %vm4630_vm9 = vcmp.eq.f32.partialorder %v4629_v53, 8.507059e+37 }
0x1caa   :  { %v4609_v2 = vmul.f32 %v8387_v7, %v4608_v15 }
0x1cac   :  { %v4610_v46 = vadd.f32 %v8387_v7, %v4609_v2 }
0x1cad   :  { %v8391_v60 = vpop.eup %6659 }
0x1cae   :  { %v4621_v57 = vmul.f32 %v8391_v60, %v8384_v34  ;;  %v8405_v20 = vpop.xlane.xlu2 %4534  ;;  %vm4626_vm14 = vweird.f32 %v8391_v60  ;;  %v4614_v39 = vsel %vm8430_vm15, %v8387_v7, %v4610_v46 }
0x1caf   :  { %6661 = vrcp.f32 %v8405_v20  ;;  %v4643_v13 = vand.u32 2147483647, %v8405_v20  ;;  %v4645_v36 = vand.u32 2147483648, %v8405_v20  ;;  %vm8444_vm3 = vmor %vm4625_vm1, %vm4626_vm14  ;;  %vm4639_vm4 = vweird.f32 %v8405_v20 }
0x1cb0   :  { %v4622_v50 = vsub.f32 1.0, %v4621_v57  ;;  %v4619_v7 = vsel %vm4616_vm6, %v4618_v59, %v4614_v39 }
0x1cb1   :  { %v4646_v34 = vor.u32 1.1754944e-38, %v4645_v36  ;;  %vm4644_vm8 = vcmp.eq.f32.partialorder %v4643_v13, 8.507059e+37  ;;  %v4653_v28 = vmul.f32 %v8339_v63, %v4619_v7 }
0x1cb2   :  { %v4623_v52 = vmul.f32 %v8391_v60, %v4622_v50 }
0x1cb4   :  { %v4624_v11 = vadd.f32 %v8391_v60, %v4623_v52 }
0x1cb5   :  { %v6662_v22 = vpop.eup %6661 }
0x1cb6   :  { %v4635_v26 = vmul.f32 %v6662_v22, %v8405_v20  ;;  %v6406_v54 = vpop.permute.xlu2 %6405  ;;  %v6411_v47 = vpop.permute.xlu1 %6410  ;;  %vm4640_vm0 = vweird.f32 %v6662_v22  ;;  %v4628_v33 = vsel %vm8444_vm3, %v8391_v60, %v4624_v11 }
0x1cb7   :  { %v6408_v10 = vunpack.i.h.bf16 %v6406_v54  ;;  %v6407_v6 = vunpack.i.l.bf16 %v6406_v54  ;;  %v6413_v0 = vunpack.i.h.bf16 %v6411_v47  ;;  %v6412_v3 = vunpack.i.l.bf16 %v6411_v47  ;;  %vm4641_vm7 = vmor %vm4639_vm4, %vm4640_vm0 }
0x1cb8   :  { %v4636_v41 = vsub.f32 1.0, %v4635_v26  ;;  %v4633_v57 = vsel %vm4630_vm9, %v4632_v14, %v4628_v33 }
0x1cb9   :  { %4755 = vmatpush.msra.mxu3 %v6407_v6  ;;  %v6416_v49 = vpop.permute.xlu0 %6415  ;;  %4703 = vmatpush.msra.mxu0 %v6412_v3  ;;  %v4654_v60 = vmul.f32 %v8343_v31, %v4633_v57 }
0x1cba   :  { %v4637_v40 = vmul.f32 %v6662_v22, %v4636_v41  ;;  %v6418_v4 = vunpack.i.h.bf16 %v6416_v49  ;;  %v6417_v5 = vunpack.i.l.bf16 %v6416_v49  ;;  %6255 = vmatmul.msk.f32.vlgmr.msra.gmra.mxu3 %vm348_vm5, %v4651_v16  ;;  %6253 = vmatmul.msk.f32.vlgmr.msra.gmra.mxu0 %vm348_vm5, %v4649_v25 }
0x1cbb   :  { %4874 = vmatpush.msrb.mxu3 %v6408_v10  ;;  %4822 = vmatpush.msrb.mxu0 %v6413_v0 }
0x1cbc   :  { %v4638_v62 = vadd.f32 %v6662_v22, %v4637_v40  ;;  %4729 = vmatpush.msra.mxu1 %v6417_v5 }
0x1cbd   :  { %6254 = vmatmul.msk.f32.vlgmr.msra.gmra.mxu1 %vm348_vm5, %v4650_v44 }
0x1cbe   :  { %v4642_v43 = vsel %vm4641_vm7, %v6662_v22, %v4638_v62  ;;  %4848 = vmatpush.msrb.mxu1 %v6418_v4  ;;  %v4657_v12 = vpop.permute.xlu1 %4656 }
0x1cbf   :  { %v4647_v30 = vsel %vm4644_vm8, %v4646_v34, %v4642_v43  ;;  %4677 = vmatpush.msra.mxu2 %v4657_v12  ;;  %v4894_v43 = vperm.slane %v8263_v35, 1 }
0x1cc0   :  { %v4655_v20 = vmul.f32 %v8347_v45, %v4647_v30 }
0x1cc2   :  { %6259 = vmatmul.msk.f32.vlgmr.msrb.gmra.mxu3 %vm348_vm5, %v4655_v20  ;;  %6257 = vmatmul.msk.f32.vlgmr.msrb.gmra.mxu0 %vm348_vm5, %v4653_v28 }
0x1cc5   :  { %6258 = vmatmul.msk.f32.vlgmr.msrb.gmra.mxu1 %vm348_vm5, %v4654_v60 }
0x1cc6   :  { %v4776_v38 = vpop.permute.xlu1 %4775 }
0x1cc7   :  { %4796 = vmatpush.msrb.mxu2 %v4776_v38 }
0x1cef   :  { %v4514_v15 = vpop.xlane.xlu2 %4513 }
0x1cf0   :  { %6663 = vrcp.f32 %v4514_v15  ;;  %v4547_v50 = vand.u32 2147483648, %v4514_v15  ;;  %v4545_v45 = vand.u32 2147483647, %v4514_v15  ;;  %vm4541_vm14 = vweird.f32 %v4514_v15 }
0x1cf2   :  { %v4548_v56 = vor.u32 1.1754944e-38, %v4547_v50  ;;  %vm4546_vm0 = vcmp.eq.f32.partialorder %v4545_v45, 8.507059e+37  ;;  %v4996_v50 = vld [vmem:[#allocation16 + $0x38] sm:$0xff] }
0x1cf3   :  { %5016 = vmatpush.msra.mxu0 %v4996_v50 }
0x1cf6   :  { %v6664_v27 = vpop.eup %6663 }
0x1cf7   :  { %v4537_v18 = vmul.f32 %v6664_v27, %v4514_v15  ;;  %vm4542_vm13 = vweird.f32 %v6664_v27 }
0x1cf8   :  { %vm4543_vm15 = vmor %vm4541_vm14, %vm4542_vm13 }
0x1cf9   :  { %v4538_v48 = vsub.f32 1.0, %v4537_v18 }
0x1cfb   :  { %v4539_v55 = vmul.f32 %v6664_v27, %v4538_v48  ;;  %v4995_v48 = vld [vmem:[#allocation16 + $0x30] sm:$0xff] }
0x1cfc   :  { %5017 = vmatpush.msra.mxu0 %v4995_v48 }
0x1cfd   :  { %v4540_v63 = vadd.f32 %v6664_v27, %v4539_v55  ;;  %v8484_v55 = vpack.i.bf16 %v4995_v48, %v4996_v50 }
0x1cff   :  { %v4544_v31 = vsel %vm4543_vm15, %v6664_v27, %v4540_v63  ;;  %v4994_v63 = vld [vmem:[#allocation16 + $0x28] sm:$0xff] }
0x1d00   :  { %v4549_v51 = vsel %vm4546_vm0, %v4548_v56, %v4544_v31  ;;  %5018 = vmatpush.msra.mxu0 %v4994_v63  ;;  %v4993_v56 = vld [vmem:[#allocation16 + $0x20] sm:$0xff] }
0x1d01   :  { %v4648_v24 = vmul.f32 %v8369_v21, %v4549_v51 }
0x1d02   :  { %5019 = vmatpush.msra.mxu0 %v4993_v56 }
0x1d03   :  { %6252 = vmatmul.msk.f32.vlgmr.msra.gmra.mxu2 %vm348_vm5, %v4648_v24 }
0x1d14   :  { %v4526_v2 = vpop.xlane.xlu0 %4525 }
0x1d15   :  { %6665 = vrcp.f32 %v4526_v2  ;;  %v4603_v8 = vand.u32 2147483648, %v4526_v2  ;;  %v4601_v17 = vand.u32 2147483647, %v4526_v2  ;;  %vm4597_vm3 = vweird.f32 %v4526_v2 }
0x1d17   :  { %v4604_v26 = vor.u32 1.1754944e-38, %v4603_v8  ;;  %vm4602_vm6 = vcmp.eq.f32.partialorder %v4601_v17, 8.507059e+37 }
0x1d1b   :  { %v6666_v22 = vpop.eup %6665 }
0x1d1c   :  { %v4593_v16 = vmul.f32 %v6666_v22, %v4526_v2  ;;  %vm4598_vm1 = vweird.f32 %v6666_v22 }
0x1d1d   :  { %vm4599_vm4 = vmor %vm4597_vm3, %vm4598_vm1 }
0x1d1e   :  { %v4594_v25 = vsub.f32 1.0, %v4593_v16  ;;  %v8491_v16 = vpack.i.bf16 %v4993_v56, %v4994_v63 }
0x1d20   :  { %v4595_v52 = vmul.f32 %v6666_v22, %v4594_v25 }
0x1d22   :  { %v4596_v1 = vadd.f32 %v6666_v22, %v4595_v52 }
0x1d24   :  { %v4600_v54 = vsel %vm4599_vm4, %v6666_v22, %v4596_v1 }
0x1d25   :  { %v4605_v47 = vsel %vm4602_vm6, %v4604_v26, %v4600_v54  ;;  %v4997_v54 = vperm.slane %v8263_v35, 2 }
0x1d26   :  { %v4652_v21 = vmul.f32 %v8376_v58, %v4605_v47  ;;  %v6421_v58 = vpop.permute.xlu1 %6420 }
0x1d27   :  { %v6423_v3 = vunpack.i.h.bf16 %v6421_v58  ;;  %v6422_v11 = vunpack.i.l.bf16 %v6421_v58 }
0x1d28   :  { %6256 = vmatmul.msk.f32.vlgmr.msrb.gmra.mxu2 %vm348_vm5, %v4652_v21 }
0x1d29   :  { %4929 = vmatpush.msra.mxu2 %v6422_v11 }
0x1d2b   :  { %4930 = vmatpush.msra.mxu2 %v6423_v3  ;;  %v4986_v3 = vperm.slane %v8263_v35, 6 }
0x1d2e   :  { %v6426_v13 = vpop.permute.xlu1 %6425 }
0x1d2f   :  { %v6428_v36 = vunpack.i.h.bf16 %v6426_v13  ;;  %v6427_v49 = vunpack.i.l.bf16 %v6426_v13  ;;  %v4989_v13 = vperm.slane %v8263_v35, 7 }
0x1d31   :  { %4931 = vmatpush.msra.mxu2 %v6427_v49 }
0x1d33   :  { %4932 = vmatpush.msra.mxu2 %v6428_v36 }
0x1d37   :  { %v4705_v46 = vpop.f32.mrf.mxu0 }
0x1d38   :  { %4761 = vrot.lane.b32.xlu1 %v4705_v46, %s7037_s5 }
0x1d3a   :  { %v4731_v10 = vpop.f32.mrf.mxu1 }
0x1d3b   :  { %4765 = vrot.lane.b32.xlu2 %v4731_v10, %s7059_s30 }
0x1d3d   :  { %v4757_v6 = vpop.f32.mrf.mxu3 }
0x1d3f   :  { %v4824_v9 = vpop.f32.mrf.mxu0 }
0x1d40   :  { %4769 = vrot.lane.b32.xlu1 %v4757_v6, %s7060_s10  ;;  %4880 = vrot.lane.b32.xlu0 %v4824_v9, %s7037_s5 }
0x1d42   :  { %v4850_v41 = vpop.f32.mrf.mxu1 }
0x1d45   :  { %v4876_v0 = vpop.f32.mrf.mxu3 }
0x1d48   :  { %4884 = vrot.lane.b32.xlu1 %v4850_v41, %s7059_s30 }
0x1d50   :  { %4888 = vrot.lane.b32.xlu1 %v4876_v0, %s7060_s10 }
0x1d86   :  { %v4679_v40 = vpop.f32.mrf.mxu2 }
0x1d95   :  { %v4766_v5 = vpop.permute.xlu2 %4765 }
0x1daa   :  { %v4762_v32 = vpop.permute.xlu1 %4761 }
0x1dab   :  { %v4772_v4 = vsel %vm348_vm5, %v4679_v40, %v4762_v32  ;;  %v4798_v62 = vpop.f32.mrf.mxu2 }
0x1dac   :  { %v4773_v39 = vsel %vm885_vm10, %v4772_v4, %v4766_v5 }
0x1db2   :  { %v4770_v44 = vpop.permute.xlu1 %4769  ;;  %v4881_v19 = vpop.permute.xlu0 %4880 }
0x1db3   :  { %v4774_v53 = vsel %vm887_vm11, %v4773_v39, %v4770_v44  ;;  %v4891_v33 = vsel %vm348_vm5, %v4798_v62, %v4881_v19 }
0x1db4   :  { %6260 = vmatmul.msk.f32.vlgmr.msra.gmra.mxu2 %vm315_vm2, %v4774_v53 }
0x1dba   :  { %v4885_v59 = vpop.permute.xlu1 %4884 }
0x1dbb   :  { %v4892_v34 = vsel %vm885_vm10, %v4891_v33, %v4885_v59 }
0x1dc2   :  { %v4889_v7 = vpop.permute.xlu1 %4888 }
0x1dc3   :  { %v4893_v14 = vsel %vm887_vm11, %v4892_v34, %v4889_v7 }
0x1dc4   :  { %6261 = vmatmul.msk.f32.gmra.mxu2 %vm315_vm2, %v4893_v14 }
0x1e37   :  { %v4934_v12 = vpop.f32.mrf.mxu2 }
0x1e38   :  { %v4935_v30 = vadd.f32 %v4934_v12, %v4894_v43 }
0x1e3a   :  { %v4940_v57 = vadd.f32 %v4935_v30, %v8254_v37 }
0x1e3c   :  { %v4942_v20 = vsel %vm315_vm2, %v4940_v57, 0.0 }
0x1e3d   :  { %4943 = vadd.xlane.f32.xlu0 %v4942_v20 }
0x1e47   :  { %v4937_v28 = vpop.f32.mrf.mxu2 }
0x1e48   :  { %v4938_v60 = vadd.f32 %v4937_v28, %v4894_v43 }
0x1e4a   :  { %v4941_v38 = vadd.f32 %v4938_v60, %v8259_v61 }
0x1e4c   :  { %v4945_v15 = vsel %vm315_vm2, %v4941_v38, 0.0 }
0x1e4d   :  { %4946 = vadd.xlane.f32.xlu2 %v4945_v15 }
0x1e65   :  { %6430 = vrot.lane.b32.xlu2 %v8484_v55, %s7049_s23 }
0x1eb0   :  { %v4944_v27 = vpop.xlane.xlu0 %4943 }
0x1eb1   :  { %v4948_v18 = vmul.f32 %v4944_v27, %v7416_v29 }
0x1eb3   :  { %v4950_v45 = vsub.f32 %v4940_v57, %v4948_v18 }
0x1eb5   :  { %v4952_v37 = vmul.f32 %v4950_v45, %v4950_v45 }
0x1eb7   :  { %v4954_v61 = vsel %vm315_vm2, %v4952_v37, 0.0 }
0x1eb8   :  { %4955 = vadd.xlane.f32.xlu1 %v4954_v61 }
0x1ec0   :  { %v4947_v31 = vpop.xlane.xlu2 %4946 }
0x1ec1   :  { %v4949_v51 = vmul.f32 %v4947_v31, %v7416_v29 }
0x1ec3   :  { %v4951_v24 = vsub.f32 %v4941_v38, %v4949_v51 }
0x1ec5   :  { %v4953_v2 = vmul.f32 %v4951_v24, %v4951_v24 }
0x1ec7   :  { %v4957_v22 = vsel %vm315_vm2, %v4953_v2, 0.0 }
0x1ec8   :  { %4958 = vadd.xlane.f32.xlu0 %v4957_v22  ;;  %v6431_v25 = vpop.permute.xlu2 %6430 }
0x1ec9   :  { %v6432_v8 = vunpack.i.l.bf16 %v6431_v25  ;;  %v6433_v52 = vunpack.i.h.bf16 %v6431_v25 }
0x1ecb   :  { %5059 = vmatpush.msra.mxu1 %v6432_v8 }
0x1ecd   :  { %5060 = vmatpush.msra.mxu1 %v6433_v52 }
0x1ed1   :  { %6435 = vrot.lane.b32.xlu1 %v8491_v16, %s7049_s23 }
0x1edc   :  { %5044 = vrot.lane.b32.xlu0 %v4997_v54, %s7049_s23 }
0x1f2b   :  { %v4956_v17 = vpop.xlane.xlu1 %4955 }
0x1f2c   :  { %v4960_v1 = vmul.f32 %v4956_v17, %v7416_v29 }
0x1f2e   :  { %v4962_v26 = vadd.f32 1e-05, %v4960_v1 }
0x1f30   :  { %6667 = vrsqrt.f32 %v4962_v26  ;;  %vm4970_vm8 = vweird.f32 %v4962_v26 }
0x1f36   :  { %v6668_v47 = vpop.eup %6667 }
0x1f37   :  { %v4965_v21 = vmul.f32 %v6668_v47, %v4962_v26  ;;  %vm4971_vm7 = vweird.f32 %v6668_v47 }
0x1f38   :  { %vm4972_vm9 = vmor %vm4970_vm8, %vm4971_vm7 }
0x1f39   :  { %v4966_v46 = vmul.f32 %v6668_v47, %v4965_v21 }
0x1f3b   :  { %v4967_v10 = vmul.f32 0.5, %v4966_v46  ;;  %v4959_v6 = vpop.xlane.xlu0 %4958 }
0x1f3c   :  { %v4961_v9 = vmul.f32 %v4959_v6, %v7416_v29 }
0x1f3d   :  { %v4968_v41 = vsub.f32 1.5, %v4967_v10 }
0x1f3e   :  { %v4963_v0 = vadd.f32 1e-05, %v4961_v9 }
0x1f3f   :  { %v4969_v58 = vmul.f32 %v6668_v47, %v4968_v41 }
0x1f40   :  { %6669 = vrsqrt.f32 %v4963_v0  ;;  %vm4980_vm14 = vweird.f32 %v4963_v0 }
0x1f41   :  { %v4973_v11 = vsel %vm4972_vm9, %v6668_v47, %v4969_v58 }
0x1f42   :  { %v4984_v36 = vmul.f32 %v4973_v11, %v4950_v45 }
0x1f43   :  { %v6436_v49 = vpop.permute.xlu1 %6435 }
0x1f44   :  { %v4987_v32 = vmul.f32 %v4986_v3, %v4984_v36  ;;  %v6437_v40 = vunpack.i.l.bf16 %v6436_v49  ;;  %v6438_v44 = vunpack.i.h.bf16 %v6436_v49 }
0x1f46   :  { %v6670_v4 = vpop.eup %6669  ;;  %v8501_v5 = vadd.f32 %v4989_v13, %v4987_v32  ;;  %5061 = vmatpush.msra.mxu1 %v6437_v40 }
0x1f47   :  { %v4975_v39 = vmul.f32 %v6670_v4, %v4963_v0  ;;  %vm4981_vm13 = vweird.f32 %v6670_v4 }
0x1f48   :  { %6262 = vmatmul.msk.f32.vlgmr.msra.gmra.mxu0 %vm315_vm2, %v8501_v5  ;;  %5062 = vmatpush.msra.mxu1 %v6438_v44  ;;  %vm4982_vm15 = vmor %vm4980_vm14, %vm4981_vm13 }
0x1f49   :  { %v4976_v53 = vmul.f32 %v6670_v4, %v4975_v39  ;;  %6264 = vmatmul.msk.f32.vlgmr.msra.gmra.mxu1 %vm315_vm2, %v8034_v23 }
0x1f4b   :  { %v4977_v59 = vmul.f32 0.5, %v4976_v53 }
0x1f4d   :  { %v4978_v35 = vsub.f32 1.5, %v4977_v59 }
0x1f4e   :  { %v5045_v14 = vpop.permute.xlu0 %5044 }
0x1f4f   :  { %v4979_v19 = vmul.f32 %v6670_v4, %v4978_v35 }
0x1f51   :  { %v4983_v62 = vsel %vm4982_vm15, %v6670_v4, %v4979_v19  ;;  %6265 = vmatmul.msk.f32.gmra.mxu1 %vm315_vm2, %v8039_v42 }
0x1f52   :  { %v4985_v33 = vmul.f32 %v4983_v62, %v4951_v24 }
0x1f54   :  { %v4988_v34 = vmul.f32 %v4986_v3, %v4985_v33 }
0x1f56   :  { %v8509_v7 = vadd.f32 %v4989_v13, %v4988_v34 }
0x1f58   :  { %6263 = vmatmul.msk.f32.gmra.mxu0 %vm315_vm2, %v8509_v7 }
0x1fc5   :  { %v5021_v43 = vpop.f32.mrf.mxu0 }
0x1fc6   :  { %v5022_v23 = vadd.f32 %v5021_v43, %v4997_v54  ;;  %v5064_v12 = vpop.f32.mrf.mxu1 }
0x1fc7   :  { %v8513_v30 = vadd.f32 %v5064_v12, %v5045_v14 }
0x1fc8   :  { %5096 = vrot.lane.b32.xlu0 %v5022_v23, %s7048_s22 }
0x1fc9   :  { %5126 = vrot.lane.b32.xlu1 %v8513_v30, %s7050_s24  ;;  %5098 = vrot.lane.b32.xlu2 %v8513_v30, %s7048_s22 }
0x1fca   :  { %6266 = vmatpush.xpose.msk.msra.mxu3 %vm348_vm5, %v8513_v30 }
0x1fcd   :  { %6267 = vmatmul.msk.f32.vlgmr.msra.gmra.mxu3 %vm348_vm5, %v5022_v23 }
0x1fce   :  { %v5067_v42 = vpop.f32.mrf.mxu1 }
0x1fcf   :  { %v8523_v57 = vadd.f32 %v5067_v42, %v5045_v14 }
0x1fd1   :  { %5236 = vrot.lane.b32.xlu0 %v8523_v57, %s7050_s24  ;;  %6274 = vmatpush.xpose.msk.msrb.mxu1 %vm348_vm5, %v8523_v57 }
0x1fd2   :  { %5208 = vrot.lane.b32.xlu1 %v8523_v57, %s7048_s22  ;;  %5124 = vrot.lane.b32.xlu2 %v5022_v23, %s7050_s24 }
0x1fd5   :  { %v5024_v20 = vpop.f32.mrf.mxu0 }
0x1fd6   :  { %v5025_v28 = vadd.f32 %v5024_v20, %v4997_v54 }
0x1fd8   :  { %6275 = vmatmul.msk.f32.vlgmr.msrb.gmra.mxu1 %vm348_vm5, %v5025_v28 }
0x1fd9   :  { %5154 = vrot.lane.b32.xlu0 %v8513_v30, %s7053_s4 }
0x1fda   :  { %5234 = vrot.lane.b32.xlu1 %v5025_v28, %s7050_s24  ;;  %5206 = vrot.lane.b32.xlu2 %v5025_v28, %s7048_s22 }
0x1fe1   :  { %5262 = vrot.lane.b32.xlu0 %v5025_v28, %s7053_s4 }
0x1fe2   :  { %5264 = vrot.lane.b32.xlu1 %v8523_v57, %s7053_s4  ;;  %5152 = vrot.lane.b32.xlu2 %v5022_v23, %s7053_s4 }
0x2023   :  { %v5099_v60 = vpop.permute.xlu2 %5098 }
0x2024   :  { %6268 = vmatpush.xpose.msk.msrb.mxu3 %vm348_vm5, %v5099_v60 }
0x202c   :  { %v5125_v38 = vpop.permute.xlu2 %5124 }
0x2034   :  { %v5207_v48 = vpop.permute.xlu2 %5206 }
0x203a   :  { %v5097_v15 = vpop.permute.xlu0 %5096 }
0x203b   :  { %v5127_v27 = vpop.permute.xlu1 %5126  ;;  %6269 = vmatmul.msk.f32.vlgmr.msrb.gmra.mxu3 %vm348_vm5, %v5097_v15 }
0x203c   :  { %6270 = vmatpush.xpose.msk.msrb.mxu2 %vm348_vm5, %v5127_v27  ;;  %v5153_v63 = vpop.permute.xlu2 %5152 }
0x203f   :  { %6271 = vmatmul.msk.f32.vlgmr.msrb.gmra.mxu2 %vm348_vm5, %v5125_v38 }
0x2043   :  { %v5237_v18 = vpop.permute.xlu0 %5236 }
0x2044   :  { %v5209_v50 = vpop.permute.xlu1 %5208  ;;  %6278 = vmatpush.xpose.msk.msra.mxu2 %vm348_vm5, %v5237_v18 }
0x2045   :  { %6276 = vmatpush.xpose.msk.msra.mxu3 %vm348_vm5, %v5209_v50 }
0x2048   :  { %6277 = vmatmul.msk.f32.vlgmr.msra.gmra.mxu3 %vm348_vm5, %v5207_v48 }
0x204b   :  { %v5155_v45 = vpop.permute.xlu0 %5154 }
0x204c   :  { %v5235_v37 = vpop.permute.xlu1 %5234  ;;  %6272 = vmatpush.xpose.msk.msrb.mxu0 %vm348_vm5, %v5155_v45 }
0x204d   :  { %6279 = vmatmul.msk.f32.vlgmr.msra.gmra.mxu2 %vm348_vm5, %v5235_v37 }
0x204f   :  { %6273 = vmatmul.msk.f32.vlgmr.msrb.gmra.mxu0 %vm348_vm5, %v5153_v63 }
0x2050   :  { %v5093_v61 = vpop.f32.mrf.mxu3 }
0x2051   :  { %v8551_v56 = vmul.f32 0.35355338, %v5093_v61 }
0x2053   :  { %v5298_v31 = vsel %vm348_vm5, %v8551_v56, -inf  ;;  %v5263_v24 = vpop.permute.xlu0 %5262 }
0x2054   :  { %v5265_v51 = vpop.permute.xlu1 %5264  ;;  %5299 = vmax.xlane.f32.xlu2 %v5298_v31 }
0x2055   :  { %6280 = vmatpush.xpose.msk.msra.mxu0 %vm348_vm5, %v5265_v51  ;;  %v5203_v3 = vpop.f32.mrf.mxu1 }
0x2056   :  { %v8563_v11 = vmul.f32 0.35355338, %v5203_v3 }
0x2058   :  { %6281 = vmatmul.msk.f32.vlgmr.msra.gmra.mxu0 %vm348_vm5, %v5263_v24  ;;  %v5310_v13 = vsel %vm348_vm5, %v8563_v11, -inf }
0x20be   :  { %v5121_v2 = vpop.f32.mrf.mxu3 }
0x20bf   :  { %v5291_v22 = vmul.f32 0.35355338, %v5121_v2 }
0x20c1   :  { %v5301_v25 = vsel %vm348_vm5, %v5291_v22, -inf }
0x20c2   :  { %v5149_v8 = vpop.f32.mrf.mxu2  ;;  %5302 = vmax.xlane.f32.xlu2 %v5301_v25 }
0x20c3   :  { %v5292_v52 = vmul.f32 0.35355338, %v5149_v8 }
0x20c5   :  { %v5304_v17 = vsel %vm348_vm5, %v5292_v52, -inf }
0x20c6   :  { %5305 = vmax.xlane.f32.xlu1 %v5304_v17 }
0x20c7   :  { %v5300_v36 = vpop.xlane.xlu2 %5299 }
0x20c8   :  { %v5322_v24 = vsub.f32 %v8551_v56, %v5300_v36 }
0x20ca   :  { %v5330_v2 = vmul.f32 1.442695, %v5322_v24 }
0x20cb   :  { %v5231_v1 = vpop.f32.mrf.mxu3 }
0x20cc   :  { %v5295_v26 = vmul.f32 0.35355338, %v5231_v1  ;;  %v5177_v54 = vpop.f32.mrf.mxu0 }
0x20cd   :  { %v5293_v47 = vmul.f32 0.35355338, %v5177_v54 }
0x20ce   :  { %v5313_v21 = vsel %vm348_vm5, %v5295_v26, -inf }
0x20cf   :  { %5314 = vmax.xlane.f32.xlu2 %v5313_v21  ;;  %v5307_v46 = vsel %vm348_vm5, %v5293_v47, -inf }
0x20d0   :  { %v5259_v10 = vpop.f32.mrf.mxu2  ;;  %5308 = vmax.xlane.f32.xlu0 %v5307_v46 }
0x20d1   :  { %v5296_v6 = vmul.f32 0.35355338, %v5259_v10 }
0x20d3   :  { %v5316_v9 = vsel %vm348_vm5, %v5296_v6, -inf }
0x20d4   :  { %5317 = vmax.xlane.f32.xlu1 %v5316_v9 }
0x20d5   :  { %v5287_v41 = vpop.f32.mrf.mxu0 }
0x20d6   :  { %v5297_v0 = vmul.f32 0.35355338, %v5287_v41 }
0x20d8   :  { %v5319_v58 = vsel %vm348_vm5, %v5297_v0, -inf }
0x20d9   :  { %5320 = vmax.xlane.f32.xlu0 %v5319_v58 }
0x20e1   :  { %5311 = vmax.xlane.f32.xlu0 %v5310_v13 }
0x20f5   :  { %5516 = vrot.lane.b32.xlu0 %v8513_v30, %s7052_s9 }
0x20fd   :  { %5635 = vrot.lane.b32.xlu0 %v8523_v57, %s7052_s9 }
0x2135   :  { %v5303_v49 = vpop.xlane.xlu2 %5302 }
0x2136   :  { %v5323_v32 = vsub.f32 %v5291_v22, %v5303_v49 }
0x2138   :  { %v5332_v40 = vmul.f32 1.442695, %v5323_v32 }
0x2139   :  { %v5306_v4 = vpop.xlane.xlu1 %5305 }
0x213a   :  { %6671 = vpow2.f32 %v5332_v40  ;;  %v5324_v44 = vsub.f32 %v5292_v52, %v5306_v4 }
0x213c   :  { %v5334_v39 = vmul.f32 1.442695, %v5324_v44 }
0x213e   :  { %6673 = vpow2.f32 %v5334_v39 }
0x2140   :  { %v8571_v53 = vpop.eup %6671 }
0x2141   :  { %v5349_v59 = vsel %vm348_vm5, %v8571_v53, 0.0 }
0x2142   :  { %v5315_v35 = vpop.xlane.xlu2 %5314  ;;  %5350 = vadd.xlane.f32.xlu1 %v5349_v59 }
0x2143   :  { %v5327_v19 = vsub.f32 %v5295_v26, %v5315_v35  ;;  %v5309_v62 = vpop.xlane.xlu0 %5308 }
0x2144   :  { %v8575_v33 = vpop.eup %6673  ;;  %v5325_v34 = vsub.f32 %v5293_v47, %v5309_v62 }
0x2145   :  { %v5340_v14 = vmul.f32 1.442695, %v5327_v19  ;;  %v5352_v43 = vsel %vm348_vm5, %v8575_v33, 0.0 }
0x2146   :  { %v5336_v23 = vmul.f32 1.442695, %v5325_v34  ;;  %5353 = vadd.xlane.f32.xlu2 %v5352_v43 }
0x2147   :  { %6675 = vpow2.f32 %v5340_v14  ;;  %v5318_v37 = vpop.xlane.xlu1 %5317 }
0x2148   :  { %6677 = vpow2.f32 %v5336_v23  ;;  %v5328_v63 = vsub.f32 %v5296_v6, %v5318_v37 }
0x214a   :  { %v5342_v61 = vmul.f32 1.442695, %v5328_v63 }
0x214c   :  { %v5321_v12 = vpop.xlane.xlu0 %5320 }
0x214d   :  { %v8579_v42 = vpop.eup %6675  ;;  %v5329_v20 = vsub.f32 %v5297_v0, %v5321_v12 }
0x214e   :  { %v8581_v28 = vpop.eup %6677  ;;  %v5361_v60 = vsel %vm348_vm5, %v8579_v42, 0.0 }
0x214f   :  { %v5344_v38 = vmul.f32 1.442695, %v5329_v20  ;;  %5362 = vadd.xlane.f32.xlu0 %v5361_v60  ;;  %v5355_v15 = vsel %vm348_vm5, %v8581_v28, 0.0 }
0x2150   :  { %5356 = vadd.xlane.f32.xlu1 %v5355_v15 }
0x2151   :  { %6679 = vpow2.f32 %v5344_v38 }
0x2152   :  { %6681 = vpow2.f32 %v5342_v61 }
0x2153   :  { %6683 = vpow2.f32 %v5330_v2 }
0x2154   :  { %v5312_v48 = vpop.xlane.xlu0 %5311 }
0x2155   :  { %v5326_v8 = vsub.f32 %v8563_v11, %v5312_v48 }
0x2157   :  { %v8587_v27 = vpop.eup %6679  ;;  %v5338_v17 = vmul.f32 1.442695, %v5326_v8 }
0x2158   :  { %v5367_v18 = vsel %vm348_vm5, %v8587_v27, 0.0  ;;  %v8601_v31 = vpop.eup %6681 }
0x2159   :  { %5368 = vadd.xlane.f32.xlu1 %v5367_v18  ;;  %v5364_v51 = vsel %vm348_vm5, %v8601_v31, 0.0  ;;  %v8606_v22 = vpop.eup %6683 }
0x215e   :  { %5542 = vrot.lane.b32.xlu2 %v8513_v30, %s7051_s7 }
0x2163   :  { %5687 = vrot.lane.b32.xlu0 %v8523_v57, %s7047_s1 }
0x2167   :  { %v5517_v50 = vpop.permute.xlu0 %5516 }
0x2168   :  { %5537 = vmatpush.msrb.mxu3 %v5517_v50 }
0x216b   :  { %5490 = vrot.lane.b32.xlu0 %v8513_v30, %s7049_s23 }
0x216f   :  { %v5636_v45 = vpop.permute.xlu0 %5635 }
0x2170   :  { %5656 = vmatpush.msra.mxu3 %v5636_v45 }
0x2172   :  { %5568 = vrot.lane.b32.xlu1 %v8513_v30, %s7047_s1  ;;  %v5346_v30 = vsel %vm348_vm5, %v8606_v22, 0.0 }
0x2173   :  { %5609 = vrot.lane.b32.xlu0 %v8523_v57, %s7049_s23 }
0x217b   :  { %6440 = vrot.lane.b32.xlu0 %v8484_v55, %s7058_s11 }
0x2183   :  { %6445 = vrot.lane.b32.xlu0 %v8491_v16, %s7058_s11 }
0x2187   :  { %5365 = vadd.xlane.f32.xlu2 %v5364_v51 }
0x219c   :  { %5347 = vadd.xlane.f32.xlu1 %v5346_v30 }
0x219f   :  { %5661 = vrot.lane.b32.xlu2 %v8523_v57, %s7051_s7 }
0x21b5   :  { %v5351_v25 = vpop.xlane.xlu1 %5350 }
0x21b6   :  { %6685 = vrcp.f32 %v5351_v25  ;;  %v5393_v47 = vand.u32 2147483647, %v5351_v25  ;;  %v5395_v21 = vand.u32 2147483648, %v5351_v25  ;;  %vm5389_vm1 = vweird.f32 %v5351_v25 }
0x21b8   :  { %vm5394_vm4 = vcmp.eq.f32.partialorder %v5393_v47, 8.507059e+37  ;;  %v5396_v3 = vor.u32 1.1754944e-38, %v5395_v21 }
0x21b9   :  { %v5354_v52 = vpop.xlane.xlu2 %5353 }
0x21ba   :  { %6687 = vrcp.f32 %v5354_v52  ;;  %v5407_v11 = vand.u32 2147483647, %v5354_v52  ;;  %v5409_v13 = vand.u32 2147483648, %v5354_v52  ;;  %vm5403_vm7 = vweird.f32 %v5354_v52 }
0x21bb   :  { %6689 = vpow2.f32 %v5338_v17 }
0x21bc   :  { %v6686_v1 = vpop.eup %6685  ;;  %v5410_v39 = vor.u32 1.1754944e-38, %v5409_v13  ;;  %vm5408_vm9 = vcmp.eq.f32.partialorder %v5407_v11, 8.507059e+37 }
0x21bd   :  { %v5385_v56 = vmul.f32 %v6686_v1, %v5351_v25  ;;  %vm5390_vm0 = vweird.f32 %v6686_v1 }
0x21be   :  { %vm5391_vm3 = vmor %vm5389_vm1, %vm5390_vm0 }
0x21bf   :  { %v5386_v26 = vsub.f32 1.0, %v5385_v56 }
0x21c0   :  { %v6688_v54 = vpop.eup %6687 }
0x21c1   :  { %v5387_v46 = vmul.f32 %v6686_v1, %v5386_v26  ;;  %v5399_v10 = vmul.f32 %v6688_v54, %v5354_v52  ;;  %v5543_v6 = vpop.permute.xlu2 %5542  ;;  %v8613_v58 = vpop.eup %6689  ;;  %vm5404_vm6 = vweird.f32 %v6688_v54 }
0x21c2   :  { %v5363_v9 = vpop.xlane.xlu0 %5362  ;;  %5563 = vmatpush.msrb.mxu2 %v5543_v6  ;;  %v5358_v44 = vsel %vm348_vm5, %v8613_v58, 0.0  ;;  %vm5405_vm8 = vmor %vm5403_vm7, %vm5404_vm6 }
0x21c3   :  { %v5388_v57 = vadd.f32 %v6686_v1, %v5387_v46  ;;  %v5400_v41 = vsub.f32 1.0, %v5399_v10  ;;  %6691 = vrcp.f32 %v5363_v9  ;;  %v5357_v0 = vpop.xlane.xlu1 %5356  ;;  %v5451_v23 = vand.u32 2147483648, %v5363_v9 }
0x21c4   :  { %6693 = vrcp.f32 %v5357_v0  ;;  %v5449_v20 = vand.u32 2147483647, %v5363_v9  ;;  %vm5445_vm14 = vweird.f32 %v5363_v9  ;;  %v5423_v2 = vand.u32 2147483648, %v5357_v0 }
0x21c5   :  { %v5392_v36 = vsel %vm5391_vm3, %v6686_v1, %v5388_v57  ;;  %v5401_v49 = vmul.f32 %v6688_v54, %v5400_v41  ;;  %v5452_v15 = vor.u32 1.1754944e-38, %v5451_v23  ;;  %vm5417_vm3 = vweird.f32 %v5357_v0 }
0x21c6   :  { %v5397_v32 = vsel %vm5394_vm4, %v5396_v3, %v5392_v36  ;;  %vm5450_vm0 = vcmp.eq.f32.partialorder %v5449_v20, 8.507059e+37  ;;  %v5421_v30 = vand.u32 2147483647, %v5357_v0  ;;  %v5424_v17 = vor.u32 1.1754944e-38, %v5423_v2 }
0x21c7   :  { %v5483_v40 = vmul.f32 %v8571_v53, %v5397_v32  ;;  %v5402_v4 = vadd.f32 %v6688_v54, %v5401_v49 }
0x21c8   :  { %5359 = vadd.xlane.f32.xlu2 %v5358_v44  ;;  %vm5422_vm6 = vcmp.eq.f32.partialorder %v5421_v30, 8.507059e+37 }
0x21c9   :  { %v6692_v59 = vpop.eup %6691  ;;  %v5406_v35 = vsel %vm5405_vm8, %v6688_v54, %v5402_v4  ;;  %6283 = vmatmul.msk.f32.vlgmr.msrb.gmra.mxu3 %vm348_vm5, %v5483_v40 }
0x21ca   :  { %v5411_v19 = vsel %vm5408_vm9, %v5410_v39, %v5406_v35  ;;  %v5441_v62 = vmul.f32 %v6692_v59, %v5363_v9  ;;  %v6694_v34 = vpop.eup %6693  ;;  %vm5446_vm13 = vweird.f32 %v6692_v59 }
0x21cb   :  { %v5484_v14 = vmul.f32 %v8575_v33, %v5411_v19  ;;  %v5413_v60 = vmul.f32 %v6694_v34, %v5357_v0  ;;  %vm5447_vm15 = vmor %vm5445_vm14, %vm5446_vm13  ;;  %vm5418_vm1 = vweird.f32 %v6694_v34 }
0x21cc   :  { %v5442_v43 = vsub.f32 1.0, %v5441_v62  ;;  %v5369_v53 = vpop.xlane.xlu1 %5368  ;;  %vm5419_vm4 = vmor %vm5417_vm3, %vm5418_vm1 }
0x21cd   :  { %6695 = vrcp.f32 %v5369_v53  ;;  %6284 = vmatmul.msk.f32.vlgmr.msrb.gmra.mxu2 %vm348_vm5, %v5484_v14  ;;  %v5414_v48 = vsub.f32 1.0, %v5413_v60  ;;  %v5479_v56 = vand.u32 2147483648, %v5369_v53  ;;  %vm5473_vm8 = vweird.f32 %v5369_v53 }
0x21ce   :  { %v5443_v12 = vmul.f32 %v6692_v59, %v5442_v43  ;;  %v5477_v54 = vand.u32 2147483647, %v5369_v53 }
0x21cf   :  { %v5415_v63 = vmul.f32 %v6694_v34, %v5414_v48  ;;  %v5480_v10 = vor.u32 1.1754944e-38, %v5479_v56 }
0x21d0   :  { %v5444_v38 = vadd.f32 %v6692_v59, %v5443_v12  ;;  %vm5478_vm13 = vcmp.eq.f32.partialorder %v5477_v54, 8.507059e+37 }
0x21d1   :  { %v5416_v51 = vadd.f32 %v6694_v34, %v5415_v63 }
0x21d2   :  { %v5448_v18 = vsel %vm5447_vm15, %v6692_v59, %v5444_v38 }
0x21d3   :  { %v6696_v50 = vpop.eup %6695  ;;  %v5453_v45 = vsel %vm5450_vm0, %v5452_v15, %v5448_v18  ;;  %v5420_v8 = vsel %vm5419_vm4, %v6694_v34, %v5416_v51 }
0x21d4   :  { %v5487_v33 = vmul.f32 %v8579_v42, %v5453_v45  ;;  %v5469_v61 = vmul.f32 %v6696_v50, %v5369_v53  ;;  %v5425_v1 = vsel %vm5422_vm6, %v5424_v17, %v5420_v8  ;;  %vm5474_vm7 = vweird.f32 %v6696_v50 }
0x21d5   :  { %v5688_v37 = vpop.permute.xlu0 %5687  ;;  %v5485_v26 = vmul.f32 %v8581_v28, %v5425_v1  ;;  %vm5475_vm9 = vmor %vm5473_vm8, %vm5474_vm7 }
0x21d6   :  { %6287 = vmatmul.msk.f32.vlgmr.msra.gmra.mxu3 %vm348_vm5, %v5487_v33  ;;  %v5470_v24 = vsub.f32 1.0, %v5469_v61 }
0x21d8   :  { %v5471_v52 = vmul.f32 %v6696_v50, %v5470_v24 }
0x21da   :  { %v5472_v42 = vadd.f32 %v6696_v50, %v5471_v52 }
0x21dc   :  { %v5476_v46 = vsel %vm5475_vm9, %v6696_v50, %v5472_v42 }
0x21dd   :  { %v5491_v25 = vpop.permute.xlu0 %5490  ;;  %v5481_v6 = vsel %vm5478_vm13, %v5480_v10, %v5476_v46 }
0x21de   :  { %5511 = vmatpush.msra.mxu1 %v5491_v25  ;;  %v5489_v9 = vmul.f32 %v8587_v27, %v5481_v6 }
0x21e4   :  { %v5569_v47 = vpop.permute.xlu1 %5568 }
0x21e5   :  { %5589 = vmatpush.msrb.mxu0 %v5569_v47  ;;  %v5610_v21 = vpop.permute.xlu0 %5609 }
0x21e6   :  { %6285 = vmatmul.msk.f32.vlgmr.msrb.gmra.mxu0 %vm348_vm5, %v5485_v26  ;;  %5630 = vmatpush.msrb.mxu1 %v5610_v21 }
0x21e7   :  { %5708 = vmatpush.msra.mxu0 %v5688_v37 }
0x21ed   :  { %v6441_v24 = vpop.permute.xlu0 %6440 }
0x21ee   :  { %6289 = vmatmul.msk.f32.vlgmr.msra.gmra.mxu0 %vm348_vm5, %v5489_v9  ;;  %v6443_v2 = vunpack.i.h.bf16 %v6441_v24  ;;  %v6442_v30 = vunpack.i.l.bf16 %v6441_v24 }
0x21f5   :  { %v6446_v25 = vpop.permute.xlu0 %6445 }
0x21f6   :  { %v6448_v8 = vunpack.i.h.bf16 %v6446_v25  ;;  %v6447_v52 = vunpack.i.l.bf16 %v6446_v25 }
0x21fa   :  { %v5366_v57 = vpop.xlane.xlu2 %5365 }
0x21fb   :  { %6697 = vrcp.f32 %v5366_v57  ;;  %v5465_v11 = vand.u32 2147483648, %v5366_v57  ;;  %v5463_v36 = vand.u32 2147483647, %v5366_v57  ;;  %vm5459_vm15 = vweird.f32 %v5366_v57 }
0x21fd   :  { %v5466_v32 = vor.u32 1.1754944e-38, %v5465_v11  ;;  %vm5464_vm1 = vcmp.eq.f32.partialorder %v5463_v36, 8.507059e+37 }
0x2201   :  { %v6698_v28 = vpop.eup %6697 }
0x2202   :  { %v5455_v41 = vmul.f32 %v6698_v28, %v5366_v57  ;;  %v5662_v0 = vpop.permute.xlu2 %5661  ;;  %vm5460_vm14 = vweird.f32 %v6698_v28 }
0x2203   :  { %5682 = vmatpush.msra.mxu2 %v5662_v0  ;;  %vm5461_vm0 = vmor %vm5459_vm15, %vm5460_vm14 }
0x2204   :  { %v5456_v3 = vsub.f32 1.0, %v5455_v41  ;;  %v8651_v41 = vld [vmem:[#allocation19 + $0x10] sm:$0xff] }
0x2205   :  { %v5728_v0 = vperm.slane %v8651_v41, 3 }
0x2206   :  { %v5457_v13 = vmul.f32 %v6698_v28, %v5456_v3 }
0x2208   :  { %v5458_v49 = vadd.f32 %v6698_v28, %v5457_v13 }
0x220a   :  { %v5462_v40 = vsel %vm5461_vm0, %v6698_v28, %v5458_v49 }
0x220b   :  { %v5467_v27 = vsel %vm5464_vm1, %v5466_v32, %v5462_v40 }
0x220c   :  { %v5488_v4 = vmul.f32 %v8601_v31, %v5467_v27 }
0x220e   :  { %6288 = vmatmul.msk.f32.vlgmr.msra.gmra.mxu2 %vm348_vm5, %v5488_v4 }
0x220f   :  { %v5348_v44 = vpop.xlane.xlu1 %5347 }
0x2210   :  { %6699 = vrcp.f32 %v5348_v44  ;;  %v5381_v19 = vand.u32 2147483648, %v5348_v44  ;;  %v5379_v34 = vand.u32 2147483647, %v5348_v44  ;;  %vm5375_vm4 = vweird.f32 %v5348_v44 }
0x2212   :  { %v5382_v43 = vor.u32 1.1754944e-38, %v5381_v19  ;;  %vm5380_vm7 = vcmp.eq.f32.partialorder %v5379_v34, 8.507059e+37 }
0x2216   :  { %v6700_v39 = vpop.eup %6699 }
0x2217   :  { %v5371_v59 = vmul.f32 %v6700_v39, %v5348_v44  ;;  %vm5376_vm3 = vweird.f32 %v6700_v39 }
0x2218   :  { %vm5377_vm6 = vmor %vm5375_vm4, %vm5376_vm3 }
0x2219   :  { %v5372_v35 = vsub.f32 1.0, %v5371_v59 }
0x221b   :  { %v5373_v62 = vmul.f32 %v6700_v39, %v5372_v35 }
0x221d   :  { %v5374_v14 = vadd.f32 %v6700_v39, %v5373_v62 }
0x221f   :  { %v5378_v53 = vsel %vm5377_vm6, %v6700_v39, %v5374_v14 }
0x2220   :  { %v5383_v31 = vsel %vm5380_vm7, %v5382_v43, %v5378_v53  ;;  %v6294_v43 = vld [vmem:[%s8727_s12 + $0x30] sm:$0xff]  ;;  %v6293_v53 = vld [vmem:[%s8727_s12 + $0x28] sm:$0xff] }
0x2221   :  { %v5482_v23 = vmul.f32 %v8606_v22, %v5383_v31  ;;  %v6292_v31 = vld [vmem:[%s8727_s12 + $0x20] sm:$0xff] }
0x2223   :  { %6282 = vmatmul.msk.f32.vlgmr.msra.gmra.mxu1 %vm348_vm5, %v5482_v23 }
0x2224   :  { %5759 = vmatpush.msra.mxu1 %v6442_v30 }
0x2226   :  { %5760 = vmatpush.msra.mxu1 %v6443_v2 }
0x2228   :  { %5761 = vmatpush.msra.mxu1 %v6447_v52 }
0x222a   :  { %5762 = vmatpush.msra.mxu1 %v6448_v8 }
0x223b   :  { %v5360_v12 = vpop.xlane.xlu2 %5359 }
0x223c   :  { %6701 = vrcp.f32 %v5360_v12  ;;  %v5437_v15 = vand.u32 2147483648, %v5360_v12  ;;  %v5435_v48 = vand.u32 2147483647, %v5360_v12  ;;  %vm5431_vm9 = vweird.f32 %v5360_v12 }
0x223e   :  { %v5438_v55 = vor.u32 1.1754944e-38, %v5437_v15  ;;  %vm5436_vm14 = vcmp.eq.f32.partialorder %v5435_v48, 8.507059e+37  ;;  %v8675_v48 = vld [vmem:[#allocation19 + $0x18] sm:$0xf] }
0x2242   :  { %v6702_v20 = vpop.eup %6701 }
0x2243   :  { %v5427_v60 = vmul.f32 %v6702_v20, %v5360_v12  ;;  %vm5432_vm8 = vweird.f32 %v6702_v20 }
0x2244   :  { %vm5433_vm13 = vmor %vm5431_vm9, %vm5432_vm8 }
0x2245   :  { %v5428_v38 = vsub.f32 1.0, %v5427_v60 }
0x2247   :  { %v5429_v18 = vmul.f32 %v6702_v20, %v5428_v38 }
0x2249   :  { %v5430_v50 = vadd.f32 %v6702_v20, %v5429_v18 }
0x224b   :  { %v5434_v45 = vsel %vm5433_vm13, %v6702_v20, %v5430_v50 }
0x224c   :  { %v5439_v22 = vsel %vm5436_vm14, %v5438_v55, %v5434_v45  ;;  %v5539_v33 = vpop.f32.mrf.mxu3  ;;  %v5816_v45 = vperm.slane %v8675_v48, 0 }
0x224d   :  { %v5486_v37 = vmul.f32 %v8613_v58, %v5439_v22  ;;  %5595 = vrot.lane.b32.xlu0 %v5539_v33, %s7037_s5  ;;  %v5819_v33 = vperm.slane %v8675_v48, 1 }
0x224f   :  { %6286 = vmatmul.msk.f32.vlgmr.msrb.gmra.mxu1 %vm348_vm5, %v5486_v37 }
0x2250   :  { %v5565_v16 = vpop.f32.mrf.mxu2 }
0x2251   :  { %5599 = vrot.lane.b32.xlu1 %v5565_v16, %s7059_s30 }
0x2259   :  { %v5658_v63 = vpop.f32.mrf.mxu3 }
0x225a   :  { %5714 = vrot.lane.b32.xlu2 %v5658_v63, %s7037_s5 }
0x2263   :  { %v5591_v61 = vpop.f32.mrf.mxu0 }
0x2264   :  { %5603 = vrot.lane.b32.xlu0 %v5591_v61, %s7060_s10 }
0x226b   :  { %v5710_v58 = vpop.f32.mrf.mxu0 }
0x2291   :  { %v5684_v51 = vpop.f32.mrf.mxu2 }
0x2292   :  { %5718 = vrot.lane.b32.xlu0 %v5684_v51, %s7059_s30 }
0x229a   :  { %5722 = vrot.lane.b32.xlu0 %v5710_v58, %s7060_s10 }
0x22a0   :  { %v5513_v42 = vpop.f32.mrf.mxu1 }
0x22b4   :  { %v5715_v10 = vpop.permute.xlu2 %5714 }
0x22bf   :  { %v5596_v17 = vpop.permute.xlu0 %5595 }
0x22c0   :  { %v5606_v56 = vsel %vm348_vm5, %v5513_v42, %v5596_v17 }
0x22c3   :  { %v5600_v1 = vpop.permute.xlu1 %5599 }
0x22c4   :  { %v5607_v26 = vsel %vm885_vm10, %v5606_v56, %v5600_v1 }
0x22cc   :  { %v5632_v46 = vpop.f32.mrf.mxu1 }
0x22cd   :  { %v5725_v6 = vsel %vm348_vm5, %v5632_v46, %v5715_v10 }
0x22d6   :  { %v5604_v54 = vpop.permute.xlu0 %5603 }
0x22d7   :  { %v5608_v47 = vsel %vm887_vm11, %v5607_v26, %v5604_v54  ;;  %v5827_v26 = vperm.slane %v8651_v41, 4 }
0x22d8   :  { %6290 = vmatmul.msk.f32.vlgmr.msra.gmra.mxu1 %vm315_vm2, %v5608_v47 }
0x2304   :  { %v5719_v21 = vpop.permute.xlu0 %5718 }
0x2305   :  { %v5726_v9 = vsel %vm885_vm10, %v5725_v6, %v5719_v21 }
0x230c   :  { %v5723_v57 = vpop.permute.xlu0 %5722 }
0x230d   :  { %v5727_v28 = vsel %vm887_vm11, %v5726_v9, %v5723_v57  ;;  %v5943_v9 = vld [vmem:[#allocation18 + $0x78] sm:$0xff]  ;;  %v5942_v57 = vld [vmem:[#allocation18 + $0x70] sm:$0xff] }
0x230e   :  { %6291 = vmatmul.msk.f32.gmra.mxu1 %vm315_vm2, %v5727_v28  ;;  %5959 = vmatpush.msrb.mxu2 %v5943_v9  ;;  %v5941_v28 = vld [vmem:[#allocation18 + $0x68] sm:$0xff] }
0x2310   :  { %5960 = vmatpush.msrb.mxu2 %v5942_v57 }
0x2312   :  { %5961 = vmatpush.msrb.mxu2 %v5941_v28 }
0x2355   :  { %v5764_v3 = vpop.f32.mrf.mxu1 }
0x2356   :  { %v5765_v11 = vadd.f32 %v5764_v3, %v5728_v0 }
0x2358   :  { %v5770_v13 = vadd.f32 %v5765_v11, %v8501_v5 }
0x235a   :  { %v5772_v36 = vsel %vm315_vm2, %v5770_v13, 0.0 }
0x235b   :  { %5773 = vadd.xlane.f32.xlu1 %v5772_v36 }
0x238b   :  { %v5767_v49 = vpop.f32.mrf.mxu1 }
0x238c   :  { %v5768_v32 = vadd.f32 %v5767_v49, %v5728_v0  ;;  %v5940_v0 = vld [vmem:[#allocation18 + $0x60] sm:$0xff]  ;;  %v5938_v49 = vld [vmem:[#allocation18 + $0x50] sm:$0xff] }
0x238d   :  { %5962 = vmatpush.msrb.mxu2 %v5940_v0 }
0x238e   :  { %v5771_v40 = vadd.f32 %v5768_v32, %v8509_v7  ;;  %v6295_v7 = vld [vmem:[%s8727_s12 + $0x38] sm:$0xff] }
0x238f   :  { %5846 = vmatpush.msrb.mxu3 %v6295_v7 }
0x2390   :  { %v5775_v27 = vsel %vm315_vm2, %v5771_v40, 0.0 }
0x2391   :  { %5776 = vadd.xlane.f32.xlu0 %v5775_v27  ;;  %5847 = vmatpush.msrb.mxu3 %v6294_v43 }
0x2393   :  { %5848 = vmatpush.msrb.mxu3 %v6293_v53 }
0x2395   :  { %5849 = vmatpush.msrb.mxu3 %v6292_v31 }
0x23ce   :  { %v5774_v4 = vpop.xlane.xlu1 %5773 }
0x23cf   :  { %v5778_v44 = vmul.f32 %v5774_v4, %v7416_v29  ;;  %v5937_v4 = vld [vmem:[#allocation18 + $0x48] sm:$0xff] }
0x23d1   :  { %v5780_v39 = vsub.f32 %v5770_v13, %v5778_v44  ;;  %v5939_v13 = vld [vmem:[#allocation18 + $0x58] sm:$0xff] }
0x23d2   :  { %5963 = vmatpush.msrb.mxu2 %v5939_v13 }
0x23d3   :  { %v5782_v59 = vmul.f32 %v5780_v39, %v5780_v39 }
0x23d4   :  { %5964 = vmatpush.msrb.mxu2 %v5938_v49 }
0x23d5   :  { %v5784_v35 = vsel %vm315_vm2, %v5782_v59, 0.0 }
0x23d6   :  { %5785 = vadd.xlane.f32.xlu2 %v5784_v35  ;;  %5965 = vmatpush.msrb.mxu2 %v5937_v4 }
0x2404   :  { %v5777_v19 = vpop.xlane.xlu0 %5776 }
0x2405   :  { %v5779_v5 = vmul.f32 %v5777_v19, %v7416_v29 }
0x2407   :  { %v5781_v62 = vsub.f32 %v5771_v40, %v5779_v5 }
0x2409   :  { %v5783_v34 = vmul.f32 %v5781_v62, %v5781_v62 }
0x240b   :  { %v5787_v14 = vsel %vm315_vm2, %v5783_v34, 0.0 }
0x240c   :  { %5788 = vadd.xlane.f32.xlu1 %v5787_v14 }
0x2449   :  { %v5786_v23 = vpop.xlane.xlu2 %5785 }
0x244a   :  { %v5790_v12 = vmul.f32 %v5786_v23, %v7416_v29 }
0x244c   :  { %v5792_v20 = vadd.f32 1e-05, %v5790_v12 }
0x244e   :  { %6703 = vrsqrt.f32 %v5792_v20  ;;  %vm5800_vm10 = vweird.f32 %v5792_v20 }
0x2454   :  { %v6704_v60 = vpop.eup %6703 }
0x2455   :  { %v5795_v38 = vmul.f32 %v6704_v60, %v5792_v20  ;;  %vm5801_vm5 = vweird.f32 %v6704_v60 }
0x2456   :  { %vm5802_vm11 = vmor %vm5800_vm10, %vm5801_vm5 }
0x2457   :  { %v5796_v15 = vmul.f32 %v6704_v60, %v5795_v38 }
0x2459   :  { %v5797_v18 = vmul.f32 0.5, %v5796_v15 }
0x245b   :  { %v5798_v50 = vsub.f32 1.5, %v5797_v18 }
0x245d   :  { %v5799_v55 = vmul.f32 %v6704_v60, %v5798_v50 }
0x245f   :  { %v5803_v22 = vsel %vm5802_vm11, %v6704_v60, %v5799_v55 }
0x2460   :  { %v5814_v37 = vmul.f32 %v5803_v22, %v5780_v39  ;;  %v5936_v39 = vld [vmem:[#allocation18 + $0x40] sm:$0xff] }
0x2461   :  { %5966 = vmatpush.msrb.mxu2 %v5936_v39 }
0x2462   :  { %v5817_v16 = vmul.f32 %v5816_v45, %v5814_v37 }
0x2464   :  { %v8679_v63 = vadd.f32 %v5819_v33, %v5817_v16 }
0x2466   :  { %6296 = vmatmul.msk.f32.vlgmr.msrb.gmra.mxu3 %vm315_vm2, %v8679_v63 }
0x247f   :  { %v5789_v61 = vpop.xlane.xlu1 %5788 }
0x2480   :  { %v5791_v51 = vmul.f32 %v5789_v61, %v7416_v29 }
0x2482   :  { %v5793_v24 = vadd.f32 1e-05, %v5791_v51 }
0x2484   :  { %6705 = vrsqrt.f32 %v5793_v24  ;;  %vm5810_vm0 = vweird.f32 %v5793_v24 }
0x248a   :  { %v6706_v2 = vpop.eup %6705 }
0x248b   :  { %v5805_v30 = vmul.f32 %v6706_v2, %v5793_v24  ;;  %vm5811_vm15 = vweird.f32 %v6706_v2 }
0x248c   :  { %vm5812_vm1 = vmor %vm5810_vm0, %vm5811_vm15 }
0x248d   :  { %v5806_v58 = vmul.f32 %v6706_v2, %v5805_v30 }
0x248f   :  { %v5807_v25 = vmul.f32 0.5, %v5806_v58 }
0x2491   :  { %v5808_v8 = vsub.f32 1.5, %v5807_v25 }
0x2493   :  { %v5809_v52 = vmul.f32 %v6706_v2, %v5808_v8 }
0x2495   :  { %v5813_v17 = vsel %vm5812_vm1, %v6706_v2, %v5809_v52 }
0x2496   :  { %v5815_v1 = vmul.f32 %v5813_v17, %v5781_v62 }
0x2498   :  { %v5818_v42 = vmul.f32 %v5816_v45, %v5815_v1 }
0x249a   :  { %v8684_v56 = vadd.f32 %v5819_v33, %v5818_v42 }
0x249c   :  { %6297 = vmatmul.msk.f32.gmra.mxu3 %vm315_vm2, %v8684_v56 }
0x24e9   :  { %v5851_v54 = vpop.f32.mrf.mxu3 }
0x24ea   :  { %v5852_v47 = vadd.f32 %v5851_v54, %v5827_v26 }
0x24ec   :  { %v5859_v21 = vmul.f32 0.70710677, %v5852_v47  ;;  %v5857_v45 = vmul.f32 0.5, %v5852_v47 }
0x24ee   :  { %v5861_v46 = vand.u32 2147483647, %v5859_v21  ;;  %vm5925_vm8 = vcmp.ge.f32.partialorder %v5859_v21, 0.0 }
0x24f0   :  { %v5863_v10 = vmul.f32 0.3275911, %v5861_v46  ;;  %v5913_v5 = vsub.f32 0.0, %v5861_v46 }
0x24f2   :  { %v5865_v6 = vadd.f32 1.0, %v5863_v10  ;;  %v5915_v14 = vmul.f32 %v5913_v5, %v5861_v46 }
0x24f4   :  { %6707 = vrcp.f32 %v5865_v6  ;;  %v5878_v32 = vand.u32 2147483648, %v5865_v6  ;;  %v5876_v27 = vand.u32 2147483647, %v5865_v6  ;;  %vm5872_vm4 = vweird.f32 %v5865_v6 }
0x24f5   :  { %v5917_v53 = vmul.f32 1.442695, %v5915_v14 }
0x24f6   :  { %v5879_v59 = vor.u32 1.1754944e-38, %v5878_v32  ;;  %vm5877_vm7 = vcmp.eq.f32.partialorder %v5876_v27, 8.507059e+37 }
0x24f7   :  { %6709 = vpow2.f32 %v5917_v53 }
0x24fa   :  { %v6708_v3 = vpop.eup %6707 }
0x24fb   :  { %v5868_v11 = vmul.f32 %v6708_v3, %v5865_v6  ;;  %vm5873_vm3 = vweird.f32 %v6708_v3 }
0x24fc   :  { %vm5874_vm6 = vmor %vm5872_vm4, %vm5873_vm3 }
0x24fd   :  { %v5869_v36 = vsub.f32 1.0, %v5868_v11  ;;  %v6710_v38 = vpop.eup %6709 }
0x24ff   :  { %v5870_v40 = vmul.f32 %v6708_v3, %v5869_v36 }
0x2501   :  { %v5871_v44 = vadd.f32 %v6708_v3, %v5870_v40 }
0x2503   :  { %v5875_v35 = vsel %vm5874_vm6, %v6708_v3, %v5871_v44 }
0x2504   :  { %v5880_v19 = vsel %vm5877_vm7, %v5879_v59, %v5875_v35  ;;  %v5944_v59 = vperm.slane %v8651_v41, 5 }
0x2505   :  { %v5895_v62 = vmul.f32 1.0614054, %v5880_v19 }
0x2507   :  { %v5897_v34 = vadd.f32 -1.4531521, %v5895_v62 }
0x2509   :  { %v5899_v7 = vmul.f32 %v5897_v34, %v5880_v19 }
0x250b   :  { %v5901_v43 = vadd.f32 1.4214138, %v5899_v7 }
0x250d   :  { %v5903_v31 = vmul.f32 %v5901_v43, %v5880_v19 }
0x250f   :  { %v5905_v23 = vadd.f32 -0.28449672, %v5903_v31 }
0x2511   :  { %v5907_v12 = vmul.f32 %v5905_v23, %v5880_v19 }
0x2513   :  { %v5909_v20 = vadd.f32 0.2548296, %v5907_v12 }
0x2515   :  { %v5911_v60 = vmul.f32 %v5909_v20, %v5880_v19 }
0x2517   :  { %v5921_v15 = vmul.f32 %v6710_v38, %v5911_v60 }
0x2519   :  { %v5923_v18 = vsub.f32 1.0, %v5921_v15 }
0x251b   :  { %v5927_v50 = vsub.f32 0.0, %v5923_v18 }
0x251d   :  { %v5929_v55 = vsel %vm5925_vm8, %v5923_v18, %v5927_v50 }
0x251e   :  { %v5931_v22 = vadd.f32 1.0, %v5929_v55 }
0x251f   :  { %v5854_v33 = vpop.f32.mrf.mxu3 }
0x2520   :  { %v5933_v37 = vmul.f32 %v5931_v22, %v5857_v45  ;;  %v5855_v16 = vadd.f32 %v5854_v33, %v5827_v26 }
0x2522   :  { %v5860_v61 = vmul.f32 0.70710677, %v5855_v16  ;;  %6298 = vmatmul.msk.f32.vlgmr.msrb.gmra.mxu2 %vm1234_vm12, %v5933_v37  ;;  %v5858_v4 = vmul.f32 0.5, %v5855_v16 }
0x2524   :  { %v5862_v51 = vand.u32 2147483647, %v5860_v61  ;;  %vm5926_vm10 = vcmp.ge.f32.partialorder %v5860_v61, 0.0  ;;  %v6020_v61 = vperm.slane %v8675_v48, 2 }
0x2526   :  { %v5864_v24 = vmul.f32 0.3275911, %v5862_v51  ;;  %v5914_v47 = vsub.f32 0.0, %v5862_v51 }
0x2528   :  { %v5866_v2 = vadd.f32 1.0, %v5864_v24  ;;  %v5916_v10 = vmul.f32 %v5914_v47, %v5862_v51 }
0x252a   :  { %6711 = vrcp.f32 %v5866_v2  ;;  %v5892_v8 = vand.u32 2147483648, %v5866_v2  ;;  %v5890_v17 = vand.u32 2147483647, %v5866_v2  ;;  %vm5886_vm13 = vweird.f32 %v5866_v2 }
0x252b   :  { %v5919_v57 = vmul.f32 1.442695, %v5916_v10 }
0x252c   :  { %v5893_v42 = vor.u32 1.1754944e-38, %v5892_v8  ;;  %vm5891_vm5 = vcmp.eq.f32.partialorder %v5890_v17, 8.507059e+37 }
0x252d   :  { %6713 = vpow2.f32 %v5919_v57 }
0x2530   :  { %v6712_v30 = vpop.eup %6711 }
0x2531   :  { %v5882_v58 = vmul.f32 %v6712_v30, %v5866_v2  ;;  %vm5887_vm9 = vweird.f32 %v6712_v30  ;;  %v6023_v2 = vperm.slane %v8675_v48, 3 }
0x2532   :  { %vm5888_vm14 = vmor %vm5886_vm13, %vm5887_vm9  ;;  %vm6079_vm13 = vcmask 1040384  }
0x2533   :  { %v5883_v25 = vsub.f32 1.0, %v5882_v58  ;;  %v6714_v36 = vpop.eup %6713 }
0x2535   :  { %v5884_v52 = vmul.f32 %v6712_v30, %v5883_v25 }
0x2537   :  { %v5885_v1 = vadd.f32 %v6712_v30, %v5884_v52 }
0x2539   :  { %v5889_v54 = vsel %vm5888_vm14, %v6712_v30, %v5885_v1  ;;  %vm6083_vm14 = vcmask 254976  }
0x253a   :  { %v5894_v26 = vsel %vm5891_vm5, %v5893_v42, %v5889_v54  ;;  %vm6089_vm5 = vcmask 1024  }
0x253b   :  { %v5896_v21 = vmul.f32 1.0614054, %v5894_v26 }
0x253d   :  { %v5898_v46 = vadd.f32 -1.4531521, %v5896_v21 }
0x253f   :  { %v5900_v6 = vmul.f32 %v5898_v46, %v5894_v26 }
0x2541   :  { %v5902_v9 = vadd.f32 1.4214138, %v5900_v6 }
0x2543   :  { %v5904_v28 = vmul.f32 %v5902_v9, %v5894_v26 }
0x2545   :  { %v5906_v0 = vadd.f32 -0.28449672, %v5904_v28 }
0x2547   :  { %v5908_v3 = vmul.f32 %v5906_v0, %v5894_v26 }
0x2549   :  { %v5910_v11 = vadd.f32 0.2548296, %v5908_v3 }
0x254b   :  { %v5912_v13 = vmul.f32 %v5910_v11, %v5894_v26 }
0x254d   :  { %v5922_v49 = vmul.f32 %v6714_v36, %v5912_v13 }
0x254f   :  { %v5924_v32 = vsub.f32 1.0, %v5922_v49 }
0x2551   :  { %v5928_v40 = vsub.f32 0.0, %v5924_v32 }
0x2553   :  { %v5930_v27 = vsel %vm5926_vm10, %v5924_v32, %v5928_v40 }
0x2554   :  { %v5932_v44 = vadd.f32 1.0, %v5930_v27 }
0x2556   :  { %v5934_v39 = vmul.f32 %v5932_v44, %v5858_v4 }
0x2558   :  { %6299 = vmatmul.msk.f32.gmra.mxu2 %vm1234_vm12, %v5934_v39 }
0x25a5   :  { %v5968_v35 = vpop.f32.mrf.mxu2 }
0x25a6   :  { %v5969_v19 = vadd.f32 %v5968_v35, %v5944_v59 }
0x25a8   :  { %v5974_v5 = vadd.f32 %v5969_v19, %v8679_v63 }
0x25aa   :  { %v5976_v62 = vsel %vm315_vm2, %v5974_v5, 0.0 }
0x25ab   :  { %5977 = vadd.xlane.f32.xlu0 %v5976_v62 }
0x25db   :  { %v5971_v34 = vpop.f32.mrf.mxu2 }
0x25dc   :  { %v5972_v14 = vadd.f32 %v5971_v34, %v5944_v59 }
0x25de   :  { %v5975_v7 = vadd.f32 %v5972_v14, %v8684_v56 }
0x25e0   :  { %v5979_v43 = vsel %vm315_vm2, %v5975_v7, 0.0 }
0x25e1   :  { %5980 = vadd.xlane.f32.xlu2 %v5979_v43 }
0x261e   :  { %v5978_v53 = vpop.xlane.xlu0 %5977 }
0x261f   :  { %v5982_v31 = vmul.f32 %v5978_v53, %v7416_v29 }
0x2621   :  { %v5984_v23 = vsub.f32 %v5974_v5, %v5982_v31 }
0x2623   :  { %v5986_v12 = vmul.f32 %v5984_v23, %v5984_v23 }
0x2625   :  { %v5988_v41 = vsel %vm315_vm2, %v5986_v12, 0.0 }
0x2626   :  { %5989 = vadd.xlane.f32.xlu2 %v5988_v41 }
0x2654   :  { %v5981_v20 = vpop.xlane.xlu2 %5980 }
0x2655   :  { %v5983_v63 = vmul.f32 %v5981_v20, %v7416_v29 }
0x2657   :  { %v5985_v60 = vsub.f32 %v5975_v7, %v5983_v63 }
0x2659   :  { %v5987_v38 = vmul.f32 %v5985_v60, %v5985_v60 }
0x265b   :  { %v5991_v15 = vsel %vm315_vm2, %v5987_v38, 0.0 }
0x265c   :  { %5992 = vadd.xlane.f32.xlu1 %v5991_v15 }
0x2699   :  { %v5990_v56 = vpop.xlane.xlu2 %5989 }
0x269a   :  { %v5994_v18 = vmul.f32 %v5990_v56, %v7416_v29 }
0x269c   :  { %v5996_v50 = vadd.f32 1e-05, %v5994_v18 }
0x269e   :  { %6715 = vrsqrt.f32 %v5996_v50  ;;  %vm6004_vm11 = vweird.f32 %v5996_v50 }
0x26a4   :  { %v6716_v55 = vpop.eup %6715 }
0x26a5   :  { %v5999_v45 = vmul.f32 %v6716_v55, %v5996_v50  ;;  %vm6005_vm12 = vweird.f32 %v6716_v55 }
0x26a6   :  { %vm6006_vm15 = vmor %vm6004_vm11, %vm6005_vm12 }
0x26a7   :  { %v6000_v22 = vmul.f32 %v6716_v55, %v5999_v45 }
0x26a9   :  { %v6001_v33 = vmul.f32 0.5, %v6000_v22 }
0x26ab   :  { %v6002_v37 = vsub.f32 1.5, %v6001_v33 }
0x26ad   :  { %v6003_v16 = vmul.f32 %v6716_v55, %v6002_v37 }
0x26af   :  { %v6007_v51 = vsel %vm6006_vm15, %v6716_v55, %v6003_v16 }
0x26b0   :  { %v6018_v24 = vmul.f32 %v6007_v51, %v5984_v23 }
0x26b2   :  { %v6021_v30 = vmul.f32 %v6020_v61, %v6018_v24 }
0x26b4   :  { %v6024_v58 = vadd.f32 %v6023_v2, %v6021_v30 }
0x26b6   :  { %v6026_v25 = vsel %vm315_vm2, %v6024_v58, 0.0 }
0x26b7   :  { %6027 = vadd.xlane.f32.xlu1 %v6026_v25 }
0x26cf   :  { %v5993_v8 = vpop.xlane.xlu1 %5992 }
0x26d0   :  { %v5995_v52 = vmul.f32 %v5993_v8, %v7416_v29 }
0x26d2   :  { %v5997_v17 = vadd.f32 1e-05, %v5995_v52 }
0x26d4   :  { %6717 = vrsqrt.f32 %v5997_v17  ;;  %vm6014_vm1 = vweird.f32 %v5997_v17 }
0x26da   :  { %v6718_v1 = vpop.eup %6717 }
0x26db   :  { %v6009_v42 = vmul.f32 %v6718_v1, %v5997_v17  ;;  %vm6015_vm0 = vweird.f32 %v6718_v1 }
0x26dc   :  { %vm6016_vm3 = vmor %vm6014_vm1, %vm6015_vm0 }
0x26dd   :  { %v6010_v54 = vmul.f32 %v6718_v1, %v6009_v42 }
0x26df   :  { %v6011_v26 = vmul.f32 0.5, %v6010_v54 }
0x26e1   :  { %v6012_v47 = vsub.f32 1.5, %v6011_v26 }
0x26e3   :  { %v6013_v21 = vmul.f32 %v6718_v1, %v6012_v47 }
0x26e5   :  { %v6017_v48 = vsel %vm6016_vm3, %v6718_v1, %v6013_v21 }
0x26e6   :  { %v6019_v46 = vmul.f32 %v6017_v48, %v5985_v60 }
0x26e8   :  { %v6022_v10 = vmul.f32 %v6020_v61, %v6019_v46 }
0x26ea   :  { %v6025_v6 = vadd.f32 %v6023_v2, %v6022_v10 }
0x26ec   :  { %v6029_v9 = vsel %vm315_vm2, %v6025_v6, 0.0 }
0x26ed   :  { %6030 = vadd.xlane.f32.xlu0 %v6029_v9 }
0x272a   :  { %v6028_v57 = vpop.xlane.xlu1 %6027 }
0x272b   :  { %v6032_v28 = vmul.f32 %v6028_v57, %v7416_v29 }
0x272d   :  { %v6034_v0 = vsub.f32 %v6024_v58, %v6032_v28 }
0x272f   :  { %v6036_v3 = vmul.f32 %v6034_v0, %v6034_v0 }
0x2731   :  { %v6038_v11 = vsel %vm315_vm2, %v6036_v3, 0.0 }
0x2732   :  { %6039 = vadd.xlane.f32.xlu0 %v6038_v11 }
0x2760   :  { %v6031_v13 = vpop.xlane.xlu0 %6030 }
0x2761   :  { %v6033_v36 = vmul.f32 %v6031_v13, %v7416_v29 }
0x2763   :  { %v6035_v49 = vsub.f32 %v6025_v6, %v6033_v36 }
0x2765   :  { %v6037_v32 = vmul.f32 %v6035_v49, %v6035_v49 }
0x2767   :  { %v6041_v40 = vsel %vm315_vm2, %v6037_v32, 0.0 }
0x2768   :  { %6042 = vadd.xlane.f32.xlu2 %v6041_v40 }
0x27a5   :  { %v6040_v27 = vpop.xlane.xlu0 %6039 }
0x27a6   :  { %v6044_v4 = vmul.f32 %v6040_v27, %v7416_v29 }
0x27a8   :  { %v6046_v44 = vadd.f32 1e-05, %v6044_v4 }
0x27aa   :  { %6719 = vrsqrt.f32 %v6046_v44  ;;  %vm6054_vm4 = vweird.f32 %v6046_v44 }
0x27b0   :  { %v6720_v39 = vpop.eup %6719 }
0x27b1   :  { %v6049_v59 = vmul.f32 %v6720_v39, %v6046_v44  ;;  %vm6055_vm2 = vweird.f32 %v6720_v39 }
0x27b2   :  { %vm6056_vm6 = vmor %vm6054_vm4, %vm6055_vm2 }
0x27b3   :  { %v6050_v5 = vmul.f32 %v6720_v39, %v6049_v59 }
0x27b5   :  { %v6051_v34 = vmul.f32 0.5, %v6050_v5 }
0x27b7   :  { %v6052_v14 = vsub.f32 1.5, %v6051_v34 }
0x27b9   :  { %v6053_v53 = vmul.f32 %v6720_v39, %v6052_v14 }
0x27bb   :  { %v6057_v12 = vsel %vm6056_vm6, %v6720_v39, %v6053_v53 }
0x27bc   :  { %v6068_v63 = vmul.f32 %v6057_v12, %v6034_v0 }
0x27db   :  { %v6043_v35 = vpop.xlane.xlu2 %6042 }
0x27dc   :  { %v6045_v19 = vmul.f32 %v6043_v35, %v7416_v29  ;;  %v6730_v29 = vld [vmem:[#allocation7] sm:$0xff] }
0x27dd   :  { %v6070_v60 = vperm.slane %v6730_v29, 4  ;;  %v6073_v50 = vperm.slane %v6730_v29, 5  ;;  %v6081_v45 = vperm.slane %v6730_v29, 6  ;;  %v6087_v51 = vperm.slane %v6730_v29, 7 }
0x27de   :  { %v6047_v62 = vadd.f32 1e-05, %v6045_v19 }
0x27df   :  { %v6071_v56 = vmul.f32 %v6070_v60, %v6068_v63 }
0x27e0   :  { %6721 = vrsqrt.f32 %v6047_v62  ;;  %vm6064_vm8 = vweird.f32 %v6047_v62 }
0x27e1   :  { %v6074_v22 = vadd.f32 %v6073_v50, %v6071_v56 }
0x27e6   :  { %v6722_v7 = vpop.eup %6721 }
0x27e7   :  { %v6059_v43 = vmul.f32 %v6722_v7, %v6047_v62  ;;  %vm6065_vm7 = vweird.f32 %v6722_v7 }
0x27e8   :  { %vm6066_vm9 = vmor %vm6064_vm8, %vm6065_vm7 }
0x27e9   :  { %v6060_v31 = vmul.f32 %v6722_v7, %v6059_v43 }
0x27eb   :  { %v6061_v23 = vmul.f32 0.5, %v6060_v31 }
0x27ed   :  { %v6062_v41 = vsub.f32 1.5, %v6061_v23 }
0x27ef   :  { %v6063_v20 = vmul.f32 %v6722_v7, %v6062_v41 }
0x27f1   :  { %v6067_v38 = vsel %vm6066_vm9, %v6722_v7, %v6063_v20 }
0x27f2   :  { %v6069_v15 = vmul.f32 %v6067_v38, %v6035_v49 }
0x27f4   :  { %v6072_v18 = vmul.f32 %v6070_v60, %v6069_v15 }
0x27f6   :  { %v6075_v55 = vadd.f32 %v6073_v50, %v6072_v18 }
0x27f8   :  { %v6077_v33 = vrot.slane %v6075_v55, 7 }
0x27fa   :  { %v6080_v37 = vsel %vm6079_vm13, %v6074_v22, %v6077_v33 }
0x27fb   :  { %v6082_v16 = vmul.f32 %v6081_v45, %v6080_v37 }
0x27fd   :  { %v6084_v61 = vsel %vm6083_vm14, %v6082_v16, 0.0 }
0x27fe   :  { %6085 = vadd.xlane.f32.xlu1 %v6084_v61 }
0x2871   :  { %v6086_v24 = vpop.xlane.xlu1 %6085 }
0x2872   :  { %v6088_v2 = vadd.f32 %v6087_v51, %v6086_v24 }
0x2874   :  { %6090 = vst.msk [vmem:[%s8730_s15] sm:$0x3] %vm6089_vm5, %v6088_v2 }
0x2875   :  { %6095 = vsyncpa [#allocation3], 1 }
0x2876   :  { %6096 = vsyncpa [#allocation5], 1 }
0x2877   :  { %6097 = vsyncpa [#allocation8], 1 }
0x2878   :  { %6098 = vsyncpa [#allocation11], 1 }
0x2879   :  { %6099 = vsyncpa [#allocation14], 1 }
0x287a   :  { %6100 = vsyncpa [#allocation17], 1 }
0x287b   :  { %6101 = vsyncpa [#allocation20], 1 }

</bundles_post_ra>
